<compile_context>
chip_gen: v7x
topology: tpu7x:2x2x1
jax: 0.10.0
libtpu: 0.0.40
codegen_flags: <defaults>
</compile_context>

<pallas_src>
import jax
import jax.numpy as jnp
from jax.experimental import pallas as pl
from jax.experimental.pallas import tpu as pltpu

PATCH = 32          # EfficientNet total stride
C_FEAT = 1536       # efficientnet-b3 backbone._fc.in_features


def _round_up(x, m):
    return (x + m - 1) // m * m


# --------------------------------------------------------------- kernel 1: backbone + classifier
def _backbone_cls_kernel(p_ref, w_ref, wcls_ref, b_ref, o_ref):
    """Fused stand-in backbone (patch-embed matmul, bf16 in / f32 acc) + ReLU + 1x1 classifier.

    Single grid axis over M tiles; the backbone weight is resident in VMEM.
    p_ref    : (TM, K)       bf16 patch rows
    w_ref    : (K, C_FEAT)   bf16 backbone weight (resident, constant index_map)
    wcls_ref : (1, C_FEAT)   f32 classifier weight (lane-dense)
    b_ref    : (1, 1)        f32 classifier bias (SMEM)
    o_ref    : (1, TM)       f32 logits (lane-dense -> unmasked stores)
    """
    feat = jnp.dot(p_ref[...], w_ref[...], preferred_element_type=jnp.float32)   # (TM, C_FEAT)
    feat = jnp.maximum(feat, 0.0)                                                 # stand-in activation
    # N=1 classifier as VPU multiply + cross-lane reduce (keeps the MXU out of a width-1 matmul).
    logits = jnp.sum(feat * wcls_ref[...], axis=-1)                               # (TM,)
    o_ref[0, :] = logits + b_ref[0, 0]


def fused_backbone_classifier(x, w_bb, w_cls, b_cls):
    """Stand-in EfficientNet.extract_features + fused 1x1-conv classifier -> logits (B, Hf, Wf)."""
    B, C, H, W = x.shape
    Hf, Wf = H // PATCH, W // PATCH
    patches = x.reshape(B, C, Hf, PATCH, Wf, PATCH).transpose(0, 2, 4, 1, 3, 5)
    patches = patches.reshape(B * Hf * Wf, C * PATCH * PATCH).astype(jnp.bfloat16)
    M, K = patches.shape

    # M tiling: power-of-two aligned tiles (lane-dense (1, TM) output blocks).  Use TM=128 when it
    # yields >=2 tiles so both v7x TensorCores get work; a single full tile for tiny M.
    if M <= 128:
        TM = _round_up(M, 8)
    elif M <= 1024:
        TM = 128
    else:
        TM = 256
    M_pad = _round_up(M, TM)
    if M_pad != M:
        patches = jnp.pad(patches, ((0, M_pad - M), (0, 0)))

    w_bb_bf16 = w_bb.astype(jnp.bfloat16)                 # no-op if caller already passes bf16
    wcls_row = w_cls.reshape(1, C_FEAT).astype(jnp.float32)

    # VMEM budget: resident W (2 x K*1536*2B ~= 19 MiB at C=3) + 2 x (TM, K) bf16 patch buffers
    # + f32 (TM, C_FEAT) temporaries -> well under 48 MiB on every generation (v7x: 64 MiB phys).
    # TODO(synk): for very large input-channel counts the resident-weight assumption breaks and a
    #   K grid axis with an f32 accumulator would be needed again.
    out = pl.pallas_call(
        _backbone_cls_kernel,
        out_shape=jax.ShapeDtypeStruct((1, M_pad), jnp.float32),
        grid_spec=pltpu.PrefetchScalarGridSpec(
            num_scalar_prefetch=0,
            grid=(M_pad // TM,),
            in_specs=[
                pl.BlockSpec((TM, K), lambda i: (i, 0)),
                pl.BlockSpec((K, C_FEAT), lambda i: (0, 0)),
                pl.BlockSpec((1, C_FEAT), lambda i: (0, 0)),
                pl.BlockSpec(memory_space=pltpu.MemorySpace.SMEM),
            ],
            out_specs=pl.BlockSpec((1, TM), lambda i: (0, i))),
        compiler_params=pltpu.CompilerParams(
            dimension_semantics=("parallel",),
            vmem_limit_bytes=48 * 1024 * 1024),
    )(patches, w_bb_bf16, wcls_row, b_cls)

    return out[0, :M].reshape(B, Hf, Wf)


# --------------------------------------------------------------- kernel 2: bilinear x32 upsample
def _upsample_kernel(l_ref, awt_ref, ah_ref, o_ref):
    """Separable bilinear x32 upsample (align_corners=True) for one (batch, H-tile) block.

    l_ref   : (1, Hf, Wf)     bf16 logits for one batch element
    awt_ref : (Wf, Wout)      bf16 column-interpolation matrix (transposed)
    ah_ref  : (TH, Hf)        bf16 row-interpolation matrix tile
    o_ref   : (1, TH, Wout)   f32 output tile (lane-dense)
    """
    # Lane-dense (Hf, Wout) intermediate first, then expand rows.
    tmp = jnp.dot(l_ref[0], awt_ref[...], preferred_element_type=jnp.float32)     # (Hf, Wout)
    o_ref[0] = jnp.dot(ah_ref[...], tmp.astype(ah_ref.dtype),
                       preferred_element_type=jnp.float32)                        # (TH, Wout)


def _bilinear_matrix(n_in, n_out):
    """Row-stochastic interpolation matrix for align_corners=True bilinear upsampling."""
    if n_in == 1:
        return jnp.ones((n_out, 1), jnp.float32)
    # n_out = n_in * 32 here, so n_out > 1 and the division below is safe.
    pos = jnp.arange(n_out, dtype=jnp.float32) * (n_in - 1) / (n_out - 1)
    lo = jnp.clip(jnp.floor(pos).astype(jnp.int32), 0, n_in - 2)
    frac = pos - lo.astype(jnp.float32)
    A = jnp.zeros((n_out, n_in), jnp.float32)
    A = A.at[jnp.arange(n_out), lo].add(1.0 - frac)
    A = A.at[jnp.arange(n_out), lo + 1].add(frac)
    return A


def upsample_bilinear(logits, scale=PATCH):
    """Separable bilinear x`scale` upsample of (B, Hf, Wf) logits -> (B, 1, Hout, Wout)."""
    B, Hf, Wf = logits.shape
    Hout, Wout = Hf * scale, Wf * scale
    A_h = _bilinear_matrix(Hf, Hout).astype(jnp.bfloat16)        # (Hout, Hf)
    A_wT = _bilinear_matrix(Wf, Wout).T.astype(jnp.bfloat16)     # (Wf, Wout)
    l_bf16 = logits.astype(jnp.bfloat16)

    # Hout tiling: keeps the double-buffered f32 output block small and gives the megacore
    # parallel work even at B=1-2.  Hout is always a multiple of 32.
    if Hout <= 256:
        TH = Hout
    else:
        TH = next(c for c in (256, 128, 64, 32) if Hout % c == 0)

    out = pl.pallas_call(
        _upsample_kernel,
        out_shape=jax.ShapeDtypeStruct((B, Hout, Wout), jnp.float32),
        grid_spec=pltpu.PrefetchScalarGridSpec(
            num_scalar_prefetch=0,
            grid=(B, Hout // TH),
            in_specs=[
                pl.BlockSpec((1, Hf, Wf), lambda b, h: (b, 0, 0)),
                pl.BlockSpec((Wf, Wout), lambda b, h: (0, 0)),
                pl.BlockSpec((TH, Hf), lambda b, h: (h, 0)),
            ],
            out_specs=pl.BlockSpec((1, TH, Wout), lambda b, h: (b, h, 0))),
        compiler_params=pltpu.CompilerParams(
            dimension_semantics=("parallel", "parallel"),
            vmem_limit_bytes=32 * 1024 * 1024),
    )(l_bf16, A_wT, A_h)
    return out.reshape(B, 1, Hout, Wout)


def segmentation_forward(x, w_bb, w_cls, b_cls):
    logits = fused_backbone_classifier(x, w_bb, w_cls, b_cls)     # (B, Hf, Wf)
    return upsample_bilinear(logits, scale=PATCH)                 # (B, 1, H, W)


# --------------------------------------------------------------- pure-JAX reference
def _ref_forward(x, w_bb, w_cls, b_cls):
    B, C, H, W = x.shape
    Hf, Wf = H // PATCH, W // PATCH
    p = x.reshape(B, C, Hf, PATCH, Wf, PATCH).transpose(0, 2, 4, 1, 3, 5)
    p = p.reshape(B * Hf * Wf, C * PATCH * PATCH)
    feats = jnp.maximum(jnp.dot(p, w_bb, precision=jax.lax.Precision.HIGHEST), 0.0)
    logits = (jnp.dot(feats, w_cls, precision=jax.lax.Precision.HIGHEST)
              + b_cls[0, 0]).reshape(B, Hf, Wf)
    Hout, Wout = Hf * PATCH, Wf * PATCH
    yi = jnp.arange(Hout) * (Hf - 1) / (Hout - 1)
    xi = jnp.arange(Wout) * (Wf - 1) / (Wout - 1)
    y0 = jnp.clip(jnp.floor(yi).astype(jnp.int32), 0, Hf - 2)
    x0 = jnp.clip(jnp.floor(xi).astype(jnp.int32), 0, Wf - 2)
    wy, wx = yi - y0, xi - x0
    g = logits
    top = g[:, y0][:, :, x0] * (1 - wx) + g[:, y0][:, :, x0 + 1] * wx
    bot = g[:, y0 + 1][:, :, x0] * (1 - wx) + g[:, y0 + 1][:, :, x0 + 1] * wx
    out = top * (1 - wy)[None, :, None] + bot * wy[None, :, None]
    return out[:, None]


# --------------------------------------------------------------- main
if __name__ == "__main__":
    key = jax.random.PRNGKey(0)
    k_x, k_bb, k_w, k_b = jax.random.split(key, 4)

    B, Cin, H, W = 2, 3, 64, 64        # spatial must be a multiple of 32 (backbone stride)
    x = jax.random.normal(k_x, (B, Cin, H, W), jnp.float32)

    # Deterministic synthetic parameters (shapes implied by the module __init__).
    w_bb = jax.random.normal(k_bb, (Cin * PATCH * PATCH, C_FEAT), jnp.float32) * 0.02
    w_cls = jax.random.normal(k_w, (C_FEAT, 1), jnp.float32) * 0.02              # Conv2d(1536,1,1)
    b_cls = jax.random.normal(k_b, (1, 1), jnp.float32)

    # Hoisted one-time weight cast (avoids a per-forward f32->bf16 convert + HBM copy).
    w_bb_bf16 = jax.block_until_ready(w_bb.astype(jnp.bfloat16))

    out = segmentation_forward(x, w_bb_bf16, w_cls, b_cls)
    out = jax.block_until_ready(out)
    assert out.shape == (B, 1, H, W), out.shape

    ref = jax.block_until_ready(_ref_forward(x, w_bb, w_cls, b_cls))
    max_err = float(jnp.max(jnp.abs(out - ref)))
    assert jnp.allclose(out, ref, atol=5e-2, rtol=5e-2), max_err

    print("KERNEL_OK")
</pallas_src>

<mosaic_0001>
module attributes {stable_mosaic.version = 11 : i64} {
  func.func @_backbone_cls_kernel(%arg0: i32, %arg1: memref<8x3072xbf16, #tpu.memory_space<vmem>>, %arg2: memref<3072x1536xbf16, #tpu.memory_space<vmem>>, %arg3: memref<1x1536xf32, #tpu.memory_space<vmem>>, %arg4: memref<1x1xf32, #tpu.memory_space<smem>>, %arg5: memref<1x8xf32, #tpu.memory_space<vmem>>) attributes {dimension_semantics = [#tpu.dimension_semantics<parallel>], iteration_bounds = array<i64: 1>, scalar_prefetch = 0 : i64, scratch_operands = 0 : i64, tpu.core_type = #tpu.core_type<tc>, window_params = [{transform_indices = @transform_0, window_bounds = array<i64: 8, 3072>}, {pipeline_mode = #tpu.pipeline_mode<synchronous>, transform_indices = @transform_1, window_bounds = array<i64: 3072, 1536>}, {pipeline_mode = #tpu.pipeline_mode<synchronous>, transform_indices = @transform_2, window_bounds = array<i64: 1, 1536>}, {transform_indices = @transform_3, window_bounds = array<i64: 1, 1>}, {transform_indices = @transform_4, window_bounds = array<i64: 1, 8>}]} {
    %c0 = arith.constant 0 : index
    %c0_0 = arith.constant 0 : index
    %0 = vector.load %arg1[%c0, %c0_0] : memref<8x3072xbf16, #tpu.memory_space<vmem>>, vector<8x3072xbf16>
    %c0_1 = arith.constant 0 : index
    %c0_2 = arith.constant 0 : index
    %1 = vector.load %arg2[%c0_1, %c0_2] : memref<3072x1536xbf16, #tpu.memory_space<vmem>>, vector<3072x1536xbf16>
    %cst = arith.constant dense<0.000000e+00> : vector<8x1536xf32>
    %2 = tpu.matmul %0, %1, %cst {dimension_numbers = #tpu.dot_dimension_numbers<[1], [0], [0], [1], [0, 0, 1, 1], [], []>} : vector<8x3072xbf16>, vector<3072x1536xbf16>, vector<8x1536xf32> -> vector<8x1536xf32>
    %cst_3 = arith.constant 0.000000e+00 : f32
    %3 = vector.broadcast %cst_3 : f32 to vector<8x1536xf32>
    %4 = arith.maximumf %2, %3 : vector<8x1536xf32>
    %c0_4 = arith.constant 0 : index
    %c0_5 = arith.constant 0 : index
    %5 = vector.load %arg3[%c0_4, %c0_5] : memref<1x1536xf32, #tpu.memory_space<vmem>>, vector<1x1536xf32>
    %6 = vector.broadcast %5 : vector<1x1536xf32> to vector<8x1536xf32>
    %7 = arith.mulf %4, %6 : vector<8x1536xf32>
    %cst_6 = arith.constant dense<0.000000e+00> : vector<8xf32>
    %8 = vector.multi_reduction <add>, %7, %cst_6 [1] : vector<8x1536xf32> to vector<8xf32>
    %c0_7 = arith.constant 0 : index
    %c0_8 = arith.constant 0 : index
    %9 = memref.load %arg4[%c0_7, %c0_8] : memref<1x1xf32, #tpu.memory_space<smem>>
    %10 = vector.broadcast %9 : f32 to vector<8xf32>
    %11 = arith.addf %8, %10 : vector<8xf32>
    %c0_9 = arith.constant 0 : index
    %c0_10 = arith.constant 0 : index
    %12 = vector.load %arg5[%c0_9, %c0_10] : memref<1x8xf32, #tpu.memory_space<vmem>>, vector<1x8xf32>
    %13 = vector.shape_cast %12 : vector<1x8xf32> to vector<8xf32>
    %14 = vector.shape_cast %11 : vector<8xf32> to vector<1x8xf32>
    tpu.vector_store %arg5[%c0_9, %c0_10], %14 {strides = array<i32>} : memref<1x8xf32, #tpu.memory_space<vmem>>, vector<1x8xf32>,
    return
  }
  func.func @transform_0(%arg0: i32) -> (i32, i32) {
    %c0_i32 = arith.constant 0 : i32
    %c0_i32_0 = arith.constant 0 : i32
    return %arg0, %c0_i32 : i32, i32
  }
  func.func @transform_1(%arg0: i32) -> (i32, i32) {
    %c0_i32 = arith.constant 0 : i32
    %c0_i32_0 = arith.constant 0 : i32
    %c0_i32_1 = arith.constant 0 : i32
    return %c0_i32, %c0_i32_0 : i32, i32
  }
  func.func @transform_2(%arg0: i32) -> (i32, i32) {
    %c0_i32 = arith.constant 0 : i32
    %c0_i32_0 = arith.constant 0 : i32
    %c0_i32_1 = arith.constant 0 : i32
    return %c0_i32, %c0_i32_0 : i32, i32
  }
  func.func @transform_3(%arg0: i32) -> (i32, i32) {
    %c0_i32 = arith.constant 0 : i32
    %c0_i32_0 = arith.constant 0 : i32
    %c0_i32_1 = arith.constant 0 : i32
    return %c0_i32, %c0_i32_0 : i32, i32
  }
  func.func @transform_4(%arg0: i32) -> (i32, i32) {
    %c0_i32 = arith.constant 0 : i32
    %c0_i32_0 = arith.constant 0 : i32
    return %c0_i32, %arg0 : i32, i32
  }
}

</mosaic_0001>

<bundles_post_ra>
// kernel: tpu_custom_call.1
= control target key start
LH: loop header
LB: loop body
LE: loop exit
PB: predicated region body
PF: predicated region fallthrough
CT: control target
= control target key end

     0   :  { %10 = vsyncpa [#allocation4], 0  ;;  %s23606_s0 = inlined_call_operand.hbm [shape: bf16[8,3072], index: 0, kind: input, shape index: {}]   ;;  %s23607_s1 = inlined_call_operand.hbm [shape: bf16[3072,1536], index: 1, kind: input, shape index: {}]   ;;  %s23608_s2 = inlined_call_operand.hbm [shape: f32[1,1536], index: 2, kind: input, shape index: {}]   ;;  %s23609_s3 = inlined_call_operand.<no memory space> [shape: f32[1,1], index: 3, kind: input, shape index: {}]   ;;  %s23610_s4 = inlined_call_operand.hbm [shape: f32[1,8], index: 4, kind: output, shape index: {}]  }
   0x1   :  { %11 = vsyncpa [#allocation7], 0 }
   0x2   :  { %12 = vsyncpa [#allocation5], 0  ;;  %s23231_s15 = smov [#allocation6]   ;;  %s23137_s19 = scalar_lea.hbm %s23607_s1, 294912 }
   0x3   :  { %s28_s16 = sshll.u32 %s23231_s15, 4  ;;  %p23138_p0 = scmp.ne.s32.totalorder %s23607_s1, %s23137_s19  ;;  %s29_s16 = int_to_ptr.vmem [resolvable:$true] %s28_s16 }
   0x4   :  { %p23141_p1 = scmp.lt.u32.totalorder %s23137_s19, %s23607_s1 }
   0x6   :  { %p23143_p2 = pnand %p23141_p1, %p23138_p0 }
   0x8   :  { %23146 = shalt.err (!%p23143_p2)
}
   0x9   :  { %s23147_s24 = scalar_lea.vmem %s29_s16, 294912  ;;  %p23152_p4 = scmp.lt.s32.totalorder %s29_s16, %s29_s16 }
   0xa   :  { %p23148_p3 = scmp.ne.s32.totalorder %s29_s16, %s23147_s24  ;;  %p23153_p5 = scmp.lt.s32.totalorder %s23147_s24, %s23147_s24 }
   0xc   :  { %p23154_p6 = por %p23153_p5, %p23152_p4 }
   0xe   :  { %p23155_p7 = pnand %p23154_p6, %p23148_p3 }
  0x10   :  { %23158 = shalt.err (!%p23155_p7)
}
  0x11   :  { %s23232_s25 = smov 768   ;;  %s23233_s26 = smov 48  }
  0x12   :  { %34 = dma.hbm_to_vmem [thread:$0]  %s23607_s1, 294912, %s29_s16, [#allocation7], %s23232_s25, %s23232_s25, %s23233_s26  }
  0x13   :  { %s23234_s29 = smov [#allocation3]   ;;  %s23235_s5 = smov [#allocation8]  }
  0x14   :  { %s19_s30 = sshll.u32 %s23234_s29, 4  ;;  %s41_s6 = sshll.u32 %s23235_s5, 4  ;;  %s20_s30 = int_to_ptr.vmem [resolvable:$true] %s19_s30  ;;  %s42_s6 = int_to_ptr.vmem [resolvable:$true] %s41_s6 }
  0x15   :  { %s23159_s9 = scalar_lea.hbm %s23606_s0, 1536 }
  0x16   :  { %p23160_p8 = scmp.ne.s32.totalorder %s23606_s0, %s23159_s9  ;;  %p23163_p9 = scmp.lt.u32.totalorder %s23159_s9, %s23606_s0 }
  0x18   :  { %p23165_p10 = pnand %p23163_p9, %p23160_p8 }
  0x1a   :  { %23168 = shalt.err (!%p23165_p10)
}
  0x1b   :  { %s23169_s1 = scalar_lea.vmem %s20_s30, 1536  ;;  %p23174_p12 = scmp.lt.s32.totalorder %s20_s30, %s20_s30 }
  0x1c   :  { %p23170_p11 = scmp.ne.s32.totalorder %s20_s30, %s23169_s1  ;;  %p23175_p13 = scmp.lt.s32.totalorder %s23169_s1, %s23169_s1 }
  0x1e   :  { %p23176_p0 = por %p23175_p13, %p23174_p12 }
  0x20   :  { %p23177_p1 = pnand %p23176_p0, %p23170_p11 }
  0x22   :  { %23180 = shalt.err (!%p23177_p1)
}
  0x23   :  { %22 = dma.hbm_to_vmem [thread:$0]  %s23606_s0, 1536, %s20_s30, [#allocation4]  }
  0x24   :  { %s23181_s18 = scalar_lea.hbm %s23608_s2, 192 }
  0x25   :  { %p23182_p2 = scmp.ne.s32.totalorder %s23608_s2, %s23181_s18  ;;  %p23185_p3 = scmp.lt.u32.totalorder %s23181_s18, %s23608_s2 }
  0x27   :  { %p23187_p4 = pnand %p23185_p3, %p23182_p2 }
  0x29   :  { %23190 = shalt.err (!%p23187_p4)
}
  0x2a   :  { %s23191_s23 = scalar_lea.vmem %s42_s6, 192  ;;  %p23196_p6 = scmp.lt.s32.totalorder %s42_s6, %s42_s6 }
  0x2b   :  { %p23192_p5 = scmp.ne.s32.totalorder %s42_s6, %s23191_s23  ;;  %p23197_p7 = scmp.lt.s32.totalorder %s23191_s23, %s23191_s23 }
  0x2d   :  { %p23198_p8 = por %p23197_p7, %p23196_p6 }
  0x2f   :  { %p23199_p9 = pnand %p23198_p8, %p23192_p5 }
  0x31   :  { %23202 = shalt.err (!%p23199_p9)
}
  0x32   :  { %44 = dma.hbm_to_vmem [thread:$0]  %s23608_s2, 192, %s42_s6, [#allocation7]  }
  0x33   :  { %23225 = dma.done.wait [#allocation4], 1536  }
  0x34   :  { %23226 = vsyncadd [#allocation4], 4294965760 }
  0x35   :  { %23227 = dma.done.wait [#allocation7], 295104  }
  0x36   :  { %23228 = vsyncadd [#allocation7], 4294672192  ;;  %v19656_v0 = vld [vmem:[#allocation6 + $0x4] ss:$48 sps:$4 sm:$0xff]   ;;  %v19658_v1 = vld [vmem:[#allocation6 + $0xc] ss:$48 sps:$4 sm:$0xff]  }
  0x37   :  { %13976 = vmatprep.subr.bf16.mxu0 %v19656_v0  ;;  %v19660_v2 = vld [vmem:[#allocation6] ss:$48 sps:$4 sm:$0xff]   ;;  %v19661_v3 = vld [vmem:[#allocation6 + $0x8] ss:$48 sps:$4 sm:$0xff]   ;;  %14468 = vmatprep.subr.bf16.mxu1 %v19658_v1  ;;  %v19662_v4 = vld [vmem:[#allocation6 + $0x64] ss:$48 sps:$4 sm:$0xff]  }
  0x38   :  { %13977 = vmatpush1.bf16.msra.mxu0 %v19660_v2  ;;  %14469 = vmatpush1.bf16.msra.mxu1 %v19661_v3  ;;  %v19664_v5 = vld [vmem:[#allocation6 + $0x6c] ss:$48 sps:$4 sm:$0xff]   ;;  %v19666_v6 = vld [vmem:[#allocation6 + $0x60] ss:$48 sps:$4 sm:$0xff]   ;;  %v19667_v7 = vld [vmem:[#allocation6 + $0x68] ss:$48 sps:$4 sm:$0xff]  }
  0x39   :  { %13978 = vmatprep.subr.bf16.mxu0 %v19662_v4  ;;  %14470 = vmatprep.subr.bf16.mxu1 %v19664_v5  ;;  %v19668_v8 = vld [vmem:[#allocation6 + $0xc4] ss:$48 sps:$4 sm:$0xff]   ;;  %v19670_v9 = vld [vmem:[#allocation6 + $0xcc] ss:$48 sps:$4 sm:$0xff]   ;;  %v19672_v10 = vld [vmem:[#allocation6 + $0xc0] ss:$48 sps:$4 sm:$0xff]  }
  0x3a   :  { %v19673_v11 = vld [vmem:[#allocation6 + $0xc8] ss:$48 sps:$4 sm:$0xff]   ;;  %v19674_v12 = vld [vmem:[#allocation6 + $0x124] ss:$48 sps:$4 sm:$0xff]   ;;  %v19676_v13 = vld [vmem:[#allocation6 + $0x12c] ss:$48 sps:$4 sm:$0xff]  }
  0x3b   :  { %v19678_v14 = vld [vmem:[#allocation6 + $0x120] ss:$48 sps:$4 sm:$0xff]   ;;  %v19679_v15 = vld [vmem:[#allocation6 + $0x128] ss:$48 sps:$4 sm:$0xff]   ;;  %v19680_v16 = vld [vmem:[#allocation6 + $0x184] ss:$48 sps:$4 sm:$0xff]  }
  0x3c   :  { %13979 = vmatpush1.bf16.msra.mxu0 %v19666_v6  ;;  %14471 = vmatpush1.bf16.msra.mxu1 %v19667_v7  ;;  %v19682_v17 = vld [vmem:[#allocation6 + $0x18c] ss:$48 sps:$4 sm:$0xff]   ;;  %v19684_v18 = vld [vmem:[#allocation6 + $0x180] ss:$48 sps:$4 sm:$0xff]   ;;  %v19685_v19 = vld [vmem:[#allocation6 + $0x188] ss:$48 sps:$4 sm:$0xff]  }
  0x3d   :  { %13980 = vmatprep.subr.bf16.mxu0 %v19668_v8  ;;  %14472 = vmatprep.subr.bf16.mxu1 %v19670_v9  ;;  %v19686_v20 = vld [vmem:[#allocation6 + $0x1e4] ss:$48 sps:$4 sm:$0xff]   ;;  %v19688_v21 = vld [vmem:[#allocation6 + $0x1ec] ss:$48 sps:$4 sm:$0xff]   ;;  %v19690_v22 = vld [vmem:[#allocation6 + $0x1e0] ss:$48 sps:$4 sm:$0xff]  }
  0x3e   :  { %v19691_v23 = vld [vmem:[#allocation6 + $0x1e8] ss:$48 sps:$4 sm:$0xff]   ;;  %v19692_v24 = vld [vmem:[#allocation6 + $0x244] ss:$48 sps:$4 sm:$0xff]   ;;  %v19694_v25 = vld [vmem:[#allocation6 + $0x24c] ss:$48 sps:$4 sm:$0xff]  }
  0x3f   :  { %v19696_v26 = vld [vmem:[#allocation6 + $0x240] ss:$48 sps:$4 sm:$0xff]   ;;  %v19697_v27 = vld [vmem:[#allocation6 + $0x248] ss:$48 sps:$4 sm:$0xff]   ;;  %v19698_v28 = vld [vmem:[#allocation6 + $0x2a4] ss:$48 sps:$4 sm:$0xff]  }
  0x40   :  { %13981 = vmatpush1.bf16.msra.mxu0 %v19672_v10  ;;  %14473 = vmatpush1.bf16.msra.mxu1 %v19673_v11  ;;  %v19700_v29 = vld [vmem:[#allocation6 + $0x2ac] ss:$48 sps:$4 sm:$0xff]   ;;  %v19702_v30 = vld [vmem:[#allocation6 + $0x2a0] ss:$48 sps:$4 sm:$0xff]   ;;  %v19703_v31 = vld [vmem:[#allocation6 + $0x2a8] ss:$48 sps:$4 sm:$0xff]  }
  0x41   :  { %13982 = vmatprep.subr.bf16.mxu0 %v19674_v12  ;;  %14474 = vmatprep.subr.bf16.mxu1 %v19676_v13  ;;  %v19704_v32 = vld [vmem:[#allocation6 + $0x304] ss:$48 sps:$4 sm:$0xff]   ;;  %v19706_v33 = vld [vmem:[#allocation6 + $0x30c] ss:$48 sps:$4 sm:$0xff]   ;;  %v19708_v34 = vld [vmem:[#allocation6 + $0x300] ss:$48 sps:$4 sm:$0xff]  }
  0x42   :  { %v19709_v35 = vld [vmem:[#allocation6 + $0x308] ss:$48 sps:$4 sm:$0xff]   ;;  %v19710_v36 = vld [vmem:[#allocation6 + $0x364] ss:$48 sps:$4 sm:$0xff]   ;;  %v19712_v37 = vld [vmem:[#allocation6 + $0x36c] ss:$48 sps:$4 sm:$0xff]  }
  0x43   :  { %v19714_v38 = vld [vmem:[#allocation6 + $0x360] ss:$48 sps:$4 sm:$0xff]   ;;  %v19715_v39 = vld [vmem:[#allocation6 + $0x368] ss:$48 sps:$4 sm:$0xff]   ;;  %v19716_v40 = vld [vmem:[#allocation6 + $0x3c4] ss:$48 sps:$4 sm:$0xff]  }
  0x44   :  { %13983 = vmatpush1.bf16.msra.mxu0 %v19678_v14  ;;  %14475 = vmatpush1.bf16.msra.mxu1 %v19679_v15  ;;  %v19718_v41 = vld [vmem:[#allocation6 + $0x3cc] ss:$48 sps:$4 sm:$0xff]   ;;  %v19720_v42 = vld [vmem:[#allocation6 + $0x3c0] ss:$48 sps:$4 sm:$0xff]   ;;  %v19721_v43 = vld [vmem:[#allocation6 + $0x3c8] ss:$48 sps:$4 sm:$0xff]  }
  0x45   :  { %13984 = vmatprep.subr.bf16.mxu0 %v19680_v16  ;;  %14476 = vmatprep.subr.bf16.mxu1 %v19682_v17  ;;  %v19722_v44 = vld [vmem:[#allocation6 + $0x424] ss:$48 sps:$4 sm:$0xff]   ;;  %v19724_v45 = vld [vmem:[#allocation6 + $0x42c] ss:$48 sps:$4 sm:$0xff]   ;;  %v19726_v47 = vld [vmem:[#allocation6 + $0x420] ss:$48 sps:$4 sm:$0xff]  }
  0x46   :  { %v56_v46 = vld [vmem:[#allocation3] sm:$0xff]  ;;  %v19727_v49 = vld [vmem:[#allocation6 + $0x428] ss:$48 sps:$4 sm:$0xff]   ;;  %v19730_v51 = vld [vmem:[#allocation6 + $0x48c] ss:$48 sps:$4 sm:$0xff]   ;;  %s23236_s26 = smov [#allocation9]  }
  0x47   :  { %v23298_v48 = vcombine.high %v56_v46, %v56_v46  ;;  %v19728_v50 = vld [vmem:[#allocation6 + $0x484] ss:$48 sps:$4 sm:$0xff]   ;;  %v19732_v52 = vld [vmem:[#allocation6 + $0x480] ss:$48 sps:$4 sm:$0xff]   ;;  %v19733_v53 = vld [vmem:[#allocation6 + $0x488] ss:$48 sps:$4 sm:$0xff]   ;;  %v23302_v5 = vcombine.low %v56_v46, %v56_v46 }
  0x48   :  { %13985 = vmatpush1.bf16.msra.mxu0 %v19684_v18  ;;  %14477 = vmatpush1.bf16.msra.mxu1 %v19685_v19  ;;  %v19734_v54 = vld [vmem:[#allocation6 + $0x4e4] ss:$48 sps:$4 sm:$0xff]   ;;  %v19736_v55 = vld [vmem:[#allocation6 + $0x4ec] ss:$48 sps:$4 sm:$0xff]   ;;  %v19738_v56 = vld [vmem:[#allocation6 + $0x4e0] ss:$48 sps:$4 sm:$0xff]  }
  0x49   :  { %13986 = vmatprep.subr.bf16.mxu0 %v19686_v20  ;;  %14478 = vmatprep.subr.bf16.mxu1 %v19688_v21  ;;  %v19739_v57 = vld [vmem:[#allocation6 + $0x4e8] ss:$48 sps:$4 sm:$0xff]   ;;  %v19740_v58 = vld [vmem:[#allocation6 + $0x544] ss:$48 sps:$4 sm:$0xff]   ;;  %v19742_v59 = vld [vmem:[#allocation6 + $0x54c] ss:$48 sps:$4 sm:$0xff]  }
  0x4a   :  { %14008 = vmatprep.mubr.bf16.mxu0 %v23298_v48  ;;  %14500 = vmatprep.mubr.bf16.mxu1 %v23298_v48  ;;  %v19744_v60 = vld [vmem:[#allocation6 + $0x540] ss:$48 sps:$4 sm:$0xff]   ;;  %v19745_v61 = vld [vmem:[#allocation6 + $0x548] ss:$48 sps:$4 sm:$0xff]   ;;  %v19746_v62 = vld [vmem:[#allocation6 + $0x5a4] ss:$48 sps:$4 sm:$0xff]  }
  0x4b   :  { %v19748_v63 = vld [vmem:[#allocation6 + $0x5ac] ss:$48 sps:$4 sm:$0xff]   ;;  %v19750_v0 = vld [vmem:[#allocation6 + $0x5a0] ss:$48 sps:$4 sm:$0xff]   ;;  %v19751_v1 = vld [vmem:[#allocation6 + $0x5a8] ss:$48 sps:$4 sm:$0xff]  }
  0x4c   :  { %13987 = vmatpush1.bf16.msra.mxu0 %v19690_v22  ;;  %14479 = vmatpush1.bf16.msra.mxu1 %v19691_v23  ;;  %v19755_v2 = vld [vmem:[#allocation6 + $0x604] ss:$48 sps:$4 sm:$0xff]   ;;  %v19758_v3 = vld [vmem:[#allocation6 + $0x60c] ss:$48 sps:$4 sm:$0xff]   ;;  %v19753_v4 = vld [vmem:[#allocation6 + $0x600] ss:$48 sps:$4 sm:$0xff]  }
  0x4d   :  { %13988 = vmatprep.subr.bf16.mxu0 %v19692_v24  ;;  %14480 = vmatprep.subr.bf16.mxu1 %v19694_v25  ;;  %v19756_v6 = vld [vmem:[#allocation6 + $0x608] ss:$48 sps:$4 sm:$0xff]   ;;  %v19762_v7 = vld [vmem:[#allocation6 + $0x664] ss:$48 sps:$4 sm:$0xff]   ;;  %v19765_v8 = vld [vmem:[#allocation6 + $0x66c] ss:$48 sps:$4 sm:$0xff]  }
  0x4e   :  { %v19760_v9 = vld [vmem:[#allocation6 + $0x660] ss:$48 sps:$4 sm:$0xff]   ;;  %v19763_v10 = vld [vmem:[#allocation6 + $0x668] ss:$48 sps:$4 sm:$0xff]   ;;  %v19768_v11 = vld [vmem:[#allocation6 + $0x6c4] ss:$48 sps:$4 sm:$0xff]  }
  0x4f   :  { %v19771_v12 = vld [vmem:[#allocation6 + $0x6cc] ss:$48 sps:$4 sm:$0xff]   ;;  %v19766_v13 = vld [vmem:[#allocation6 + $0x6c0] ss:$48 sps:$4 sm:$0xff]   ;;  %v19769_v14 = vld [vmem:[#allocation6 + $0x6c8] ss:$48 sps:$4 sm:$0xff]  }
  0x50   :  { %13989 = vmatpush1.bf16.msra.mxu0 %v19696_v26  ;;  %14481 = vmatpush1.bf16.msra.mxu1 %v19697_v27  ;;  %v19774_v15 = vld [vmem:[#allocation6 + $0x724] ss:$48 sps:$4 sm:$0xff]   ;;  %v19777_v16 = vld [vmem:[#allocation6 + $0x72c] ss:$48 sps:$4 sm:$0xff]   ;;  %v19772_v17 = vld [vmem:[#allocation6 + $0x720] ss:$48 sps:$4 sm:$0xff]  }
  0x51   :  { %13990 = vmatprep.subr.bf16.mxu0 %v19698_v28  ;;  %14482 = vmatprep.subr.bf16.mxu1 %v19700_v29  ;;  %v19775_v18 = vld [vmem:[#allocation6 + $0x728] ss:$48 sps:$4 sm:$0xff]   ;;  %v19780_v19 = vld [vmem:[#allocation6 + $0x784] ss:$48 sps:$4 sm:$0xff]   ;;  %v19783_v20 = vld [vmem:[#allocation6 + $0x78c] ss:$48 sps:$4 sm:$0xff]  }
  0x52   :  { %v19778_v21 = vld [vmem:[#allocation6 + $0x780] ss:$48 sps:$4 sm:$0xff]   ;;  %v19781_v22 = vld [vmem:[#allocation6 + $0x788] ss:$48 sps:$4 sm:$0xff]   ;;  %v19786_v23 = vld [vmem:[#allocation6 + $0x7e4] ss:$48 sps:$4 sm:$0xff]  }
  0x53   :  { %v19789_v24 = vld [vmem:[#allocation6 + $0x7ec] ss:$48 sps:$4 sm:$0xff]   ;;  %v19784_v25 = vld [vmem:[#allocation6 + $0x7e0] ss:$48 sps:$4 sm:$0xff]   ;;  %v19787_v26 = vld [vmem:[#allocation6 + $0x7e8] ss:$48 sps:$4 sm:$0xff]  }
  0x54   :  { %13991 = vmatpush1.bf16.msra.mxu0 %v19702_v30  ;;  %14483 = vmatpush1.bf16.msra.mxu1 %v19703_v31  ;;  %v19792_v27 = vld [vmem:[#allocation6 + $0x844] ss:$48 sps:$4 sm:$0xff]   ;;  %v19795_v28 = vld [vmem:[#allocation6 + $0x84c] ss:$48 sps:$4 sm:$0xff]   ;;  %v19790_v31 = vld [vmem:[#allocation6 + $0x840] ss:$48 sps:$4 sm:$0xff]  }
  0x55   :  { %13992 = vmatprep.subr.bf16.mxu0 %v19704_v32  ;;  %14484 = vmatprep.subr.bf16.mxu1 %v19706_v33  ;;  %v23306_v29 = vld [vmem:[#allocation3 + $0x8] sm:$0xff]  ;;  %v19798_v33 = vld [vmem:[#allocation6 + $0x8a4] ss:$48 sps:$4 sm:$0xff]   ;;  %s17048_s27 = sshll.u32 %s23236_s26, 4  ;;  %vm17040_vm0 = vcmask 57344   ;;  %s17049_s27 = int_to_ptr.vmem [resolvable:$true] %s17048_s27 }
  0x56   :  { %v23310_v30 = vcombine.high %v23306_v29, %v23306_v29  ;;  %v19793_v32 = vld [vmem:[#allocation6 + $0x848] ss:$48 sps:$4 sm:$0xff]   ;;  %v19819_v46 = vld [vmem:[#allocation6 + $0x9cc] ss:$48 sps:$4 sm:$0xff]   ;;  %s23203_s28 = scalar_lea.vmem %s17049_s27, 16  ;;  %s23207_s29 = scalar_lea.vmem %s17049_s27, 32 }
  0x57   :  { %p23204_p10 = scmp.ne.s32.totalorder %s17049_s27, %s23203_s28  ;;  %p23208_p11 = scmp.lt.s32.totalorder %s17049_s27, %s17049_s27 }
  0x58   :  { %13993 = vmatpush1.bf16.msra.mxu0 %v19708_v34  ;;  %14485 = vmatpush1.bf16.msra.mxu1 %v19709_v35  ;;  %v19801_v34 = vld [vmem:[#allocation6 + $0x8ac] ss:$48 sps:$4 sm:$0xff]   ;;  %v19796_v35 = vld [vmem:[#allocation6 + $0x8a0] ss:$48 sps:$4 sm:$0xff]   ;;  %p23209_p12 = scmp.lt.s32.totalorder %s23207_s29, %s23203_s28 }
  0x59   :  { %13994 = vmatprep.subr.bf16.mxu0 %v19710_v36  ;;  %14486 = vmatprep.subr.bf16.mxu1 %v19712_v37  ;;  %v19799_v36 = vld [vmem:[#allocation6 + $0x8a8] ss:$48 sps:$4 sm:$0xff]   ;;  %v19804_v37 = vld [vmem:[#allocation6 + $0x904] ss:$48 sps:$4 sm:$0xff]  }
  0x5a   :  { %p23210_p13 = por %p23209_p12, %p23208_p11 }
  0x5c   :  { %13995 = vmatpush1.bf16.msra.mxu0 %v19714_v38  ;;  %14487 = vmatpush1.bf16.msra.mxu1 %v19715_v39  ;;  %v19807_v38 = vld [vmem:[#allocation6 + $0x90c] ss:$48 sps:$4 sm:$0xff]   ;;  %v19802_v39 = vld [vmem:[#allocation6 + $0x900] ss:$48 sps:$4 sm:$0xff]   ;;  %p23211_p0 = pnand %p23210_p13, %p23204_p10 }
  0x5d   :  { %13996 = vmatprep.subr.bf16.mxu0 %v19716_v40  ;;  %14488 = vmatprep.subr.bf16.mxu1 %v19718_v41  ;;  %v19805_v40 = vld [vmem:[#allocation6 + $0x908] ss:$48 sps:$4 sm:$0xff]   ;;  %v19810_v41 = vld [vmem:[#allocation6 + $0x964] ss:$48 sps:$4 sm:$0xff]  }
  0x60   :  { %13997 = vmatpush1.bf16.msra.mxu0 %v19720_v42  ;;  %14489 = vmatpush1.bf16.msra.mxu1 %v19721_v43  ;;  %v19813_v42 = vld [vmem:[#allocation6 + $0x96c] ss:$48 sps:$4 sm:$0xff]   ;;  %v19808_v43 = vld [vmem:[#allocation6 + $0x960] ss:$48 sps:$4 sm:$0xff]  }
  0x61   :  { %13998 = vmatprep.subr.bf16.mxu0 %v19722_v44  ;;  %14490 = vmatprep.subr.bf16.mxu1 %v19724_v45  ;;  %v19811_v44 = vld [vmem:[#allocation6 + $0x968] ss:$48 sps:$4 sm:$0xff]   ;;  %v19816_v45 = vld [vmem:[#allocation6 + $0x9c4] ss:$48 sps:$4 sm:$0xff]  }
  0x64   :  { %13999 = vmatpush1.bf16.msra.mxu0 %v19726_v47  ;;  %14491 = vmatpush1.bf16.msra.mxu1 %v19727_v49  ;;  %v19814_v47 = vld [vmem:[#allocation6 + $0x9c0] ss:$48 sps:$4 sm:$0xff]   ;;  %v19817_v49 = vld [vmem:[#allocation6 + $0x9c8] ss:$48 sps:$4 sm:$0xff]  }
  0x65   :  { %14000 = vmatprep.subr.bf16.mxu0 %v19728_v50  ;;  %14492 = vmatprep.subr.bf16.mxu1 %v19730_v51  ;;  %v19822_v50 = vld [vmem:[#allocation6 + $0xa24] ss:$48 sps:$4 sm:$0xff]   ;;  %v19825_v51 = vld [vmem:[#allocation6 + $0xa2c] ss:$48 sps:$4 sm:$0xff]  }
  0x68   :  { %14001 = vmatpush1.bf16.msra.mxu0 %v19732_v52  ;;  %14493 = vmatpush1.bf16.msra.mxu1 %v19733_v53  ;;  %v19820_v52 = vld [vmem:[#allocation6 + $0xa20] ss:$48 sps:$4 sm:$0xff]   ;;  %v19823_v53 = vld [vmem:[#allocation6 + $0xa28] ss:$48 sps:$4 sm:$0xff]  }
  0x69   :  { %14002 = vmatprep.subr.bf16.mxu0 %v19734_v54  ;;  %14494 = vmatprep.subr.bf16.mxu1 %v19736_v55  ;;  %v19828_v54 = vld [vmem:[#allocation6 + $0xa84] ss:$48 sps:$4 sm:$0xff]   ;;  %v19831_v55 = vld [vmem:[#allocation6 + $0xa8c] ss:$48 sps:$4 sm:$0xff]  }
  0x6c   :  { %14003 = vmatpush1.bf16.msra.mxu0 %v19738_v56  ;;  %14495 = vmatpush1.bf16.msra.mxu1 %v19739_v57  ;;  %v19826_v56 = vld [vmem:[#allocation6 + $0xa80] ss:$48 sps:$4 sm:$0xff]   ;;  %v19829_v57 = vld [vmem:[#allocation6 + $0xa88] ss:$48 sps:$4 sm:$0xff]  }
  0x6d   :  { %14004 = vmatprep.subr.bf16.mxu0 %v19740_v58  ;;  %14496 = vmatprep.subr.bf16.mxu1 %v19742_v59  ;;  %v19834_v58 = vld [vmem:[#allocation6 + $0xae4] ss:$48 sps:$4 sm:$0xff]   ;;  %v19837_v59 = vld [vmem:[#allocation6 + $0xaec] ss:$48 sps:$4 sm:$0xff]  }
  0x70   :  { %14005 = vmatpush1.bf16.msra.mxu0 %v19744_v60  ;;  %14497 = vmatpush1.bf16.msra.mxu1 %v19745_v61  ;;  %v19832_v60 = vld [vmem:[#allocation6 + $0xae0] ss:$48 sps:$4 sm:$0xff]   ;;  %v19835_v61 = vld [vmem:[#allocation6 + $0xae8] ss:$48 sps:$4 sm:$0xff]  }
  0x71   :  { %14006 = vmatprep.subr.bf16.mxu0 %v19746_v62  ;;  %14498 = vmatprep.subr.bf16.mxu1 %v19748_v63  ;;  %v19840_v62 = vld [vmem:[#allocation6 + $0xb44] ss:$48 sps:$4 sm:$0xff]   ;;  %v19843_v63 = vld [vmem:[#allocation6 + $0xb4c] ss:$48 sps:$4 sm:$0xff]  }
  0x74   :  { %14007 = vmatpush1.bf16.msra.mxu0 %v19750_v0  ;;  %14499 = vmatpush1.bf16.msra.mxu1 %v19751_v1  ;;  %v19838_v0 = vld [vmem:[#allocation6 + $0xb40] ss:$48 sps:$4 sm:$0xff]   ;;  %v19841_v1 = vld [vmem:[#allocation6 + $0xb48] ss:$48 sps:$4 sm:$0xff]  }
  0x75   :  { %14017 = vmatprep.subr.bf16.mxu0 %v19755_v2  ;;  %14509 = vmatprep.subr.bf16.mxu1 %v19758_v3  ;;  %v19846_v2 = vld [vmem:[#allocation6 + $0xba4] ss:$48 sps:$4 sm:$0xff]   ;;  %v19849_v3 = vld [vmem:[#allocation6 + $0xbac] ss:$48 sps:$4 sm:$0xff]  }
  0x77   :  { %14009 = vmatmul.mubr.bf16.vlgmr.msra.gmra.mrb[0].mxu0 %v23302_v5  ;;  %14501 = vmatmul.mubr.bf16.vlgmr.msra.gmra.mrb[0].mxu1 %v23302_v5 }
  0x78   :  { %14018 = vmatpush1.bf16.msra.mxu0 %v19753_v4  ;;  %14510 = vmatpush1.bf16.msra.mxu1 %v19756_v6  ;;  %v19844_v4 = vld [vmem:[#allocation6 + $0xba0] ss:$48 sps:$4 sm:$0xff]   ;;  %v19847_v6 = vld [vmem:[#allocation6 + $0xba8] ss:$48 sps:$4 sm:$0xff]  }
  0x79   :  { %14019 = vmatprep.subr.bf16.mxu0 %v19762_v7  ;;  %14511 = vmatprep.subr.bf16.mxu1 %v19765_v8  ;;  %v19853_v7 = vld [vmem:[#allocation6 + $0xc04] ss:$48 sps:$4 sm:$0xff]   ;;  %v19856_v8 = vld [vmem:[#allocation6 + $0xc0c] ss:$48 sps:$4 sm:$0xff]  }
  0x7a   :  { %14049 = vmatprep.mubr.bf16.mxu0 %v23310_v30  ;;  %14541 = vmatprep.mubr.bf16.mxu1 %v23310_v30 }
  0x7c   :  { %14020 = vmatpush1.bf16.msra.mxu0 %v19760_v9  ;;  %14512 = vmatpush1.bf16.msra.mxu1 %v19763_v10  ;;  %v19851_v9 = vld [vmem:[#allocation6 + $0xc00] ss:$48 sps:$4 sm:$0xff]   ;;  %v23316_v10 = vcombine.low %v23306_v29, %v23306_v29  ;;  %v19879_v29 = vld [vmem:[#allocation6 + $0xd88] ss:$48 sps:$4 sm:$0xff]  }
  0x7d   :  { %14021 = vmatprep.subr.bf16.mxu0 %v19768_v11  ;;  %14513 = vmatprep.subr.bf16.mxu1 %v19771_v12  ;;  %v19854_v11 = vld [vmem:[#allocation6 + $0xc08] ss:$48 sps:$4 sm:$0xff]   ;;  %v19860_v12 = vld [vmem:[#allocation6 + $0xc64] ss:$48 sps:$4 sm:$0xff]  }
  0x80   :  { %14022 = vmatpush1.bf16.msra.mxu0 %v19766_v13  ;;  %14514 = vmatpush1.bf16.msra.mxu1 %v19769_v14  ;;  %v23318_v13 = vld [vmem:[#allocation3 + $0x10] sm:$0xff]  ;;  %v19863_v14 = vld [vmem:[#allocation6 + $0xc6c] ss:$48 sps:$4 sm:$0xff]  }
  0x81   :  { %14023 = vmatprep.subr.bf16.mxu0 %v19774_v15  ;;  %14515 = vmatprep.subr.bf16.mxu1 %v19777_v16  ;;  %v23322_v15 = vcombine.high %v23318_v13, %v23318_v13  ;;  %v19858_v16 = vld [vmem:[#allocation6 + $0xc60] ss:$48 sps:$4 sm:$0xff]  }
  0x84   :  { %14024 = vmatpush1.bf16.msra.mxu0 %v19772_v17  ;;  %14516 = vmatpush1.bf16.msra.mxu1 %v19775_v18  ;;  %v19861_v17 = vld [vmem:[#allocation6 + $0xc68] ss:$48 sps:$4 sm:$0xff]   ;;  %v19866_v18 = vld [vmem:[#allocation6 + $0xcc4] ss:$48 sps:$4 sm:$0xff]  }
  0x85   :  { %14025 = vmatprep.subr.bf16.mxu0 %v19780_v19  ;;  %14517 = vmatprep.subr.bf16.mxu1 %v19783_v20  ;;  %v19869_v19 = vld [vmem:[#allocation6 + $0xccc] ss:$48 sps:$4 sm:$0xff]   ;;  %v19864_v20 = vld [vmem:[#allocation6 + $0xcc0] ss:$48 sps:$4 sm:$0xff]  }
  0x88   :  { %14026 = vmatpush1.bf16.msra.mxu0 %v19778_v21  ;;  %14518 = vmatpush1.bf16.msra.mxu1 %v19781_v22  ;;  %v19867_v21 = vld [vmem:[#allocation6 + $0xcc8] ss:$48 sps:$4 sm:$0xff]   ;;  %v19872_v22 = vld [vmem:[#allocation6 + $0xd24] ss:$48 sps:$4 sm:$0xff]  }
  0x89   :  { %14027 = vmatprep.subr.bf16.mxu0 %v19786_v23  ;;  %14519 = vmatprep.subr.bf16.mxu1 %v19789_v24  ;;  %v19875_v23 = vld [vmem:[#allocation6 + $0xd2c] ss:$48 sps:$4 sm:$0xff]   ;;  %v19870_v24 = vld [vmem:[#allocation6 + $0xd20] ss:$48 sps:$4 sm:$0xff]  }
  0x8c   :  { %14028 = vmatpush1.bf16.msra.mxu0 %v19784_v25  ;;  %14520 = vmatpush1.bf16.msra.mxu1 %v19787_v26  ;;  %v19873_v25 = vld [vmem:[#allocation6 + $0xd28] ss:$48 sps:$4 sm:$0xff]   ;;  %v19878_v26 = vld [vmem:[#allocation6 + $0xd84] ss:$48 sps:$4 sm:$0xff]  }
  0x8d   :  { %14029 = vmatprep.subr.bf16.mxu0 %v19792_v27  ;;  %14521 = vmatprep.subr.bf16.mxu1 %v19795_v28  ;;  %v19881_v27 = vld [vmem:[#allocation6 + $0xd8c] ss:$48 sps:$4 sm:$0xff]   ;;  %v19876_v28 = vld [vmem:[#allocation6 + $0xd80] ss:$48 sps:$4 sm:$0xff]  }
  0x90   :  { %14030 = vmatpush1.bf16.msra.mxu0 %v19790_v31  ;;  %14522 = vmatpush1.bf16.msra.mxu1 %v19793_v32  ;;  %v19884_v31 = vld [vmem:[#allocation6 + $0xde4] ss:$48 sps:$4 sm:$0xff]   ;;  %v19887_v32 = vld [vmem:[#allocation6 + $0xdec] ss:$48 sps:$4 sm:$0xff]  }
  0x91   :  { %14031 = vmatprep.subr.bf16.mxu0 %v19798_v33  ;;  %14523 = vmatprep.subr.bf16.mxu1 %v19801_v34  ;;  %v19882_v33 = vld [vmem:[#allocation6 + $0xde0] ss:$48 sps:$4 sm:$0xff]   ;;  %v19885_v34 = vld [vmem:[#allocation6 + $0xde8] ss:$48 sps:$4 sm:$0xff]  }
  0x94   :  { %14032 = vmatpush1.bf16.msra.mxu0 %v19796_v35  ;;  %14524 = vmatpush1.bf16.msra.mxu1 %v19799_v36  ;;  %v19890_v35 = vld [vmem:[#allocation6 + $0xe44] ss:$48 sps:$4 sm:$0xff]   ;;  %v19893_v36 = vld [vmem:[#allocation6 + $0xe4c] ss:$48 sps:$4 sm:$0xff]  }
  0x95   :  { %14033 = vmatprep.subr.bf16.mxu0 %v19804_v37  ;;  %14525 = vmatprep.subr.bf16.mxu1 %v19807_v38  ;;  %v19888_v37 = vld [vmem:[#allocation6 + $0xe40] ss:$48 sps:$4 sm:$0xff]   ;;  %v19891_v38 = vld [vmem:[#allocation6 + $0xe48] ss:$48 sps:$4 sm:$0xff]  }
  0x98   :  { %14034 = vmatpush1.bf16.msra.mxu0 %v19802_v39  ;;  %14526 = vmatpush1.bf16.msra.mxu1 %v19805_v40  ;;  %v19896_v39 = vld [vmem:[#allocation6 + $0xea4] ss:$48 sps:$4 sm:$0xff]   ;;  %v19899_v40 = vld [vmem:[#allocation6 + $0xeac] ss:$48 sps:$4 sm:$0xff]  }
  0x99   :  { %14035 = vmatprep.subr.bf16.mxu0 %v19810_v41  ;;  %14527 = vmatprep.subr.bf16.mxu1 %v19813_v42  ;;  %v19894_v41 = vld [vmem:[#allocation6 + $0xea0] ss:$48 sps:$4 sm:$0xff]   ;;  %v19897_v42 = vld [vmem:[#allocation6 + $0xea8] ss:$48 sps:$4 sm:$0xff]  }
  0x9c   :  { %14036 = vmatpush1.bf16.msra.mxu0 %v19808_v43  ;;  %14528 = vmatpush1.bf16.msra.mxu1 %v19811_v44  ;;  %v19902_v43 = vld [vmem:[#allocation6 + $0xf04] ss:$48 sps:$4 sm:$0xff]   ;;  %v19905_v44 = vld [vmem:[#allocation6 + $0xf0c] ss:$48 sps:$4 sm:$0xff]  }
  0x9d   :  { %14037 = vmatprep.subr.bf16.mxu0 %v19816_v45  ;;  %14529 = vmatprep.subr.bf16.mxu1 %v19819_v46  ;;  %v19900_v45 = vld [vmem:[#allocation6 + $0xf00] ss:$48 sps:$4 sm:$0xff]   ;;  %v19903_v46 = vld [vmem:[#allocation6 + $0xf08] ss:$48 sps:$4 sm:$0xff]  }
  0xa0   :  { %14038 = vmatpush1.bf16.msra.mxu0 %v19814_v47  ;;  %14530 = vmatpush1.bf16.msra.mxu1 %v19817_v49  ;;  %v19908_v47 = vld [vmem:[#allocation6 + $0xf64] ss:$48 sps:$4 sm:$0xff]   ;;  %v19911_v49 = vld [vmem:[#allocation6 + $0xf6c] ss:$48 sps:$4 sm:$0xff]  }
  0xa1   :  { %14039 = vmatprep.subr.bf16.mxu0 %v19822_v50  ;;  %14531 = vmatprep.subr.bf16.mxu1 %v19825_v51  ;;  %v19906_v50 = vld [vmem:[#allocation6 + $0xf60] ss:$48 sps:$4 sm:$0xff]   ;;  %v19909_v51 = vld [vmem:[#allocation6 + $0xf68] ss:$48 sps:$4 sm:$0xff]  }
  0xa4   :  { %14040 = vmatpush1.bf16.msra.mxu0 %v19820_v52  ;;  %14532 = vmatpush1.bf16.msra.mxu1 %v19823_v53  ;;  %v19914_v52 = vld [vmem:[#allocation6 + $0xfc4] ss:$48 sps:$4 sm:$0xff]   ;;  %v19917_v53 = vld [vmem:[#allocation6 + $0xfcc] ss:$48 sps:$4 sm:$0xff]  }
  0xa5   :  { %14041 = vmatprep.subr.bf16.mxu0 %v19828_v54  ;;  %14533 = vmatprep.subr.bf16.mxu1 %v19831_v55  ;;  %v19912_v54 = vld [vmem:[#allocation6 + $0xfc0] ss:$48 sps:$4 sm:$0xff]   ;;  %v19915_v55 = vld [vmem:[#allocation6 + $0xfc8] ss:$48 sps:$4 sm:$0xff]  }
  0xa8   :  { %14042 = vmatpush1.bf16.msra.mxu0 %v19826_v56  ;;  %14534 = vmatpush1.bf16.msra.mxu1 %v19829_v57  ;;  %v19920_v56 = vld [vmem:[#allocation6 + $0x1024] ss:$48 sps:$4 sm:$0xff]   ;;  %v19923_v57 = vld [vmem:[#allocation6 + $0x102c] ss:$48 sps:$4 sm:$0xff]  }
  0xa9   :  { %14043 = vmatprep.subr.bf16.mxu0 %v19834_v58  ;;  %14535 = vmatprep.subr.bf16.mxu1 %v19837_v59  ;;  %v19918_v58 = vld [vmem:[#allocation6 + $0x1020] ss:$48 sps:$4 sm:$0xff]   ;;  %v19921_v59 = vld [vmem:[#allocation6 + $0x1028] ss:$48 sps:$4 sm:$0xff]  }
  0xac   :  { %14044 = vmatpush1.bf16.msra.mxu0 %v19832_v60  ;;  %14536 = vmatpush1.bf16.msra.mxu1 %v19835_v61  ;;  %v19926_v60 = vld [vmem:[#allocation6 + $0x1084] ss:$48 sps:$4 sm:$0xff]   ;;  %v19929_v61 = vld [vmem:[#allocation6 + $0x108c] ss:$48 sps:$4 sm:$0xff]  }
  0xad   :  { %14045 = vmatprep.subr.bf16.mxu0 %v19840_v62  ;;  %14537 = vmatprep.subr.bf16.mxu1 %v19843_v63  ;;  %v19924_v62 = vld [vmem:[#allocation6 + $0x1080] ss:$48 sps:$4 sm:$0xff]   ;;  %v19927_v63 = vld [vmem:[#allocation6 + $0x1088] ss:$48 sps:$4 sm:$0xff]  }
  0xb0   :  { %14046 = vmatpush1.bf16.msra.mxu0 %v19838_v0  ;;  %14538 = vmatpush1.bf16.msra.mxu1 %v19841_v1  ;;  %v19932_v0 = vld [vmem:[#allocation6 + $0x10e4] ss:$48 sps:$4 sm:$0xff]   ;;  %v19935_v1 = vld [vmem:[#allocation6 + $0x10ec] ss:$48 sps:$4 sm:$0xff]  }
  0xb1   :  { %14047 = vmatprep.subr.bf16.mxu0 %v19846_v2  ;;  %14539 = vmatprep.subr.bf16.mxu1 %v19849_v3  ;;  %v19930_v2 = vld [vmem:[#allocation6 + $0x10e0] ss:$48 sps:$4 sm:$0xff]   ;;  %v19933_v3 = vld [vmem:[#allocation6 + $0x10e8] ss:$48 sps:$4 sm:$0xff]  }
  0xb4   :  { %14048 = vmatpush1.bf16.msra.mxu0 %v19844_v4  ;;  %14540 = vmatpush1.bf16.msra.mxu1 %v19847_v6  ;;  %v19938_v4 = vld [vmem:[#allocation6 + $0x1144] ss:$48 sps:$4 sm:$0xff]   ;;  %v19941_v6 = vld [vmem:[#allocation6 + $0x114c] ss:$48 sps:$4 sm:$0xff]  }
  0xb5   :  { %14058 = vmatprep.subr.bf16.mxu0 %v19853_v7  ;;  %14550 = vmatprep.subr.bf16.mxu1 %v19856_v8  ;;  %v19936_v7 = vld [vmem:[#allocation6 + $0x1140] ss:$48 sps:$4 sm:$0xff]   ;;  %v19939_v8 = vld [vmem:[#allocation6 + $0x1148] ss:$48 sps:$4 sm:$0xff]  }
  0xb7   :  { %14050 = vmatmul.mubr.bf16.vlgmr.msra.gmra.mrb[0].mxu0 %v23316_v10  ;;  %14542 = vmatmul.mubr.bf16.vlgmr.msra.gmra.mrb[0].mxu1 %v23316_v10 }
  0xb8   :  { %14059 = vmatpush1.bf16.msra.mxu0 %v19851_v9  ;;  %14551 = vmatpush1.bf16.msra.mxu1 %v19854_v11  ;;  %v19944_v9 = vld [vmem:[#allocation6 + $0x11a4] ss:$48 sps:$4 sm:$0xff]   ;;  %v19947_v11 = vld [vmem:[#allocation6 + $0x11ac] ss:$48 sps:$4 sm:$0xff]  }
  0xb9   :  { %14060 = vmatprep.subr.bf16.mxu0 %v19860_v12  ;;  %14552 = vmatprep.subr.bf16.mxu1 %v19863_v14  ;;  %v19942_v12 = vld [vmem:[#allocation6 + $0x11a0] ss:$48 sps:$4 sm:$0xff]   ;;  %v19945_v14 = vld [vmem:[#allocation6 + $0x11a8] ss:$48 sps:$4 sm:$0xff]  }
  0xba   :  { %14090 = vmatprep.mubr.bf16.mxu0 %v23322_v15  ;;  %14582 = vmatprep.mubr.bf16.mxu1 %v23322_v15 }
  0xbc   :  { %14061 = vmatpush1.bf16.msra.mxu0 %v19858_v16  ;;  %14553 = vmatpush1.bf16.msra.mxu1 %v19861_v17  ;;  %v19951_v16 = vld [vmem:[#allocation6 + $0x1204] ss:$48 sps:$4 sm:$0xff]   ;;  %v19954_v17 = vld [vmem:[#allocation6 + $0x120c] ss:$48 sps:$4 sm:$0xff]  }
  0xbd   :  { %14062 = vmatprep.subr.bf16.mxu0 %v19866_v18  ;;  %14554 = vmatprep.subr.bf16.mxu1 %v19869_v19  ;;  %v19949_v18 = vld [vmem:[#allocation6 + $0x1200] ss:$48 sps:$4 sm:$0xff]   ;;  %v19952_v19 = vld [vmem:[#allocation6 + $0x1208] ss:$48 sps:$4 sm:$0xff]  }
  0xc0   :  { %14063 = vmatpush1.bf16.msra.mxu0 %v19864_v20  ;;  %14555 = vmatpush1.bf16.msra.mxu1 %v19867_v21  ;;  %v23330_v20 = vcombine.low %v23318_v13, %v23318_v13  ;;  %v23332_v21 = vld [vmem:[#allocation3 + $0x18] sm:$0xff]  ;;  %v19964_v13 = vld [vmem:[#allocation6 + $0x12c4] ss:$48 sps:$4 sm:$0xff]  }
  0xc1   :  { %14064 = vmatprep.subr.bf16.mxu0 %v19872_v22  ;;  %14556 = vmatprep.subr.bf16.mxu1 %v19875_v23  ;;  %v19958_v22 = vld [vmem:[#allocation6 + $0x1264] ss:$48 sps:$4 sm:$0xff]   ;;  %v19961_v23 = vld [vmem:[#allocation6 + $0x126c] ss:$48 sps:$4 sm:$0xff]  }
  0xc4   :  { %14065 = vmatpush1.bf16.msra.mxu0 %v19870_v24  ;;  %14557 = vmatpush1.bf16.msra.mxu1 %v19873_v25  ;;  %v23336_v24 = vcombine.high %v23332_v21, %v23332_v21  ;;  %v19956_v25 = vld [vmem:[#allocation6 + $0x1260] ss:$48 sps:$4 sm:$0xff]  }
  0xc5   :  { %14066 = vmatprep.subr.bf16.mxu0 %v19878_v26  ;;  %14558 = vmatprep.subr.bf16.mxu1 %v19881_v27  ;;  %v19959_v26 = vld [vmem:[#allocation6 + $0x1268] ss:$48 sps:$4 sm:$0xff]   ;;  %v19967_v27 = vld [vmem:[#allocation6 + $0x12cc] ss:$48 sps:$4 sm:$0xff]  }
  0xc8   :  { %14067 = vmatpush1.bf16.msra.mxu0 %v19876_v28  ;;  %14559 = vmatpush1.bf16.msra.mxu1 %v19879_v29  ;;  %v19962_v28 = vld [vmem:[#allocation6 + $0x12c0] ss:$48 sps:$4 sm:$0xff]   ;;  %v19965_v29 = vld [vmem:[#allocation6 + $0x12c8] ss:$48 sps:$4 sm:$0xff]  }
  0xc9   :  { %14068 = vmatprep.subr.bf16.mxu0 %v19884_v31  ;;  %14560 = vmatprep.subr.bf16.mxu1 %v19887_v32  ;;  %v19970_v31 = vld [vmem:[#allocation6 + $0x1324] ss:$48 sps:$4 sm:$0xff]   ;;  %v19973_v32 = vld [vmem:[#allocation6 + $0x132c] ss:$48 sps:$4 sm:$0xff]  }
  0xcc   :  { %14069 = vmatpush1.bf16.msra.mxu0 %v19882_v33  ;;  %14561 = vmatpush1.bf16.msra.mxu1 %v19885_v34  ;;  %v19968_v33 = vld [vmem:[#allocation6 + $0x1320] ss:$48 sps:$4 sm:$0xff]   ;;  %v19971_v34 = vld [vmem:[#allocation6 + $0x1328] ss:$48 sps:$4 sm:$0xff]  }
  0xcd   :  { %14070 = vmatprep.subr.bf16.mxu0 %v19890_v35  ;;  %14562 = vmatprep.subr.bf16.mxu1 %v19893_v36  ;;  %v19976_v35 = vld [vmem:[#allocation6 + $0x1384] ss:$48 sps:$4 sm:$0xff]   ;;  %v19979_v36 = vld [vmem:[#allocation6 + $0x138c] ss:$48 sps:$4 sm:$0xff]  }
  0xd0   :  { %14071 = vmatpush1.bf16.msra.mxu0 %v19888_v37  ;;  %14563 = vmatpush1.bf16.msra.mxu1 %v19891_v38  ;;  %v19974_v37 = vld [vmem:[#allocation6 + $0x1380] ss:$48 sps:$4 sm:$0xff]   ;;  %v19977_v38 = vld [vmem:[#allocation6 + $0x1388] ss:$48 sps:$4 sm:$0xff]  }
  0xd1   :  { %14072 = vmatprep.subr.bf16.mxu0 %v19896_v39  ;;  %14564 = vmatprep.subr.bf16.mxu1 %v19899_v40  ;;  %v19982_v39 = vld [vmem:[#allocation6 + $0x13e4] ss:$48 sps:$4 sm:$0xff]   ;;  %v19985_v40 = vld [vmem:[#allocation6 + $0x13ec] ss:$48 sps:$4 sm:$0xff]  }
  0xd4   :  { %14073 = vmatpush1.bf16.msra.mxu0 %v19894_v41  ;;  %14565 = vmatpush1.bf16.msra.mxu1 %v19897_v42  ;;  %v19980_v41 = vld [vmem:[#allocation6 + $0x13e0] ss:$48 sps:$4 sm:$0xff]   ;;  %v19983_v42 = vld [vmem:[#allocation6 + $0x13e8] ss:$48 sps:$4 sm:$0xff]  }
  0xd5   :  { %14074 = vmatprep.subr.bf16.mxu0 %v19902_v43  ;;  %14566 = vmatprep.subr.bf16.mxu1 %v19905_v44  ;;  %v19988_v43 = vld [vmem:[#allocation6 + $0x1444] ss:$48 sps:$4 sm:$0xff]   ;;  %v19991_v44 = vld [vmem:[#allocation6 + $0x144c] ss:$48 sps:$4 sm:$0xff]  }
  0xd8   :  { %14075 = vmatpush1.bf16.msra.mxu0 %v19900_v45  ;;  %14567 = vmatpush1.bf16.msra.mxu1 %v19903_v46  ;;  %v19986_v45 = vld [vmem:[#allocation6 + $0x1440] ss:$48 sps:$4 sm:$0xff]   ;;  %v19989_v46 = vld [vmem:[#allocation6 + $0x1448] ss:$48 sps:$4 sm:$0xff]  }
  0xd9   :  { %14076 = vmatprep.subr.bf16.mxu0 %v19908_v47  ;;  %14568 = vmatprep.subr.bf16.mxu1 %v19911_v49  ;;  %v19994_v47 = vld [vmem:[#allocation6 + $0x14a4] ss:$48 sps:$4 sm:$0xff]   ;;  %v19997_v49 = vld [vmem:[#allocation6 + $0x14ac] ss:$48 sps:$4 sm:$0xff]  }
  0xdc   :  { %14077 = vmatpush1.bf16.msra.mxu0 %v19906_v50  ;;  %14569 = vmatpush1.bf16.msra.mxu1 %v19909_v51  ;;  %v19992_v50 = vld [vmem:[#allocation6 + $0x14a0] ss:$48 sps:$4 sm:$0xff]   ;;  %v19995_v51 = vld [vmem:[#allocation6 + $0x14a8] ss:$48 sps:$4 sm:$0xff]  }
  0xdd   :  { %14078 = vmatprep.subr.bf16.mxu0 %v19914_v52  ;;  %14570 = vmatprep.subr.bf16.mxu1 %v19917_v53  ;;  %v20000_v52 = vld [vmem:[#allocation6 + $0x1504] ss:$48 sps:$4 sm:$0xff]   ;;  %v20003_v53 = vld [vmem:[#allocation6 + $0x150c] ss:$48 sps:$4 sm:$0xff]  }
  0xe0   :  { %14079 = vmatpush1.bf16.msra.mxu0 %v19912_v54  ;;  %14571 = vmatpush1.bf16.msra.mxu1 %v19915_v55  ;;  %v19998_v54 = vld [vmem:[#allocation6 + $0x1500] ss:$48 sps:$4 sm:$0xff]   ;;  %v20001_v55 = vld [vmem:[#allocation6 + $0x1508] ss:$48 sps:$4 sm:$0xff]  }
  0xe1   :  { %14080 = vmatprep.subr.bf16.mxu0 %v19920_v56  ;;  %14572 = vmatprep.subr.bf16.mxu1 %v19923_v57  ;;  %v20006_v56 = vld [vmem:[#allocation6 + $0x1564] ss:$48 sps:$4 sm:$0xff]   ;;  %v20009_v57 = vld [vmem:[#allocation6 + $0x156c] ss:$48 sps:$4 sm:$0xff]  }
  0xe4   :  { %14081 = vmatpush1.bf16.msra.mxu0 %v19918_v58  ;;  %14573 = vmatpush1.bf16.msra.mxu1 %v19921_v59  ;;  %v20004_v58 = vld [vmem:[#allocation6 + $0x1560] ss:$48 sps:$4 sm:$0xff]   ;;  %v20007_v59 = vld [vmem:[#allocation6 + $0x1568] ss:$48 sps:$4 sm:$0xff]  }
  0xe5   :  { %14082 = vmatprep.subr.bf16.mxu0 %v19926_v60  ;;  %14574 = vmatprep.subr.bf16.mxu1 %v19929_v61  ;;  %v20012_v60 = vld [vmem:[#allocation6 + $0x15c4] ss:$48 sps:$4 sm:$0xff]   ;;  %v20015_v61 = vld [vmem:[#allocation6 + $0x15cc] ss:$48 sps:$4 sm:$0xff]  }
  0xe8   :  { %14083 = vmatpush1.bf16.msra.mxu0 %v19924_v62  ;;  %14575 = vmatpush1.bf16.msra.mxu1 %v19927_v63  ;;  %v20010_v62 = vld [vmem:[#allocation6 + $0x15c0] ss:$48 sps:$4 sm:$0xff]   ;;  %v20013_v63 = vld [vmem:[#allocation6 + $0x15c8] ss:$48 sps:$4 sm:$0xff]  }
  0xe9   :  { %14084 = vmatprep.subr.bf16.mxu0 %v19932_v0  ;;  %14576 = vmatprep.subr.bf16.mxu1 %v19935_v1  ;;  %v20018_v0 = vld [vmem:[#allocation6 + $0x1624] ss:$48 sps:$4 sm:$0xff]   ;;  %v20021_v1 = vld [vmem:[#allocation6 + $0x162c] ss:$48 sps:$4 sm:$0xff]  }
  0xec   :  { %14085 = vmatpush1.bf16.msra.mxu0 %v19930_v2  ;;  %14577 = vmatpush1.bf16.msra.mxu1 %v19933_v3  ;;  %v20016_v2 = vld [vmem:[#allocation6 + $0x1620] ss:$48 sps:$4 sm:$0xff]   ;;  %v20019_v3 = vld [vmem:[#allocation6 + $0x1628] ss:$48 sps:$4 sm:$0xff]  }
  0xed   :  { %14086 = vmatprep.subr.bf16.mxu0 %v19938_v4  ;;  %14578 = vmatprep.subr.bf16.mxu1 %v19941_v6  ;;  %v20024_v4 = vld [vmem:[#allocation6 + $0x1684] ss:$48 sps:$4 sm:$0xff]   ;;  %v20027_v6 = vld [vmem:[#allocation6 + $0x168c] ss:$48 sps:$4 sm:$0xff]  }
  0xf0   :  { %14087 = vmatpush1.bf16.msra.mxu0 %v19936_v7  ;;  %14579 = vmatpush1.bf16.msra.mxu1 %v19939_v8  ;;  %v20022_v7 = vld [vmem:[#allocation6 + $0x1680] ss:$48 sps:$4 sm:$0xff]   ;;  %v20025_v8 = vld [vmem:[#allocation6 + $0x1688] ss:$48 sps:$4 sm:$0xff]  }
  0xf1   :  { %14088 = vmatprep.subr.bf16.mxu0 %v19944_v9  ;;  %14580 = vmatprep.subr.bf16.mxu1 %v19947_v11  ;;  %v20030_v9 = vld [vmem:[#allocation6 + $0x16e4] ss:$48 sps:$4 sm:$0xff]   ;;  %v20033_v11 = vld [vmem:[#allocation6 + $0x16ec] ss:$48 sps:$4 sm:$0xff]  }
  0xf4   :  { %14089 = vmatpush1.bf16.msra.mxu0 %v19942_v12  ;;  %14581 = vmatpush1.bf16.msra.mxu1 %v19945_v14  ;;  %v20028_v12 = vld [vmem:[#allocation6 + $0x16e0] ss:$48 sps:$4 sm:$0xff]   ;;  %v20031_v14 = vld [vmem:[#allocation6 + $0x16e8] ss:$48 sps:$4 sm:$0xff]  }
  0xf5   :  { %14099 = vmatprep.subr.bf16.mxu0 %v19951_v16  ;;  %14591 = vmatprep.subr.bf16.mxu1 %v19954_v17  ;;  %v20036_v16 = vld [vmem:[#allocation6 + $0x1744] ss:$48 sps:$4 sm:$0xff]   ;;  %v20039_v17 = vld [vmem:[#allocation6 + $0x174c] ss:$48 sps:$4 sm:$0xff]  }
  0xf7   :  { %14091 = vmatmul.mubr.bf16.vlgmr.msra.gmra.mrb[0].mxu0 %v23330_v20  ;;  %14583 = vmatmul.mubr.bf16.vlgmr.msra.gmra.mrb[0].mxu1 %v23330_v20 }
  0xf8   :  { %14100 = vmatpush1.bf16.msra.mxu0 %v19949_v18  ;;  %14592 = vmatpush1.bf16.msra.mxu1 %v19952_v19  ;;  %v20034_v18 = vld [vmem:[#allocation6 + $0x1740] ss:$48 sps:$4 sm:$0xff]   ;;  %v20037_v19 = vld [vmem:[#allocation6 + $0x1748] ss:$48 sps:$4 sm:$0xff]  }
  0xf9   :  { %14101 = vmatprep.subr.bf16.mxu0 %v19958_v22  ;;  %14593 = vmatprep.subr.bf16.mxu1 %v19961_v23  ;;  %v20042_v22 = vld [vmem:[#allocation6 + $0x17a4] ss:$48 sps:$4 sm:$0xff]   ;;  %v20045_v23 = vld [vmem:[#allocation6 + $0x17ac] ss:$48 sps:$4 sm:$0xff]  }
  0xfa   :  { %14131 = vmatprep.mubr.bf16.mxu0 %v23336_v24  ;;  %14623 = vmatprep.mubr.bf16.mxu1 %v23336_v24 }
  0xfc   :  { %14102 = vmatpush1.bf16.msra.mxu0 %v19956_v25  ;;  %14594 = vmatpush1.bf16.msra.mxu1 %v19959_v26  ;;  %v20040_v25 = vld [vmem:[#allocation6 + $0x17a0] ss:$48 sps:$4 sm:$0xff]   ;;  %v20043_v26 = vld [vmem:[#allocation6 + $0x17a8] ss:$48 sps:$4 sm:$0xff]  }
  0xfd   :  { %14103 = vmatprep.subr.bf16.mxu0 %v19964_v13  ;;  %14595 = vmatprep.subr.bf16.mxu1 %v19967_v27  ;;  %v20049_v13 = vld [vmem:[#allocation6 + $0x1804] ss:$48 sps:$4 sm:$0xff]   ;;  %v20052_v27 = vld [vmem:[#allocation6 + $0x180c] ss:$48 sps:$4 sm:$0xff]  }
 0x100   :  { %14104 = vmatpush1.bf16.msra.mxu0 %v19962_v28  ;;  %14596 = vmatpush1.bf16.msra.mxu1 %v19965_v29  ;;  %v20047_v28 = vld [vmem:[#allocation6 + $0x1800] ss:$48 sps:$4 sm:$0xff]   ;;  %v23344_v29 = vcombine.low %v23332_v21, %v23332_v21 }
 0x101   :  { %14105 = vmatprep.subr.bf16.mxu0 %v19970_v31  ;;  %14597 = vmatprep.subr.bf16.mxu1 %v19973_v32  ;;  %v23346_v31 = vld [vmem:[#allocation3 + $0x20] sm:$0xff]  ;;  %v20050_v32 = vld [vmem:[#allocation6 + $0x1808] ss:$48 sps:$4 sm:$0xff]  }
 0x102   :  { %v20054_v21 = vld [vmem:[#allocation6 + $0x1860] ss:$48 sps:$4 sm:$0xff]  }
 0x104   :  { %14106 = vmatpush1.bf16.msra.mxu0 %v19968_v33  ;;  %14598 = vmatpush1.bf16.msra.mxu1 %v19971_v34  ;;  %v20056_v33 = vld [vmem:[#allocation6 + $0x1864] ss:$48 sps:$4 sm:$0xff]   ;;  %v20059_v34 = vld [vmem:[#allocation6 + $0x186c] ss:$48 sps:$4 sm:$0xff]  }
 0x105   :  { %14107 = vmatprep.subr.bf16.mxu0 %v19976_v35  ;;  %14599 = vmatprep.subr.bf16.mxu1 %v19979_v36  ;;  %v23350_v35 = vcombine.high %v23346_v31, %v23346_v31  ;;  %v20057_v36 = vld [vmem:[#allocation6 + $0x1868] ss:$48 sps:$4 sm:$0xff]  }
 0x108   :  { %14108 = vmatpush1.bf16.msra.mxu0 %v19974_v37  ;;  %14600 = vmatpush1.bf16.msra.mxu1 %v19977_v38  ;;  %v20062_v37 = vld [vmem:[#allocation6 + $0x18c4] ss:$48 sps:$4 sm:$0xff]   ;;  %v20065_v38 = vld [vmem:[#allocation6 + $0x18cc] ss:$48 sps:$4 sm:$0xff]  }
 0x109   :  { %14109 = vmatprep.subr.bf16.mxu0 %v19982_v39  ;;  %14601 = vmatprep.subr.bf16.mxu1 %v19985_v40  ;;  %v20060_v39 = vld [vmem:[#allocation6 + $0x18c0] ss:$48 sps:$4 sm:$0xff]   ;;  %v20063_v40 = vld [vmem:[#allocation6 + $0x18c8] ss:$48 sps:$4 sm:$0xff]  }
 0x10c   :  { %14110 = vmatpush1.bf16.msra.mxu0 %v19980_v41  ;;  %14602 = vmatpush1.bf16.msra.mxu1 %v19983_v42  ;;  %v20068_v41 = vld [vmem:[#allocation6 + $0x1924] ss:$48 sps:$4 sm:$0xff]   ;;  %v20071_v42 = vld [vmem:[#allocation6 + $0x192c] ss:$48 sps:$4 sm:$0xff]  }
 0x10d   :  { %14111 = vmatprep.subr.bf16.mxu0 %v19988_v43  ;;  %14603 = vmatprep.subr.bf16.mxu1 %v19991_v44  ;;  %v20066_v43 = vld [vmem:[#allocation6 + $0x1920] ss:$48 sps:$4 sm:$0xff]   ;;  %v20069_v44 = vld [vmem:[#allocation6 + $0x1928] ss:$48 sps:$4 sm:$0xff]  }
 0x110   :  { %14112 = vmatpush1.bf16.msra.mxu0 %v19986_v45  ;;  %14604 = vmatpush1.bf16.msra.mxu1 %v19989_v46  ;;  %v20074_v45 = vld [vmem:[#allocation6 + $0x1984] ss:$48 sps:$4 sm:$0xff]   ;;  %v20077_v46 = vld [vmem:[#allocation6 + $0x198c] ss:$48 sps:$4 sm:$0xff]  }
 0x111   :  { %14113 = vmatprep.subr.bf16.mxu0 %v19994_v47  ;;  %14605 = vmatprep.subr.bf16.mxu1 %v19997_v49  ;;  %v20072_v47 = vld [vmem:[#allocation6 + $0x1980] ss:$48 sps:$4 sm:$0xff]   ;;  %v20075_v49 = vld [vmem:[#allocation6 + $0x1988] ss:$48 sps:$4 sm:$0xff]  }
 0x114   :  { %14114 = vmatpush1.bf16.msra.mxu0 %v19992_v50  ;;  %14606 = vmatpush1.bf16.msra.mxu1 %v19995_v51  ;;  %v20080_v50 = vld [vmem:[#allocation6 + $0x19e4] ss:$48 sps:$4 sm:$0xff]   ;;  %v20083_v51 = vld [vmem:[#allocation6 + $0x19ec] ss:$48 sps:$4 sm:$0xff]  }
 0x115   :  { %14115 = vmatprep.subr.bf16.mxu0 %v20000_v52  ;;  %14607 = vmatprep.subr.bf16.mxu1 %v20003_v53  ;;  %v20078_v52 = vld [vmem:[#allocation6 + $0x19e0] ss:$48 sps:$4 sm:$0xff]   ;;  %v20081_v53 = vld [vmem:[#allocation6 + $0x19e8] ss:$48 sps:$4 sm:$0xff]  }
 0x118   :  { %14116 = vmatpush1.bf16.msra.mxu0 %v19998_v54  ;;  %14608 = vmatpush1.bf16.msra.mxu1 %v20001_v55  ;;  %v20086_v54 = vld [vmem:[#allocation6 + $0x1a44] ss:$48 sps:$4 sm:$0xff]   ;;  %v20089_v55 = vld [vmem:[#allocation6 + $0x1a4c] ss:$48 sps:$4 sm:$0xff]  }
 0x119   :  { %14117 = vmatprep.subr.bf16.mxu0 %v20006_v56  ;;  %14609 = vmatprep.subr.bf16.mxu1 %v20009_v57  ;;  %v20084_v56 = vld [vmem:[#allocation6 + $0x1a40] ss:$48 sps:$4 sm:$0xff]   ;;  %v20087_v57 = vld [vmem:[#allocation6 + $0x1a48] ss:$48 sps:$4 sm:$0xff]  }
 0x11c   :  { %14118 = vmatpush1.bf16.msra.mxu0 %v20004_v58  ;;  %14610 = vmatpush1.bf16.msra.mxu1 %v20007_v59  ;;  %v20092_v58 = vld [vmem:[#allocation6 + $0x1aa4] ss:$48 sps:$4 sm:$0xff]   ;;  %v20095_v59 = vld [vmem:[#allocation6 + $0x1aac] ss:$48 sps:$4 sm:$0xff]  }
 0x11d   :  { %14119 = vmatprep.subr.bf16.mxu0 %v20012_v60  ;;  %14611 = vmatprep.subr.bf16.mxu1 %v20015_v61  ;;  %v20090_v60 = vld [vmem:[#allocation6 + $0x1aa0] ss:$48 sps:$4 sm:$0xff]   ;;  %v20093_v61 = vld [vmem:[#allocation6 + $0x1aa8] ss:$48 sps:$4 sm:$0xff]  }
 0x120   :  { %14120 = vmatpush1.bf16.msra.mxu0 %v20010_v62  ;;  %14612 = vmatpush1.bf16.msra.mxu1 %v20013_v63  ;;  %v20098_v62 = vld [vmem:[#allocation6 + $0x1b04] ss:$48 sps:$4 sm:$0xff]   ;;  %v20101_v63 = vld [vmem:[#allocation6 + $0x1b0c] ss:$48 sps:$4 sm:$0xff]  }
 0x121   :  { %14121 = vmatprep.subr.bf16.mxu0 %v20018_v0  ;;  %14613 = vmatprep.subr.bf16.mxu1 %v20021_v1  ;;  %v20096_v0 = vld [vmem:[#allocation6 + $0x1b00] ss:$48 sps:$4 sm:$0xff]   ;;  %v20099_v1 = vld [vmem:[#allocation6 + $0x1b08] ss:$48 sps:$4 sm:$0xff]  }
 0x124   :  { %14122 = vmatpush1.bf16.msra.mxu0 %v20016_v2  ;;  %14614 = vmatpush1.bf16.msra.mxu1 %v20019_v3  ;;  %v20104_v2 = vld [vmem:[#allocation6 + $0x1b64] ss:$48 sps:$4 sm:$0xff]   ;;  %v20107_v3 = vld [vmem:[#allocation6 + $0x1b6c] ss:$48 sps:$4 sm:$0xff]  }
 0x125   :  { %14123 = vmatprep.subr.bf16.mxu0 %v20024_v4  ;;  %14615 = vmatprep.subr.bf16.mxu1 %v20027_v6  ;;  %v20102_v4 = vld [vmem:[#allocation6 + $0x1b60] ss:$48 sps:$4 sm:$0xff]   ;;  %v20105_v6 = vld [vmem:[#allocation6 + $0x1b68] ss:$48 sps:$4 sm:$0xff]  }
 0x128   :  { %14124 = vmatpush1.bf16.msra.mxu0 %v20022_v7  ;;  %14616 = vmatpush1.bf16.msra.mxu1 %v20025_v8  ;;  %v20110_v7 = vld [vmem:[#allocation6 + $0x1bc4] ss:$48 sps:$4 sm:$0xff]   ;;  %v20113_v8 = vld [vmem:[#allocation6 + $0x1bcc] ss:$48 sps:$4 sm:$0xff]  }
 0x129   :  { %14125 = vmatprep.subr.bf16.mxu0 %v20030_v9  ;;  %14617 = vmatprep.subr.bf16.mxu1 %v20033_v11  ;;  %v20108_v9 = vld [vmem:[#allocation6 + $0x1bc0] ss:$48 sps:$4 sm:$0xff]   ;;  %v20111_v11 = vld [vmem:[#allocation6 + $0x1bc8] ss:$48 sps:$4 sm:$0xff]  }
 0x12c   :  { %14126 = vmatpush1.bf16.msra.mxu0 %v20028_v12  ;;  %14618 = vmatpush1.bf16.msra.mxu1 %v20031_v14  ;;  %v20116_v12 = vld [vmem:[#allocation6 + $0x1c24] ss:$48 sps:$4 sm:$0xff]   ;;  %v20119_v14 = vld [vmem:[#allocation6 + $0x1c2c] ss:$48 sps:$4 sm:$0xff]  }
 0x12d   :  { %14127 = vmatprep.subr.bf16.mxu0 %v20036_v16  ;;  %14619 = vmatprep.subr.bf16.mxu1 %v20039_v17  ;;  %v20114_v16 = vld [vmem:[#allocation6 + $0x1c20] ss:$48 sps:$4 sm:$0xff]   ;;  %v20117_v17 = vld [vmem:[#allocation6 + $0x1c28] ss:$48 sps:$4 sm:$0xff]  }
 0x130   :  { %14128 = vmatpush1.bf16.msra.mxu0 %v20034_v18  ;;  %14620 = vmatpush1.bf16.msra.mxu1 %v20037_v19  ;;  %v20122_v18 = vld [vmem:[#allocation6 + $0x1c84] ss:$48 sps:$4 sm:$0xff]   ;;  %v20125_v19 = vld [vmem:[#allocation6 + $0x1c8c] ss:$48 sps:$4 sm:$0xff]  }
 0x131   :  { %14129 = vmatprep.subr.bf16.mxu0 %v20042_v22  ;;  %14621 = vmatprep.subr.bf16.mxu1 %v20045_v23  ;;  %v20120_v22 = vld [vmem:[#allocation6 + $0x1c80] ss:$48 sps:$4 sm:$0xff]   ;;  %v20123_v23 = vld [vmem:[#allocation6 + $0x1c88] ss:$48 sps:$4 sm:$0xff]  }
 0x134   :  { %14130 = vmatpush1.bf16.msra.mxu0 %v20040_v25  ;;  %14622 = vmatpush1.bf16.msra.mxu1 %v20043_v26  ;;  %v20128_v25 = vld [vmem:[#allocation6 + $0x1ce4] ss:$48 sps:$4 sm:$0xff]   ;;  %v20131_v26 = vld [vmem:[#allocation6 + $0x1cec] ss:$48 sps:$4 sm:$0xff]  }
 0x135   :  { %14140 = vmatprep.subr.bf16.mxu0 %v20049_v13  ;;  %14632 = vmatprep.subr.bf16.mxu1 %v20052_v27  ;;  %v20126_v13 = vld [vmem:[#allocation6 + $0x1ce0] ss:$48 sps:$4 sm:$0xff]   ;;  %v20129_v27 = vld [vmem:[#allocation6 + $0x1ce8] ss:$48 sps:$4 sm:$0xff]  }
 0x137   :  { %14132 = vmatmul.mubr.bf16.vlgmr.msra.gmra.mrb[0].mxu0 %v23344_v29  ;;  %14624 = vmatmul.mubr.bf16.vlgmr.msra.gmra.mrb[0].mxu1 %v23344_v29 }
 0x138   :  { %14141 = vmatpush1.bf16.msra.mxu0 %v20047_v28  ;;  %14633 = vmatpush1.bf16.msra.mxu1 %v20050_v32  ;;  %v20134_v28 = vld [vmem:[#allocation6 + $0x1d44] ss:$48 sps:$4 sm:$0xff]   ;;  %v20137_v32 = vld [vmem:[#allocation6 + $0x1d4c] ss:$48 sps:$4 sm:$0xff]  }
 0x139   :  { %14142 = vmatprep.subr.bf16.mxu0 %v20056_v33  ;;  %14634 = vmatprep.subr.bf16.mxu1 %v20059_v34  ;;  %v20132_v33 = vld [vmem:[#allocation6 + $0x1d40] ss:$48 sps:$4 sm:$0xff]   ;;  %v20135_v34 = vld [vmem:[#allocation6 + $0x1d48] ss:$48 sps:$4 sm:$0xff]  }
 0x13a   :  { %14172 = vmatprep.mubr.bf16.mxu0 %v23350_v35  ;;  %14664 = vmatprep.mubr.bf16.mxu1 %v23350_v35 }
 0x13c   :  { %14143 = vmatpush1.bf16.msra.mxu0 %v20054_v21  ;;  %14635 = vmatpush1.bf16.msra.mxu1 %v20057_v36  ;;  %v20140_v21 = vld [vmem:[#allocation6 + $0x1da4] ss:$48 sps:$4 sm:$0xff]   ;;  %v20143_v36 = vld [vmem:[#allocation6 + $0x1dac] ss:$48 sps:$4 sm:$0xff]  }
 0x13d   :  { %14144 = vmatprep.subr.bf16.mxu0 %v20062_v37  ;;  %14636 = vmatprep.subr.bf16.mxu1 %v20065_v38  ;;  %v20138_v37 = vld [vmem:[#allocation6 + $0x1da0] ss:$48 sps:$4 sm:$0xff]   ;;  %v20141_v38 = vld [vmem:[#allocation6 + $0x1da8] ss:$48 sps:$4 sm:$0xff]  }
 0x140   :  { %14145 = vmatpush1.bf16.msra.mxu0 %v20060_v39  ;;  %14637 = vmatpush1.bf16.msra.mxu1 %v20063_v40  ;;  %v20147_v39 = vld [vmem:[#allocation6 + $0x1e04] ss:$48 sps:$4 sm:$0xff]   ;;  %v20150_v40 = vld [vmem:[#allocation6 + $0x1e0c] ss:$48 sps:$4 sm:$0xff]  }
 0x141   :  { %14146 = vmatprep.subr.bf16.mxu0 %v20068_v41  ;;  %14638 = vmatprep.subr.bf16.mxu1 %v20071_v42  ;;  %v23356_v41 = vld [vmem:[#allocation3 + $0x28] sm:$0xff]  ;;  %v23360_v42 = vcombine.low %v23346_v31, %v23346_v31  ;;  %v20152_v31 = vld [vmem:[#allocation6 + $0x1e60] ss:$48 sps:$4 sm:$0xff]  }
 0x144   :  { %14147 = vmatpush1.bf16.msra.mxu0 %v20066_v43  ;;  %14639 = vmatpush1.bf16.msra.mxu1 %v20069_v44  ;;  %v20145_v43 = vld [vmem:[#allocation6 + $0x1e00] ss:$48 sps:$4 sm:$0xff]   ;;  %v20148_v44 = vld [vmem:[#allocation6 + $0x1e08] ss:$48 sps:$4 sm:$0xff]  }
 0x145   :  { %14148 = vmatprep.subr.bf16.mxu0 %v20074_v45  ;;  %14640 = vmatprep.subr.bf16.mxu1 %v20077_v46  ;;  %v20154_v45 = vld [vmem:[#allocation6 + $0x1e64] ss:$48 sps:$4 sm:$0xff]   ;;  %v20157_v46 = vld [vmem:[#allocation6 + $0x1e6c] ss:$48 sps:$4 sm:$0xff]  }
 0x148   :  { %14149 = vmatpush1.bf16.msra.mxu0 %v20072_v47  ;;  %14641 = vmatpush1.bf16.msra.mxu1 %v20075_v49  ;;  %v23364_v47 = vcombine.high %v23356_v41, %v23356_v41  ;;  %v20155_v49 = vld [vmem:[#allocation6 + $0x1e68] ss:$48 sps:$4 sm:$0xff]  }
 0x149   :  { %14150 = vmatprep.subr.bf16.mxu0 %v20080_v50  ;;  %14642 = vmatprep.subr.bf16.mxu1 %v20083_v51  ;;  %v20160_v50 = vld [vmem:[#allocation6 + $0x1ec4] ss:$48 sps:$4 sm:$0xff]   ;;  %v20163_v51 = vld [vmem:[#allocation6 + $0x1ecc] ss:$48 sps:$4 sm:$0xff]  }
 0x14c   :  { %14151 = vmatpush1.bf16.msra.mxu0 %v20078_v52  ;;  %14643 = vmatpush1.bf16.msra.mxu1 %v20081_v53  ;;  %v20158_v52 = vld [vmem:[#allocation6 + $0x1ec0] ss:$48 sps:$4 sm:$0xff]   ;;  %v20161_v53 = vld [vmem:[#allocation6 + $0x1ec8] ss:$48 sps:$4 sm:$0xff]  }
 0x14d   :  { %14152 = vmatprep.subr.bf16.mxu0 %v20086_v54  ;;  %14644 = vmatprep.subr.bf16.mxu1 %v20089_v55  ;;  %v20166_v54 = vld [vmem:[#allocation6 + $0x1f24] ss:$48 sps:$4 sm:$0xff]   ;;  %v20169_v55 = vld [vmem:[#allocation6 + $0x1f2c] ss:$48 sps:$4 sm:$0xff]  }
 0x150   :  { %14153 = vmatpush1.bf16.msra.mxu0 %v20084_v56  ;;  %14645 = vmatpush1.bf16.msra.mxu1 %v20087_v57  ;;  %v20164_v56 = vld [vmem:[#allocation6 + $0x1f20] ss:$48 sps:$4 sm:$0xff]   ;;  %v20167_v57 = vld [vmem:[#allocation6 + $0x1f28] ss:$48 sps:$4 sm:$0xff]  }
 0x151   :  { %14154 = vmatprep.subr.bf16.mxu0 %v20092_v58  ;;  %14646 = vmatprep.subr.bf16.mxu1 %v20095_v59  ;;  %v20172_v58 = vld [vmem:[#allocation6 + $0x1f84] ss:$48 sps:$4 sm:$0xff]   ;;  %v20175_v59 = vld [vmem:[#allocation6 + $0x1f8c] ss:$48 sps:$4 sm:$0xff]  }
 0x154   :  { %14155 = vmatpush1.bf16.msra.mxu0 %v20090_v60  ;;  %14647 = vmatpush1.bf16.msra.mxu1 %v20093_v61  ;;  %v20170_v60 = vld [vmem:[#allocation6 + $0x1f80] ss:$48 sps:$4 sm:$0xff]   ;;  %v20173_v61 = vld [vmem:[#allocation6 + $0x1f88] ss:$48 sps:$4 sm:$0xff]  }
 0x155   :  { %14156 = vmatprep.subr.bf16.mxu0 %v20098_v62  ;;  %14648 = vmatprep.subr.bf16.mxu1 %v20101_v63  ;;  %v20178_v62 = vld [vmem:[#allocation6 + $0x1fe4] ss:$48 sps:$4 sm:$0xff]   ;;  %v20181_v63 = vld [vmem:[#allocation6 + $0x1fec] ss:$48 sps:$4 sm:$0xff]  }
 0x158   :  { %14157 = vmatpush1.bf16.msra.mxu0 %v20096_v0  ;;  %14649 = vmatpush1.bf16.msra.mxu1 %v20099_v1  ;;  %v20176_v0 = vld [vmem:[#allocation6 + $0x1fe0] ss:$48 sps:$4 sm:$0xff]   ;;  %v20179_v1 = vld [vmem:[#allocation6 + $0x1fe8] ss:$48 sps:$4 sm:$0xff]  }
 0x159   :  { %14158 = vmatprep.subr.bf16.mxu0 %v20104_v2  ;;  %14650 = vmatprep.subr.bf16.mxu1 %v20107_v3  ;;  %v20184_v2 = vld [vmem:[#allocation6 + $0x2044] ss:$48 sps:$4 sm:$0xff]   ;;  %v20187_v3 = vld [vmem:[#allocation6 + $0x204c] ss:$48 sps:$4 sm:$0xff]  }
 0x15c   :  { %14159 = vmatpush1.bf16.msra.mxu0 %v20102_v4  ;;  %14651 = vmatpush1.bf16.msra.mxu1 %v20105_v6  ;;  %v20182_v4 = vld [vmem:[#allocation6 + $0x2040] ss:$48 sps:$4 sm:$0xff]   ;;  %v20185_v6 = vld [vmem:[#allocation6 + $0x2048] ss:$48 sps:$4 sm:$0xff]  }
 0x15d   :  { %14160 = vmatprep.subr.bf16.mxu0 %v20110_v7  ;;  %14652 = vmatprep.subr.bf16.mxu1 %v20113_v8  ;;  %v20190_v7 = vld [vmem:[#allocation6 + $0x20a4] ss:$48 sps:$4 sm:$0xff]   ;;  %v20193_v8 = vld [vmem:[#allocation6 + $0x20ac] ss:$48 sps:$4 sm:$0xff]  }
 0x160   :  { %14161 = vmatpush1.bf16.msra.mxu0 %v20108_v9  ;;  %14653 = vmatpush1.bf16.msra.mxu1 %v20111_v11  ;;  %v20188_v9 = vld [vmem:[#allocation6 + $0x20a0] ss:$48 sps:$4 sm:$0xff]   ;;  %v20191_v11 = vld [vmem:[#allocation6 + $0x20a8] ss:$48 sps:$4 sm:$0xff]  }
 0x161   :  { %14162 = vmatprep.subr.bf16.mxu0 %v20116_v12  ;;  %14654 = vmatprep.subr.bf16.mxu1 %v20119_v14  ;;  %v20196_v12 = vld [vmem:[#allocation6 + $0x2104] ss:$48 sps:$4 sm:$0xff]   ;;  %v20199_v14 = vld [vmem:[#allocation6 + $0x210c] ss:$48 sps:$4 sm:$0xff]  }
 0x164   :  { %14163 = vmatpush1.bf16.msra.mxu0 %v20114_v16  ;;  %14655 = vmatpush1.bf16.msra.mxu1 %v20117_v17  ;;  %v20194_v16 = vld [vmem:[#allocation6 + $0x2100] ss:$48 sps:$4 sm:$0xff]   ;;  %v20197_v17 = vld [vmem:[#allocation6 + $0x2108] ss:$48 sps:$4 sm:$0xff]  }
 0x165   :  { %14164 = vmatprep.subr.bf16.mxu0 %v20122_v18  ;;  %14656 = vmatprep.subr.bf16.mxu1 %v20125_v19  ;;  %v20202_v18 = vld [vmem:[#allocation6 + $0x2164] ss:$48 sps:$4 sm:$0xff]   ;;  %v20205_v19 = vld [vmem:[#allocation6 + $0x216c] ss:$48 sps:$4 sm:$0xff]  }
 0x168   :  { %14165 = vmatpush1.bf16.msra.mxu0 %v20120_v22  ;;  %14657 = vmatpush1.bf16.msra.mxu1 %v20123_v23  ;;  %v20200_v22 = vld [vmem:[#allocation6 + $0x2160] ss:$48 sps:$4 sm:$0xff]   ;;  %v20203_v23 = vld [vmem:[#allocation6 + $0x2168] ss:$48 sps:$4 sm:$0xff]  }
 0x169   :  { %14166 = vmatprep.subr.bf16.mxu0 %v20128_v25  ;;  %14658 = vmatprep.subr.bf16.mxu1 %v20131_v26  ;;  %v20208_v25 = vld [vmem:[#allocation6 + $0x21c4] ss:$48 sps:$4 sm:$0xff]   ;;  %v20211_v26 = vld [vmem:[#allocation6 + $0x21cc] ss:$48 sps:$4 sm:$0xff]  }
 0x16c   :  { %14167 = vmatpush1.bf16.msra.mxu0 %v20126_v13  ;;  %14659 = vmatpush1.bf16.msra.mxu1 %v20129_v27  ;;  %v20206_v13 = vld [vmem:[#allocation6 + $0x21c0] ss:$48 sps:$4 sm:$0xff]   ;;  %v20209_v27 = vld [vmem:[#allocation6 + $0x21c8] ss:$48 sps:$4 sm:$0xff]  }
 0x16d   :  { %14168 = vmatprep.subr.bf16.mxu0 %v20134_v28  ;;  %14660 = vmatprep.subr.bf16.mxu1 %v20137_v32  ;;  %v20214_v28 = vld [vmem:[#allocation6 + $0x2224] ss:$48 sps:$4 sm:$0xff]   ;;  %v20217_v32 = vld [vmem:[#allocation6 + $0x222c] ss:$48 sps:$4 sm:$0xff]  }
 0x170   :  { %14169 = vmatpush1.bf16.msra.mxu0 %v20132_v33  ;;  %14661 = vmatpush1.bf16.msra.mxu1 %v20135_v34  ;;  %v20212_v33 = vld [vmem:[#allocation6 + $0x2220] ss:$48 sps:$4 sm:$0xff]   ;;  %v20215_v34 = vld [vmem:[#allocation6 + $0x2228] ss:$48 sps:$4 sm:$0xff]  }
 0x171   :  { %14170 = vmatprep.subr.bf16.mxu0 %v20140_v21  ;;  %14662 = vmatprep.subr.bf16.mxu1 %v20143_v36  ;;  %v20220_v21 = vld [vmem:[#allocation6 + $0x2284] ss:$48 sps:$4 sm:$0xff]   ;;  %v20223_v36 = vld [vmem:[#allocation6 + $0x228c] ss:$48 sps:$4 sm:$0xff]  }
 0x174   :  { %14171 = vmatpush1.bf16.msra.mxu0 %v20138_v37  ;;  %14663 = vmatpush1.bf16.msra.mxu1 %v20141_v38  ;;  %v20218_v37 = vld [vmem:[#allocation6 + $0x2280] ss:$48 sps:$4 sm:$0xff]   ;;  %v20221_v38 = vld [vmem:[#allocation6 + $0x2288] ss:$48 sps:$4 sm:$0xff]  }
 0x175   :  { %14181 = vmatprep.subr.bf16.mxu0 %v20147_v39  ;;  %14673 = vmatprep.subr.bf16.mxu1 %v20150_v40  ;;  %v20226_v39 = vld [vmem:[#allocation6 + $0x22e4] ss:$48 sps:$4 sm:$0xff]   ;;  %v20229_v40 = vld [vmem:[#allocation6 + $0x22ec] ss:$48 sps:$4 sm:$0xff]  }
 0x177   :  { %14173 = vmatmul.mubr.bf16.vlgmr.msra.gmra.mrb[0].mxu0 %v23360_v42  ;;  %14665 = vmatmul.mubr.bf16.vlgmr.msra.gmra.mrb[0].mxu1 %v23360_v42 }
 0x178   :  { %14182 = vmatpush1.bf16.msra.mxu0 %v20145_v43  ;;  %14674 = vmatpush1.bf16.msra.mxu1 %v20148_v44  ;;  %v20224_v43 = vld [vmem:[#allocation6 + $0x22e0] ss:$48 sps:$4 sm:$0xff]   ;;  %v20227_v44 = vld [vmem:[#allocation6 + $0x22e8] ss:$48 sps:$4 sm:$0xff]  }
 0x179   :  { %14183 = vmatprep.subr.bf16.mxu0 %v20154_v45  ;;  %14675 = vmatprep.subr.bf16.mxu1 %v20157_v46  ;;  %v20232_v45 = vld [vmem:[#allocation6 + $0x2344] ss:$48 sps:$4 sm:$0xff]   ;;  %v20235_v46 = vld [vmem:[#allocation6 + $0x234c] ss:$48 sps:$4 sm:$0xff]  }
 0x17a   :  { %14213 = vmatprep.mubr.bf16.mxu0 %v23364_v47  ;;  %14705 = vmatprep.mubr.bf16.mxu1 %v23364_v47 }
 0x17c   :  { %14184 = vmatpush1.bf16.msra.mxu0 %v20152_v31  ;;  %14676 = vmatpush1.bf16.msra.mxu1 %v20155_v49  ;;  %v20230_v31 = vld [vmem:[#allocation6 + $0x2340] ss:$48 sps:$4 sm:$0xff]   ;;  %v20233_v49 = vld [vmem:[#allocation6 + $0x2348] ss:$48 sps:$4 sm:$0xff]  }
 0x17d   :  { %14185 = vmatprep.subr.bf16.mxu0 %v20160_v50  ;;  %14677 = vmatprep.subr.bf16.mxu1 %v20163_v51  ;;  %v20238_v50 = vld [vmem:[#allocation6 + $0x23a4] ss:$48 sps:$4 sm:$0xff]   ;;  %v20241_v51 = vld [vmem:[#allocation6 + $0x23ac] ss:$48 sps:$4 sm:$0xff]  }
 0x180   :  { %14186 = vmatpush1.bf16.msra.mxu0 %v20158_v52  ;;  %14678 = vmatpush1.bf16.msra.mxu1 %v20161_v53  ;;  %v20236_v52 = vld [vmem:[#allocation6 + $0x23a0] ss:$48 sps:$4 sm:$0xff]   ;;  %v20239_v53 = vld [vmem:[#allocation6 + $0x23a8] ss:$48 sps:$4 sm:$0xff]  }
 0x181   :  { %14187 = vmatprep.subr.bf16.mxu0 %v20166_v54  ;;  %14679 = vmatprep.subr.bf16.mxu1 %v20169_v55  ;;  %v20245_v54 = vld [vmem:[#allocation6 + $0x2404] ss:$48 sps:$4 sm:$0xff]   ;;  %v20248_v55 = vld [vmem:[#allocation6 + $0x240c] ss:$48 sps:$4 sm:$0xff]  }
 0x184   :  { %14188 = vmatpush1.bf16.msra.mxu0 %v20164_v56  ;;  %14680 = vmatpush1.bf16.msra.mxu1 %v20167_v57  ;;  %v23370_v56 = vld [vmem:[#allocation3 + $0x30] sm:$0xff]  ;;  %v23374_v57 = vcombine.low %v23356_v41, %v23356_v41 }
 0x185   :  { %14189 = vmatprep.subr.bf16.mxu0 %v20172_v58  ;;  %14681 = vmatprep.subr.bf16.mxu1 %v20175_v59  ;;  %v20243_v58 = vld [vmem:[#allocation6 + $0x2400] ss:$48 sps:$4 sm:$0xff]   ;;  %v20246_v59 = vld [vmem:[#allocation6 + $0x2408] ss:$48 sps:$4 sm:$0xff]  }
 0x186   :  { %v20250_v41 = vld [vmem:[#allocation6 + $0x2460] ss:$48 sps:$4 sm:$0xff]  }
 0x188   :  { %14190 = vmatpush1.bf16.msra.mxu0 %v20170_v60  ;;  %14682 = vmatpush1.bf16.msra.mxu1 %v20173_v61  ;;  %v20252_v60 = vld [vmem:[#allocation6 + $0x2464] ss:$48 sps:$4 sm:$0xff]   ;;  %v20255_v61 = vld [vmem:[#allocation6 + $0x246c] ss:$48 sps:$4 sm:$0xff]  }
 0x189   :  { %14191 = vmatprep.subr.bf16.mxu0 %v20178_v62  ;;  %14683 = vmatprep.subr.bf16.mxu1 %v20181_v63  ;;  %v23378_v62 = vcombine.high %v23370_v56, %v23370_v56  ;;  %v20253_v63 = vld [vmem:[#allocation6 + $0x2468] ss:$48 sps:$4 sm:$0xff]  }
 0x18c   :  { %14192 = vmatpush1.bf16.msra.mxu0 %v20176_v0  ;;  %14684 = vmatpush1.bf16.msra.mxu1 %v20179_v1  ;;  %v20258_v0 = vld [vmem:[#allocation6 + $0x24c4] ss:$48 sps:$4 sm:$0xff]   ;;  %v20261_v1 = vld [vmem:[#allocation6 + $0x24cc] ss:$48 sps:$4 sm:$0xff]  }
 0x18d   :  { %14193 = vmatprep.subr.bf16.mxu0 %v20184_v2  ;;  %14685 = vmatprep.subr.bf16.mxu1 %v20187_v3  ;;  %v20256_v2 = vld [vmem:[#allocation6 + $0x24c0] ss:$48 sps:$4 sm:$0xff]   ;;  %v20259_v3 = vld [vmem:[#allocation6 + $0x24c8] ss:$48 sps:$4 sm:$0xff]  }
 0x190   :  { %14194 = vmatpush1.bf16.msra.mxu0 %v20182_v4  ;;  %14686 = vmatpush1.bf16.msra.mxu1 %v20185_v6  ;;  %v20264_v4 = vld [vmem:[#allocation6 + $0x2524] ss:$48 sps:$4 sm:$0xff]   ;;  %v20267_v6 = vld [vmem:[#allocation6 + $0x252c] ss:$48 sps:$4 sm:$0xff]  }
 0x191   :  { %14195 = vmatprep.subr.bf16.mxu0 %v20190_v7  ;;  %14687 = vmatprep.subr.bf16.mxu1 %v20193_v8  ;;  %v20262_v7 = vld [vmem:[#allocation6 + $0x2520] ss:$48 sps:$4 sm:$0xff]   ;;  %v20265_v8 = vld [vmem:[#allocation6 + $0x2528] ss:$48 sps:$4 sm:$0xff]  }
 0x194   :  { %14196 = vmatpush1.bf16.msra.mxu0 %v20188_v9  ;;  %14688 = vmatpush1.bf16.msra.mxu1 %v20191_v11  ;;  %v20270_v9 = vld [vmem:[#allocation6 + $0x2584] ss:$48 sps:$4 sm:$0xff]   ;;  %v20273_v11 = vld [vmem:[#allocation6 + $0x258c] ss:$48 sps:$4 sm:$0xff]  }
 0x195   :  { %14197 = vmatprep.subr.bf16.mxu0 %v20196_v12  ;;  %14689 = vmatprep.subr.bf16.mxu1 %v20199_v14  ;;  %v20268_v12 = vld [vmem:[#allocation6 + $0x2580] ss:$48 sps:$4 sm:$0xff]   ;;  %v20271_v14 = vld [vmem:[#allocation6 + $0x2588] ss:$48 sps:$4 sm:$0xff]  }
 0x198   :  { %14198 = vmatpush1.bf16.msra.mxu0 %v20194_v16  ;;  %14690 = vmatpush1.bf16.msra.mxu1 %v20197_v17  ;;  %v20276_v16 = vld [vmem:[#allocation6 + $0x25e4] ss:$48 sps:$4 sm:$0xff]   ;;  %v20279_v17 = vld [vmem:[#allocation6 + $0x25ec] ss:$48 sps:$4 sm:$0xff]  }
 0x199   :  { %14199 = vmatprep.subr.bf16.mxu0 %v20202_v18  ;;  %14691 = vmatprep.subr.bf16.mxu1 %v20205_v19  ;;  %v20274_v18 = vld [vmem:[#allocation6 + $0x25e0] ss:$48 sps:$4 sm:$0xff]   ;;  %v20277_v19 = vld [vmem:[#allocation6 + $0x25e8] ss:$48 sps:$4 sm:$0xff]  }
 0x19c   :  { %14200 = vmatpush1.bf16.msra.mxu0 %v20200_v22  ;;  %14692 = vmatpush1.bf16.msra.mxu1 %v20203_v23  ;;  %v20282_v22 = vld [vmem:[#allocation6 + $0x2644] ss:$48 sps:$4 sm:$0xff]   ;;  %v20285_v23 = vld [vmem:[#allocation6 + $0x264c] ss:$48 sps:$4 sm:$0xff]  }
 0x19d   :  { %14201 = vmatprep.subr.bf16.mxu0 %v20208_v25  ;;  %14693 = vmatprep.subr.bf16.mxu1 %v20211_v26  ;;  %v20280_v25 = vld [vmem:[#allocation6 + $0x2640] ss:$48 sps:$4 sm:$0xff]   ;;  %v20283_v26 = vld [vmem:[#allocation6 + $0x2648] ss:$48 sps:$4 sm:$0xff]  }
 0x1a0   :  { %14202 = vmatpush1.bf16.msra.mxu0 %v20206_v13  ;;  %14694 = vmatpush1.bf16.msra.mxu1 %v20209_v27  ;;  %v20288_v13 = vld [vmem:[#allocation6 + $0x26a4] ss:$48 sps:$4 sm:$0xff]   ;;  %v20291_v27 = vld [vmem:[#allocation6 + $0x26ac] ss:$48 sps:$4 sm:$0xff]  }
 0x1a1   :  { %14203 = vmatprep.subr.bf16.mxu0 %v20214_v28  ;;  %14695 = vmatprep.subr.bf16.mxu1 %v20217_v32  ;;  %v20286_v28 = vld [vmem:[#allocation6 + $0x26a0] ss:$48 sps:$4 sm:$0xff]   ;;  %v20289_v32 = vld [vmem:[#allocation6 + $0x26a8] ss:$48 sps:$4 sm:$0xff]  }
 0x1a4   :  { %14204 = vmatpush1.bf16.msra.mxu0 %v20212_v33  ;;  %14696 = vmatpush1.bf16.msra.mxu1 %v20215_v34  ;;  %v20294_v33 = vld [vmem:[#allocation6 + $0x2704] ss:$48 sps:$4 sm:$0xff]   ;;  %v20297_v34 = vld [vmem:[#allocation6 + $0x270c] ss:$48 sps:$4 sm:$0xff]  }
 0x1a5   :  { %14205 = vmatprep.subr.bf16.mxu0 %v20220_v21  ;;  %14697 = vmatprep.subr.bf16.mxu1 %v20223_v36  ;;  %v20292_v21 = vld [vmem:[#allocation6 + $0x2700] ss:$48 sps:$4 sm:$0xff]   ;;  %v20295_v36 = vld [vmem:[#allocation6 + $0x2708] ss:$48 sps:$4 sm:$0xff]  }
 0x1a8   :  { %14206 = vmatpush1.bf16.msra.mxu0 %v20218_v37  ;;  %14698 = vmatpush1.bf16.msra.mxu1 %v20221_v38  ;;  %v20300_v37 = vld [vmem:[#allocation6 + $0x2764] ss:$48 sps:$4 sm:$0xff]   ;;  %v20303_v38 = vld [vmem:[#allocation6 + $0x276c] ss:$48 sps:$4 sm:$0xff]  }
 0x1a9   :  { %14207 = vmatprep.subr.bf16.mxu0 %v20226_v39  ;;  %14699 = vmatprep.subr.bf16.mxu1 %v20229_v40  ;;  %v20298_v39 = vld [vmem:[#allocation6 + $0x2760] ss:$48 sps:$4 sm:$0xff]   ;;  %v20301_v40 = vld [vmem:[#allocation6 + $0x2768] ss:$48 sps:$4 sm:$0xff]  }
 0x1ac   :  { %14208 = vmatpush1.bf16.msra.mxu0 %v20224_v43  ;;  %14700 = vmatpush1.bf16.msra.mxu1 %v20227_v44  ;;  %v20306_v43 = vld [vmem:[#allocation6 + $0x27c4] ss:$48 sps:$4 sm:$0xff]   ;;  %v20309_v44 = vld [vmem:[#allocation6 + $0x27cc] ss:$48 sps:$4 sm:$0xff]  }
 0x1ad   :  { %14209 = vmatprep.subr.bf16.mxu0 %v20232_v45  ;;  %14701 = vmatprep.subr.bf16.mxu1 %v20235_v46  ;;  %v20304_v45 = vld [vmem:[#allocation6 + $0x27c0] ss:$48 sps:$4 sm:$0xff]   ;;  %v20307_v46 = vld [vmem:[#allocation6 + $0x27c8] ss:$48 sps:$4 sm:$0xff]  }
 0x1b0   :  { %14210 = vmatpush1.bf16.msra.mxu0 %v20230_v31  ;;  %14702 = vmatpush1.bf16.msra.mxu1 %v20233_v49  ;;  %v20312_v31 = vld [vmem:[#allocation6 + $0x2824] ss:$48 sps:$4 sm:$0xff]   ;;  %v20315_v49 = vld [vmem:[#allocation6 + $0x282c] ss:$48 sps:$4 sm:$0xff]  }
 0x1b1   :  { %14211 = vmatprep.subr.bf16.mxu0 %v20238_v50  ;;  %14703 = vmatprep.subr.bf16.mxu1 %v20241_v51  ;;  %v20310_v50 = vld [vmem:[#allocation6 + $0x2820] ss:$48 sps:$4 sm:$0xff]   ;;  %v20313_v51 = vld [vmem:[#allocation6 + $0x2828] ss:$48 sps:$4 sm:$0xff]  }
 0x1b4   :  { %14212 = vmatpush1.bf16.msra.mxu0 %v20236_v52  ;;  %14704 = vmatpush1.bf16.msra.mxu1 %v20239_v53  ;;  %v20318_v52 = vld [vmem:[#allocation6 + $0x2884] ss:$48 sps:$4 sm:$0xff]   ;;  %v20321_v53 = vld [vmem:[#allocation6 + $0x288c] ss:$48 sps:$4 sm:$0xff]  }
 0x1b5   :  { %14222 = vmatprep.subr.bf16.mxu0 %v20245_v54  ;;  %14714 = vmatprep.subr.bf16.mxu1 %v20248_v55  ;;  %v20316_v54 = vld [vmem:[#allocation6 + $0x2880] ss:$48 sps:$4 sm:$0xff]   ;;  %v20319_v55 = vld [vmem:[#allocation6 + $0x2888] ss:$48 sps:$4 sm:$0xff]  }
 0x1b7   :  { %14214 = vmatmul.mubr.bf16.vlgmr.msra.gmra.mrb[0].mxu0 %v23374_v57  ;;  %14706 = vmatmul.mubr.bf16.vlgmr.msra.gmra.mrb[0].mxu1 %v23374_v57 }
 0x1b8   :  { %14223 = vmatpush1.bf16.msra.mxu0 %v20243_v58  ;;  %14715 = vmatpush1.bf16.msra.mxu1 %v20246_v59  ;;  %v20324_v58 = vld [vmem:[#allocation6 + $0x28e4] ss:$48 sps:$4 sm:$0xff]   ;;  %v20327_v59 = vld [vmem:[#allocation6 + $0x28ec] ss:$48 sps:$4 sm:$0xff]  }
 0x1b9   :  { %14224 = vmatprep.subr.bf16.mxu0 %v20252_v60  ;;  %14716 = vmatprep.subr.bf16.mxu1 %v20255_v61  ;;  %v20322_v60 = vld [vmem:[#allocation6 + $0x28e0] ss:$48 sps:$4 sm:$0xff]   ;;  %v20325_v61 = vld [vmem:[#allocation6 + $0x28e8] ss:$48 sps:$4 sm:$0xff]  }
 0x1ba   :  { %14254 = vmatprep.mubr.bf16.mxu0 %v23378_v62  ;;  %14746 = vmatprep.mubr.bf16.mxu1 %v23378_v62 }
 0x1bc   :  { %14225 = vmatpush1.bf16.msra.mxu0 %v20250_v41  ;;  %14717 = vmatpush1.bf16.msra.mxu1 %v20253_v63  ;;  %v20330_v41 = vld [vmem:[#allocation6 + $0x2944] ss:$48 sps:$4 sm:$0xff]   ;;  %v20333_v63 = vld [vmem:[#allocation6 + $0x294c] ss:$48 sps:$4 sm:$0xff]  }
 0x1bd   :  { %14226 = vmatprep.subr.bf16.mxu0 %v20258_v0  ;;  %14718 = vmatprep.subr.bf16.mxu1 %v20261_v1  ;;  %v20328_v0 = vld [vmem:[#allocation6 + $0x2940] ss:$48 sps:$4 sm:$0xff]   ;;  %v20331_v1 = vld [vmem:[#allocation6 + $0x2948] ss:$48 sps:$4 sm:$0xff]  }
 0x1c0   :  { %14227 = vmatpush1.bf16.msra.mxu0 %v20256_v2  ;;  %14719 = vmatpush1.bf16.msra.mxu1 %v20259_v3  ;;  %v20336_v2 = vld [vmem:[#allocation6 + $0x29a4] ss:$48 sps:$4 sm:$0xff]   ;;  %v20339_v3 = vld [vmem:[#allocation6 + $0x29ac] ss:$48 sps:$4 sm:$0xff]  }
 0x1c1   :  { %14228 = vmatprep.subr.bf16.mxu0 %v20264_v4  ;;  %14720 = vmatprep.subr.bf16.mxu1 %v20267_v6  ;;  %v20334_v4 = vld [vmem:[#allocation6 + $0x29a0] ss:$48 sps:$4 sm:$0xff]   ;;  %v20337_v6 = vld [vmem:[#allocation6 + $0x29a8] ss:$48 sps:$4 sm:$0xff]  }
 0x1c4   :  { %14229 = vmatpush1.bf16.msra.mxu0 %v20262_v7  ;;  %14721 = vmatpush1.bf16.msra.mxu1 %v20265_v8  ;;  %v20343_v7 = vld [vmem:[#allocation6 + $0x2a04] ss:$48 sps:$4 sm:$0xff]   ;;  %v20346_v8 = vld [vmem:[#allocation6 + $0x2a0c] ss:$48 sps:$4 sm:$0xff]  }
 0x1c5   :  { %14230 = vmatprep.subr.bf16.mxu0 %v20270_v9  ;;  %14722 = vmatprep.subr.bf16.mxu1 %v20273_v11  ;;  %v23384_v9 = vld [vmem:[#allocation3 + $0x38] sm:$0xff]  ;;  %v23388_v11 = vcombine.low %v23370_v56, %v23370_v56  ;;  %v20348_v56 = vld [vmem:[#allocation6 + $0x2a60] ss:$48 sps:$4 sm:$0xff]  }
 0x1c8   :  { %14231 = vmatpush1.bf16.msra.mxu0 %v20268_v12  ;;  %14723 = vmatpush1.bf16.msra.mxu1 %v20271_v14  ;;  %v20341_v12 = vld [vmem:[#allocation6 + $0x2a00] ss:$48 sps:$4 sm:$0xff]   ;;  %v20344_v14 = vld [vmem:[#allocation6 + $0x2a08] ss:$48 sps:$4 sm:$0xff]  }
 0x1c9   :  { %14232 = vmatprep.subr.bf16.mxu0 %v20276_v16  ;;  %14724 = vmatprep.subr.bf16.mxu1 %v20279_v17  ;;  %v20350_v16 = vld [vmem:[#allocation6 + $0x2a64] ss:$48 sps:$4 sm:$0xff]   ;;  %v20353_v17 = vld [vmem:[#allocation6 + $0x2a6c] ss:$48 sps:$4 sm:$0xff]  }
 0x1cc   :  { %14233 = vmatpush1.bf16.msra.mxu0 %v20274_v18  ;;  %14725 = vmatpush1.bf16.msra.mxu1 %v20277_v19  ;;  %v23392_v18 = vcombine.high %v23384_v9, %v23384_v9  ;;  %v20351_v19 = vld [vmem:[#allocation6 + $0x2a68] ss:$48 sps:$4 sm:$0xff]  }
 0x1cd   :  { %14234 = vmatprep.subr.bf16.mxu0 %v20282_v22  ;;  %14726 = vmatprep.subr.bf16.mxu1 %v20285_v23  ;;  %v20356_v22 = vld [vmem:[#allocation6 + $0x2ac4] ss:$48 sps:$4 sm:$0xff]   ;;  %v20359_v23 = vld [vmem:[#allocation6 + $0x2acc] ss:$48 sps:$4 sm:$0xff]  }
 0x1d0   :  { %14235 = vmatpush1.bf16.msra.mxu0 %v20280_v25  ;;  %14727 = vmatpush1.bf16.msra.mxu1 %v20283_v26  ;;  %v20354_v25 = vld [vmem:[#allocation6 + $0x2ac0] ss:$48 sps:$4 sm:$0xff]   ;;  %v20357_v26 = vld [vmem:[#allocation6 + $0x2ac8] ss:$48 sps:$4 sm:$0xff]  }
 0x1d1   :  { %14236 = vmatprep.subr.bf16.mxu0 %v20288_v13  ;;  %14728 = vmatprep.subr.bf16.mxu1 %v20291_v27  ;;  %v20362_v13 = vld [vmem:[#allocation6 + $0x2b24] ss:$48 sps:$4 sm:$0xff]   ;;  %v20365_v27 = vld [vmem:[#allocation6 + $0x2b2c] ss:$48 sps:$4 sm:$0xff]  }
 0x1d4   :  { %14237 = vmatpush1.bf16.msra.mxu0 %v20286_v28  ;;  %14729 = vmatpush1.bf16.msra.mxu1 %v20289_v32  ;;  %v20360_v28 = vld [vmem:[#allocation6 + $0x2b20] ss:$48 sps:$4 sm:$0xff]   ;;  %v20363_v32 = vld [vmem:[#allocation6 + $0x2b28] ss:$48 sps:$4 sm:$0xff]  }
 0x1d5   :  { %14238 = vmatprep.subr.bf16.mxu0 %v20294_v33  ;;  %14730 = vmatprep.subr.bf16.mxu1 %v20297_v34  ;;  %v20368_v33 = vld [vmem:[#allocation6 + $0x2b84] ss:$48 sps:$4 sm:$0xff]   ;;  %v20371_v34 = vld [vmem:[#allocation6 + $0x2b8c] ss:$48 sps:$4 sm:$0xff]  }
 0x1d8   :  { %14239 = vmatpush1.bf16.msra.mxu0 %v20292_v21  ;;  %14731 = vmatpush1.bf16.msra.mxu1 %v20295_v36  ;;  %v20366_v21 = vld [vmem:[#allocation6 + $0x2b80] ss:$48 sps:$4 sm:$0xff]   ;;  %v20369_v36 = vld [vmem:[#allocation6 + $0x2b88] ss:$48 sps:$4 sm:$0xff]  }
 0x1d9   :  { %14240 = vmatprep.subr.bf16.mxu0 %v20300_v37  ;;  %14732 = vmatprep.subr.bf16.mxu1 %v20303_v38  ;;  %v20374_v37 = vld [vmem:[#allocation6 + $0x2be4] ss:$48 sps:$4 sm:$0xff]   ;;  %v20377_v38 = vld [vmem:[#allocation6 + $0x2bec] ss:$48 sps:$4 sm:$0xff]  }
 0x1dc   :  { %14241 = vmatpush1.bf16.msra.mxu0 %v20298_v39  ;;  %14733 = vmatpush1.bf16.msra.mxu1 %v20301_v40  ;;  %v20372_v39 = vld [vmem:[#allocation6 + $0x2be0] ss:$48 sps:$4 sm:$0xff]   ;;  %v20375_v40 = vld [vmem:[#allocation6 + $0x2be8] ss:$48 sps:$4 sm:$0xff]  }
 0x1dd   :  { %14242 = vmatprep.subr.bf16.mxu0 %v20306_v43  ;;  %14734 = vmatprep.subr.bf16.mxu1 %v20309_v44  ;;  %v20380_v43 = vld [vmem:[#allocation6 + $0x2c44] ss:$48 sps:$4 sm:$0xff]   ;;  %v20383_v44 = vld [vmem:[#allocation6 + $0x2c4c] ss:$48 sps:$4 sm:$0xff]  }
 0x1e0   :  { %14243 = vmatpush1.bf16.msra.mxu0 %v20304_v45  ;;  %14735 = vmatpush1.bf16.msra.mxu1 %v20307_v46  ;;  %v20378_v45 = vld [vmem:[#allocation6 + $0x2c40] ss:$48 sps:$4 sm:$0xff]   ;;  %v20381_v46 = vld [vmem:[#allocation6 + $0x2c48] ss:$48 sps:$4 sm:$0xff]  }
 0x1e1   :  { %14244 = vmatprep.subr.bf16.mxu0 %v20312_v31  ;;  %14736 = vmatprep.subr.bf16.mxu1 %v20315_v49  ;;  %v20386_v31 = vld [vmem:[#allocation6 + $0x2ca4] ss:$48 sps:$4 sm:$0xff]   ;;  %v20389_v49 = vld [vmem:[#allocation6 + $0x2cac] ss:$48 sps:$4 sm:$0xff]  }
 0x1e4   :  { %14245 = vmatpush1.bf16.msra.mxu0 %v20310_v50  ;;  %14737 = vmatpush1.bf16.msra.mxu1 %v20313_v51  ;;  %v20384_v50 = vld [vmem:[#allocation6 + $0x2ca0] ss:$48 sps:$4 sm:$0xff]   ;;  %v20387_v51 = vld [vmem:[#allocation6 + $0x2ca8] ss:$48 sps:$4 sm:$0xff]  }
 0x1e5   :  { %14246 = vmatprep.subr.bf16.mxu0 %v20318_v52  ;;  %14738 = vmatprep.subr.bf16.mxu1 %v20321_v53  ;;  %v20392_v52 = vld [vmem:[#allocation6 + $0x2d04] ss:$48 sps:$4 sm:$0xff]   ;;  %v20395_v53 = vld [vmem:[#allocation6 + $0x2d0c] ss:$48 sps:$4 sm:$0xff]  }
 0x1e8   :  { %14247 = vmatpush1.bf16.msra.mxu0 %v20316_v54  ;;  %14739 = vmatpush1.bf16.msra.mxu1 %v20319_v55  ;;  %v20390_v54 = vld [vmem:[#allocation6 + $0x2d00] ss:$48 sps:$4 sm:$0xff]   ;;  %v20393_v55 = vld [vmem:[#allocation6 + $0x2d08] ss:$48 sps:$4 sm:$0xff]  }
 0x1e9   :  { %14248 = vmatprep.subr.bf16.mxu0 %v20324_v58  ;;  %14740 = vmatprep.subr.bf16.mxu1 %v20327_v59  ;;  %v20398_v58 = vld [vmem:[#allocation6 + $0x2d64] ss:$48 sps:$4 sm:$0xff]   ;;  %v20401_v59 = vld [vmem:[#allocation6 + $0x2d6c] ss:$48 sps:$4 sm:$0xff]  }
 0x1ec   :  { %14249 = vmatpush1.bf16.msra.mxu0 %v20322_v60  ;;  %14741 = vmatpush1.bf16.msra.mxu1 %v20325_v61  ;;  %v20396_v60 = vld [vmem:[#allocation6 + $0x2d60] ss:$48 sps:$4 sm:$0xff]   ;;  %v20399_v61 = vld [vmem:[#allocation6 + $0x2d68] ss:$48 sps:$4 sm:$0xff]  }
 0x1ed   :  { %14250 = vmatprep.subr.bf16.mxu0 %v20330_v41  ;;  %14742 = vmatprep.subr.bf16.mxu1 %v20333_v63  ;;  %v20404_v41 = vld [vmem:[#allocation6 + $0x2dc4] ss:$48 sps:$4 sm:$0xff]   ;;  %v20407_v63 = vld [vmem:[#allocation6 + $0x2dcc] ss:$48 sps:$4 sm:$0xff]  }
 0x1f0   :  { %14251 = vmatpush1.bf16.msra.mxu0 %v20328_v0  ;;  %14743 = vmatpush1.bf16.msra.mxu1 %v20331_v1  ;;  %v20402_v0 = vld [vmem:[#allocation6 + $0x2dc0] ss:$48 sps:$4 sm:$0xff]   ;;  %v20405_v1 = vld [vmem:[#allocation6 + $0x2dc8] ss:$48 sps:$4 sm:$0xff]  }
 0x1f1   :  { %14252 = vmatprep.subr.bf16.mxu0 %v20336_v2  ;;  %14744 = vmatprep.subr.bf16.mxu1 %v20339_v3  ;;  %v20410_v2 = vld [vmem:[#allocation6 + $0x2e24] ss:$48 sps:$4 sm:$0xff]   ;;  %v20413_v3 = vld [vmem:[#allocation6 + $0x2e2c] ss:$48 sps:$4 sm:$0xff]  }
 0x1f4   :  { %14253 = vmatpush1.bf16.msra.mxu0 %v20334_v4  ;;  %14745 = vmatpush1.bf16.msra.mxu1 %v20337_v6  ;;  %v20408_v4 = vld [vmem:[#allocation6 + $0x2e20] ss:$48 sps:$4 sm:$0xff]   ;;  %v20411_v6 = vld [vmem:[#allocation6 + $0x2e28] ss:$48 sps:$4 sm:$0xff]  }
 0x1f5   :  { %14263 = vmatprep.subr.bf16.mxu0 %v20343_v7  ;;  %14755 = vmatprep.subr.bf16.mxu1 %v20346_v8  ;;  %v20416_v7 = vld [vmem:[#allocation6 + $0x2e84] ss:$48 sps:$4 sm:$0xff]   ;;  %v20419_v8 = vld [vmem:[#allocation6 + $0x2e8c] ss:$48 sps:$4 sm:$0xff]  }
 0x1f7   :  { %14255 = vmatmul.mubr.bf16.vlgmr.msra.gmra.mrb[0].mxu0 %v23388_v11  ;;  %14747 = vmatmul.mubr.bf16.vlgmr.msra.gmra.mrb[0].mxu1 %v23388_v11 }
 0x1f8   :  { %14264 = vmatpush1.bf16.msra.mxu0 %v20341_v12  ;;  %14756 = vmatpush1.bf16.msra.mxu1 %v20344_v14  ;;  %v20414_v12 = vld [vmem:[#allocation6 + $0x2e80] ss:$48 sps:$4 sm:$0xff]   ;;  %v20417_v14 = vld [vmem:[#allocation6 + $0x2e88] ss:$48 sps:$4 sm:$0xff]  }
 0x1f9   :  { %14265 = vmatprep.subr.bf16.mxu0 %v20350_v16  ;;  %14757 = vmatprep.subr.bf16.mxu1 %v20353_v17  ;;  %v20422_v16 = vld [vmem:[#allocation6 + $0x2ee4] ss:$48 sps:$4 sm:$0xff]   ;;  %v20425_v17 = vld [vmem:[#allocation6 + $0x2eec] ss:$48 sps:$4 sm:$0xff]  }
 0x1fa   :  { %14295 = vmatprep.mubr.bf16.mxu0 %v23392_v18  ;;  %14787 = vmatprep.mubr.bf16.mxu1 %v23392_v18 }
 0x1fc   :  { %14266 = vmatpush1.bf16.msra.mxu0 %v20348_v56  ;;  %14758 = vmatpush1.bf16.msra.mxu1 %v20351_v19  ;;  %v20420_v56 = vld [vmem:[#allocation6 + $0x2ee0] ss:$48 sps:$4 sm:$0xff]   ;;  %v20423_v19 = vld [vmem:[#allocation6 + $0x2ee8] ss:$48 sps:$4 sm:$0xff]  }
 0x1fd   :  { %14267 = vmatprep.subr.bf16.mxu0 %v20356_v22  ;;  %14759 = vmatprep.subr.bf16.mxu1 %v20359_v23  ;;  %v20428_v22 = vld [vmem:[#allocation6 + $0x2f44] ss:$48 sps:$4 sm:$0xff]   ;;  %v20431_v23 = vld [vmem:[#allocation6 + $0x2f4c] ss:$48 sps:$4 sm:$0xff]  }
 0x200   :  { %14268 = vmatpush1.bf16.msra.mxu0 %v20354_v25  ;;  %14760 = vmatpush1.bf16.msra.mxu1 %v20357_v26  ;;  %v20426_v25 = vld [vmem:[#allocation6 + $0x2f40] ss:$48 sps:$4 sm:$0xff]   ;;  %v20429_v26 = vld [vmem:[#allocation6 + $0x2f48] ss:$48 sps:$4 sm:$0xff]  }
 0x201   :  { %14269 = vmatprep.subr.bf16.mxu0 %v20362_v13  ;;  %14761 = vmatprep.subr.bf16.mxu1 %v20365_v27  ;;  %v20434_v13 = vld [vmem:[#allocation6 + $0x2fa4] ss:$48 sps:$4 sm:$0xff]   ;;  %v20437_v27 = vld [vmem:[#allocation6 + $0x2fac] ss:$48 sps:$4 sm:$0xff]  }
 0x204   :  { %14270 = vmatpush1.bf16.msra.mxu0 %v20360_v28  ;;  %14762 = vmatpush1.bf16.msra.mxu1 %v20363_v32  ;;  %v20432_v28 = vld [vmem:[#allocation6 + $0x2fa0] ss:$48 sps:$4 sm:$0xff]   ;;  %v20435_v32 = vld [vmem:[#allocation6 + $0x2fa8] ss:$48 sps:$4 sm:$0xff]  }
 0x205   :  { %14271 = vmatprep.subr.bf16.mxu0 %v20368_v33  ;;  %14763 = vmatprep.subr.bf16.mxu1 %v20371_v34  ;;  %v20441_v33 = vld [vmem:[#allocation6 + $0x3004] ss:$48 sps:$4 sm:$0xff]   ;;  %v20444_v34 = vld [vmem:[#allocation6 + $0x300c] ss:$48 sps:$4 sm:$0xff]  }
 0x208   :  { %14272 = vmatpush1.bf16.msra.mxu0 %v20366_v21  ;;  %14764 = vmatpush1.bf16.msra.mxu1 %v20369_v36  ;;  %v23398_v21 = vld [vmem:[#allocation3 + $0x40] sm:$0xff]  ;;  %v23402_v36 = vcombine.low %v23384_v9, %v23384_v9 }
 0x209   :  { %14273 = vmatprep.subr.bf16.mxu0 %v20374_v37  ;;  %14765 = vmatprep.subr.bf16.mxu1 %v20377_v38  ;;  %v20439_v37 = vld [vmem:[#allocation6 + $0x3000] ss:$48 sps:$4 sm:$0xff]   ;;  %v20442_v38 = vld [vmem:[#allocation6 + $0x3008] ss:$48 sps:$4 sm:$0xff]  }
 0x20a   :  { %v20446_v9 = vld [vmem:[#allocation6 + $0x3060] ss:$48 sps:$4 sm:$0xff]  }
 0x20c   :  { %14274 = vmatpush1.bf16.msra.mxu0 %v20372_v39  ;;  %14766 = vmatpush1.bf16.msra.mxu1 %v20375_v40  ;;  %v20448_v39 = vld [vmem:[#allocation6 + $0x3064] ss:$48 sps:$4 sm:$0xff]   ;;  %v20451_v40 = vld [vmem:[#allocation6 + $0x306c] ss:$48 sps:$4 sm:$0xff]  }
 0x20d   :  { %14275 = vmatprep.subr.bf16.mxu0 %v20380_v43  ;;  %14767 = vmatprep.subr.bf16.mxu1 %v20383_v44  ;;  %v23406_v43 = vcombine.high %v23398_v21, %v23398_v21  ;;  %v20449_v44 = vld [vmem:[#allocation6 + $0x3068] ss:$48 sps:$4 sm:$0xff]  }
 0x210   :  { %14276 = vmatpush1.bf16.msra.mxu0 %v20378_v45  ;;  %14768 = vmatpush1.bf16.msra.mxu1 %v20381_v46  ;;  %v20454_v45 = vld [vmem:[#allocation6 + $0x30c4] ss:$48 sps:$4 sm:$0xff]   ;;  %v20457_v46 = vld [vmem:[#allocation6 + $0x30cc] ss:$48 sps:$4 sm:$0xff]  }
 0x211   :  { %14277 = vmatprep.subr.bf16.mxu0 %v20386_v31  ;;  %14769 = vmatprep.subr.bf16.mxu1 %v20389_v49  ;;  %v20452_v31 = vld [vmem:[#allocation6 + $0x30c0] ss:$48 sps:$4 sm:$0xff]   ;;  %v20455_v49 = vld [vmem:[#allocation6 + $0x30c8] ss:$48 sps:$4 sm:$0xff]  }
 0x214   :  { %14278 = vmatpush1.bf16.msra.mxu0 %v20384_v50  ;;  %14770 = vmatpush1.bf16.msra.mxu1 %v20387_v51  ;;  %v20460_v50 = vld [vmem:[#allocation6 + $0x3124] ss:$48 sps:$4 sm:$0xff]   ;;  %v20463_v51 = vld [vmem:[#allocation6 + $0x312c] ss:$48 sps:$4 sm:$0xff]  }
 0x215   :  { %14279 = vmatprep.subr.bf16.mxu0 %v20392_v52  ;;  %14771 = vmatprep.subr.bf16.mxu1 %v20395_v53  ;;  %v20458_v52 = vld [vmem:[#allocation6 + $0x3120] ss:$48 sps:$4 sm:$0xff]   ;;  %v20461_v53 = vld [vmem:[#allocation6 + $0x3128] ss:$48 sps:$4 sm:$0xff]  }
 0x218   :  { %14280 = vmatpush1.bf16.msra.mxu0 %v20390_v54  ;;  %14772 = vmatpush1.bf16.msra.mxu1 %v20393_v55  ;;  %v20466_v54 = vld [vmem:[#allocation6 + $0x3184] ss:$48 sps:$4 sm:$0xff]   ;;  %v20469_v55 = vld [vmem:[#allocation6 + $0x318c] ss:$48 sps:$4 sm:$0xff]  }
 0x219   :  { %14281 = vmatprep.subr.bf16.mxu0 %v20398_v58  ;;  %14773 = vmatprep.subr.bf16.mxu1 %v20401_v59  ;;  %v20464_v58 = vld [vmem:[#allocation6 + $0x3180] ss:$48 sps:$4 sm:$0xff]   ;;  %v20467_v59 = vld [vmem:[#allocation6 + $0x3188] ss:$48 sps:$4 sm:$0xff]  }
 0x21c   :  { %14282 = vmatpush1.bf16.msra.mxu0 %v20396_v60  ;;  %14774 = vmatpush1.bf16.msra.mxu1 %v20399_v61  ;;  %v20472_v60 = vld [vmem:[#allocation6 + $0x31e4] ss:$48 sps:$4 sm:$0xff]   ;;  %v20475_v61 = vld [vmem:[#allocation6 + $0x31ec] ss:$48 sps:$4 sm:$0xff]  }
 0x21d   :  { %14283 = vmatprep.subr.bf16.mxu0 %v20404_v41  ;;  %14775 = vmatprep.subr.bf16.mxu1 %v20407_v63  ;;  %v20470_v41 = vld [vmem:[#allocation6 + $0x31e0] ss:$48 sps:$4 sm:$0xff]   ;;  %v20473_v63 = vld [vmem:[#allocation6 + $0x31e8] ss:$48 sps:$4 sm:$0xff]  }
 0x220   :  { %14284 = vmatpush1.bf16.msra.mxu0 %v20402_v0  ;;  %14776 = vmatpush1.bf16.msra.mxu1 %v20405_v1  ;;  %v20478_v0 = vld [vmem:[#allocation6 + $0x3244] ss:$48 sps:$4 sm:$0xff]   ;;  %v20481_v1 = vld [vmem:[#allocation6 + $0x324c] ss:$48 sps:$4 sm:$0xff]  }
 0x221   :  { %14285 = vmatprep.subr.bf16.mxu0 %v20410_v2  ;;  %14777 = vmatprep.subr.bf16.mxu1 %v20413_v3  ;;  %v20476_v2 = vld [vmem:[#allocation6 + $0x3240] ss:$48 sps:$4 sm:$0xff]   ;;  %v20479_v3 = vld [vmem:[#allocation6 + $0x3248] ss:$48 sps:$4 sm:$0xff]  }
 0x224   :  { %14286 = vmatpush1.bf16.msra.mxu0 %v20408_v4  ;;  %14778 = vmatpush1.bf16.msra.mxu1 %v20411_v6  ;;  %v20484_v4 = vld [vmem:[#allocation6 + $0x32a4] ss:$48 sps:$4 sm:$0xff]   ;;  %v20487_v6 = vld [vmem:[#allocation6 + $0x32ac] ss:$48 sps:$4 sm:$0xff]  }
 0x225   :  { %14287 = vmatprep.subr.bf16.mxu0 %v20416_v7  ;;  %14779 = vmatprep.subr.bf16.mxu1 %v20419_v8  ;;  %v20482_v7 = vld [vmem:[#allocation6 + $0x32a0] ss:$48 sps:$4 sm:$0xff]   ;;  %v20485_v8 = vld [vmem:[#allocation6 + $0x32a8] ss:$48 sps:$4 sm:$0xff]  }
 0x228   :  { %14288 = vmatpush1.bf16.msra.mxu0 %v20414_v12  ;;  %14780 = vmatpush1.bf16.msra.mxu1 %v20417_v14  ;;  %v20490_v12 = vld [vmem:[#allocation6 + $0x3304] ss:$48 sps:$4 sm:$0xff]   ;;  %v20493_v14 = vld [vmem:[#allocation6 + $0x330c] ss:$48 sps:$4 sm:$0xff]  }
 0x229   :  { %14289 = vmatprep.subr.bf16.mxu0 %v20422_v16  ;;  %14781 = vmatprep.subr.bf16.mxu1 %v20425_v17  ;;  %v20488_v16 = vld [vmem:[#allocation6 + $0x3300] ss:$48 sps:$4 sm:$0xff]   ;;  %v20491_v17 = vld [vmem:[#allocation6 + $0x3308] ss:$48 sps:$4 sm:$0xff]  }
 0x22c   :  { %14290 = vmatpush1.bf16.msra.mxu0 %v20420_v56  ;;  %14782 = vmatpush1.bf16.msra.mxu1 %v20423_v19  ;;  %v20496_v56 = vld [vmem:[#allocation6 + $0x3364] ss:$48 sps:$4 sm:$0xff]   ;;  %v20499_v19 = vld [vmem:[#allocation6 + $0x336c] ss:$48 sps:$4 sm:$0xff]  }
 0x22d   :  { %14291 = vmatprep.subr.bf16.mxu0 %v20428_v22  ;;  %14783 = vmatprep.subr.bf16.mxu1 %v20431_v23  ;;  %v20494_v22 = vld [vmem:[#allocation6 + $0x3360] ss:$48 sps:$4 sm:$0xff]   ;;  %v20497_v23 = vld [vmem:[#allocation6 + $0x3368] ss:$48 sps:$4 sm:$0xff]  }
 0x230   :  { %14292 = vmatpush1.bf16.msra.mxu0 %v20426_v25  ;;  %14784 = vmatpush1.bf16.msra.mxu1 %v20429_v26  ;;  %v20502_v25 = vld [vmem:[#allocation6 + $0x33c4] ss:$48 sps:$4 sm:$0xff]   ;;  %v20505_v26 = vld [vmem:[#allocation6 + $0x33cc] ss:$48 sps:$4 sm:$0xff]  }
 0x231   :  { %14293 = vmatprep.subr.bf16.mxu0 %v20434_v13  ;;  %14785 = vmatprep.subr.bf16.mxu1 %v20437_v27  ;;  %v20500_v13 = vld [vmem:[#allocation6 + $0x33c0] ss:$48 sps:$4 sm:$0xff]   ;;  %v20503_v27 = vld [vmem:[#allocation6 + $0x33c8] ss:$48 sps:$4 sm:$0xff]  }
 0x234   :  { %14294 = vmatpush1.bf16.msra.mxu0 %v20432_v28  ;;  %14786 = vmatpush1.bf16.msra.mxu1 %v20435_v32  ;;  %v20508_v28 = vld [vmem:[#allocation6 + $0x3424] ss:$48 sps:$4 sm:$0xff]   ;;  %v20511_v32 = vld [vmem:[#allocation6 + $0x342c] ss:$48 sps:$4 sm:$0xff]  }
 0x235   :  { %14304 = vmatprep.subr.bf16.mxu0 %v20441_v33  ;;  %14796 = vmatprep.subr.bf16.mxu1 %v20444_v34  ;;  %v20506_v33 = vld [vmem:[#allocation6 + $0x3420] ss:$48 sps:$4 sm:$0xff]   ;;  %v20509_v34 = vld [vmem:[#allocation6 + $0x3428] ss:$48 sps:$4 sm:$0xff]  }
 0x237   :  { %14296 = vmatmul.mubr.bf16.vlgmr.msra.gmra.mrb[0].mxu0 %v23402_v36  ;;  %14788 = vmatmul.mubr.bf16.vlgmr.msra.gmra.mrb[0].mxu1 %v23402_v36 }
 0x238   :  { %14305 = vmatpush1.bf16.msra.mxu0 %v20439_v37  ;;  %14797 = vmatpush1.bf16.msra.mxu1 %v20442_v38  ;;  %v20514_v37 = vld [vmem:[#allocation6 + $0x3484] ss:$48 sps:$4 sm:$0xff]   ;;  %v20517_v38 = vld [vmem:[#allocation6 + $0x348c] ss:$48 sps:$4 sm:$0xff]  }
 0x239   :  { %14306 = vmatprep.subr.bf16.mxu0 %v20448_v39  ;;  %14798 = vmatprep.subr.bf16.mxu1 %v20451_v40  ;;  %v20512_v39 = vld [vmem:[#allocation6 + $0x3480] ss:$48 sps:$4 sm:$0xff]   ;;  %v20515_v40 = vld [vmem:[#allocation6 + $0x3488] ss:$48 sps:$4 sm:$0xff]  }
 0x23a   :  { %14336 = vmatprep.mubr.bf16.mxu0 %v23406_v43  ;;  %14828 = vmatprep.mubr.bf16.mxu1 %v23406_v43 }
 0x23c   :  { %14307 = vmatpush1.bf16.msra.mxu0 %v20446_v9  ;;  %14799 = vmatpush1.bf16.msra.mxu1 %v20449_v44  ;;  %v20520_v9 = vld [vmem:[#allocation6 + $0x34e4] ss:$48 sps:$4 sm:$0xff]   ;;  %v20523_v44 = vld [vmem:[#allocation6 + $0x34ec] ss:$48 sps:$4 sm:$0xff]  }
 0x23d   :  { %14308 = vmatprep.subr.bf16.mxu0 %v20454_v45  ;;  %14800 = vmatprep.subr.bf16.mxu1 %v20457_v46  ;;  %v20518_v45 = vld [vmem:[#allocation6 + $0x34e0] ss:$48 sps:$4 sm:$0xff]   ;;  %v20521_v46 = vld [vmem:[#allocation6 + $0x34e8] ss:$48 sps:$4 sm:$0xff]  }
 0x240   :  { %14309 = vmatpush1.bf16.msra.mxu0 %v20452_v31  ;;  %14801 = vmatpush1.bf16.msra.mxu1 %v20455_v49  ;;  %v20526_v31 = vld [vmem:[#allocation6 + $0x3544] ss:$48 sps:$4 sm:$0xff]   ;;  %v20529_v49 = vld [vmem:[#allocation6 + $0x354c] ss:$48 sps:$4 sm:$0xff]  }
 0x241   :  { %14310 = vmatprep.subr.bf16.mxu0 %v20460_v50  ;;  %14802 = vmatprep.subr.bf16.mxu1 %v20463_v51  ;;  %v20524_v50 = vld [vmem:[#allocation6 + $0x3540] ss:$48 sps:$4 sm:$0xff]   ;;  %v20527_v51 = vld [vmem:[#allocation6 + $0x3548] ss:$48 sps:$4 sm:$0xff]  }
 0x244   :  { %14311 = vmatpush1.bf16.msra.mxu0 %v20458_v52  ;;  %14803 = vmatpush1.bf16.msra.mxu1 %v20461_v53  ;;  %v20532_v52 = vld [vmem:[#allocation6 + $0x35a4] ss:$48 sps:$4 sm:$0xff]   ;;  %v20535_v53 = vld [vmem:[#allocation6 + $0x35ac] ss:$48 sps:$4 sm:$0xff]  }
 0x245   :  { %14312 = vmatprep.subr.bf16.mxu0 %v20466_v54  ;;  %14804 = vmatprep.subr.bf16.mxu1 %v20469_v55  ;;  %v20530_v54 = vld [vmem:[#allocation6 + $0x35a0] ss:$48 sps:$4 sm:$0xff]   ;;  %v20533_v55 = vld [vmem:[#allocation6 + $0x35a8] ss:$48 sps:$4 sm:$0xff]  }
 0x248   :  { %14313 = vmatpush1.bf16.msra.mxu0 %v20464_v58  ;;  %14805 = vmatpush1.bf16.msra.mxu1 %v20467_v59  ;;  %v20539_v58 = vld [vmem:[#allocation6 + $0x3604] ss:$48 sps:$4 sm:$0xff]   ;;  %v20542_v59 = vld [vmem:[#allocation6 + $0x360c] ss:$48 sps:$4 sm:$0xff]  }
 0x249   :  { %14314 = vmatprep.subr.bf16.mxu0 %v20472_v60  ;;  %14806 = vmatprep.subr.bf16.mxu1 %v20475_v61  ;;  %v23412_v60 = vld [vmem:[#allocation3 + $0x48] sm:$0xff]  ;;  %v23416_v61 = vcombine.low %v23398_v21, %v23398_v21  ;;  %v20544_v21 = vld [vmem:[#allocation6 + $0x3660] ss:$48 sps:$4 sm:$0xff]  }
 0x24c   :  { %14315 = vmatpush1.bf16.msra.mxu0 %v20470_v41  ;;  %14807 = vmatpush1.bf16.msra.mxu1 %v20473_v63  ;;  %v20537_v41 = vld [vmem:[#allocation6 + $0x3600] ss:$48 sps:$4 sm:$0xff]   ;;  %v20540_v63 = vld [vmem:[#allocation6 + $0x3608] ss:$48 sps:$4 sm:$0xff]  }
 0x24d   :  { %14316 = vmatprep.subr.bf16.mxu0 %v20478_v0  ;;  %14808 = vmatprep.subr.bf16.mxu1 %v20481_v1  ;;  %v20546_v0 = vld [vmem:[#allocation6 + $0x3664] ss:$48 sps:$4 sm:$0xff]   ;;  %v20549_v1 = vld [vmem:[#allocation6 + $0x366c] ss:$48 sps:$4 sm:$0xff]  }
 0x250   :  { %14317 = vmatpush1.bf16.msra.mxu0 %v20476_v2  ;;  %14809 = vmatpush1.bf16.msra.mxu1 %v20479_v3  ;;  %v23420_v2 = vcombine.high %v23412_v60, %v23412_v60  ;;  %v20547_v3 = vld [vmem:[#allocation6 + $0x3668] ss:$48 sps:$4 sm:$0xff]  }
 0x251   :  { %14318 = vmatprep.subr.bf16.mxu0 %v20484_v4  ;;  %14810 = vmatprep.subr.bf16.mxu1 %v20487_v6  ;;  %v20552_v4 = vld [vmem:[#allocation6 + $0x36c4] ss:$48 sps:$4 sm:$0xff]   ;;  %v20555_v6 = vld [vmem:[#allocation6 + $0x36cc] ss:$48 sps:$4 sm:$0xff]  }
 0x254   :  { %14319 = vmatpush1.bf16.msra.mxu0 %v20482_v7  ;;  %14811 = vmatpush1.bf16.msra.mxu1 %v20485_v8  ;;  %v20550_v7 = vld [vmem:[#allocation6 + $0x36c0] ss:$48 sps:$4 sm:$0xff]   ;;  %v20553_v8 = vld [vmem:[#allocation6 + $0x36c8] ss:$48 sps:$4 sm:$0xff]  }
 0x255   :  { %14320 = vmatprep.subr.bf16.mxu0 %v20490_v12  ;;  %14812 = vmatprep.subr.bf16.mxu1 %v20493_v14  ;;  %v20558_v12 = vld [vmem:[#allocation6 + $0x3724] ss:$48 sps:$4 sm:$0xff]   ;;  %v20561_v14 = vld [vmem:[#allocation6 + $0x372c] ss:$48 sps:$4 sm:$0xff]  }
 0x258   :  { %14321 = vmatpush1.bf16.msra.mxu0 %v20488_v16  ;;  %14813 = vmatpush1.bf16.msra.mxu1 %v20491_v17  ;;  %v20556_v16 = vld [vmem:[#allocation6 + $0x3720] ss:$48 sps:$4 sm:$0xff]   ;;  %v20559_v17 = vld [vmem:[#allocation6 + $0x3728] ss:$48 sps:$4 sm:$0xff]  }
 0x259   :  { %14322 = vmatprep.subr.bf16.mxu0 %v20496_v56  ;;  %14814 = vmatprep.subr.bf16.mxu1 %v20499_v19  ;;  %v20564_v56 = vld [vmem:[#allocation6 + $0x3784] ss:$48 sps:$4 sm:$0xff]   ;;  %v20567_v19 = vld [vmem:[#allocation6 + $0x378c] ss:$48 sps:$4 sm:$0xff]  }
 0x25c   :  { %14323 = vmatpush1.bf16.msra.mxu0 %v20494_v22  ;;  %14815 = vmatpush1.bf16.msra.mxu1 %v20497_v23  ;;  %v20562_v22 = vld [vmem:[#allocation6 + $0x3780] ss:$48 sps:$4 sm:$0xff]   ;;  %v20565_v23 = vld [vmem:[#allocation6 + $0x3788] ss:$48 sps:$4 sm:$0xff]  }
 0x25d   :  { %14324 = vmatprep.subr.bf16.mxu0 %v20502_v25  ;;  %14816 = vmatprep.subr.bf16.mxu1 %v20505_v26  ;;  %v20570_v25 = vld [vmem:[#allocation6 + $0x37e4] ss:$48 sps:$4 sm:$0xff]   ;;  %v20573_v26 = vld [vmem:[#allocation6 + $0x37ec] ss:$48 sps:$4 sm:$0xff]  }
 0x260   :  { %14325 = vmatpush1.bf16.msra.mxu0 %v20500_v13  ;;  %14817 = vmatpush1.bf16.msra.mxu1 %v20503_v27  ;;  %v20568_v13 = vld [vmem:[#allocation6 + $0x37e0] ss:$48 sps:$4 sm:$0xff]   ;;  %v20571_v27 = vld [vmem:[#allocation6 + $0x37e8] ss:$48 sps:$4 sm:$0xff]  }
 0x261   :  { %14326 = vmatprep.subr.bf16.mxu0 %v20508_v28  ;;  %14818 = vmatprep.subr.bf16.mxu1 %v20511_v32  ;;  %v20576_v28 = vld [vmem:[#allocation6 + $0x3844] ss:$48 sps:$4 sm:$0xff]   ;;  %v20579_v32 = vld [vmem:[#allocation6 + $0x384c] ss:$48 sps:$4 sm:$0xff]  }
 0x264   :  { %14327 = vmatpush1.bf16.msra.mxu0 %v20506_v33  ;;  %14819 = vmatpush1.bf16.msra.mxu1 %v20509_v34  ;;  %v20574_v33 = vld [vmem:[#allocation6 + $0x3840] ss:$48 sps:$4 sm:$0xff]   ;;  %v20577_v34 = vld [vmem:[#allocation6 + $0x3848] ss:$48 sps:$4 sm:$0xff]  }
 0x265   :  { %14328 = vmatprep.subr.bf16.mxu0 %v20514_v37  ;;  %14820 = vmatprep.subr.bf16.mxu1 %v20517_v38  ;;  %v20582_v37 = vld [vmem:[#allocation6 + $0x38a4] ss:$48 sps:$4 sm:$0xff]   ;;  %v20585_v38 = vld [vmem:[#allocation6 + $0x38ac] ss:$48 sps:$4 sm:$0xff]  }
 0x268   :  { %14329 = vmatpush1.bf16.msra.mxu0 %v20512_v39  ;;  %14821 = vmatpush1.bf16.msra.mxu1 %v20515_v40  ;;  %v20580_v39 = vld [vmem:[#allocation6 + $0x38a0] ss:$48 sps:$4 sm:$0xff]   ;;  %v20583_v40 = vld [vmem:[#allocation6 + $0x38a8] ss:$48 sps:$4 sm:$0xff]  }
 0x269   :  { %14330 = vmatprep.subr.bf16.mxu0 %v20520_v9  ;;  %14822 = vmatprep.subr.bf16.mxu1 %v20523_v44  ;;  %v20588_v9 = vld [vmem:[#allocation6 + $0x3904] ss:$48 sps:$4 sm:$0xff]   ;;  %v20591_v44 = vld [vmem:[#allocation6 + $0x390c] ss:$48 sps:$4 sm:$0xff]  }
 0x26c   :  { %14331 = vmatpush1.bf16.msra.mxu0 %v20518_v45  ;;  %14823 = vmatpush1.bf16.msra.mxu1 %v20521_v46  ;;  %v20586_v45 = vld [vmem:[#allocation6 + $0x3900] ss:$48 sps:$4 sm:$0xff]   ;;  %v20589_v46 = vld [vmem:[#allocation6 + $0x3908] ss:$48 sps:$4 sm:$0xff]  }
 0x26d   :  { %14332 = vmatprep.subr.bf16.mxu0 %v20526_v31  ;;  %14824 = vmatprep.subr.bf16.mxu1 %v20529_v49  ;;  %v20594_v31 = vld [vmem:[#allocation6 + $0x3964] ss:$48 sps:$4 sm:$0xff]   ;;  %v20597_v49 = vld [vmem:[#allocation6 + $0x396c] ss:$48 sps:$4 sm:$0xff]  }
 0x270   :  { %14333 = vmatpush1.bf16.msra.mxu0 %v20524_v50  ;;  %14825 = vmatpush1.bf16.msra.mxu1 %v20527_v51  ;;  %v20592_v50 = vld [vmem:[#allocation6 + $0x3960] ss:$48 sps:$4 sm:$0xff]   ;;  %v20595_v51 = vld [vmem:[#allocation6 + $0x3968] ss:$48 sps:$4 sm:$0xff]  }
 0x271   :  { %14334 = vmatprep.subr.bf16.mxu0 %v20532_v52  ;;  %14826 = vmatprep.subr.bf16.mxu1 %v20535_v53  ;;  %v20600_v52 = vld [vmem:[#allocation6 + $0x39c4] ss:$48 sps:$4 sm:$0xff]   ;;  %v20603_v53 = vld [vmem:[#allocation6 + $0x39cc] ss:$48 sps:$4 sm:$0xff]  }
 0x274   :  { %14335 = vmatpush1.bf16.msra.mxu0 %v20530_v54  ;;  %14827 = vmatpush1.bf16.msra.mxu1 %v20533_v55  ;;  %v20598_v54 = vld [vmem:[#allocation6 + $0x39c0] ss:$48 sps:$4 sm:$0xff]   ;;  %v20601_v55 = vld [vmem:[#allocation6 + $0x39c8] ss:$48 sps:$4 sm:$0xff]  }
 0x275   :  { %14345 = vmatprep.subr.bf16.mxu0 %v20539_v58  ;;  %14837 = vmatprep.subr.bf16.mxu1 %v20542_v59  ;;  %v20606_v58 = vld [vmem:[#allocation6 + $0x3a24] ss:$48 sps:$4 sm:$0xff]   ;;  %v20609_v59 = vld [vmem:[#allocation6 + $0x3a2c] ss:$48 sps:$4 sm:$0xff]  }
 0x277   :  { %14337 = vmatmul.mubr.bf16.vlgmr.msra.gmra.mrb[0].mxu0 %v23416_v61  ;;  %14829 = vmatmul.mubr.bf16.vlgmr.msra.gmra.mrb[0].mxu1 %v23416_v61 }
 0x278   :  { %14346 = vmatpush1.bf16.msra.mxu0 %v20537_v41  ;;  %14838 = vmatpush1.bf16.msra.mxu1 %v20540_v63  ;;  %v20604_v41 = vld [vmem:[#allocation6 + $0x3a20] ss:$48 sps:$4 sm:$0xff]   ;;  %v20607_v63 = vld [vmem:[#allocation6 + $0x3a28] ss:$48 sps:$4 sm:$0xff]  }
 0x279   :  { %14347 = vmatprep.subr.bf16.mxu0 %v20546_v0  ;;  %14839 = vmatprep.subr.bf16.mxu1 %v20549_v1  ;;  %v20612_v0 = vld [vmem:[#allocation6 + $0x3a84] ss:$48 sps:$4 sm:$0xff]   ;;  %v20615_v1 = vld [vmem:[#allocation6 + $0x3a8c] ss:$48 sps:$4 sm:$0xff]  }
 0x27a   :  { %14377 = vmatprep.mubr.bf16.mxu0 %v23420_v2  ;;  %14869 = vmatprep.mubr.bf16.mxu1 %v23420_v2 }
 0x27c   :  { %14348 = vmatpush1.bf16.msra.mxu0 %v20544_v21  ;;  %14840 = vmatpush1.bf16.msra.mxu1 %v20547_v3  ;;  %v20610_v21 = vld [vmem:[#allocation6 + $0x3a80] ss:$48 sps:$4 sm:$0xff]   ;;  %v20613_v3 = vld [vmem:[#allocation6 + $0x3a88] ss:$48 sps:$4 sm:$0xff]  }
 0x27d   :  { %14349 = vmatprep.subr.bf16.mxu0 %v20552_v4  ;;  %14841 = vmatprep.subr.bf16.mxu1 %v20555_v6  ;;  %v20618_v4 = vld [vmem:[#allocation6 + $0x3ae4] ss:$48 sps:$4 sm:$0xff]   ;;  %v20621_v6 = vld [vmem:[#allocation6 + $0x3aec] ss:$48 sps:$4 sm:$0xff]  }
 0x280   :  { %14350 = vmatpush1.bf16.msra.mxu0 %v20550_v7  ;;  %14842 = vmatpush1.bf16.msra.mxu1 %v20553_v8  ;;  %v20616_v7 = vld [vmem:[#allocation6 + $0x3ae0] ss:$48 sps:$4 sm:$0xff]   ;;  %v20619_v8 = vld [vmem:[#allocation6 + $0x3ae8] ss:$48 sps:$4 sm:$0xff]  }
 0x281   :  { %14351 = vmatprep.subr.bf16.mxu0 %v20558_v12  ;;  %14843 = vmatprep.subr.bf16.mxu1 %v20561_v14  ;;  %v20624_v12 = vld [vmem:[#allocation6 + $0x3b44] ss:$48 sps:$4 sm:$0xff]   ;;  %v20627_v14 = vld [vmem:[#allocation6 + $0x3b4c] ss:$48 sps:$4 sm:$0xff]  }
 0x284   :  { %14352 = vmatpush1.bf16.msra.mxu0 %v20556_v16  ;;  %14844 = vmatpush1.bf16.msra.mxu1 %v20559_v17  ;;  %v20622_v16 = vld [vmem:[#allocation6 + $0x3b40] ss:$48 sps:$4 sm:$0xff]   ;;  %v20625_v17 = vld [vmem:[#allocation6 + $0x3b48] ss:$48 sps:$4 sm:$0xff]  }
 0x285   :  { %14353 = vmatprep.subr.bf16.mxu0 %v20564_v56  ;;  %14845 = vmatprep.subr.bf16.mxu1 %v20567_v19  ;;  %v20630_v56 = vld [vmem:[#allocation6 + $0x3ba4] ss:$48 sps:$4 sm:$0xff]   ;;  %v20633_v19 = vld [vmem:[#allocation6 + $0x3bac] ss:$48 sps:$4 sm:$0xff]  }
 0x288   :  { %14354 = vmatpush1.bf16.msra.mxu0 %v20562_v22  ;;  %14846 = vmatpush1.bf16.msra.mxu1 %v20565_v23  ;;  %v20628_v22 = vld [vmem:[#allocation6 + $0x3ba0] ss:$48 sps:$4 sm:$0xff]   ;;  %v20631_v23 = vld [vmem:[#allocation6 + $0x3ba8] ss:$48 sps:$4 sm:$0xff]  }
 0x289   :  { %14355 = vmatprep.subr.bf16.mxu0 %v20570_v25  ;;  %14847 = vmatprep.subr.bf16.mxu1 %v20573_v26  ;;  %v20637_v25 = vld [vmem:[#allocation6 + $0x3c04] ss:$48 sps:$4 sm:$0xff]   ;;  %v20640_v26 = vld [vmem:[#allocation6 + $0x3c0c] ss:$48 sps:$4 sm:$0xff]  }
 0x28c   :  { %14356 = vmatpush1.bf16.msra.mxu0 %v20568_v13  ;;  %14848 = vmatpush1.bf16.msra.mxu1 %v20571_v27  ;;  %v20635_v13 = vld [vmem:[#allocation6 + $0x3c00] ss:$48 sps:$4 sm:$0xff]   ;;  %v20638_v27 = vld [vmem:[#allocation6 + $0x3c08] ss:$48 sps:$4 sm:$0xff]  }
 0x28d   :  { %14357 = vmatprep.subr.bf16.mxu0 %v20576_v28  ;;  %14849 = vmatprep.subr.bf16.mxu1 %v20579_v32  ;;  %v23428_v28 = vcombine.low %v23412_v60, %v23412_v60  ;;  %v23430_v32 = vld [vmem:[#allocation3 + $0x50] sm:$0xff] }
 0x28e   :  { %v20642_v60 = vld [vmem:[#allocation6 + $0x3c60] ss:$48 sps:$4 sm:$0xff]  }
 0x290   :  { %14358 = vmatpush1.bf16.msra.mxu0 %v20574_v33  ;;  %14850 = vmatpush1.bf16.msra.mxu1 %v20577_v34  ;;  %v20644_v33 = vld [vmem:[#allocation6 + $0x3c64] ss:$48 sps:$4 sm:$0xff]   ;;  %v20647_v34 = vld [vmem:[#allocation6 + $0x3c6c] ss:$48 sps:$4 sm:$0xff]  }
 0x291   :  { %14359 = vmatprep.subr.bf16.mxu0 %v20582_v37  ;;  %14851 = vmatprep.subr.bf16.mxu1 %v20585_v38  ;;  %v23434_v37 = vcombine.high %v23430_v32, %v23430_v32  ;;  %v20645_v38 = vld [vmem:[#allocation6 + $0x3c68] ss:$48 sps:$4 sm:$0xff]  }
 0x294   :  { %14360 = vmatpush1.bf16.msra.mxu0 %v20580_v39  ;;  %14852 = vmatpush1.bf16.msra.mxu1 %v20583_v40  ;;  %v20650_v39 = vld [vmem:[#allocation6 + $0x3cc4] ss:$48 sps:$4 sm:$0xff]   ;;  %v20653_v40 = vld [vmem:[#allocation6 + $0x3ccc] ss:$48 sps:$4 sm:$0xff]  }
 0x295   :  { %14361 = vmatprep.subr.bf16.mxu0 %v20588_v9  ;;  %14853 = vmatprep.subr.bf16.mxu1 %v20591_v44  ;;  %v20648_v9 = vld [vmem:[#allocation6 + $0x3cc0] ss:$48 sps:$4 sm:$0xff]   ;;  %v20651_v44 = vld [vmem:[#allocation6 + $0x3cc8] ss:$48 sps:$4 sm:$0xff]  }
 0x298   :  { %14362 = vmatpush1.bf16.msra.mxu0 %v20586_v45  ;;  %14854 = vmatpush1.bf16.msra.mxu1 %v20589_v46  ;;  %v20656_v45 = vld [vmem:[#allocation6 + $0x3d24] ss:$48 sps:$4 sm:$0xff]   ;;  %v20659_v46 = vld [vmem:[#allocation6 + $0x3d2c] ss:$48 sps:$4 sm:$0xff]  }
 0x299   :  { %14363 = vmatprep.subr.bf16.mxu0 %v20594_v31  ;;  %14855 = vmatprep.subr.bf16.mxu1 %v20597_v49  ;;  %v20654_v31 = vld [vmem:[#allocation6 + $0x3d20] ss:$48 sps:$4 sm:$0xff]   ;;  %v20657_v49 = vld [vmem:[#allocation6 + $0x3d28] ss:$48 sps:$4 sm:$0xff]  }
 0x29c   :  { %14364 = vmatpush1.bf16.msra.mxu0 %v20592_v50  ;;  %14856 = vmatpush1.bf16.msra.mxu1 %v20595_v51  ;;  %v20662_v50 = vld [vmem:[#allocation6 + $0x3d84] ss:$48 sps:$4 sm:$0xff]   ;;  %v20665_v51 = vld [vmem:[#allocation6 + $0x3d8c] ss:$48 sps:$4 sm:$0xff]  }
 0x29d   :  { %14365 = vmatprep.subr.bf16.mxu0 %v20600_v52  ;;  %14857 = vmatprep.subr.bf16.mxu1 %v20603_v53  ;;  %v20660_v52 = vld [vmem:[#allocation6 + $0x3d80] ss:$48 sps:$4 sm:$0xff]   ;;  %v20663_v53 = vld [vmem:[#allocation6 + $0x3d88] ss:$48 sps:$4 sm:$0xff]  }
 0x2a0   :  { %14366 = vmatpush1.bf16.msra.mxu0 %v20598_v54  ;;  %14858 = vmatpush1.bf16.msra.mxu1 %v20601_v55  ;;  %v20668_v54 = vld [vmem:[#allocation6 + $0x3de4] ss:$48 sps:$4 sm:$0xff]   ;;  %v20671_v55 = vld [vmem:[#allocation6 + $0x3dec] ss:$48 sps:$4 sm:$0xff]  }
 0x2a1   :  { %14367 = vmatprep.subr.bf16.mxu0 %v20606_v58  ;;  %14859 = vmatprep.subr.bf16.mxu1 %v20609_v59  ;;  %v20666_v58 = vld [vmem:[#allocation6 + $0x3de0] ss:$48 sps:$4 sm:$0xff]   ;;  %v20669_v59 = vld [vmem:[#allocation6 + $0x3de8] ss:$48 sps:$4 sm:$0xff]  }
 0x2a4   :  { %14368 = vmatpush1.bf16.msra.mxu0 %v20604_v41  ;;  %14860 = vmatpush1.bf16.msra.mxu1 %v20607_v63  ;;  %v20674_v41 = vld [vmem:[#allocation6 + $0x3e44] ss:$48 sps:$4 sm:$0xff]   ;;  %v20677_v63 = vld [vmem:[#allocation6 + $0x3e4c] ss:$48 sps:$4 sm:$0xff]  }
 0x2a5   :  { %14369 = vmatprep.subr.bf16.mxu0 %v20612_v0  ;;  %14861 = vmatprep.subr.bf16.mxu1 %v20615_v1  ;;  %v20672_v0 = vld [vmem:[#allocation6 + $0x3e40] ss:$48 sps:$4 sm:$0xff]   ;;  %v20675_v1 = vld [vmem:[#allocation6 + $0x3e48] ss:$48 sps:$4 sm:$0xff]  }
 0x2a8   :  { %14370 = vmatpush1.bf16.msra.mxu0 %v20610_v21  ;;  %14862 = vmatpush1.bf16.msra.mxu1 %v20613_v3  ;;  %v20680_v21 = vld [vmem:[#allocation6 + $0x3ea4] ss:$48 sps:$4 sm:$0xff]   ;;  %v20683_v3 = vld [vmem:[#allocation6 + $0x3eac] ss:$48 sps:$4 sm:$0xff]  }
 0x2a9   :  { %14371 = vmatprep.subr.bf16.mxu0 %v20618_v4  ;;  %14863 = vmatprep.subr.bf16.mxu1 %v20621_v6  ;;  %v20678_v4 = vld [vmem:[#allocation6 + $0x3ea0] ss:$48 sps:$4 sm:$0xff]   ;;  %v20681_v6 = vld [vmem:[#allocation6 + $0x3ea8] ss:$48 sps:$4 sm:$0xff]  }
 0x2ac   :  { %14372 = vmatpush1.bf16.msra.mxu0 %v20616_v7  ;;  %14864 = vmatpush1.bf16.msra.mxu1 %v20619_v8  ;;  %v20686_v7 = vld [vmem:[#allocation6 + $0x3f04] ss:$48 sps:$4 sm:$0xff]   ;;  %v20689_v8 = vld [vmem:[#allocation6 + $0x3f0c] ss:$48 sps:$4 sm:$0xff]  }
 0x2ad   :  { %14373 = vmatprep.subr.bf16.mxu0 %v20624_v12  ;;  %14865 = vmatprep.subr.bf16.mxu1 %v20627_v14  ;;  %v20684_v12 = vld [vmem:[#allocation6 + $0x3f00] ss:$48 sps:$4 sm:$0xff]   ;;  %v20687_v14 = vld [vmem:[#allocation6 + $0x3f08] ss:$48 sps:$4 sm:$0xff]  }
 0x2b0   :  { %14374 = vmatpush1.bf16.msra.mxu0 %v20622_v16  ;;  %14866 = vmatpush1.bf16.msra.mxu1 %v20625_v17  ;;  %v20692_v16 = vld [vmem:[#allocation6 + $0x3f64] ss:$48 sps:$4 sm:$0xff]   ;;  %v20695_v17 = vld [vmem:[#allocation6 + $0x3f6c] ss:$48 sps:$4 sm:$0xff]  }
 0x2b1   :  { %14375 = vmatprep.subr.bf16.mxu0 %v20630_v56  ;;  %14867 = vmatprep.subr.bf16.mxu1 %v20633_v19  ;;  %v20690_v56 = vld [vmem:[#allocation6 + $0x3f60] ss:$48 sps:$4 sm:$0xff]   ;;  %v20693_v19 = vld [vmem:[#allocation6 + $0x3f68] ss:$48 sps:$4 sm:$0xff]  }
 0x2b4   :  { %14376 = vmatpush1.bf16.msra.mxu0 %v20628_v22  ;;  %14868 = vmatpush1.bf16.msra.mxu1 %v20631_v23  ;;  %v20698_v22 = vld [vmem:[#allocation6 + $0x3fc4] ss:$48 sps:$4 sm:$0xff]   ;;  %v20701_v23 = vld [vmem:[#allocation6 + $0x3fcc] ss:$48 sps:$4 sm:$0xff]  }
 0x2b5   :  { %14386 = vmatprep.subr.bf16.mxu0 %v20637_v25  ;;  %14878 = vmatprep.subr.bf16.mxu1 %v20640_v26  ;;  %v20696_v25 = vld [vmem:[#allocation6 + $0x3fc0] ss:$48 sps:$4 sm:$0xff]   ;;  %v20699_v26 = vld [vmem:[#allocation6 + $0x3fc8] ss:$48 sps:$4 sm:$0xff]  }
 0x2b7   :  { %14378 = vmatmul.mubr.bf16.vlgmr.msra.gmra.mrb[0].mxu0 %v23428_v28  ;;  %14870 = vmatmul.mubr.bf16.vlgmr.msra.gmra.mrb[0].mxu1 %v23428_v28 }
 0x2b8   :  { %14387 = vmatpush1.bf16.msra.mxu0 %v20635_v13  ;;  %14879 = vmatpush1.bf16.msra.mxu1 %v20638_v27  ;;  %v20704_v13 = vld [vmem:[#allocation6 + $0x4024] ss:$48 sps:$4 sm:$0xff]   ;;  %v20707_v27 = vld [vmem:[#allocation6 + $0x402c] ss:$48 sps:$4 sm:$0xff]  }
 0x2b9   :  { %14388 = vmatprep.subr.bf16.mxu0 %v20644_v33  ;;  %14880 = vmatprep.subr.bf16.mxu1 %v20647_v34  ;;  %v20702_v33 = vld [vmem:[#allocation6 + $0x4020] ss:$48 sps:$4 sm:$0xff]   ;;  %v20705_v34 = vld [vmem:[#allocation6 + $0x4028] ss:$48 sps:$4 sm:$0xff]  }
 0x2ba   :  { %14418 = vmatprep.mubr.bf16.mxu0 %v23434_v37  ;;  %14910 = vmatprep.mubr.bf16.mxu1 %v23434_v37 }
 0x2bc   :  { %14389 = vmatpush1.bf16.msra.mxu0 %v20642_v60  ;;  %14881 = vmatpush1.bf16.msra.mxu1 %v20645_v38  ;;  %v20710_v60 = vld [vmem:[#allocation6 + $0x4084] ss:$48 sps:$4 sm:$0xff]   ;;  %v20713_v38 = vld [vmem:[#allocation6 + $0x408c] ss:$48 sps:$4 sm:$0xff]  }
 0x2bd   :  { %14390 = vmatprep.subr.bf16.mxu0 %v20650_v39  ;;  %14882 = vmatprep.subr.bf16.mxu1 %v20653_v40  ;;  %v20708_v39 = vld [vmem:[#allocation6 + $0x4080] ss:$48 sps:$4 sm:$0xff]   ;;  %v20711_v40 = vld [vmem:[#allocation6 + $0x4088] ss:$48 sps:$4 sm:$0xff]  }
 0x2c0   :  { %14391 = vmatpush1.bf16.msra.mxu0 %v20648_v9  ;;  %14883 = vmatpush1.bf16.msra.mxu1 %v20651_v44  ;;  %v20716_v9 = vld [vmem:[#allocation6 + $0x40e4] ss:$48 sps:$4 sm:$0xff]   ;;  %v20719_v44 = vld [vmem:[#allocation6 + $0x40ec] ss:$48 sps:$4 sm:$0xff]  }
 0x2c1   :  { %14392 = vmatprep.subr.bf16.mxu0 %v20656_v45  ;;  %14884 = vmatprep.subr.bf16.mxu1 %v20659_v46  ;;  %v20714_v45 = vld [vmem:[#allocation6 + $0x40e0] ss:$48 sps:$4 sm:$0xff]   ;;  %v20717_v46 = vld [vmem:[#allocation6 + $0x40e8] ss:$48 sps:$4 sm:$0xff]  }
 0x2c4   :  { %14393 = vmatpush1.bf16.msra.mxu0 %v20654_v31  ;;  %14885 = vmatpush1.bf16.msra.mxu1 %v20657_v49  ;;  %v20722_v31 = vld [vmem:[#allocation6 + $0x4144] ss:$48 sps:$4 sm:$0xff]   ;;  %v20725_v49 = vld [vmem:[#allocation6 + $0x414c] ss:$48 sps:$4 sm:$0xff]  }
 0x2c5   :  { %14394 = vmatprep.subr.bf16.mxu0 %v20662_v50  ;;  %14886 = vmatprep.subr.bf16.mxu1 %v20665_v51  ;;  %v20720_v50 = vld [vmem:[#allocation6 + $0x4140] ss:$48 sps:$4 sm:$0xff]   ;;  %v20723_v51 = vld [vmem:[#allocation6 + $0x4148] ss:$48 sps:$4 sm:$0xff]  }
 0x2c8   :  { %14395 = vmatpush1.bf16.msra.mxu0 %v20660_v52  ;;  %14887 = vmatpush1.bf16.msra.mxu1 %v20663_v53  ;;  %v20728_v52 = vld [vmem:[#allocation6 + $0x41a4] ss:$48 sps:$4 sm:$0xff]   ;;  %v20731_v53 = vld [vmem:[#allocation6 + $0x41ac] ss:$48 sps:$4 sm:$0xff]  }
 0x2c9   :  { %14396 = vmatprep.subr.bf16.mxu0 %v20668_v54  ;;  %14888 = vmatprep.subr.bf16.mxu1 %v20671_v55  ;;  %v20726_v54 = vld [vmem:[#allocation6 + $0x41a0] ss:$48 sps:$4 sm:$0xff]   ;;  %v20729_v55 = vld [vmem:[#allocation6 + $0x41a8] ss:$48 sps:$4 sm:$0xff]  }
 0x2cc   :  { %14397 = vmatpush1.bf16.msra.mxu0 %v20666_v58  ;;  %14889 = vmatpush1.bf16.msra.mxu1 %v20669_v59  ;;  %v20735_v58 = vld [vmem:[#allocation6 + $0x4204] ss:$48 sps:$4 sm:$0xff]   ;;  %v20738_v59 = vld [vmem:[#allocation6 + $0x420c] ss:$48 sps:$4 sm:$0xff]  }
 0x2cd   :  { %14398 = vmatprep.subr.bf16.mxu0 %v20674_v41  ;;  %14890 = vmatprep.subr.bf16.mxu1 %v20677_v63  ;;  %v23440_v41 = vld [vmem:[#allocation3 + $0x58] sm:$0xff]  ;;  %v23444_v63 = vcombine.low %v23430_v32, %v23430_v32  ;;  %v20740_v32 = vld [vmem:[#allocation6 + $0x4260] ss:$48 sps:$4 sm:$0xff]  }
 0x2d0   :  { %14399 = vmatpush1.bf16.msra.mxu0 %v20672_v0  ;;  %14891 = vmatpush1.bf16.msra.mxu1 %v20675_v1  ;;  %v20733_v0 = vld [vmem:[#allocation6 + $0x4200] ss:$48 sps:$4 sm:$0xff]   ;;  %v20736_v1 = vld [vmem:[#allocation6 + $0x4208] ss:$48 sps:$4 sm:$0xff]  }
 0x2d1   :  { %14400 = vmatprep.subr.bf16.mxu0 %v20680_v21  ;;  %14892 = vmatprep.subr.bf16.mxu1 %v20683_v3  ;;  %v20742_v21 = vld [vmem:[#allocation6 + $0x4264] ss:$48 sps:$4 sm:$0xff]   ;;  %v20745_v3 = vld [vmem:[#allocation6 + $0x426c] ss:$48 sps:$4 sm:$0xff]  }
 0x2d4   :  { %14401 = vmatpush1.bf16.msra.mxu0 %v20678_v4  ;;  %14893 = vmatpush1.bf16.msra.mxu1 %v20681_v6  ;;  %v23448_v4 = vcombine.high %v23440_v41, %v23440_v41  ;;  %v20743_v6 = vld [vmem:[#allocation6 + $0x4268] ss:$48 sps:$4 sm:$0xff]  }
 0x2d5   :  { %14402 = vmatprep.subr.bf16.mxu0 %v20686_v7  ;;  %14894 = vmatprep.subr.bf16.mxu1 %v20689_v8  ;;  %v20748_v7 = vld [vmem:[#allocation6 + $0x42c4] ss:$48 sps:$4 sm:$0xff]   ;;  %v20751_v8 = vld [vmem:[#allocation6 + $0x42cc] ss:$48 sps:$4 sm:$0xff]  }
 0x2d8   :  { %14403 = vmatpush1.bf16.msra.mxu0 %v20684_v12  ;;  %14895 = vmatpush1.bf16.msra.mxu1 %v20687_v14  ;;  %v20746_v12 = vld [vmem:[#allocation6 + $0x42c0] ss:$48 sps:$4 sm:$0xff]   ;;  %v20749_v14 = vld [vmem:[#allocation6 + $0x42c8] ss:$48 sps:$4 sm:$0xff]  }
 0x2d9   :  { %14404 = vmatprep.subr.bf16.mxu0 %v20692_v16  ;;  %14896 = vmatprep.subr.bf16.mxu1 %v20695_v17  ;;  %v20754_v16 = vld [vmem:[#allocation6 + $0x4324] ss:$48 sps:$4 sm:$0xff]   ;;  %v20757_v17 = vld [vmem:[#allocation6 + $0x432c] ss:$48 sps:$4 sm:$0xff]  }
 0x2dc   :  { %14405 = vmatpush1.bf16.msra.mxu0 %v20690_v56  ;;  %14897 = vmatpush1.bf16.msra.mxu1 %v20693_v19  ;;  %v20752_v56 = vld [vmem:[#allocation6 + $0x4320] ss:$48 sps:$4 sm:$0xff]   ;;  %v20755_v19 = vld [vmem:[#allocation6 + $0x4328] ss:$48 sps:$4 sm:$0xff]  }
 0x2dd   :  { %14406 = vmatprep.subr.bf16.mxu0 %v20698_v22  ;;  %14898 = vmatprep.subr.bf16.mxu1 %v20701_v23  ;;  %v20760_v22 = vld [vmem:[#allocation6 + $0x4384] ss:$48 sps:$4 sm:$0xff]   ;;  %v20763_v23 = vld [vmem:[#allocation6 + $0x438c] ss:$48 sps:$4 sm:$0xff]  }
 0x2e0   :  { %14407 = vmatpush1.bf16.msra.mxu0 %v20696_v25  ;;  %14899 = vmatpush1.bf16.msra.mxu1 %v20699_v26  ;;  %v20758_v25 = vld [vmem:[#allocation6 + $0x4380] ss:$48 sps:$4 sm:$0xff]   ;;  %v20761_v26 = vld [vmem:[#allocation6 + $0x4388] ss:$48 sps:$4 sm:$0xff]  }
 0x2e1   :  { %14408 = vmatprep.subr.bf16.mxu0 %v20704_v13  ;;  %14900 = vmatprep.subr.bf16.mxu1 %v20707_v27  ;;  %v20766_v13 = vld [vmem:[#allocation6 + $0x43e4] ss:$48 sps:$4 sm:$0xff]   ;;  %v20769_v27 = vld [vmem:[#allocation6 + $0x43ec] ss:$48 sps:$4 sm:$0xff]  }
 0x2e4   :  { %14409 = vmatpush1.bf16.msra.mxu0 %v20702_v33  ;;  %14901 = vmatpush1.bf16.msra.mxu1 %v20705_v34  ;;  %v20764_v33 = vld [vmem:[#allocation6 + $0x43e0] ss:$48 sps:$4 sm:$0xff]   ;;  %v20767_v34 = vld [vmem:[#allocation6 + $0x43e8] ss:$48 sps:$4 sm:$0xff]  }
 0x2e5   :  { %14410 = vmatprep.subr.bf16.mxu0 %v20710_v60  ;;  %14902 = vmatprep.subr.bf16.mxu1 %v20713_v38  ;;  %v20772_v60 = vld [vmem:[#allocation6 + $0x4444] ss:$48 sps:$4 sm:$0xff]   ;;  %v20775_v38 = vld [vmem:[#allocation6 + $0x444c] ss:$48 sps:$4 sm:$0xff]  }
 0x2e8   :  { %14411 = vmatpush1.bf16.msra.mxu0 %v20708_v39  ;;  %14903 = vmatpush1.bf16.msra.mxu1 %v20711_v40  ;;  %v20770_v39 = vld [vmem:[#allocation6 + $0x4440] ss:$48 sps:$4 sm:$0xff]   ;;  %v20773_v40 = vld [vmem:[#allocation6 + $0x4448] ss:$48 sps:$4 sm:$0xff]  }
 0x2e9   :  { %14412 = vmatprep.subr.bf16.mxu0 %v20716_v9  ;;  %14904 = vmatprep.subr.bf16.mxu1 %v20719_v44  ;;  %v20778_v9 = vld [vmem:[#allocation6 + $0x44a4] ss:$48 sps:$4 sm:$0xff]   ;;  %v20781_v44 = vld [vmem:[#allocation6 + $0x44ac] ss:$48 sps:$4 sm:$0xff]  }
 0x2ec   :  { %14413 = vmatpush1.bf16.msra.mxu0 %v20714_v45  ;;  %14905 = vmatpush1.bf16.msra.mxu1 %v20717_v46  ;;  %v20776_v45 = vld [vmem:[#allocation6 + $0x44a0] ss:$48 sps:$4 sm:$0xff]   ;;  %v20779_v46 = vld [vmem:[#allocation6 + $0x44a8] ss:$48 sps:$4 sm:$0xff]  }
 0x2ed   :  { %14414 = vmatprep.subr.bf16.mxu0 %v20722_v31  ;;  %14906 = vmatprep.subr.bf16.mxu1 %v20725_v49  ;;  %v20784_v31 = vld [vmem:[#allocation6 + $0x4504] ss:$48 sps:$4 sm:$0xff]   ;;  %v20787_v49 = vld [vmem:[#allocation6 + $0x450c] ss:$48 sps:$4 sm:$0xff]  }
 0x2f0   :  { %14415 = vmatpush1.bf16.msra.mxu0 %v20720_v50  ;;  %14907 = vmatpush1.bf16.msra.mxu1 %v20723_v51  ;;  %v20782_v50 = vld [vmem:[#allocation6 + $0x4500] ss:$48 sps:$4 sm:$0xff]   ;;  %v20785_v51 = vld [vmem:[#allocation6 + $0x4508] ss:$48 sps:$4 sm:$0xff]  }
 0x2f1   :  { %14416 = vmatprep.subr.bf16.mxu0 %v20728_v52  ;;  %14908 = vmatprep.subr.bf16.mxu1 %v20731_v53  ;;  %v20790_v52 = vld [vmem:[#allocation6 + $0x4564] ss:$48 sps:$4 sm:$0xff]   ;;  %v20793_v53 = vld [vmem:[#allocation6 + $0x456c] ss:$48 sps:$4 sm:$0xff]  }
 0x2f4   :  { %14417 = vmatpush1.bf16.msra.mxu0 %v20726_v54  ;;  %14909 = vmatpush1.bf16.msra.mxu1 %v20729_v55  ;;  %v20788_v54 = vld [vmem:[#allocation6 + $0x4560] ss:$48 sps:$4 sm:$0xff]   ;;  %v20791_v55 = vld [vmem:[#allocation6 + $0x4568] ss:$48 sps:$4 sm:$0xff]  }
 0x2f5   :  { %14427 = vmatprep.subr.bf16.mxu0 %v20735_v58  ;;  %14919 = vmatprep.subr.bf16.mxu1 %v20738_v59  ;;  %v20796_v58 = vld [vmem:[#allocation6 + $0x45c4] ss:$48 sps:$4 sm:$0xff]   ;;  %v20799_v59 = vld [vmem:[#allocation6 + $0x45cc] ss:$48 sps:$4 sm:$0xff]  }
 0x2f7   :  { %14419 = vmatmul.mubr.bf16.vlgmr.msra.gmra.mrb[0].mxu0 %v23444_v63  ;;  %14911 = vmatmul.mubr.bf16.vlgmr.msra.gmra.mrb[0].mxu1 %v23444_v63 }
 0x2f8   :  { %14428 = vmatpush1.bf16.msra.mxu0 %v20733_v0  ;;  %14920 = vmatpush1.bf16.msra.mxu1 %v20736_v1  ;;  %v20794_v0 = vld [vmem:[#allocation6 + $0x45c0] ss:$48 sps:$4 sm:$0xff]   ;;  %v20797_v1 = vld [vmem:[#allocation6 + $0x45c8] ss:$48 sps:$4 sm:$0xff]  }
 0x2f9   :  { %14429 = vmatprep.subr.bf16.mxu0 %v20742_v21  ;;  %14921 = vmatprep.subr.bf16.mxu1 %v20745_v3  ;;  %v20802_v21 = vld [vmem:[#allocation6 + $0x4624] ss:$48 sps:$4 sm:$0xff]   ;;  %v20805_v3 = vld [vmem:[#allocation6 + $0x462c] ss:$48 sps:$4 sm:$0xff]  }
 0x2fa   :  { %14459 = vmatprep.mubr.bf16.mxu0 %v23448_v4  ;;  %14951 = vmatprep.mubr.bf16.mxu1 %v23448_v4 }
 0x2fc   :  { %14430 = vmatpush1.bf16.msra.mxu0 %v20740_v32  ;;  %14922 = vmatpush1.bf16.msra.mxu1 %v20743_v6  ;;  %v20800_v32 = vld [vmem:[#allocation6 + $0x4620] ss:$48 sps:$4 sm:$0xff]   ;;  %v20803_v6 = vld [vmem:[#allocation6 + $0x4628] ss:$48 sps:$4 sm:$0xff]  }
 0x2fd   :  { %14431 = vmatprep.subr.bf16.mxu0 %v20748_v7  ;;  %14923 = vmatprep.subr.bf16.mxu1 %v20751_v8  ;;  %v20808_v7 = vld [vmem:[#allocation6 + $0x4684] ss:$48 sps:$4 sm:$0xff]   ;;  %v20811_v8 = vld [vmem:[#allocation6 + $0x468c] ss:$48 sps:$4 sm:$0xff]  }
 0x300   :  { %14432 = vmatpush1.bf16.msra.mxu0 %v20746_v12  ;;  %14924 = vmatpush1.bf16.msra.mxu1 %v20749_v14  ;;  %v20806_v12 = vld [vmem:[#allocation6 + $0x4680] ss:$48 sps:$4 sm:$0xff]   ;;  %v20809_v14 = vld [vmem:[#allocation6 + $0x4688] ss:$48 sps:$4 sm:$0xff]  }
 0x301   :  { %14433 = vmatprep.subr.bf16.mxu0 %v20754_v16  ;;  %14925 = vmatprep.subr.bf16.mxu1 %v20757_v17  ;;  %v20814_v16 = vld [vmem:[#allocation6 + $0x46e4] ss:$48 sps:$4 sm:$0xff]   ;;  %v20817_v17 = vld [vmem:[#allocation6 + $0x46ec] ss:$48 sps:$4 sm:$0xff]  }
 0x304   :  { %14434 = vmatpush1.bf16.msra.mxu0 %v20752_v56  ;;  %14926 = vmatpush1.bf16.msra.mxu1 %v20755_v19  ;;  %v20812_v56 = vld [vmem:[#allocation6 + $0x46e0] ss:$48 sps:$4 sm:$0xff]   ;;  %v20815_v19 = vld [vmem:[#allocation6 + $0x46e8] ss:$48 sps:$4 sm:$0xff]  }
 0x305   :  { %14435 = vmatprep.subr.bf16.mxu0 %v20760_v22  ;;  %14927 = vmatprep.subr.bf16.mxu1 %v20763_v23  ;;  %v20820_v22 = vld [vmem:[#allocation6 + $0x4744] ss:$48 sps:$4 sm:$0xff]   ;;  %v20823_v23 = vld [vmem:[#allocation6 + $0x474c] ss:$48 sps:$4 sm:$0xff]  }
 0x308   :  { %14436 = vmatpush1.bf16.msra.mxu0 %v20758_v25  ;;  %14928 = vmatpush1.bf16.msra.mxu1 %v20761_v26  ;;  %v20818_v25 = vld [vmem:[#allocation6 + $0x4740] ss:$48 sps:$4 sm:$0xff]   ;;  %v20821_v26 = vld [vmem:[#allocation6 + $0x4748] ss:$48 sps:$4 sm:$0xff]  }
 0x309   :  { %14437 = vmatprep.subr.bf16.mxu0 %v20766_v13  ;;  %14929 = vmatprep.subr.bf16.mxu1 %v20769_v27  ;;  %v20826_v13 = vld [vmem:[#allocation6 + $0x47a4] ss:$48 sps:$4 sm:$0xff]   ;;  %v20829_v27 = vld [vmem:[#allocation6 + $0x47ac] ss:$48 sps:$4 sm:$0xff]  }
 0x30c   :  { %14438 = vmatpush1.bf16.msra.mxu0 %v20764_v33  ;;  %14930 = vmatpush1.bf16.msra.mxu1 %v20767_v34  ;;  %v20824_v33 = vld [vmem:[#allocation6 + $0x47a0] ss:$48 sps:$4 sm:$0xff]   ;;  %v20827_v34 = vld [vmem:[#allocation6 + $0x47a8] ss:$48 sps:$4 sm:$0xff]  }
 0x30d   :  { %14439 = vmatprep.subr.bf16.mxu0 %v20772_v60  ;;  %14931 = vmatprep.subr.bf16.mxu1 %v20775_v38  ;;  %v20834_v60 = vld [vmem:[#allocation6 + $0x14] ss:$48 sps:$4 sm:$0xff]   ;;  %v20837_v38 = vld [vmem:[#allocation6 + $0x1c] ss:$48 sps:$4 sm:$0xff]  }
 0x310   :  { %14440 = vmatpush1.bf16.msra.mxu0 %v20770_v39  ;;  %14932 = vmatpush1.bf16.msra.mxu1 %v20773_v40  ;;  %v23456_v39 = vcombine.low %v23440_v41, %v23440_v41  ;;  %v20832_v40 = vld [vmem:[#allocation6 + $0x10] ss:$48 sps:$4 sm:$0xff]   ;;  %v20846_v41 = vld [vmem:[#allocation6 + $0xd4] ss:$48 sps:$4 sm:$0xff]  }
 0x311   :  { %14441 = vmatprep.subr.bf16.mxu0 %v20778_v9  ;;  %14933 = vmatprep.subr.bf16.mxu1 %v20781_v44  ;;  %v20835_v9 = vld [vmem:[#allocation6 + $0x18] ss:$48 sps:$4 sm:$0xff]   ;;  %v20840_v44 = vld [vmem:[#allocation6 + $0x74] ss:$48 sps:$4 sm:$0xff]  }
 0x314   :  { %14442 = vmatpush1.bf16.msra.mxu0 %v20776_v45  ;;  %14934 = vmatpush1.bf16.msra.mxu1 %v20779_v46  ;;  %v20843_v45 = vld [vmem:[#allocation6 + $0x7c] ss:$48 sps:$4 sm:$0xff]   ;;  %v20838_v46 = vld [vmem:[#allocation6 + $0x70] ss:$48 sps:$4 sm:$0xff]  }
 0x315   :  { %14443 = vmatprep.subr.bf16.mxu0 %v20784_v31  ;;  %14935 = vmatprep.subr.bf16.mxu1 %v20787_v49  ;;  %v20841_v31 = vld [vmem:[#allocation6 + $0x78] ss:$48 sps:$4 sm:$0xff]   ;;  %v20849_v49 = vld [vmem:[#allocation6 + $0xdc] ss:$48 sps:$4 sm:$0xff]  }
 0x318   :  { %14444 = vmatpush1.bf16.msra.mxu0 %v20782_v50  ;;  %14936 = vmatpush1.bf16.msra.mxu1 %v20785_v51  ;;  %v20844_v50 = vld [vmem:[#allocation6 + $0xd0] ss:$48 sps:$4 sm:$0xff]   ;;  %v20847_v51 = vld [vmem:[#allocation6 + $0xd8] ss:$48 sps:$4 sm:$0xff]  }
 0x319   :  { %14445 = vmatprep.subr.bf16.mxu0 %v20790_v52  ;;  %14937 = vmatprep.subr.bf16.mxu1 %v20793_v53  ;;  %v20852_v52 = vld [vmem:[#allocation6 + $0x134] ss:$48 sps:$4 sm:$0xff]   ;;  %v20855_v53 = vld [vmem:[#allocation6 + $0x13c] ss:$48 sps:$4 sm:$0xff]  }
 0x31c   :  { %14446 = vmatpush1.bf16.msra.mxu0 %v20788_v54  ;;  %14938 = vmatpush1.bf16.msra.mxu1 %v20791_v55  ;;  %v20850_v54 = vld [vmem:[#allocation6 + $0x130] ss:$48 sps:$4 sm:$0xff]   ;;  %v20853_v55 = vld [vmem:[#allocation6 + $0x138] ss:$48 sps:$4 sm:$0xff]  }
 0x31d   :  { %14447 = vmatprep.subr.bf16.mxu0 %v20796_v58  ;;  %14939 = vmatprep.subr.bf16.mxu1 %v20799_v59  ;;  %v20858_v58 = vld [vmem:[#allocation6 + $0x194] ss:$48 sps:$4 sm:$0xff]   ;;  %v20861_v59 = vld [vmem:[#allocation6 + $0x19c] ss:$48 sps:$4 sm:$0xff]  }
 0x320   :  { %14448 = vmatpush1.bf16.msra.mxu0 %v20794_v0  ;;  %14940 = vmatpush1.bf16.msra.mxu1 %v20797_v1  ;;  %v20856_v0 = vld [vmem:[#allocation6 + $0x190] ss:$48 sps:$4 sm:$0xff]   ;;  %v20859_v1 = vld [vmem:[#allocation6 + $0x198] ss:$48 sps:$4 sm:$0xff]  }
 0x321   :  { %14449 = vmatprep.subr.bf16.mxu0 %v20802_v21  ;;  %14941 = vmatprep.subr.bf16.mxu1 %v20805_v3  ;;  %v20864_v21 = vld [vmem:[#allocation6 + $0x1f4] ss:$48 sps:$4 sm:$0xff]   ;;  %v20867_v3 = vld [vmem:[#allocation6 + $0x1fc] ss:$48 sps:$4 sm:$0xff]  }
 0x324   :  { %14450 = vmatpush1.bf16.msra.mxu0 %v20800_v32  ;;  %14942 = vmatpush1.bf16.msra.mxu1 %v20803_v6  ;;  %v20862_v32 = vld [vmem:[#allocation6 + $0x1f0] ss:$48 sps:$4 sm:$0xff]   ;;  %v20865_v6 = vld [vmem:[#allocation6 + $0x1f8] ss:$48 sps:$4 sm:$0xff]  }
 0x325   :  { %14451 = vmatprep.subr.bf16.mxu0 %v20808_v7  ;;  %14943 = vmatprep.subr.bf16.mxu1 %v20811_v8  ;;  %v20870_v7 = vld [vmem:[#allocation6 + $0x254] ss:$48 sps:$4 sm:$0xff]   ;;  %v20873_v8 = vld [vmem:[#allocation6 + $0x25c] ss:$48 sps:$4 sm:$0xff]  }
 0x328   :  { %14452 = vmatpush1.bf16.msra.mxu0 %v20806_v12  ;;  %14944 = vmatpush1.bf16.msra.mxu1 %v20809_v14  ;;  %v20868_v12 = vld [vmem:[#allocation6 + $0x250] ss:$48 sps:$4 sm:$0xff]   ;;  %v20871_v14 = vld [vmem:[#allocation6 + $0x258] ss:$48 sps:$4 sm:$0xff]  }
 0x329   :  { %14453 = vmatprep.subr.bf16.mxu0 %v20814_v16  ;;  %14945 = vmatprep.subr.bf16.mxu1 %v20817_v17  ;;  %v20876_v16 = vld [vmem:[#allocation6 + $0x2b4] ss:$48 sps:$4 sm:$0xff]   ;;  %v20879_v17 = vld [vmem:[#allocation6 + $0x2bc] ss:$48 sps:$4 sm:$0xff]  }
 0x32c   :  { %14454 = vmatpush1.bf16.msra.mxu0 %v20812_v56  ;;  %14946 = vmatpush1.bf16.msra.mxu1 %v20815_v19  ;;  %v20874_v56 = vld [vmem:[#allocation6 + $0x2b0] ss:$48 sps:$4 sm:$0xff]   ;;  %v20877_v19 = vld [vmem:[#allocation6 + $0x2b8] ss:$48 sps:$4 sm:$0xff]  }
 0x32d   :  { %14455 = vmatprep.subr.bf16.mxu0 %v20820_v22  ;;  %14947 = vmatprep.subr.bf16.mxu1 %v20823_v23  ;;  %v20882_v22 = vld [vmem:[#allocation6 + $0x314] ss:$48 sps:$4 sm:$0xff]   ;;  %v20885_v23 = vld [vmem:[#allocation6 + $0x31c] ss:$48 sps:$4 sm:$0xff]  }
 0x330   :  { %14456 = vmatpush1.bf16.msra.mxu0 %v20818_v25  ;;  %14948 = vmatpush1.bf16.msra.mxu1 %v20821_v26  ;;  %v20880_v25 = vld [vmem:[#allocation6 + $0x310] ss:$48 sps:$4 sm:$0xff]   ;;  %v20883_v26 = vld [vmem:[#allocation6 + $0x318] ss:$48 sps:$4 sm:$0xff]  }
 0x331   :  { %14457 = vmatprep.subr.bf16.mxu0 %v20826_v13  ;;  %14949 = vmatprep.subr.bf16.mxu1 %v20829_v27  ;;  %v20888_v13 = vld [vmem:[#allocation6 + $0x374] ss:$48 sps:$4 sm:$0xff]   ;;  %v20891_v27 = vld [vmem:[#allocation6 + $0x37c] ss:$48 sps:$4 sm:$0xff]  }
 0x334   :  { %14458 = vmatpush1.bf16.msra.mxu0 %v20824_v33  ;;  %14950 = vmatpush1.bf16.msra.mxu1 %v20827_v34  ;;  %v20886_v33 = vld [vmem:[#allocation6 + $0x370] ss:$48 sps:$4 sm:$0xff]   ;;  %v20889_v34 = vld [vmem:[#allocation6 + $0x378] ss:$48 sps:$4 sm:$0xff]  }
 0x335   :  { %14960 = vmatprep.subr.bf16.mxu0 %v20834_v60  ;;  %15452 = vmatprep.subr.bf16.mxu1 %v20837_v38  ;;  %v20894_v60 = vld [vmem:[#allocation6 + $0x3d4] ss:$48 sps:$4 sm:$0xff]   ;;  %v20897_v38 = vld [vmem:[#allocation6 + $0x3dc] ss:$48 sps:$4 sm:$0xff]  }
 0x337   :  { %14460 = vmatmul.mubr.bf16.vlgmr.msra.gmra.mrb[0].mxu0 %v23456_v39  ;;  %14952 = vmatmul.mubr.bf16.vlgmr.msra.gmra.mrb[0].mxu1 %v23456_v39 }
 0x338   :  { %14961 = vmatpush1.bf16.msra.mxu0 %v20832_v40  ;;  %15453 = vmatpush1.bf16.msra.mxu1 %v20835_v9  ;;  %v20892_v40 = vld [vmem:[#allocation6 + $0x3d0] ss:$48 sps:$4 sm:$0xff]   ;;  %v20895_v9 = vld [vmem:[#allocation6 + $0x3d8] ss:$48 sps:$4 sm:$0xff]  }
 0x339   :  { %14962 = vmatprep.subr.bf16.mxu0 %v20840_v44  ;;  %15454 = vmatprep.subr.bf16.mxu1 %v20843_v45  ;;  %v20900_v44 = vld [vmem:[#allocation6 + $0x434] ss:$48 sps:$4 sm:$0xff]   ;;  %v20903_v45 = vld [vmem:[#allocation6 + $0x43c] ss:$48 sps:$4 sm:$0xff]  }
 0x33a   :  { %14992 = vmatprep.mubr.bf16.mxu0 %v23298_v48  ;;  %15484 = vmatprep.mubr.bf16.mxu1 %v23298_v48 }
 0x33c   :  { %14963 = vmatpush1.bf16.msra.mxu0 %v20838_v46  ;;  %15455 = vmatpush1.bf16.msra.mxu1 %v20841_v31  ;;  %v20898_v46 = vld [vmem:[#allocation6 + $0x430] ss:$48 sps:$4 sm:$0xff]   ;;  %v20901_v31 = vld [vmem:[#allocation6 + $0x438] ss:$48 sps:$4 sm:$0xff]  }
 0x33d   :  { %14964 = vmatprep.subr.bf16.mxu0 %v20846_v41  ;;  %15456 = vmatprep.subr.bf16.mxu1 %v20849_v49  ;;  %v20906_v41 = vld [vmem:[#allocation6 + $0x494] ss:$48 sps:$4 sm:$0xff]   ;;  %v20909_v49 = vld [vmem:[#allocation6 + $0x49c] ss:$48 sps:$4 sm:$0xff]  }
 0x340   :  { %14965 = vmatpush1.bf16.msra.mxu0 %v20844_v50  ;;  %15457 = vmatpush1.bf16.msra.mxu1 %v20847_v51  ;;  %v20904_v50 = vld [vmem:[#allocation6 + $0x490] ss:$48 sps:$4 sm:$0xff]   ;;  %v20907_v51 = vld [vmem:[#allocation6 + $0x498] ss:$48 sps:$4 sm:$0xff]  }
 0x341   :  { %14966 = vmatprep.subr.bf16.mxu0 %v20852_v52  ;;  %15458 = vmatprep.subr.bf16.mxu1 %v20855_v53  ;;  %v20912_v52 = vld [vmem:[#allocation6 + $0x4f4] ss:$48 sps:$4 sm:$0xff]   ;;  %v20915_v53 = vld [vmem:[#allocation6 + $0x4fc] ss:$48 sps:$4 sm:$0xff]  }
 0x344   :  { %14967 = vmatpush1.bf16.msra.mxu0 %v20850_v54  ;;  %15459 = vmatpush1.bf16.msra.mxu1 %v20853_v55  ;;  %v20910_v54 = vld [vmem:[#allocation6 + $0x4f0] ss:$48 sps:$4 sm:$0xff]   ;;  %v20913_v55 = vld [vmem:[#allocation6 + $0x4f8] ss:$48 sps:$4 sm:$0xff]  }
 0x345   :  { %14968 = vmatprep.subr.bf16.mxu0 %v20858_v58  ;;  %15460 = vmatprep.subr.bf16.mxu1 %v20861_v59  ;;  %v20918_v58 = vld [vmem:[#allocation6 + $0x554] ss:$48 sps:$4 sm:$0xff]   ;;  %v20921_v59 = vld [vmem:[#allocation6 + $0x55c] ss:$48 sps:$4 sm:$0xff]  }
 0x348   :  { %14969 = vmatpush1.bf16.msra.mxu0 %v20856_v0  ;;  %15461 = vmatpush1.bf16.msra.mxu1 %v20859_v1  ;;  %v20916_v0 = vld [vmem:[#allocation6 + $0x550] ss:$48 sps:$4 sm:$0xff]   ;;  %v20919_v1 = vld [vmem:[#allocation6 + $0x558] ss:$48 sps:$4 sm:$0xff]  }
 0x349   :  { %14970 = vmatprep.subr.bf16.mxu0 %v20864_v21  ;;  %15462 = vmatprep.subr.bf16.mxu1 %v20867_v3  ;;  %v20924_v21 = vld [vmem:[#allocation6 + $0x5b4] ss:$48 sps:$4 sm:$0xff]   ;;  %v20927_v3 = vld [vmem:[#allocation6 + $0x5bc] ss:$48 sps:$4 sm:$0xff]  }
 0x34c   :  { %14971 = vmatpush1.bf16.msra.mxu0 %v20862_v32  ;;  %15463 = vmatpush1.bf16.msra.mxu1 %v20865_v6  ;;  %v20922_v32 = vld [vmem:[#allocation6 + $0x5b0] ss:$48 sps:$4 sm:$0xff]   ;;  %v20925_v6 = vld [vmem:[#allocation6 + $0x5b8] ss:$48 sps:$4 sm:$0xff]  }
 0x34d   :  { %14972 = vmatprep.subr.bf16.mxu0 %v20870_v7  ;;  %15464 = vmatprep.subr.bf16.mxu1 %v20873_v8  ;;  %v20930_v7 = vld [vmem:[#allocation6 + $0x614] ss:$48 sps:$4 sm:$0xff]   ;;  %v20933_v8 = vld [vmem:[#allocation6 + $0x61c] ss:$48 sps:$4 sm:$0xff]  }
 0x350   :  { %14973 = vmatpush1.bf16.msra.mxu0 %v20868_v12  ;;  %15465 = vmatpush1.bf16.msra.mxu1 %v20871_v14  ;;  %v20928_v12 = vld [vmem:[#allocation6 + $0x610] ss:$48 sps:$4 sm:$0xff]   ;;  %v20931_v14 = vld [vmem:[#allocation6 + $0x618] ss:$48 sps:$4 sm:$0xff]  }
 0x351   :  { %14974 = vmatprep.subr.bf16.mxu0 %v20876_v16  ;;  %15466 = vmatprep.subr.bf16.mxu1 %v20879_v17  ;;  %v20936_v16 = vld [vmem:[#allocation6 + $0x674] ss:$48 sps:$4 sm:$0xff]   ;;  %v20939_v17 = vld [vmem:[#allocation6 + $0x67c] ss:$48 sps:$4 sm:$0xff]  }
 0x354   :  { %14975 = vmatpush1.bf16.msra.mxu0 %v20874_v56  ;;  %15467 = vmatpush1.bf16.msra.mxu1 %v20877_v19  ;;  %v20934_v56 = vld [vmem:[#allocation6 + $0x670] ss:$48 sps:$4 sm:$0xff]   ;;  %v20937_v19 = vld [vmem:[#allocation6 + $0x678] ss:$48 sps:$4 sm:$0xff]  }
 0x355   :  { %14976 = vmatprep.subr.bf16.mxu0 %v20882_v22  ;;  %15468 = vmatprep.subr.bf16.mxu1 %v20885_v23  ;;  %v20942_v22 = vld [vmem:[#allocation6 + $0x6d4] ss:$48 sps:$4 sm:$0xff]   ;;  %v20945_v23 = vld [vmem:[#allocation6 + $0x6dc] ss:$48 sps:$4 sm:$0xff]  }
 0x358   :  { %14977 = vmatpush1.bf16.msra.mxu0 %v20880_v25  ;;  %15469 = vmatpush1.bf16.msra.mxu1 %v20883_v26  ;;  %v20940_v25 = vld [vmem:[#allocation6 + $0x6d0] ss:$48 sps:$4 sm:$0xff]   ;;  %v20943_v26 = vld [vmem:[#allocation6 + $0x6d8] ss:$48 sps:$4 sm:$0xff]  }
 0x359   :  { %14978 = vmatprep.subr.bf16.mxu0 %v20888_v13  ;;  %15470 = vmatprep.subr.bf16.mxu1 %v20891_v27  ;;  %v20948_v13 = vld [vmem:[#allocation6 + $0x734] ss:$48 sps:$4 sm:$0xff]   ;;  %v20951_v27 = vld [vmem:[#allocation6 + $0x73c] ss:$48 sps:$4 sm:$0xff]  }
 0x35c   :  { %14979 = vmatpush1.bf16.msra.mxu0 %v20886_v33  ;;  %15471 = vmatpush1.bf16.msra.mxu1 %v20889_v34  ;;  %v20946_v33 = vld [vmem:[#allocation6 + $0x730] ss:$48 sps:$4 sm:$0xff]   ;;  %v20949_v34 = vld [vmem:[#allocation6 + $0x738] ss:$48 sps:$4 sm:$0xff]  }
 0x35d   :  { %14980 = vmatprep.subr.bf16.mxu0 %v20894_v60  ;;  %15472 = vmatprep.subr.bf16.mxu1 %v20897_v38  ;;  %v20954_v60 = vld [vmem:[#allocation6 + $0x794] ss:$48 sps:$4 sm:$0xff]   ;;  %v20957_v38 = vld [vmem:[#allocation6 + $0x79c] ss:$48 sps:$4 sm:$0xff]  }
 0x360   :  { %14981 = vmatpush1.bf16.msra.mxu0 %v20892_v40  ;;  %15473 = vmatpush1.bf16.msra.mxu1 %v20895_v9  ;;  %v20952_v40 = vld [vmem:[#allocation6 + $0x790] ss:$48 sps:$4 sm:$0xff]   ;;  %v20955_v9 = vld [vmem:[#allocation6 + $0x798] ss:$48 sps:$4 sm:$0xff]  }
 0x361   :  { %14982 = vmatprep.subr.bf16.mxu0 %v20900_v44  ;;  %15474 = vmatprep.subr.bf16.mxu1 %v20903_v45  ;;  %v20960_v44 = vld [vmem:[#allocation6 + $0x7f4] ss:$48 sps:$4 sm:$0xff]   ;;  %v20963_v45 = vld [vmem:[#allocation6 + $0x7fc] ss:$48 sps:$4 sm:$0xff]  }
 0x364   :  { %14983 = vmatpush1.bf16.msra.mxu0 %v20898_v46  ;;  %15475 = vmatpush1.bf16.msra.mxu1 %v20901_v31  ;;  %v20958_v46 = vld [vmem:[#allocation6 + $0x7f0] ss:$48 sps:$4 sm:$0xff]   ;;  %v20961_v31 = vld [vmem:[#allocation6 + $0x7f8] ss:$48 sps:$4 sm:$0xff]  }
 0x365   :  { %14984 = vmatprep.subr.bf16.mxu0 %v20906_v41  ;;  %15476 = vmatprep.subr.bf16.mxu1 %v20909_v49  ;;  %v20966_v41 = vld [vmem:[#allocation6 + $0x854] ss:$48 sps:$4 sm:$0xff]   ;;  %v20969_v49 = vld [vmem:[#allocation6 + $0x85c] ss:$48 sps:$4 sm:$0xff]  }
 0x368   :  { %14985 = vmatpush1.bf16.msra.mxu0 %v20904_v50  ;;  %15477 = vmatpush1.bf16.msra.mxu1 %v20907_v51  ;;  %v20964_v50 = vld [vmem:[#allocation6 + $0x850] ss:$48 sps:$4 sm:$0xff]   ;;  %v20967_v51 = vld [vmem:[#allocation6 + $0x858] ss:$48 sps:$4 sm:$0xff]  }
 0x369   :  { %14986 = vmatprep.subr.bf16.mxu0 %v20912_v52  ;;  %15478 = vmatprep.subr.bf16.mxu1 %v20915_v53  ;;  %v20972_v52 = vld [vmem:[#allocation6 + $0x8b4] ss:$48 sps:$4 sm:$0xff]   ;;  %v20975_v53 = vld [vmem:[#allocation6 + $0x8bc] ss:$48 sps:$4 sm:$0xff]  }
 0x36c   :  { %14987 = vmatpush1.bf16.msra.mxu0 %v20910_v54  ;;  %15479 = vmatpush1.bf16.msra.mxu1 %v20913_v55  ;;  %v20970_v54 = vld [vmem:[#allocation6 + $0x8b0] ss:$48 sps:$4 sm:$0xff]   ;;  %v20973_v55 = vld [vmem:[#allocation6 + $0x8b8] ss:$48 sps:$4 sm:$0xff]  }
 0x36d   :  { %14988 = vmatprep.subr.bf16.mxu0 %v20918_v58  ;;  %15480 = vmatprep.subr.bf16.mxu1 %v20921_v59  ;;  %v20978_v58 = vld [vmem:[#allocation6 + $0x914] ss:$48 sps:$4 sm:$0xff]   ;;  %v20981_v59 = vld [vmem:[#allocation6 + $0x91c] ss:$48 sps:$4 sm:$0xff]  }
 0x370   :  { %14989 = vmatpush1.bf16.msra.mxu0 %v20916_v0  ;;  %15481 = vmatpush1.bf16.msra.mxu1 %v20919_v1  ;;  %v20976_v0 = vld [vmem:[#allocation6 + $0x910] ss:$48 sps:$4 sm:$0xff]   ;;  %v20979_v1 = vld [vmem:[#allocation6 + $0x918] ss:$48 sps:$4 sm:$0xff]  }
 0x371   :  { %14990 = vmatprep.subr.bf16.mxu0 %v20924_v21  ;;  %15482 = vmatprep.subr.bf16.mxu1 %v20927_v3  ;;  %v20984_v21 = vld [vmem:[#allocation6 + $0x974] ss:$48 sps:$4 sm:$0xff]   ;;  %v20987_v3 = vld [vmem:[#allocation6 + $0x97c] ss:$48 sps:$4 sm:$0xff]  }
 0x374   :  { %14991 = vmatpush1.bf16.msra.mxu0 %v20922_v32  ;;  %15483 = vmatpush1.bf16.msra.mxu1 %v20925_v6  ;;  %v20982_v32 = vld [vmem:[#allocation6 + $0x970] ss:$48 sps:$4 sm:$0xff]   ;;  %v20985_v6 = vld [vmem:[#allocation6 + $0x978] ss:$48 sps:$4 sm:$0xff]  }
 0x375   :  { %15001 = vmatprep.subr.bf16.mxu0 %v20930_v7  ;;  %15493 = vmatprep.subr.bf16.mxu1 %v20933_v8  ;;  %v20990_v7 = vld [vmem:[#allocation6 + $0x9d4] ss:$48 sps:$4 sm:$0xff]   ;;  %v20993_v8 = vld [vmem:[#allocation6 + $0x9dc] ss:$48 sps:$4 sm:$0xff]  }
 0x377   :  { %14993 = vmatmul.mubr.bf16.vlgmr.msra.gmra.mrb[4].mxu0 %v23302_v5  ;;  %15485 = vmatmul.mubr.bf16.vlgmr.msra.gmra.mrb[4].mxu1 %v23302_v5 }
 0x378   :  { %15002 = vmatpush1.bf16.msra.mxu0 %v20928_v12  ;;  %15494 = vmatpush1.bf16.msra.mxu1 %v20931_v14  ;;  %v20988_v12 = vld [vmem:[#allocation6 + $0x9d0] ss:$48 sps:$4 sm:$0xff]   ;;  %v20991_v14 = vld [vmem:[#allocation6 + $0x9d8] ss:$48 sps:$4 sm:$0xff]  }
 0x379   :  { %15003 = vmatprep.subr.bf16.mxu0 %v20936_v16  ;;  %15495 = vmatprep.subr.bf16.mxu1 %v20939_v17  ;;  %v20996_v16 = vld [vmem:[#allocation6 + $0xa34] ss:$48 sps:$4 sm:$0xff]   ;;  %v20999_v17 = vld [vmem:[#allocation6 + $0xa3c] ss:$48 sps:$4 sm:$0xff]  }
 0x37a   :  { %15033 = vmatprep.mubr.bf16.mxu0 %v23310_v30  ;;  %15525 = vmatprep.mubr.bf16.mxu1 %v23310_v30 }
 0x37c   :  { %15004 = vmatpush1.bf16.msra.mxu0 %v20934_v56  ;;  %15496 = vmatpush1.bf16.msra.mxu1 %v20937_v19  ;;  %v20994_v56 = vld [vmem:[#allocation6 + $0xa30] ss:$48 sps:$4 sm:$0xff]   ;;  %v20997_v19 = vld [vmem:[#allocation6 + $0xa38] ss:$48 sps:$4 sm:$0xff]  }
 0x37d   :  { %15005 = vmatprep.subr.bf16.mxu0 %v20942_v22  ;;  %15497 = vmatprep.subr.bf16.mxu1 %v20945_v23  ;;  %v21002_v22 = vld [vmem:[#allocation6 + $0xa94] ss:$48 sps:$4 sm:$0xff]   ;;  %v21005_v23 = vld [vmem:[#allocation6 + $0xa9c] ss:$48 sps:$4 sm:$0xff]  }
 0x380   :  { %15006 = vmatpush1.bf16.msra.mxu0 %v20940_v25  ;;  %15498 = vmatpush1.bf16.msra.mxu1 %v20943_v26  ;;  %v21000_v25 = vld [vmem:[#allocation6 + $0xa90] ss:$48 sps:$4 sm:$0xff]   ;;  %v21003_v26 = vld [vmem:[#allocation6 + $0xa98] ss:$48 sps:$4 sm:$0xff]  }
 0x381   :  { %15007 = vmatprep.subr.bf16.mxu0 %v20948_v13  ;;  %15499 = vmatprep.subr.bf16.mxu1 %v20951_v27  ;;  %v21008_v13 = vld [vmem:[#allocation6 + $0xaf4] ss:$48 sps:$4 sm:$0xff]   ;;  %v21011_v27 = vld [vmem:[#allocation6 + $0xafc] ss:$48 sps:$4 sm:$0xff]  }
 0x384   :  { %15008 = vmatpush1.bf16.msra.mxu0 %v20946_v33  ;;  %15500 = vmatpush1.bf16.msra.mxu1 %v20949_v34  ;;  %v21006_v33 = vld [vmem:[#allocation6 + $0xaf0] ss:$48 sps:$4 sm:$0xff]   ;;  %v21009_v34 = vld [vmem:[#allocation6 + $0xaf8] ss:$48 sps:$4 sm:$0xff]  }
 0x385   :  { %15009 = vmatprep.subr.bf16.mxu0 %v20954_v60  ;;  %15501 = vmatprep.subr.bf16.mxu1 %v20957_v38  ;;  %v21014_v60 = vld [vmem:[#allocation6 + $0xb54] ss:$48 sps:$4 sm:$0xff]   ;;  %v21017_v38 = vld [vmem:[#allocation6 + $0xb5c] ss:$48 sps:$4 sm:$0xff]  }
 0x388   :  { %15010 = vmatpush1.bf16.msra.mxu0 %v20952_v40  ;;  %15502 = vmatpush1.bf16.msra.mxu1 %v20955_v9  ;;  %v21012_v40 = vld [vmem:[#allocation6 + $0xb50] ss:$48 sps:$4 sm:$0xff]   ;;  %v21015_v9 = vld [vmem:[#allocation6 + $0xb58] ss:$48 sps:$4 sm:$0xff]  }
 0x389   :  { %15011 = vmatprep.subr.bf16.mxu0 %v20960_v44  ;;  %15503 = vmatprep.subr.bf16.mxu1 %v20963_v45  ;;  %v21020_v44 = vld [vmem:[#allocation6 + $0xbb4] ss:$48 sps:$4 sm:$0xff]   ;;  %v21023_v45 = vld [vmem:[#allocation6 + $0xbbc] ss:$48 sps:$4 sm:$0xff]  }
 0x38c   :  { %15012 = vmatpush1.bf16.msra.mxu0 %v20958_v46  ;;  %15504 = vmatpush1.bf16.msra.mxu1 %v20961_v31  ;;  %v21018_v46 = vld [vmem:[#allocation6 + $0xbb0] ss:$48 sps:$4 sm:$0xff]   ;;  %v21021_v31 = vld [vmem:[#allocation6 + $0xbb8] ss:$48 sps:$4 sm:$0xff]  }
 0x38d   :  { %15013 = vmatprep.subr.bf16.mxu0 %v20966_v41  ;;  %15505 = vmatprep.subr.bf16.mxu1 %v20969_v49  ;;  %v21026_v41 = vld [vmem:[#allocation6 + $0xc14] ss:$48 sps:$4 sm:$0xff]   ;;  %v21029_v49 = vld [vmem:[#allocation6 + $0xc1c] ss:$48 sps:$4 sm:$0xff]  }
 0x390   :  { %15014 = vmatpush1.bf16.msra.mxu0 %v20964_v50  ;;  %15506 = vmatpush1.bf16.msra.mxu1 %v20967_v51  ;;  %v21024_v50 = vld [vmem:[#allocation6 + $0xc10] ss:$48 sps:$4 sm:$0xff]   ;;  %v21027_v51 = vld [vmem:[#allocation6 + $0xc18] ss:$48 sps:$4 sm:$0xff]  }
 0x391   :  { %15015 = vmatprep.subr.bf16.mxu0 %v20972_v52  ;;  %15507 = vmatprep.subr.bf16.mxu1 %v20975_v53  ;;  %v21032_v52 = vld [vmem:[#allocation6 + $0xc74] ss:$48 sps:$4 sm:$0xff]   ;;  %v21035_v53 = vld [vmem:[#allocation6 + $0xc7c] ss:$48 sps:$4 sm:$0xff]  }
 0x394   :  { %15016 = vmatpush1.bf16.msra.mxu0 %v20970_v54  ;;  %15508 = vmatpush1.bf16.msra.mxu1 %v20973_v55  ;;  %v21030_v54 = vld [vmem:[#allocation6 + $0xc70] ss:$48 sps:$4 sm:$0xff]   ;;  %v21033_v55 = vld [vmem:[#allocation6 + $0xc78] ss:$48 sps:$4 sm:$0xff]  }
 0x395   :  { %15017 = vmatprep.subr.bf16.mxu0 %v20978_v58  ;;  %15509 = vmatprep.subr.bf16.mxu1 %v20981_v59  ;;  %v21038_v58 = vld [vmem:[#allocation6 + $0xcd4] ss:$48 sps:$4 sm:$0xff]   ;;  %v21041_v59 = vld [vmem:[#allocation6 + $0xcdc] ss:$48 sps:$4 sm:$0xff]  }
 0x398   :  { %15018 = vmatpush1.bf16.msra.mxu0 %v20976_v0  ;;  %15510 = vmatpush1.bf16.msra.mxu1 %v20979_v1  ;;  %v21036_v0 = vld [vmem:[#allocation6 + $0xcd0] ss:$48 sps:$4 sm:$0xff]   ;;  %v21039_v1 = vld [vmem:[#allocation6 + $0xcd8] ss:$48 sps:$4 sm:$0xff]  }
 0x399   :  { %15019 = vmatprep.subr.bf16.mxu0 %v20984_v21  ;;  %15511 = vmatprep.subr.bf16.mxu1 %v20987_v3  ;;  %v21044_v21 = vld [vmem:[#allocation6 + $0xd34] ss:$48 sps:$4 sm:$0xff]   ;;  %v21047_v3 = vld [vmem:[#allocation6 + $0xd3c] ss:$48 sps:$4 sm:$0xff]  }
 0x39c   :  { %15020 = vmatpush1.bf16.msra.mxu0 %v20982_v32  ;;  %15512 = vmatpush1.bf16.msra.mxu1 %v20985_v6  ;;  %v21042_v32 = vld [vmem:[#allocation6 + $0xd30] ss:$48 sps:$4 sm:$0xff]   ;;  %v21045_v6 = vld [vmem:[#allocation6 + $0xd38] ss:$48 sps:$4 sm:$0xff]  }
 0x39d   :  { %15021 = vmatprep.subr.bf16.mxu0 %v20990_v7  ;;  %15513 = vmatprep.subr.bf16.mxu1 %v20993_v8  ;;  %v21050_v7 = vld [vmem:[#allocation6 + $0xd94] ss:$48 sps:$4 sm:$0xff]   ;;  %v21053_v8 = vld [vmem:[#allocation6 + $0xd9c] ss:$48 sps:$4 sm:$0xff]  }
 0x3a0   :  { %15022 = vmatpush1.bf16.msra.mxu0 %v20988_v12  ;;  %15514 = vmatpush1.bf16.msra.mxu1 %v20991_v14  ;;  %v21048_v12 = vld [vmem:[#allocation6 + $0xd90] ss:$48 sps:$4 sm:$0xff]   ;;  %v21051_v14 = vld [vmem:[#allocation6 + $0xd98] ss:$48 sps:$4 sm:$0xff]  }
 0x3a1   :  { %15023 = vmatprep.subr.bf16.mxu0 %v20996_v16  ;;  %15515 = vmatprep.subr.bf16.mxu1 %v20999_v17  ;;  %v21056_v16 = vld [vmem:[#allocation6 + $0xdf4] ss:$48 sps:$4 sm:$0xff]   ;;  %v21059_v17 = vld [vmem:[#allocation6 + $0xdfc] ss:$48 sps:$4 sm:$0xff]  }
 0x3a4   :  { %15024 = vmatpush1.bf16.msra.mxu0 %v20994_v56  ;;  %15516 = vmatpush1.bf16.msra.mxu1 %v20997_v19  ;;  %v21054_v56 = vld [vmem:[#allocation6 + $0xdf0] ss:$48 sps:$4 sm:$0xff]   ;;  %v21057_v19 = vld [vmem:[#allocation6 + $0xdf8] ss:$48 sps:$4 sm:$0xff]  }
 0x3a5   :  { %15025 = vmatprep.subr.bf16.mxu0 %v21002_v22  ;;  %15517 = vmatprep.subr.bf16.mxu1 %v21005_v23  ;;  %v21062_v22 = vld [vmem:[#allocation6 + $0xe54] ss:$48 sps:$4 sm:$0xff]   ;;  %v21065_v23 = vld [vmem:[#allocation6 + $0xe5c] ss:$48 sps:$4 sm:$0xff]  }
 0x3a8   :  { %15026 = vmatpush1.bf16.msra.mxu0 %v21000_v25  ;;  %15518 = vmatpush1.bf16.msra.mxu1 %v21003_v26  ;;  %v21060_v25 = vld [vmem:[#allocation6 + $0xe50] ss:$48 sps:$4 sm:$0xff]   ;;  %v21063_v26 = vld [vmem:[#allocation6 + $0xe58] ss:$48 sps:$4 sm:$0xff]  }
 0x3a9   :  { %15027 = vmatprep.subr.bf16.mxu0 %v21008_v13  ;;  %15519 = vmatprep.subr.bf16.mxu1 %v21011_v27  ;;  %v21068_v13 = vld [vmem:[#allocation6 + $0xeb4] ss:$48 sps:$4 sm:$0xff]   ;;  %v21071_v27 = vld [vmem:[#allocation6 + $0xebc] ss:$48 sps:$4 sm:$0xff]  }
 0x3ac   :  { %15028 = vmatpush1.bf16.msra.mxu0 %v21006_v33  ;;  %15520 = vmatpush1.bf16.msra.mxu1 %v21009_v34  ;;  %v21066_v33 = vld [vmem:[#allocation6 + $0xeb0] ss:$48 sps:$4 sm:$0xff]   ;;  %v21069_v34 = vld [vmem:[#allocation6 + $0xeb8] ss:$48 sps:$4 sm:$0xff]  }
 0x3ad   :  { %15029 = vmatprep.subr.bf16.mxu0 %v21014_v60  ;;  %15521 = vmatprep.subr.bf16.mxu1 %v21017_v38  ;;  %v21074_v60 = vld [vmem:[#allocation6 + $0xf14] ss:$48 sps:$4 sm:$0xff]   ;;  %v21077_v38 = vld [vmem:[#allocation6 + $0xf1c] ss:$48 sps:$4 sm:$0xff]  }
 0x3b0   :  { %15030 = vmatpush1.bf16.msra.mxu0 %v21012_v40  ;;  %15522 = vmatpush1.bf16.msra.mxu1 %v21015_v9  ;;  %v21072_v40 = vld [vmem:[#allocation6 + $0xf10] ss:$48 sps:$4 sm:$0xff]   ;;  %v21075_v9 = vld [vmem:[#allocation6 + $0xf18] ss:$48 sps:$4 sm:$0xff]  }
 0x3b1   :  { %15031 = vmatprep.subr.bf16.mxu0 %v21020_v44  ;;  %15523 = vmatprep.subr.bf16.mxu1 %v21023_v45  ;;  %v21080_v44 = vld [vmem:[#allocation6 + $0xf74] ss:$48 sps:$4 sm:$0xff]   ;;  %v21083_v45 = vld [vmem:[#allocation6 + $0xf7c] ss:$48 sps:$4 sm:$0xff]  }
 0x3b4   :  { %15032 = vmatpush1.bf16.msra.mxu0 %v21018_v46  ;;  %15524 = vmatpush1.bf16.msra.mxu1 %v21021_v31  ;;  %v21078_v46 = vld [vmem:[#allocation6 + $0xf70] ss:$48 sps:$4 sm:$0xff]   ;;  %v21081_v31 = vld [vmem:[#allocation6 + $0xf78] ss:$48 sps:$4 sm:$0xff]  }
 0x3b5   :  { %15042 = vmatprep.subr.bf16.mxu0 %v21026_v41  ;;  %15534 = vmatprep.subr.bf16.mxu1 %v21029_v49  ;;  %v21086_v41 = vld [vmem:[#allocation6 + $0xfd4] ss:$48 sps:$4 sm:$0xff]   ;;  %v21089_v49 = vld [vmem:[#allocation6 + $0xfdc] ss:$48 sps:$4 sm:$0xff]  }
 0x3b7   :  { %15034 = vmatmul.mubr.bf16.vlgmr.msra.gmra.mrb[4].mxu0 %v23316_v10  ;;  %15526 = vmatmul.mubr.bf16.vlgmr.msra.gmra.mrb[4].mxu1 %v23316_v10 }
 0x3b8   :  { %15043 = vmatpush1.bf16.msra.mxu0 %v21024_v50  ;;  %15535 = vmatpush1.bf16.msra.mxu1 %v21027_v51  ;;  %v21084_v50 = vld [vmem:[#allocation6 + $0xfd0] ss:$48 sps:$4 sm:$0xff]   ;;  %v21087_v51 = vld [vmem:[#allocation6 + $0xfd8] ss:$48 sps:$4 sm:$0xff]  }
 0x3b9   :  { %15044 = vmatprep.subr.bf16.mxu0 %v21032_v52  ;;  %15536 = vmatprep.subr.bf16.mxu1 %v21035_v53  ;;  %v21092_v52 = vld [vmem:[#allocation6 + $0x1034] ss:$48 sps:$4 sm:$0xff]   ;;  %v21095_v53 = vld [vmem:[#allocation6 + $0x103c] ss:$48 sps:$4 sm:$0xff]  }
 0x3ba   :  { %15074 = vmatprep.mubr.bf16.mxu0 %v23322_v15  ;;  %15566 = vmatprep.mubr.bf16.mxu1 %v23322_v15 }
 0x3bc   :  { %15045 = vmatpush1.bf16.msra.mxu0 %v21030_v54  ;;  %15537 = vmatpush1.bf16.msra.mxu1 %v21033_v55  ;;  %v21090_v54 = vld [vmem:[#allocation6 + $0x1030] ss:$48 sps:$4 sm:$0xff]   ;;  %v21093_v55 = vld [vmem:[#allocation6 + $0x1038] ss:$48 sps:$4 sm:$0xff]  }
 0x3bd   :  { %15046 = vmatprep.subr.bf16.mxu0 %v21038_v58  ;;  %15538 = vmatprep.subr.bf16.mxu1 %v21041_v59  ;;  %v21098_v58 = vld [vmem:[#allocation6 + $0x1094] ss:$48 sps:$4 sm:$0xff]   ;;  %v21101_v59 = vld [vmem:[#allocation6 + $0x109c] ss:$48 sps:$4 sm:$0xff]  }
 0x3c0   :  { %15047 = vmatpush1.bf16.msra.mxu0 %v21036_v0  ;;  %15539 = vmatpush1.bf16.msra.mxu1 %v21039_v1  ;;  %v21096_v0 = vld [vmem:[#allocation6 + $0x1090] ss:$48 sps:$4 sm:$0xff]   ;;  %v21099_v1 = vld [vmem:[#allocation6 + $0x1098] ss:$48 sps:$4 sm:$0xff]  }
 0x3c1   :  { %15048 = vmatprep.subr.bf16.mxu0 %v21044_v21  ;;  %15540 = vmatprep.subr.bf16.mxu1 %v21047_v3  ;;  %v21104_v21 = vld [vmem:[#allocation6 + $0x10f4] ss:$48 sps:$4 sm:$0xff]   ;;  %v21107_v3 = vld [vmem:[#allocation6 + $0x10fc] ss:$48 sps:$4 sm:$0xff]  }
 0x3c4   :  { %15049 = vmatpush1.bf16.msra.mxu0 %v21042_v32  ;;  %15541 = vmatpush1.bf16.msra.mxu1 %v21045_v6  ;;  %v21102_v32 = vld [vmem:[#allocation6 + $0x10f0] ss:$48 sps:$4 sm:$0xff]   ;;  %v21105_v6 = vld [vmem:[#allocation6 + $0x10f8] ss:$48 sps:$4 sm:$0xff]  }
 0x3c5   :  { %15050 = vmatprep.subr.bf16.mxu0 %v21050_v7  ;;  %15542 = vmatprep.subr.bf16.mxu1 %v21053_v8  ;;  %v21110_v7 = vld [vmem:[#allocation6 + $0x1154] ss:$48 sps:$4 sm:$0xff]   ;;  %v21113_v8 = vld [vmem:[#allocation6 + $0x115c] ss:$48 sps:$4 sm:$0xff]  }
 0x3c8   :  { %15051 = vmatpush1.bf16.msra.mxu0 %v21048_v12  ;;  %15543 = vmatpush1.bf16.msra.mxu1 %v21051_v14  ;;  %v21108_v12 = vld [vmem:[#allocation6 + $0x1150] ss:$48 sps:$4 sm:$0xff]   ;;  %v21111_v14 = vld [vmem:[#allocation6 + $0x1158] ss:$48 sps:$4 sm:$0xff]  }
 0x3c9   :  { %15052 = vmatprep.subr.bf16.mxu0 %v21056_v16  ;;  %15544 = vmatprep.subr.bf16.mxu1 %v21059_v17  ;;  %v21116_v16 = vld [vmem:[#allocation6 + $0x11b4] ss:$48 sps:$4 sm:$0xff]   ;;  %v21119_v17 = vld [vmem:[#allocation6 + $0x11bc] ss:$48 sps:$4 sm:$0xff]  }
 0x3cc   :  { %15053 = vmatpush1.bf16.msra.mxu0 %v21054_v56  ;;  %15545 = vmatpush1.bf16.msra.mxu1 %v21057_v19  ;;  %v21114_v56 = vld [vmem:[#allocation6 + $0x11b0] ss:$48 sps:$4 sm:$0xff]   ;;  %v21117_v19 = vld [vmem:[#allocation6 + $0x11b8] ss:$48 sps:$4 sm:$0xff]  }
 0x3cd   :  { %15054 = vmatprep.subr.bf16.mxu0 %v21062_v22  ;;  %15546 = vmatprep.subr.bf16.mxu1 %v21065_v23  ;;  %v21122_v22 = vld [vmem:[#allocation6 + $0x1214] ss:$48 sps:$4 sm:$0xff]   ;;  %v21125_v23 = vld [vmem:[#allocation6 + $0x121c] ss:$48 sps:$4 sm:$0xff]  }
 0x3d0   :  { %15055 = vmatpush1.bf16.msra.mxu0 %v21060_v25  ;;  %15547 = vmatpush1.bf16.msra.mxu1 %v21063_v26  ;;  %v21120_v25 = vld [vmem:[#allocation6 + $0x1210] ss:$48 sps:$4 sm:$0xff]   ;;  %v21123_v26 = vld [vmem:[#allocation6 + $0x1218] ss:$48 sps:$4 sm:$0xff]  }
 0x3d1   :  { %15056 = vmatprep.subr.bf16.mxu0 %v21068_v13  ;;  %15548 = vmatprep.subr.bf16.mxu1 %v21071_v27  ;;  %v21128_v13 = vld [vmem:[#allocation6 + $0x1274] ss:$48 sps:$4 sm:$0xff]   ;;  %v21131_v27 = vld [vmem:[#allocation6 + $0x127c] ss:$48 sps:$4 sm:$0xff]  }
 0x3d4   :  { %15057 = vmatpush1.bf16.msra.mxu0 %v21066_v33  ;;  %15549 = vmatpush1.bf16.msra.mxu1 %v21069_v34  ;;  %v21126_v33 = vld [vmem:[#allocation6 + $0x1270] ss:$48 sps:$4 sm:$0xff]   ;;  %v21129_v34 = vld [vmem:[#allocation6 + $0x1278] ss:$48 sps:$4 sm:$0xff]  }
 0x3d5   :  { %15058 = vmatprep.subr.bf16.mxu0 %v21074_v60  ;;  %15550 = vmatprep.subr.bf16.mxu1 %v21077_v38  ;;  %v21134_v60 = vld [vmem:[#allocation6 + $0x12d4] ss:$48 sps:$4 sm:$0xff]   ;;  %v21137_v38 = vld [vmem:[#allocation6 + $0x12dc] ss:$48 sps:$4 sm:$0xff]  }
 0x3d8   :  { %15059 = vmatpush1.bf16.msra.mxu0 %v21072_v40  ;;  %15551 = vmatpush1.bf16.msra.mxu1 %v21075_v9  ;;  %v21132_v40 = vld [vmem:[#allocation6 + $0x12d0] ss:$48 sps:$4 sm:$0xff]   ;;  %v21135_v9 = vld [vmem:[#allocation6 + $0x12d8] ss:$48 sps:$4 sm:$0xff]  }
 0x3d9   :  { %15060 = vmatprep.subr.bf16.mxu0 %v21080_v44  ;;  %15552 = vmatprep.subr.bf16.mxu1 %v21083_v45  ;;  %v21140_v44 = vld [vmem:[#allocation6 + $0x1334] ss:$48 sps:$4 sm:$0xff]   ;;  %v21143_v45 = vld [vmem:[#allocation6 + $0x133c] ss:$48 sps:$4 sm:$0xff]  }
 0x3dc   :  { %15061 = vmatpush1.bf16.msra.mxu0 %v21078_v46  ;;  %15553 = vmatpush1.bf16.msra.mxu1 %v21081_v31  ;;  %v16944_v46 = vlaneseq  ;;  %v21138_v31 = vld [vmem:[#allocation6 + $0x1330] ss:$48 sps:$4 sm:$0xff]  }
 0x3dd   :  { %15062 = vmatprep.subr.bf16.mxu0 %v21086_v41  ;;  %15554 = vmatprep.subr.bf16.mxu1 %v21089_v49  ;;  %v21141_v41 = vld [vmem:[#allocation6 + $0x1338] ss:$48 sps:$4 sm:$0xff]   ;;  %v21146_v49 = vld [vmem:[#allocation6 + $0x1394] ss:$48 sps:$4 sm:$0xff]  }
 0x3e0   :  { %15063 = vmatpush1.bf16.msra.mxu0 %v21084_v50  ;;  %15555 = vmatpush1.bf16.msra.mxu1 %v21087_v51  ;;  %v21149_v50 = vld [vmem:[#allocation6 + $0x139c] ss:$48 sps:$4 sm:$0xff]   ;;  %v23475_v51 = vshrl.u32 %v16944_v46, 7 }
 0x3e1   :  { %15064 = vmatprep.subr.bf16.mxu0 %v21092_v52  ;;  %15556 = vmatprep.subr.bf16.mxu1 %v21095_v53  ;;  %v21144_v52 = vld [vmem:[#allocation6 + $0x1390] ss:$48 sps:$4 sm:$0xff]   ;;  %v21147_v53 = vld [vmem:[#allocation6 + $0x1398] ss:$48 sps:$4 sm:$0xff]  }
 0x3e4   :  { %15065 = vmatpush1.bf16.msra.mxu0 %v21090_v54  ;;  %15557 = vmatpush1.bf16.msra.mxu1 %v21093_v55  ;;  %v21152_v54 = vld [vmem:[#allocation6 + $0x13f4] ss:$48 sps:$4 sm:$0xff]  }
 0x3e5   :  { %15066 = vmatprep.subr.bf16.mxu0 %v21098_v58  ;;  %15558 = vmatprep.subr.bf16.mxu1 %v21101_v59  ;;  %v16940_v55 = vld [vmem:[#allocation8] sm:$0xff]  ;;  %v16946_v58 = vsub.s32 0, %v23475_v51  ;;  %v21155_v59 = vld [vmem:[#allocation6 + $0x13fc] ss:$48 sps:$4 sm:$0xff]  }
 0x3e8   :  { %15067 = vmatpush1.bf16.msra.mxu0 %v21096_v0  ;;  %15559 = vmatpush1.bf16.msra.mxu1 %v21099_v1  ;;  %v16950_v0 = vsub.s32 1, %v23475_v51  ;;  %v16954_v1 = vsub.s32 2, %v23475_v51 }
 0x3e9   :  { %15068 = vmatprep.subr.bf16.mxu0 %v21104_v21  ;;  %15560 = vmatprep.subr.bf16.mxu1 %v21107_v3  ;;  %v21150_v21 = vld [vmem:[#allocation6 + $0x13f0] ss:$48 sps:$4 sm:$0xff]   ;;  %v21153_v3 = vld [vmem:[#allocation6 + $0x13f8] ss:$48 sps:$4 sm:$0xff]  }
 0x3ec   :  { %15069 = vmatpush1.bf16.msra.mxu0 %v21102_v32  ;;  %15561 = vmatpush1.bf16.msra.mxu1 %v21105_v6  ;;  %v16947_v32 = vrot.slane %v16940_v55, %v16946_v58  ;;  %v21158_v6 = vld [vmem:[#allocation6 + $0x1454] ss:$48 sps:$4 sm:$0xff]  }
 0x3ed   :  { %15070 = vmatprep.subr.bf16.mxu0 %v21110_v7  ;;  %15562 = vmatprep.subr.bf16.mxu1 %v21113_v8  ;;  %v21161_v7 = vld [vmem:[#allocation6 + $0x145c] ss:$48 sps:$4 sm:$0xff]  }
 0x3f0   :  { %15071 = vmatpush1.bf16.msra.mxu0 %v21108_v12  ;;  %15563 = vmatpush1.bf16.msra.mxu1 %v21111_v14  ;;  %v16951_v14 = vrot.slane %v16940_v55, %v16950_v0 }
 0x3f1   :  { %15072 = vmatprep.subr.bf16.mxu0 %v21116_v16  ;;  %15564 = vmatprep.subr.bf16.mxu1 %v21119_v17  ;;  %v16958_v16 = vsub.s32 3, %v23475_v51  ;;  %v21156_v17 = vld [vmem:[#allocation6 + $0x1450] ss:$48 sps:$4 sm:$0xff]  }
 0x3f4   :  { %15073 = vmatpush1.bf16.msra.mxu0 %v21114_v56  ;;  %15565 = vmatpush1.bf16.msra.mxu1 %v21117_v19 }
 0x3f5   :  { %15083 = vmatprep.subr.bf16.mxu0 %v21122_v22  ;;  %15575 = vmatprep.subr.bf16.mxu1 %v21125_v23 }
 0x3f7   :  { %15075 = vmatmul.mubr.bf16.vlgmr.msra.gmra.mrb[4].mxu0 %v23330_v20  ;;  %15567 = vmatmul.mubr.bf16.vlgmr.msra.gmra.mrb[4].mxu1 %v23330_v20 }
 0x3f8   :  { %15084 = vmatpush1.bf16.msra.mxu0 %v21120_v25  ;;  %15576 = vmatpush1.bf16.msra.mxu1 %v21123_v26  ;;  %v16955_v25 = vrot.slane %v16940_v55, %v16954_v1 }
 0x3f9   :  { %15085 = vmatprep.subr.bf16.mxu0 %v21128_v13  ;;  %15577 = vmatprep.subr.bf16.mxu1 %v21131_v27 }
 0x3fa   :  { %15115 = vmatprep.mubr.bf16.mxu0 %v23336_v24  ;;  %15607 = vmatprep.mubr.bf16.mxu1 %v23336_v24 }
 0x3fc   :  { %15086 = vmatpush1.bf16.msra.mxu0 %v21126_v33  ;;  %15578 = vmatpush1.bf16.msra.mxu1 %v21129_v34  ;;  %v21159_v33 = vld [vmem:[#allocation6 + $0x1458] ss:$48 sps:$4 sm:$0xff]  }
 0x3fd   :  { %15087 = vmatprep.subr.bf16.mxu0 %v21134_v60  ;;  %15579 = vmatprep.subr.bf16.mxu1 %v21137_v38 }
 0x400   :  { %15088 = vmatpush1.bf16.msra.mxu0 %v21132_v40  ;;  %15580 = vmatpush1.bf16.msra.mxu1 %v21135_v9  ;;  %v21164_v40 = vld [vmem:[#allocation6 + $0x14b4] ss:$48 sps:$4 sm:$0xff]   ;;  %v21167_v9 = vld [vmem:[#allocation6 + $0x14bc] ss:$48 sps:$4 sm:$0xff]  }
 0x401   :  { %15089 = vmatprep.subr.bf16.mxu0 %v21140_v44  ;;  %15581 = vmatprep.subr.bf16.mxu1 %v21143_v45 }
 0x404   :  { %15090 = vmatpush1.bf16.msra.mxu0 %v21138_v31  ;;  %15582 = vmatpush1.bf16.msra.mxu1 %v21141_v41  ;;  %v16959_v31 = vrot.slane %v16940_v55, %v16958_v16  ;;  %v21176_v55 = vld [vmem:[#allocation6 + $0x1574] ss:$48 sps:$4 sm:$0xff]  }
 0x405   :  { %15091 = vmatprep.subr.bf16.mxu0 %v21146_v49  ;;  %15583 = vmatprep.subr.bf16.mxu1 %v21149_v50  ;;  %v21162_v50 = vld [vmem:[#allocation6 + $0x14b0] ss:$48 sps:$4 sm:$0xff]  }
 0x408   :  { %15092 = vmatpush1.bf16.msra.mxu0 %v21144_v52  ;;  %15584 = vmatpush1.bf16.msra.mxu1 %v21147_v53  ;;  %v21165_v52 = vld [vmem:[#allocation6 + $0x14b8] ss:$48 sps:$4 sm:$0xff]   ;;  %v21170_v53 = vld [vmem:[#allocation6 + $0x1514] ss:$48 sps:$4 sm:$0xff]  }
 0x409   :  { %15093 = vmatprep.subr.bf16.mxu0 %v21152_v54  ;;  %15585 = vmatprep.subr.bf16.mxu1 %v21155_v59  ;;  %v21173_v54 = vld [vmem:[#allocation6 + $0x151c] ss:$48 sps:$4 sm:$0xff]  }
 0x40a   :  { %v14461_v8 = vpop.f32.mrb[0].mxu0  ;;  %v14953_v12 = vpop.f32.mrb[0].mxu1 }
 0x40b   :  { %v16928_v56 = vmax.f32 %v14461_v8, 0.0  ;;  %v14463_v19 = vpop.f32.mrb[1].mxu0  ;;  %v14955_v22 = vpop.f32.mrb[1].mxu1  ;;  %v16930_v23 = vmax.f32 %v14953_v12, 0.0  ;;  %v21174_v8 = vld [vmem:[#allocation6 + $0x1570] ss:$48 sps:$4 sm:$0xff]  }
 0x40c   :  { %v16929_v26 = vmax.f32 %v14463_v19, 0.0  ;;  %v14465_v13 = vpop.f32.mrb[2].mxu0  ;;  %v14957_v27 = vpop.f32.mrb[2].mxu1  ;;  %15094 = vmatpush1.bf16.msra.mxu0 %v21150_v21  ;;  %15586 = vmatpush1.bf16.msra.mxu1 %v21153_v3  ;;  %v16931_v45 = vmax.f32 %v14955_v22, 0.0  ;;  %v21177_v12 = vld [vmem:[#allocation6 + $0x1578] ss:$48 sps:$4 sm:$0xff]  }
 0x40d   :  { %v17004_v34 = vmul.f32 %v16947_v32, %v16928_v56  ;;  %v14466_v60 = vpop.f32.mrb[3].mxu0  ;;  %v14958_v38 = vpop.f32.mrb[3].mxu1  ;;  %15095 = vmatprep.subr.bf16.mxu0 %v21158_v6  ;;  %15587 = vmatprep.subr.bf16.mxu1 %v21161_v7  ;;  %v17006_v41 = vmul.f32 %v16955_v25, %v16930_v23  ;;  %v21168_v32 = vld [vmem:[#allocation6 + $0x1510] ss:$48 sps:$4 sm:$0xff]   ;;  %v21171_v6 = vld [vmem:[#allocation6 + $0x1518] ss:$48 sps:$4 sm:$0xff]  }
 0x40e   :  { %v17005_v44 = vmul.f32 %v16951_v14, %v16929_v26  ;;  %v17007_v59 = vmul.f32 %v16959_v31, %v16931_v45  ;;  %v21179_v7 = vld [vmem:[#allocation6 + $0x157c] ss:$48 sps:$4 sm:$0xff]   ;;  %v21182_v14 = vld [vmem:[#allocation6 + $0x15d4] ss:$48 sps:$4 sm:$0xff]   ;;  %v21180_v56 = vld [vmem:[#allocation6 + $0x15d0] ss:$48 sps:$4 sm:$0xff]  }
 0x40f   :  { %v21183_v19 = vld [vmem:[#allocation6 + $0x15d8] ss:$48 sps:$4 sm:$0xff]   ;;  %v21188_v22 = vld [vmem:[#allocation6 + $0x1634] ss:$48 sps:$4 sm:$0xff]   ;;  %v21191_v23 = vld [vmem:[#allocation6 + $0x163c] ss:$48 sps:$4 sm:$0xff]  }
 0x410   :  { %v17016_v49 = vadd.f32 %v17005_v44, %v17004_v34  ;;  %15096 = vmatpush1.bf16.msra.mxu0 %v21156_v17  ;;  %15588 = vmatpush1.bf16.msra.mxu1 %v21159_v33  ;;  %v21185_v17 = vld [vmem:[#allocation6 + $0x15dc] ss:$48 sps:$4 sm:$0xff]   ;;  %v21186_v25 = vld [vmem:[#allocation6 + $0x1630] ss:$48 sps:$4 sm:$0xff]   ;;  %v21189_v26 = vld [vmem:[#allocation6 + $0x1638] ss:$48 sps:$4 sm:$0xff]  }
 0x411   :  { %15097 = vmatprep.subr.bf16.mxu0 %v21164_v40  ;;  %15589 = vmatprep.subr.bf16.mxu1 %v21167_v9  ;;  %v21194_v13 = vld [vmem:[#allocation6 + $0x1694] ss:$48 sps:$4 sm:$0xff]   ;;  %v21197_v27 = vld [vmem:[#allocation6 + $0x169c] ss:$48 sps:$4 sm:$0xff]   ;;  %v21192_v33 = vld [vmem:[#allocation6 + $0x1690] ss:$48 sps:$4 sm:$0xff]  }
 0x412   :  { %v17017_v21 = vadd.f32 %v17016_v49, %v17006_v41  ;;  %v21195_v34 = vld [vmem:[#allocation6 + $0x1698] ss:$48 sps:$4 sm:$0xff]   ;;  %v21200_v60 = vld [vmem:[#allocation6 + $0x16f4] ss:$48 sps:$4 sm:$0xff]   ;;  %v21203_v38 = vld [vmem:[#allocation6 + $0x16fc] ss:$48 sps:$4 sm:$0xff]  }
 0x413   :  { %v21198_v40 = vld [vmem:[#allocation6 + $0x16f0] ss:$48 sps:$4 sm:$0xff]   ;;  %v21201_v9 = vld [vmem:[#allocation6 + $0x16f8] ss:$48 sps:$4 sm:$0xff]   ;;  %v21206_v44 = vld [vmem:[#allocation6 + $0x1754] ss:$48 sps:$4 sm:$0xff]  }
 0x414   :  { %v23489_v3 = vadd.f32 %v17017_v21, %v17007_v59  ;;  %15098 = vmatpush1.bf16.msra.mxu0 %v21162_v50  ;;  %15590 = vmatpush1.bf16.msra.mxu1 %v21165_v52  ;;  %v21209_v45 = vld [vmem:[#allocation6 + $0x175c] ss:$48 sps:$4 sm:$0xff]   ;;  %v21204_v31 = vld [vmem:[#allocation6 + $0x1750] ss:$48 sps:$4 sm:$0xff]   ;;  %v21207_v41 = vld [vmem:[#allocation6 + $0x1758] ss:$48 sps:$4 sm:$0xff]  }
 0x415   :  { %15099 = vmatprep.subr.bf16.mxu0 %v21170_v53  ;;  %15591 = vmatprep.subr.bf16.mxu1 %v21173_v54  ;;  %v21212_v49 = vld [vmem:[#allocation6 + $0x17b4] ss:$48 sps:$4 sm:$0xff]   ;;  %v21215_v50 = vld [vmem:[#allocation6 + $0x17bc] ss:$48 sps:$4 sm:$0xff]   ;;  %v21210_v52 = vld [vmem:[#allocation6 + $0x17b0] ss:$48 sps:$4 sm:$0xff]  }
 0x416   :  { %v21213_v53 = vld [vmem:[#allocation6 + $0x17b8] ss:$48 sps:$4 sm:$0xff]   ;;  %v21218_v54 = vld [vmem:[#allocation6 + $0x1814] ss:$48 sps:$4 sm:$0xff]   ;;  %v21221_v59 = vld [vmem:[#allocation6 + $0x181c] ss:$48 sps:$4 sm:$0xff]  }
 0x417   :  { %v21216_v21 = vld [vmem:[#allocation6 + $0x1810] ss:$48 sps:$4 sm:$0xff]  }
 0x418   :  { %15100 = vmatpush1.bf16.msra.mxu0 %v21168_v32  ;;  %15592 = vmatpush1.bf16.msra.mxu1 %v21171_v6  ;;  %v21219_v32 = vld [vmem:[#allocation6 + $0x1818] ss:$48 sps:$4 sm:$0xff]   ;;  %v21224_v6 = vld [vmem:[#allocation6 + $0x1874] ss:$48 sps:$4 sm:$0xff]  }
 0x419   :  { %15101 = vmatprep.subr.bf16.mxu0 %v21176_v55  ;;  %15593 = vmatprep.subr.bf16.mxu1 %v21179_v7  ;;  %v21227_v55 = vld [vmem:[#allocation6 + $0x187c] ss:$48 sps:$4 sm:$0xff]   ;;  %v21222_v7 = vld [vmem:[#allocation6 + $0x1870] ss:$48 sps:$4 sm:$0xff]  }
 0x41c   :  { %15102 = vmatpush1.bf16.msra.mxu0 %v21174_v8  ;;  %15594 = vmatpush1.bf16.msra.mxu1 %v21177_v12  ;;  %v21225_v8 = vld [vmem:[#allocation6 + $0x1878] ss:$48 sps:$4 sm:$0xff]   ;;  %v21230_v12 = vld [vmem:[#allocation6 + $0x18d4] ss:$48 sps:$4 sm:$0xff]  }
 0x41d   :  { %15103 = vmatprep.subr.bf16.mxu0 %v21182_v14  ;;  %15595 = vmatprep.subr.bf16.mxu1 %v21185_v17  ;;  %v21233_v14 = vld [vmem:[#allocation6 + $0x18dc] ss:$48 sps:$4 sm:$0xff]   ;;  %v21228_v17 = vld [vmem:[#allocation6 + $0x18d0] ss:$48 sps:$4 sm:$0xff]  }
 0x420   :  { %15104 = vmatpush1.bf16.msra.mxu0 %v21180_v56  ;;  %15596 = vmatpush1.bf16.msra.mxu1 %v21183_v19  ;;  %v21231_v56 = vld [vmem:[#allocation6 + $0x18d8] ss:$48 sps:$4 sm:$0xff]   ;;  %v21236_v19 = vld [vmem:[#allocation6 + $0x1934] ss:$48 sps:$4 sm:$0xff]  }
 0x421   :  { %15105 = vmatprep.subr.bf16.mxu0 %v21188_v22  ;;  %15597 = vmatprep.subr.bf16.mxu1 %v21191_v23  ;;  %v21239_v22 = vld [vmem:[#allocation6 + $0x193c] ss:$48 sps:$4 sm:$0xff]   ;;  %v21234_v23 = vld [vmem:[#allocation6 + $0x1930] ss:$48 sps:$4 sm:$0xff]  }
 0x424   :  { %15106 = vmatpush1.bf16.msra.mxu0 %v21186_v25  ;;  %15598 = vmatpush1.bf16.msra.mxu1 %v21189_v26  ;;  %v21237_v25 = vld [vmem:[#allocation6 + $0x1938] ss:$48 sps:$4 sm:$0xff]   ;;  %v21242_v26 = vld [vmem:[#allocation6 + $0x1994] ss:$48 sps:$4 sm:$0xff]  }
 0x425   :  { %15107 = vmatprep.subr.bf16.mxu0 %v21194_v13  ;;  %15599 = vmatprep.subr.bf16.mxu1 %v21197_v27  ;;  %v21245_v13 = vld [vmem:[#allocation6 + $0x199c] ss:$48 sps:$4 sm:$0xff]   ;;  %v21240_v27 = vld [vmem:[#allocation6 + $0x1990] ss:$48 sps:$4 sm:$0xff]  }
 0x428   :  { %15108 = vmatpush1.bf16.msra.mxu0 %v21192_v33  ;;  %15600 = vmatpush1.bf16.msra.mxu1 %v21195_v34  ;;  %v21243_v33 = vld [vmem:[#allocation6 + $0x1998] ss:$48 sps:$4 sm:$0xff]   ;;  %v21248_v34 = vld [vmem:[#allocation6 + $0x19f4] ss:$48 sps:$4 sm:$0xff]  }
 0x429   :  { %15109 = vmatprep.subr.bf16.mxu0 %v21200_v60  ;;  %15601 = vmatprep.subr.bf16.mxu1 %v21203_v38  ;;  %v21251_v60 = vld [vmem:[#allocation6 + $0x19fc] ss:$48 sps:$4 sm:$0xff]   ;;  %v21246_v38 = vld [vmem:[#allocation6 + $0x19f0] ss:$48 sps:$4 sm:$0xff]  }
 0x42c   :  { %15110 = vmatpush1.bf16.msra.mxu0 %v21198_v40  ;;  %15602 = vmatpush1.bf16.msra.mxu1 %v21201_v9  ;;  %v21249_v40 = vld [vmem:[#allocation6 + $0x19f8] ss:$48 sps:$4 sm:$0xff]   ;;  %v21254_v9 = vld [vmem:[#allocation6 + $0x1a54] ss:$48 sps:$4 sm:$0xff]  }
 0x42d   :  { %15111 = vmatprep.subr.bf16.mxu0 %v21206_v44  ;;  %15603 = vmatprep.subr.bf16.mxu1 %v21209_v45  ;;  %v21257_v44 = vld [vmem:[#allocation6 + $0x1a5c] ss:$48 sps:$4 sm:$0xff]   ;;  %v21252_v45 = vld [vmem:[#allocation6 + $0x1a50] ss:$48 sps:$4 sm:$0xff]  }
 0x430   :  { %15112 = vmatpush1.bf16.msra.mxu0 %v21204_v31  ;;  %15604 = vmatpush1.bf16.msra.mxu1 %v21207_v41  ;;  %v21255_v31 = vld [vmem:[#allocation6 + $0x1a58] ss:$48 sps:$4 sm:$0xff]   ;;  %v21260_v41 = vld [vmem:[#allocation6 + $0x1ab4] ss:$48 sps:$4 sm:$0xff]  }
 0x431   :  { %15113 = vmatprep.subr.bf16.mxu0 %v21212_v49  ;;  %15605 = vmatprep.subr.bf16.mxu1 %v21215_v50  ;;  %v21263_v49 = vld [vmem:[#allocation6 + $0x1abc] ss:$48 sps:$4 sm:$0xff]   ;;  %v21258_v50 = vld [vmem:[#allocation6 + $0x1ab0] ss:$48 sps:$4 sm:$0xff]  }
 0x434   :  { %15114 = vmatpush1.bf16.msra.mxu0 %v21210_v52  ;;  %15606 = vmatpush1.bf16.msra.mxu1 %v21213_v53  ;;  %v21261_v52 = vld [vmem:[#allocation6 + $0x1ab8] ss:$48 sps:$4 sm:$0xff]   ;;  %v21266_v53 = vld [vmem:[#allocation6 + $0x1b14] ss:$48 sps:$4 sm:$0xff]  }
 0x435   :  { %15124 = vmatprep.subr.bf16.mxu0 %v21218_v54  ;;  %15616 = vmatprep.subr.bf16.mxu1 %v21221_v59  ;;  %v21269_v54 = vld [vmem:[#allocation6 + $0x1b1c] ss:$48 sps:$4 sm:$0xff]   ;;  %v21264_v59 = vld [vmem:[#allocation6 + $0x1b10] ss:$48 sps:$4 sm:$0xff]  }
 0x437   :  { %15116 = vmatmul.mubr.bf16.vlgmr.msra.gmra.mrb[4].mxu0 %v23344_v29  ;;  %15608 = vmatmul.mubr.bf16.vlgmr.msra.gmra.mrb[4].mxu1 %v23344_v29 }
 0x438   :  { %15125 = vmatpush1.bf16.msra.mxu0 %v21216_v21  ;;  %15617 = vmatpush1.bf16.msra.mxu1 %v21219_v32  ;;  %v21267_v21 = vld [vmem:[#allocation6 + $0x1b18] ss:$48 sps:$4 sm:$0xff]   ;;  %v21272_v32 = vld [vmem:[#allocation6 + $0x1b74] ss:$48 sps:$4 sm:$0xff]  }
 0x439   :  { %15126 = vmatprep.subr.bf16.mxu0 %v21224_v6  ;;  %15618 = vmatprep.subr.bf16.mxu1 %v21227_v55  ;;  %v21275_v6 = vld [vmem:[#allocation6 + $0x1b7c] ss:$48 sps:$4 sm:$0xff]   ;;  %v21270_v55 = vld [vmem:[#allocation6 + $0x1b70] ss:$48 sps:$4 sm:$0xff]  }
 0x43a   :  { %15156 = vmatprep.mubr.bf16.mxu0 %v23350_v35  ;;  %15648 = vmatprep.mubr.bf16.mxu1 %v23350_v35 }
 0x43c   :  { %15127 = vmatpush1.bf16.msra.mxu0 %v21222_v7  ;;  %15619 = vmatpush1.bf16.msra.mxu1 %v21225_v8  ;;  %v21273_v7 = vld [vmem:[#allocation6 + $0x1b78] ss:$48 sps:$4 sm:$0xff]   ;;  %v21278_v8 = vld [vmem:[#allocation6 + $0x1bd4] ss:$48 sps:$4 sm:$0xff]  }
 0x43d   :  { %15128 = vmatprep.subr.bf16.mxu0 %v21230_v12  ;;  %15620 = vmatprep.subr.bf16.mxu1 %v21233_v14  ;;  %v21281_v12 = vld [vmem:[#allocation6 + $0x1bdc] ss:$48 sps:$4 sm:$0xff]   ;;  %v21276_v14 = vld [vmem:[#allocation6 + $0x1bd0] ss:$48 sps:$4 sm:$0xff]  }
 0x440   :  { %15129 = vmatpush1.bf16.msra.mxu0 %v21228_v17  ;;  %15621 = vmatpush1.bf16.msra.mxu1 %v21231_v56  ;;  %v21279_v17 = vld [vmem:[#allocation6 + $0x1bd8] ss:$48 sps:$4 sm:$0xff]   ;;  %v21284_v56 = vld [vmem:[#allocation6 + $0x1c34] ss:$48 sps:$4 sm:$0xff]  }
 0x441   :  { %15130 = vmatprep.subr.bf16.mxu0 %v21236_v19  ;;  %15622 = vmatprep.subr.bf16.mxu1 %v21239_v22  ;;  %v21287_v19 = vld [vmem:[#allocation6 + $0x1c3c] ss:$48 sps:$4 sm:$0xff]   ;;  %v21282_v22 = vld [vmem:[#allocation6 + $0x1c30] ss:$48 sps:$4 sm:$0xff]  }
 0x444   :  { %15131 = vmatpush1.bf16.msra.mxu0 %v21234_v23  ;;  %15623 = vmatpush1.bf16.msra.mxu1 %v21237_v25  ;;  %v21285_v23 = vld [vmem:[#allocation6 + $0x1c38] ss:$48 sps:$4 sm:$0xff]   ;;  %v21290_v25 = vld [vmem:[#allocation6 + $0x1c94] ss:$48 sps:$4 sm:$0xff]  }
 0x445   :  { %15132 = vmatprep.subr.bf16.mxu0 %v21242_v26  ;;  %15624 = vmatprep.subr.bf16.mxu1 %v21245_v13  ;;  %v21293_v26 = vld [vmem:[#allocation6 + $0x1c9c] ss:$48 sps:$4 sm:$0xff]   ;;  %v21288_v13 = vld [vmem:[#allocation6 + $0x1c90] ss:$48 sps:$4 sm:$0xff]  }
 0x448   :  { %15133 = vmatpush1.bf16.msra.mxu0 %v21240_v27  ;;  %15625 = vmatpush1.bf16.msra.mxu1 %v21243_v33  ;;  %v21291_v27 = vld [vmem:[#allocation6 + $0x1c98] ss:$48 sps:$4 sm:$0xff]   ;;  %v21296_v33 = vld [vmem:[#allocation6 + $0x1cf4] ss:$48 sps:$4 sm:$0xff]  }
 0x449   :  { %15134 = vmatprep.subr.bf16.mxu0 %v21248_v34  ;;  %15626 = vmatprep.subr.bf16.mxu1 %v21251_v60  ;;  %v21299_v34 = vld [vmem:[#allocation6 + $0x1cfc] ss:$48 sps:$4 sm:$0xff]   ;;  %v21294_v60 = vld [vmem:[#allocation6 + $0x1cf0] ss:$48 sps:$4 sm:$0xff]  }
 0x44c   :  { %15135 = vmatpush1.bf16.msra.mxu0 %v21246_v38  ;;  %15627 = vmatpush1.bf16.msra.mxu1 %v21249_v40  ;;  %v21297_v38 = vld [vmem:[#allocation6 + $0x1cf8] ss:$48 sps:$4 sm:$0xff]   ;;  %v21302_v40 = vld [vmem:[#allocation6 + $0x1d54] ss:$48 sps:$4 sm:$0xff]  }
 0x44d   :  { %15136 = vmatprep.subr.bf16.mxu0 %v21254_v9  ;;  %15628 = vmatprep.subr.bf16.mxu1 %v21257_v44  ;;  %v21305_v9 = vld [vmem:[#allocation6 + $0x1d5c] ss:$48 sps:$4 sm:$0xff]   ;;  %v21300_v44 = vld [vmem:[#allocation6 + $0x1d50] ss:$48 sps:$4 sm:$0xff]  }
 0x450   :  { %15137 = vmatpush1.bf16.msra.mxu0 %v21252_v45  ;;  %15629 = vmatpush1.bf16.msra.mxu1 %v21255_v31  ;;  %v21303_v45 = vld [vmem:[#allocation6 + $0x1d58] ss:$48 sps:$4 sm:$0xff]   ;;  %v21308_v31 = vld [vmem:[#allocation6 + $0x1db4] ss:$48 sps:$4 sm:$0xff]  }
 0x451   :  { %15138 = vmatprep.subr.bf16.mxu0 %v21260_v41  ;;  %15630 = vmatprep.subr.bf16.mxu1 %v21263_v49  ;;  %v21311_v41 = vld [vmem:[#allocation6 + $0x1dbc] ss:$48 sps:$4 sm:$0xff]   ;;  %v21306_v49 = vld [vmem:[#allocation6 + $0x1db0] ss:$48 sps:$4 sm:$0xff]  }
 0x454   :  { %15139 = vmatpush1.bf16.msra.mxu0 %v21258_v50  ;;  %15631 = vmatpush1.bf16.msra.mxu1 %v21261_v52  ;;  %v21309_v50 = vld [vmem:[#allocation6 + $0x1db8] ss:$48 sps:$4 sm:$0xff]   ;;  %v21314_v52 = vld [vmem:[#allocation6 + $0x1e14] ss:$48 sps:$4 sm:$0xff]  }
 0x455   :  { %15140 = vmatprep.subr.bf16.mxu0 %v21266_v53  ;;  %15632 = vmatprep.subr.bf16.mxu1 %v21269_v54  ;;  %v21317_v53 = vld [vmem:[#allocation6 + $0x1e1c] ss:$48 sps:$4 sm:$0xff]   ;;  %v21312_v54 = vld [vmem:[#allocation6 + $0x1e10] ss:$48 sps:$4 sm:$0xff]  }
 0x458   :  { %15141 = vmatpush1.bf16.msra.mxu0 %v21264_v59  ;;  %15633 = vmatpush1.bf16.msra.mxu1 %v21267_v21  ;;  %v21315_v59 = vld [vmem:[#allocation6 + $0x1e18] ss:$48 sps:$4 sm:$0xff]   ;;  %v21320_v21 = vld [vmem:[#allocation6 + $0x1e74] ss:$48 sps:$4 sm:$0xff]  }
 0x459   :  { %15142 = vmatprep.subr.bf16.mxu0 %v21272_v32  ;;  %15634 = vmatprep.subr.bf16.mxu1 %v21275_v6  ;;  %v21323_v32 = vld [vmem:[#allocation6 + $0x1e7c] ss:$48 sps:$4 sm:$0xff]   ;;  %v21318_v6 = vld [vmem:[#allocation6 + $0x1e70] ss:$48 sps:$4 sm:$0xff]  }
 0x45c   :  { %15143 = vmatpush1.bf16.msra.mxu0 %v21270_v55  ;;  %15635 = vmatpush1.bf16.msra.mxu1 %v21273_v7  ;;  %v21321_v55 = vld [vmem:[#allocation6 + $0x1e78] ss:$48 sps:$4 sm:$0xff]   ;;  %v21326_v7 = vld [vmem:[#allocation6 + $0x1ed4] ss:$48 sps:$4 sm:$0xff]  }
 0x45d   :  { %15144 = vmatprep.subr.bf16.mxu0 %v21278_v8  ;;  %15636 = vmatprep.subr.bf16.mxu1 %v21281_v12  ;;  %v21329_v8 = vld [vmem:[#allocation6 + $0x1edc] ss:$48 sps:$4 sm:$0xff]   ;;  %v21324_v12 = vld [vmem:[#allocation6 + $0x1ed0] ss:$48 sps:$4 sm:$0xff]  }
 0x460   :  { %15145 = vmatpush1.bf16.msra.mxu0 %v21276_v14  ;;  %15637 = vmatpush1.bf16.msra.mxu1 %v21279_v17  ;;  %v21327_v14 = vld [vmem:[#allocation6 + $0x1ed8] ss:$48 sps:$4 sm:$0xff]   ;;  %v21332_v17 = vld [vmem:[#allocation6 + $0x1f34] ss:$48 sps:$4 sm:$0xff]  }
 0x461   :  { %15146 = vmatprep.subr.bf16.mxu0 %v21284_v56  ;;  %15638 = vmatprep.subr.bf16.mxu1 %v21287_v19  ;;  %v21335_v56 = vld [vmem:[#allocation6 + $0x1f3c] ss:$48 sps:$4 sm:$0xff]   ;;  %v21330_v19 = vld [vmem:[#allocation6 + $0x1f30] ss:$48 sps:$4 sm:$0xff]  }
 0x464   :  { %15147 = vmatpush1.bf16.msra.mxu0 %v21282_v22  ;;  %15639 = vmatpush1.bf16.msra.mxu1 %v21285_v23  ;;  %v21333_v22 = vld [vmem:[#allocation6 + $0x1f38] ss:$48 sps:$4 sm:$0xff]   ;;  %v21338_v23 = vld [vmem:[#allocation6 + $0x1f94] ss:$48 sps:$4 sm:$0xff]  }
 0x465   :  { %15148 = vmatprep.subr.bf16.mxu0 %v21290_v25  ;;  %15640 = vmatprep.subr.bf16.mxu1 %v21293_v26  ;;  %v21341_v25 = vld [vmem:[#allocation6 + $0x1f9c] ss:$48 sps:$4 sm:$0xff]   ;;  %v21336_v26 = vld [vmem:[#allocation6 + $0x1f90] ss:$48 sps:$4 sm:$0xff]  }
 0x468   :  { %15149 = vmatpush1.bf16.msra.mxu0 %v21288_v13  ;;  %15641 = vmatpush1.bf16.msra.mxu1 %v21291_v27  ;;  %v21339_v13 = vld [vmem:[#allocation6 + $0x1f98] ss:$48 sps:$4 sm:$0xff]   ;;  %v21344_v27 = vld [vmem:[#allocation6 + $0x1ff4] ss:$48 sps:$4 sm:$0xff]  }
 0x469   :  { %15150 = vmatprep.subr.bf16.mxu0 %v21296_v33  ;;  %15642 = vmatprep.subr.bf16.mxu1 %v21299_v34  ;;  %v21347_v33 = vld [vmem:[#allocation6 + $0x1ffc] ss:$48 sps:$4 sm:$0xff]   ;;  %v21342_v34 = vld [vmem:[#allocation6 + $0x1ff0] ss:$48 sps:$4 sm:$0xff]  }
 0x46c   :  { %15151 = vmatpush1.bf16.msra.mxu0 %v21294_v60  ;;  %15643 = vmatpush1.bf16.msra.mxu1 %v21297_v38  ;;  %v21345_v60 = vld [vmem:[#allocation6 + $0x1ff8] ss:$48 sps:$4 sm:$0xff]   ;;  %v21350_v38 = vld [vmem:[#allocation6 + $0x2054] ss:$48 sps:$4 sm:$0xff]  }
 0x46d   :  { %15152 = vmatprep.subr.bf16.mxu0 %v21302_v40  ;;  %15644 = vmatprep.subr.bf16.mxu1 %v21305_v9  ;;  %v21353_v40 = vld [vmem:[#allocation6 + $0x205c] ss:$48 sps:$4 sm:$0xff]   ;;  %v21348_v9 = vld [vmem:[#allocation6 + $0x2050] ss:$48 sps:$4 sm:$0xff]  }
 0x470   :  { %15153 = vmatpush1.bf16.msra.mxu0 %v21300_v44  ;;  %15645 = vmatpush1.bf16.msra.mxu1 %v21303_v45  ;;  %v21351_v44 = vld [vmem:[#allocation6 + $0x2058] ss:$48 sps:$4 sm:$0xff]   ;;  %v21356_v45 = vld [vmem:[#allocation6 + $0x20b4] ss:$48 sps:$4 sm:$0xff]  }
 0x471   :  { %15154 = vmatprep.subr.bf16.mxu0 %v21308_v31  ;;  %15646 = vmatprep.subr.bf16.mxu1 %v21311_v41  ;;  %v21359_v31 = vld [vmem:[#allocation6 + $0x20bc] ss:$48 sps:$4 sm:$0xff]   ;;  %v21354_v41 = vld [vmem:[#allocation6 + $0x20b0] ss:$48 sps:$4 sm:$0xff]  }
 0x474   :  { %15155 = vmatpush1.bf16.msra.mxu0 %v21306_v49  ;;  %15647 = vmatpush1.bf16.msra.mxu1 %v21309_v50  ;;  %v21357_v49 = vld [vmem:[#allocation6 + $0x20b8] ss:$48 sps:$4 sm:$0xff]   ;;  %v21362_v50 = vld [vmem:[#allocation6 + $0x2114] ss:$48 sps:$4 sm:$0xff]  }
 0x475   :  { %15165 = vmatprep.subr.bf16.mxu0 %v21314_v52  ;;  %15657 = vmatprep.subr.bf16.mxu1 %v21317_v53  ;;  %v21365_v52 = vld [vmem:[#allocation6 + $0x211c] ss:$48 sps:$4 sm:$0xff]   ;;  %v21360_v53 = vld [vmem:[#allocation6 + $0x2110] ss:$48 sps:$4 sm:$0xff]  }
 0x477   :  { %15157 = vmatmul.mubr.bf16.vlgmr.msra.gmra.mrb[4].mxu0 %v23360_v42  ;;  %15649 = vmatmul.mubr.bf16.vlgmr.msra.gmra.mrb[4].mxu1 %v23360_v42 }
 0x478   :  { %15166 = vmatpush1.bf16.msra.mxu0 %v21312_v54  ;;  %15658 = vmatpush1.bf16.msra.mxu1 %v21315_v59  ;;  %v21363_v54 = vld [vmem:[#allocation6 + $0x2118] ss:$48 sps:$4 sm:$0xff]   ;;  %v21368_v59 = vld [vmem:[#allocation6 + $0x2174] ss:$48 sps:$4 sm:$0xff]  }
 0x479   :  { %15167 = vmatprep.subr.bf16.mxu0 %v21320_v21  ;;  %15659 = vmatprep.subr.bf16.mxu1 %v21323_v32  ;;  %v21371_v21 = vld [vmem:[#allocation6 + $0x217c] ss:$48 sps:$4 sm:$0xff]   ;;  %v21366_v32 = vld [vmem:[#allocation6 + $0x2170] ss:$48 sps:$4 sm:$0xff]  }
 0x47a   :  { %15197 = vmatprep.mubr.bf16.mxu0 %v23364_v47  ;;  %15689 = vmatprep.mubr.bf16.mxu1 %v23364_v47 }
 0x47c   :  { %15168 = vmatpush1.bf16.msra.mxu0 %v21318_v6  ;;  %15660 = vmatpush1.bf16.msra.mxu1 %v21321_v55  ;;  %v21369_v6 = vld [vmem:[#allocation6 + $0x2178] ss:$48 sps:$4 sm:$0xff]   ;;  %v21374_v55 = vld [vmem:[#allocation6 + $0x21d4] ss:$48 sps:$4 sm:$0xff]  }
 0x47d   :  { %15169 = vmatprep.subr.bf16.mxu0 %v21326_v7  ;;  %15661 = vmatprep.subr.bf16.mxu1 %v21329_v8  ;;  %v21377_v7 = vld [vmem:[#allocation6 + $0x21dc] ss:$48 sps:$4 sm:$0xff]   ;;  %v21372_v8 = vld [vmem:[#allocation6 + $0x21d0] ss:$48 sps:$4 sm:$0xff]  }
 0x480   :  { %15170 = vmatpush1.bf16.msra.mxu0 %v21324_v12  ;;  %15662 = vmatpush1.bf16.msra.mxu1 %v21327_v14  ;;  %v21375_v12 = vld [vmem:[#allocation6 + $0x21d8] ss:$48 sps:$4 sm:$0xff]   ;;  %v21380_v14 = vld [vmem:[#allocation6 + $0x2234] ss:$48 sps:$4 sm:$0xff]  }
 0x481   :  { %15171 = vmatprep.subr.bf16.mxu0 %v21332_v17  ;;  %15663 = vmatprep.subr.bf16.mxu1 %v21335_v56  ;;  %v21383_v17 = vld [vmem:[#allocation6 + $0x223c] ss:$48 sps:$4 sm:$0xff]   ;;  %v21378_v56 = vld [vmem:[#allocation6 + $0x2230] ss:$48 sps:$4 sm:$0xff]  }
 0x484   :  { %15172 = vmatpush1.bf16.msra.mxu0 %v21330_v19  ;;  %15664 = vmatpush1.bf16.msra.mxu1 %v21333_v22  ;;  %v21381_v19 = vld [vmem:[#allocation6 + $0x2238] ss:$48 sps:$4 sm:$0xff]   ;;  %v21386_v22 = vld [vmem:[#allocation6 + $0x2294] ss:$48 sps:$4 sm:$0xff]  }
 0x485   :  { %15173 = vmatprep.subr.bf16.mxu0 %v21338_v23  ;;  %15665 = vmatprep.subr.bf16.mxu1 %v21341_v25  ;;  %v21389_v23 = vld [vmem:[#allocation6 + $0x229c] ss:$48 sps:$4 sm:$0xff]   ;;  %v21384_v25 = vld [vmem:[#allocation6 + $0x2290] ss:$48 sps:$4 sm:$0xff]  }
 0x488   :  { %15174 = vmatpush1.bf16.msra.mxu0 %v21336_v26  ;;  %15666 = vmatpush1.bf16.msra.mxu1 %v21339_v13  ;;  %v21387_v26 = vld [vmem:[#allocation6 + $0x2298] ss:$48 sps:$4 sm:$0xff]   ;;  %v21392_v13 = vld [vmem:[#allocation6 + $0x22f4] ss:$48 sps:$4 sm:$0xff]  }
 0x489   :  { %15175 = vmatprep.subr.bf16.mxu0 %v21344_v27  ;;  %15667 = vmatprep.subr.bf16.mxu1 %v21347_v33  ;;  %v21395_v27 = vld [vmem:[#allocation6 + $0x22fc] ss:$48 sps:$4 sm:$0xff]   ;;  %v21390_v33 = vld [vmem:[#allocation6 + $0x22f0] ss:$48 sps:$4 sm:$0xff]  }
 0x48c   :  { %15176 = vmatpush1.bf16.msra.mxu0 %v21342_v34  ;;  %15668 = vmatpush1.bf16.msra.mxu1 %v21345_v60  ;;  %v21393_v34 = vld [vmem:[#allocation6 + $0x22f8] ss:$48 sps:$4 sm:$0xff]   ;;  %v21398_v60 = vld [vmem:[#allocation6 + $0x2354] ss:$48 sps:$4 sm:$0xff]  }
 0x48d   :  { %15177 = vmatprep.subr.bf16.mxu0 %v21350_v38  ;;  %15669 = vmatprep.subr.bf16.mxu1 %v21353_v40  ;;  %v21401_v38 = vld [vmem:[#allocation6 + $0x235c] ss:$48 sps:$4 sm:$0xff]   ;;  %v21396_v40 = vld [vmem:[#allocation6 + $0x2350] ss:$48 sps:$4 sm:$0xff]  }
 0x490   :  { %15178 = vmatpush1.bf16.msra.mxu0 %v21348_v9  ;;  %15670 = vmatpush1.bf16.msra.mxu1 %v21351_v44  ;;  %v21399_v9 = vld [vmem:[#allocation6 + $0x2358] ss:$48 sps:$4 sm:$0xff]   ;;  %v21404_v44 = vld [vmem:[#allocation6 + $0x23b4] ss:$48 sps:$4 sm:$0xff]  }
 0x491   :  { %15179 = vmatprep.subr.bf16.mxu0 %v21356_v45  ;;  %15671 = vmatprep.subr.bf16.mxu1 %v21359_v31  ;;  %v21407_v45 = vld [vmem:[#allocation6 + $0x23bc] ss:$48 sps:$4 sm:$0xff]   ;;  %v21402_v31 = vld [vmem:[#allocation6 + $0x23b0] ss:$48 sps:$4 sm:$0xff]  }
 0x494   :  { %15180 = vmatpush1.bf16.msra.mxu0 %v21354_v41  ;;  %15672 = vmatpush1.bf16.msra.mxu1 %v21357_v49  ;;  %v21405_v41 = vld [vmem:[#allocation6 + $0x23b8] ss:$48 sps:$4 sm:$0xff]   ;;  %v21410_v49 = vld [vmem:[#allocation6 + $0x2414] ss:$48 sps:$4 sm:$0xff]  }
 0x495   :  { %15181 = vmatprep.subr.bf16.mxu0 %v21362_v50  ;;  %15673 = vmatprep.subr.bf16.mxu1 %v21365_v52  ;;  %v21413_v50 = vld [vmem:[#allocation6 + $0x241c] ss:$48 sps:$4 sm:$0xff]   ;;  %v21408_v52 = vld [vmem:[#allocation6 + $0x2410] ss:$48 sps:$4 sm:$0xff]  }
 0x498   :  { %15182 = vmatpush1.bf16.msra.mxu0 %v21360_v53  ;;  %15674 = vmatpush1.bf16.msra.mxu1 %v21363_v54  ;;  %v21411_v53 = vld [vmem:[#allocation6 + $0x2418] ss:$48 sps:$4 sm:$0xff]   ;;  %v21416_v54 = vld [vmem:[#allocation6 + $0x2474] ss:$48 sps:$4 sm:$0xff]  }
 0x499   :  { %15183 = vmatprep.subr.bf16.mxu0 %v21368_v59  ;;  %15675 = vmatprep.subr.bf16.mxu1 %v21371_v21  ;;  %v21419_v59 = vld [vmem:[#allocation6 + $0x247c] ss:$48 sps:$4 sm:$0xff]   ;;  %v21414_v21 = vld [vmem:[#allocation6 + $0x2470] ss:$48 sps:$4 sm:$0xff]  }
 0x49c   :  { %15184 = vmatpush1.bf16.msra.mxu0 %v21366_v32  ;;  %15676 = vmatpush1.bf16.msra.mxu1 %v21369_v6  ;;  %v21417_v32 = vld [vmem:[#allocation6 + $0x2478] ss:$48 sps:$4 sm:$0xff]   ;;  %v21422_v6 = vld [vmem:[#allocation6 + $0x24d4] ss:$48 sps:$4 sm:$0xff]  }
 0x49d   :  { %15185 = vmatprep.subr.bf16.mxu0 %v21374_v55  ;;  %15677 = vmatprep.subr.bf16.mxu1 %v21377_v7  ;;  %v21425_v55 = vld [vmem:[#allocation6 + $0x24dc] ss:$48 sps:$4 sm:$0xff]   ;;  %v21420_v7 = vld [vmem:[#allocation6 + $0x24d0] ss:$48 sps:$4 sm:$0xff]  }
 0x4a0   :  { %15186 = vmatpush1.bf16.msra.mxu0 %v21372_v8  ;;  %15678 = vmatpush1.bf16.msra.mxu1 %v21375_v12  ;;  %v21423_v8 = vld [vmem:[#allocation6 + $0x24d8] ss:$48 sps:$4 sm:$0xff]   ;;  %v21428_v12 = vld [vmem:[#allocation6 + $0x2534] ss:$48 sps:$4 sm:$0xff]  }
 0x4a1   :  { %15187 = vmatprep.subr.bf16.mxu0 %v21380_v14  ;;  %15679 = vmatprep.subr.bf16.mxu1 %v21383_v17  ;;  %v21431_v14 = vld [vmem:[#allocation6 + $0x253c] ss:$48 sps:$4 sm:$0xff]   ;;  %v21426_v17 = vld [vmem:[#allocation6 + $0x2530] ss:$48 sps:$4 sm:$0xff]  }
 0x4a4   :  { %15188 = vmatpush1.bf16.msra.mxu0 %v21378_v56  ;;  %15680 = vmatpush1.bf16.msra.mxu1 %v21381_v19  ;;  %v21429_v56 = vld [vmem:[#allocation6 + $0x2538] ss:$48 sps:$4 sm:$0xff]   ;;  %v21434_v19 = vld [vmem:[#allocation6 + $0x2594] ss:$48 sps:$4 sm:$0xff]  }
 0x4a5   :  { %15189 = vmatprep.subr.bf16.mxu0 %v21386_v22  ;;  %15681 = vmatprep.subr.bf16.mxu1 %v21389_v23  ;;  %v21437_v22 = vld [vmem:[#allocation6 + $0x259c] ss:$48 sps:$4 sm:$0xff]   ;;  %v21432_v23 = vld [vmem:[#allocation6 + $0x2590] ss:$48 sps:$4 sm:$0xff]  }
 0x4a8   :  { %15190 = vmatpush1.bf16.msra.mxu0 %v21384_v25  ;;  %15682 = vmatpush1.bf16.msra.mxu1 %v21387_v26  ;;  %v21435_v25 = vld [vmem:[#allocation6 + $0x2598] ss:$48 sps:$4 sm:$0xff]   ;;  %v21440_v26 = vld [vmem:[#allocation6 + $0x25f4] ss:$48 sps:$4 sm:$0xff]  }
 0x4a9   :  { %15191 = vmatprep.subr.bf16.mxu0 %v21392_v13  ;;  %15683 = vmatprep.subr.bf16.mxu1 %v21395_v27  ;;  %v21443_v13 = vld [vmem:[#allocation6 + $0x25fc] ss:$48 sps:$4 sm:$0xff]   ;;  %v21438_v27 = vld [vmem:[#allocation6 + $0x25f0] ss:$48 sps:$4 sm:$0xff]  }
 0x4ac   :  { %15192 = vmatpush1.bf16.msra.mxu0 %v21390_v33  ;;  %15684 = vmatpush1.bf16.msra.mxu1 %v21393_v34  ;;  %v21441_v33 = vld [vmem:[#allocation6 + $0x25f8] ss:$48 sps:$4 sm:$0xff]   ;;  %v21446_v34 = vld [vmem:[#allocation6 + $0x2654] ss:$48 sps:$4 sm:$0xff]  }
 0x4ad   :  { %15193 = vmatprep.subr.bf16.mxu0 %v21398_v60  ;;  %15685 = vmatprep.subr.bf16.mxu1 %v21401_v38  ;;  %v21449_v60 = vld [vmem:[#allocation6 + $0x265c] ss:$48 sps:$4 sm:$0xff]   ;;  %v21444_v38 = vld [vmem:[#allocation6 + $0x2650] ss:$48 sps:$4 sm:$0xff]  }
 0x4b0   :  { %15194 = vmatpush1.bf16.msra.mxu0 %v21396_v40  ;;  %15686 = vmatpush1.bf16.msra.mxu1 %v21399_v9  ;;  %v21447_v40 = vld [vmem:[#allocation6 + $0x2658] ss:$48 sps:$4 sm:$0xff]   ;;  %v21452_v9 = vld [vmem:[#allocation6 + $0x26b4] ss:$48 sps:$4 sm:$0xff]  }
 0x4b1   :  { %15195 = vmatprep.subr.bf16.mxu0 %v21404_v44  ;;  %15687 = vmatprep.subr.bf16.mxu1 %v21407_v45  ;;  %v21455_v44 = vld [vmem:[#allocation6 + $0x26bc] ss:$48 sps:$4 sm:$0xff]   ;;  %v21450_v45 = vld [vmem:[#allocation6 + $0x26b0] ss:$48 sps:$4 sm:$0xff]  }
 0x4b4   :  { %15196 = vmatpush1.bf16.msra.mxu0 %v21402_v31  ;;  %15688 = vmatpush1.bf16.msra.mxu1 %v21405_v41  ;;  %v21453_v31 = vld [vmem:[#allocation6 + $0x26b8] ss:$48 sps:$4 sm:$0xff]   ;;  %v21458_v41 = vld [vmem:[#allocation6 + $0x2714] ss:$48 sps:$4 sm:$0xff]  }
 0x4b5   :  { %15206 = vmatprep.subr.bf16.mxu0 %v21410_v49  ;;  %15698 = vmatprep.subr.bf16.mxu1 %v21413_v50  ;;  %v21461_v49 = vld [vmem:[#allocation6 + $0x271c] ss:$48 sps:$4 sm:$0xff]   ;;  %v21456_v50 = vld [vmem:[#allocation6 + $0x2710] ss:$48 sps:$4 sm:$0xff]  }
 0x4b7   :  { %15198 = vmatmul.mubr.bf16.vlgmr.msra.gmra.mrb[4].mxu0 %v23374_v57  ;;  %15690 = vmatmul.mubr.bf16.vlgmr.msra.gmra.mrb[4].mxu1 %v23374_v57 }
 0x4b8   :  { %15207 = vmatpush1.bf16.msra.mxu0 %v21408_v52  ;;  %15699 = vmatpush1.bf16.msra.mxu1 %v21411_v53  ;;  %v21459_v52 = vld [vmem:[#allocation6 + $0x2718] ss:$48 sps:$4 sm:$0xff]   ;;  %v21464_v53 = vld [vmem:[#allocation6 + $0x2774] ss:$48 sps:$4 sm:$0xff]  }
 0x4b9   :  { %15208 = vmatprep.subr.bf16.mxu0 %v21416_v54  ;;  %15700 = vmatprep.subr.bf16.mxu1 %v21419_v59  ;;  %v21467_v54 = vld [vmem:[#allocation6 + $0x277c] ss:$48 sps:$4 sm:$0xff]   ;;  %v21462_v59 = vld [vmem:[#allocation6 + $0x2770] ss:$48 sps:$4 sm:$0xff]  }
 0x4ba   :  { %15238 = vmatprep.mubr.bf16.mxu0 %v23378_v62  ;;  %15730 = vmatprep.mubr.bf16.mxu1 %v23378_v62 }
 0x4bc   :  { %15209 = vmatpush1.bf16.msra.mxu0 %v21414_v21  ;;  %15701 = vmatpush1.bf16.msra.mxu1 %v21417_v32  ;;  %v21465_v21 = vld [vmem:[#allocation6 + $0x2778] ss:$48 sps:$4 sm:$0xff]   ;;  %v21470_v32 = vld [vmem:[#allocation6 + $0x27d4] ss:$48 sps:$4 sm:$0xff]  }
 0x4bd   :  { %15210 = vmatprep.subr.bf16.mxu0 %v21422_v6  ;;  %15702 = vmatprep.subr.bf16.mxu1 %v21425_v55  ;;  %v21473_v6 = vld [vmem:[#allocation6 + $0x27dc] ss:$48 sps:$4 sm:$0xff]   ;;  %v21468_v55 = vld [vmem:[#allocation6 + $0x27d0] ss:$48 sps:$4 sm:$0xff]  }
 0x4c0   :  { %15211 = vmatpush1.bf16.msra.mxu0 %v21420_v7  ;;  %15703 = vmatpush1.bf16.msra.mxu1 %v21423_v8  ;;  %v21471_v7 = vld [vmem:[#allocation6 + $0x27d8] ss:$48 sps:$4 sm:$0xff]   ;;  %v21476_v8 = vld [vmem:[#allocation6 + $0x2834] ss:$48 sps:$4 sm:$0xff]  }
 0x4c1   :  { %15212 = vmatprep.subr.bf16.mxu0 %v21428_v12  ;;  %15704 = vmatprep.subr.bf16.mxu1 %v21431_v14  ;;  %v21479_v12 = vld [vmem:[#allocation6 + $0x283c] ss:$48 sps:$4 sm:$0xff]   ;;  %v21474_v14 = vld [vmem:[#allocation6 + $0x2830] ss:$48 sps:$4 sm:$0xff]  }
 0x4c4   :  { %15213 = vmatpush1.bf16.msra.mxu0 %v21426_v17  ;;  %15705 = vmatpush1.bf16.msra.mxu1 %v21429_v56  ;;  %v21477_v17 = vld [vmem:[#allocation6 + $0x2838] ss:$48 sps:$4 sm:$0xff]   ;;  %v21482_v56 = vld [vmem:[#allocation6 + $0x2894] ss:$48 sps:$4 sm:$0xff]  }
 0x4c5   :  { %15214 = vmatprep.subr.bf16.mxu0 %v21434_v19  ;;  %15706 = vmatprep.subr.bf16.mxu1 %v21437_v22  ;;  %v21485_v19 = vld [vmem:[#allocation6 + $0x289c] ss:$48 sps:$4 sm:$0xff]   ;;  %v21480_v22 = vld [vmem:[#allocation6 + $0x2890] ss:$48 sps:$4 sm:$0xff]  }
 0x4c8   :  { %15215 = vmatpush1.bf16.msra.mxu0 %v21432_v23  ;;  %15707 = vmatpush1.bf16.msra.mxu1 %v21435_v25  ;;  %v21483_v23 = vld [vmem:[#allocation6 + $0x2898] ss:$48 sps:$4 sm:$0xff]   ;;  %v21488_v25 = vld [vmem:[#allocation6 + $0x28f4] ss:$48 sps:$4 sm:$0xff]  }
 0x4c9   :  { %15216 = vmatprep.subr.bf16.mxu0 %v21440_v26  ;;  %15708 = vmatprep.subr.bf16.mxu1 %v21443_v13  ;;  %v21491_v26 = vld [vmem:[#allocation6 + $0x28fc] ss:$48 sps:$4 sm:$0xff]   ;;  %v21486_v13 = vld [vmem:[#allocation6 + $0x28f0] ss:$48 sps:$4 sm:$0xff]  }
 0x4cc   :  { %15217 = vmatpush1.bf16.msra.mxu0 %v21438_v27  ;;  %15709 = vmatpush1.bf16.msra.mxu1 %v21441_v33  ;;  %v21489_v27 = vld [vmem:[#allocation6 + $0x28f8] ss:$48 sps:$4 sm:$0xff]   ;;  %v21494_v33 = vld [vmem:[#allocation6 + $0x2954] ss:$48 sps:$4 sm:$0xff]  }
 0x4cd   :  { %15218 = vmatprep.subr.bf16.mxu0 %v21446_v34  ;;  %15710 = vmatprep.subr.bf16.mxu1 %v21449_v60  ;;  %v21497_v34 = vld [vmem:[#allocation6 + $0x295c] ss:$48 sps:$4 sm:$0xff]   ;;  %v21492_v60 = vld [vmem:[#allocation6 + $0x2950] ss:$48 sps:$4 sm:$0xff]  }
 0x4d0   :  { %15219 = vmatpush1.bf16.msra.mxu0 %v21444_v38  ;;  %15711 = vmatpush1.bf16.msra.mxu1 %v21447_v40  ;;  %v21495_v38 = vld [vmem:[#allocation6 + $0x2958] ss:$48 sps:$4 sm:$0xff]   ;;  %v21500_v40 = vld [vmem:[#allocation6 + $0x29b4] ss:$48 sps:$4 sm:$0xff]  }
 0x4d1   :  { %15220 = vmatprep.subr.bf16.mxu0 %v21452_v9  ;;  %15712 = vmatprep.subr.bf16.mxu1 %v21455_v44  ;;  %v21503_v9 = vld [vmem:[#allocation6 + $0x29bc] ss:$48 sps:$4 sm:$0xff]   ;;  %v21498_v44 = vld [vmem:[#allocation6 + $0x29b0] ss:$48 sps:$4 sm:$0xff]  }
 0x4d4   :  { %15221 = vmatpush1.bf16.msra.mxu0 %v21450_v45  ;;  %15713 = vmatpush1.bf16.msra.mxu1 %v21453_v31  ;;  %v21501_v45 = vld [vmem:[#allocation6 + $0x29b8] ss:$48 sps:$4 sm:$0xff]   ;;  %v21506_v31 = vld [vmem:[#allocation6 + $0x2a14] ss:$48 sps:$4 sm:$0xff]  }
 0x4d5   :  { %15222 = vmatprep.subr.bf16.mxu0 %v21458_v41  ;;  %15714 = vmatprep.subr.bf16.mxu1 %v21461_v49  ;;  %v21509_v41 = vld [vmem:[#allocation6 + $0x2a1c] ss:$48 sps:$4 sm:$0xff]   ;;  %v21504_v49 = vld [vmem:[#allocation6 + $0x2a10] ss:$48 sps:$4 sm:$0xff]  }
 0x4d8   :  { %15223 = vmatpush1.bf16.msra.mxu0 %v21456_v50  ;;  %15715 = vmatpush1.bf16.msra.mxu1 %v21459_v52  ;;  %v21507_v50 = vld [vmem:[#allocation6 + $0x2a18] ss:$48 sps:$4 sm:$0xff]   ;;  %v21512_v52 = vld [vmem:[#allocation6 + $0x2a74] ss:$48 sps:$4 sm:$0xff]  }
 0x4d9   :  { %15224 = vmatprep.subr.bf16.mxu0 %v21464_v53  ;;  %15716 = vmatprep.subr.bf16.mxu1 %v21467_v54  ;;  %v21515_v53 = vld [vmem:[#allocation6 + $0x2a7c] ss:$48 sps:$4 sm:$0xff]   ;;  %v21510_v54 = vld [vmem:[#allocation6 + $0x2a70] ss:$48 sps:$4 sm:$0xff]  }
 0x4dc   :  { %15225 = vmatpush1.bf16.msra.mxu0 %v21462_v59  ;;  %15717 = vmatpush1.bf16.msra.mxu1 %v21465_v21  ;;  %v21513_v59 = vld [vmem:[#allocation6 + $0x2a78] ss:$48 sps:$4 sm:$0xff]   ;;  %v21518_v21 = vld [vmem:[#allocation6 + $0x2ad4] ss:$48 sps:$4 sm:$0xff]  }
 0x4dd   :  { %15226 = vmatprep.subr.bf16.mxu0 %v21470_v32  ;;  %15718 = vmatprep.subr.bf16.mxu1 %v21473_v6  ;;  %v21521_v32 = vld [vmem:[#allocation6 + $0x2adc] ss:$48 sps:$4 sm:$0xff]   ;;  %v21516_v6 = vld [vmem:[#allocation6 + $0x2ad0] ss:$48 sps:$4 sm:$0xff]  }
 0x4e0   :  { %15227 = vmatpush1.bf16.msra.mxu0 %v21468_v55  ;;  %15719 = vmatpush1.bf16.msra.mxu1 %v21471_v7  ;;  %v21519_v55 = vld [vmem:[#allocation6 + $0x2ad8] ss:$48 sps:$4 sm:$0xff]   ;;  %v21524_v7 = vld [vmem:[#allocation6 + $0x2b34] ss:$48 sps:$4 sm:$0xff]  }
 0x4e1   :  { %15228 = vmatprep.subr.bf16.mxu0 %v21476_v8  ;;  %15720 = vmatprep.subr.bf16.mxu1 %v21479_v12  ;;  %v21527_v8 = vld [vmem:[#allocation6 + $0x2b3c] ss:$48 sps:$4 sm:$0xff]   ;;  %v21522_v12 = vld [vmem:[#allocation6 + $0x2b30] ss:$48 sps:$4 sm:$0xff]  }
 0x4e4   :  { %15229 = vmatpush1.bf16.msra.mxu0 %v21474_v14  ;;  %15721 = vmatpush1.bf16.msra.mxu1 %v21477_v17  ;;  %v21525_v14 = vld [vmem:[#allocation6 + $0x2b38] ss:$48 sps:$4 sm:$0xff]   ;;  %v21530_v17 = vld [vmem:[#allocation6 + $0x2b94] ss:$48 sps:$4 sm:$0xff]  }
 0x4e5   :  { %15230 = vmatprep.subr.bf16.mxu0 %v21482_v56  ;;  %15722 = vmatprep.subr.bf16.mxu1 %v21485_v19  ;;  %v21533_v56 = vld [vmem:[#allocation6 + $0x2b9c] ss:$48 sps:$4 sm:$0xff]   ;;  %v21528_v19 = vld [vmem:[#allocation6 + $0x2b90] ss:$48 sps:$4 sm:$0xff]  }
 0x4e8   :  { %15231 = vmatpush1.bf16.msra.mxu0 %v21480_v22  ;;  %15723 = vmatpush1.bf16.msra.mxu1 %v21483_v23  ;;  %v21531_v22 = vld [vmem:[#allocation6 + $0x2b98] ss:$48 sps:$4 sm:$0xff]   ;;  %v21536_v23 = vld [vmem:[#allocation6 + $0x2bf4] ss:$48 sps:$4 sm:$0xff]  }
 0x4e9   :  { %15232 = vmatprep.subr.bf16.mxu0 %v21488_v25  ;;  %15724 = vmatprep.subr.bf16.mxu1 %v21491_v26  ;;  %v21539_v25 = vld [vmem:[#allocation6 + $0x2bfc] ss:$48 sps:$4 sm:$0xff]   ;;  %v21534_v26 = vld [vmem:[#allocation6 + $0x2bf0] ss:$48 sps:$4 sm:$0xff]  }
 0x4ec   :  { %15233 = vmatpush1.bf16.msra.mxu0 %v21486_v13  ;;  %15725 = vmatpush1.bf16.msra.mxu1 %v21489_v27  ;;  %v21537_v13 = vld [vmem:[#allocation6 + $0x2bf8] ss:$48 sps:$4 sm:$0xff]   ;;  %v21542_v27 = vld [vmem:[#allocation6 + $0x2c54] ss:$48 sps:$4 sm:$0xff]  }
 0x4ed   :  { %15234 = vmatprep.subr.bf16.mxu0 %v21494_v33  ;;  %15726 = vmatprep.subr.bf16.mxu1 %v21497_v34  ;;  %v21545_v33 = vld [vmem:[#allocation6 + $0x2c5c] ss:$48 sps:$4 sm:$0xff]   ;;  %v21540_v34 = vld [vmem:[#allocation6 + $0x2c50] ss:$48 sps:$4 sm:$0xff]  }
 0x4f0   :  { %15235 = vmatpush1.bf16.msra.mxu0 %v21492_v60  ;;  %15727 = vmatpush1.bf16.msra.mxu1 %v21495_v38  ;;  %v21543_v60 = vld [vmem:[#allocation6 + $0x2c58] ss:$48 sps:$4 sm:$0xff]   ;;  %v21548_v38 = vld [vmem:[#allocation6 + $0x2cb4] ss:$48 sps:$4 sm:$0xff]  }
 0x4f1   :  { %15236 = vmatprep.subr.bf16.mxu0 %v21500_v40  ;;  %15728 = vmatprep.subr.bf16.mxu1 %v21503_v9  ;;  %v21551_v40 = vld [vmem:[#allocation6 + $0x2cbc] ss:$48 sps:$4 sm:$0xff]   ;;  %v21546_v9 = vld [vmem:[#allocation6 + $0x2cb0] ss:$48 sps:$4 sm:$0xff]  }
 0x4f4   :  { %15237 = vmatpush1.bf16.msra.mxu0 %v21498_v44  ;;  %15729 = vmatpush1.bf16.msra.mxu1 %v21501_v45  ;;  %v21549_v44 = vld [vmem:[#allocation6 + $0x2cb8] ss:$48 sps:$4 sm:$0xff]   ;;  %v21554_v45 = vld [vmem:[#allocation6 + $0x2d14] ss:$48 sps:$4 sm:$0xff]  }
 0x4f5   :  { %15247 = vmatprep.subr.bf16.mxu0 %v21506_v31  ;;  %15739 = vmatprep.subr.bf16.mxu1 %v21509_v41  ;;  %v21557_v31 = vld [vmem:[#allocation6 + $0x2d1c] ss:$48 sps:$4 sm:$0xff]   ;;  %v21552_v41 = vld [vmem:[#allocation6 + $0x2d10] ss:$48 sps:$4 sm:$0xff]  }
 0x4f7   :  { %15239 = vmatmul.mubr.bf16.vlgmr.msra.gmra.mrb[4].mxu0 %v23388_v11  ;;  %15731 = vmatmul.mubr.bf16.vlgmr.msra.gmra.mrb[4].mxu1 %v23388_v11 }
 0x4f8   :  { %15248 = vmatpush1.bf16.msra.mxu0 %v21504_v49  ;;  %15740 = vmatpush1.bf16.msra.mxu1 %v21507_v50  ;;  %v21555_v49 = vld [vmem:[#allocation6 + $0x2d18] ss:$48 sps:$4 sm:$0xff]   ;;  %v21560_v50 = vld [vmem:[#allocation6 + $0x2d74] ss:$48 sps:$4 sm:$0xff]  }
 0x4f9   :  { %15249 = vmatprep.subr.bf16.mxu0 %v21512_v52  ;;  %15741 = vmatprep.subr.bf16.mxu1 %v21515_v53  ;;  %v21563_v52 = vld [vmem:[#allocation6 + $0x2d7c] ss:$48 sps:$4 sm:$0xff]   ;;  %v21558_v53 = vld [vmem:[#allocation6 + $0x2d70] ss:$48 sps:$4 sm:$0xff]  }
 0x4fa   :  { %15279 = vmatprep.mubr.bf16.mxu0 %v23392_v18  ;;  %15771 = vmatprep.mubr.bf16.mxu1 %v23392_v18 }
 0x4fc   :  { %15250 = vmatpush1.bf16.msra.mxu0 %v21510_v54  ;;  %15742 = vmatpush1.bf16.msra.mxu1 %v21513_v59  ;;  %v21561_v54 = vld [vmem:[#allocation6 + $0x2d78] ss:$48 sps:$4 sm:$0xff]   ;;  %v21566_v59 = vld [vmem:[#allocation6 + $0x2dd4] ss:$48 sps:$4 sm:$0xff]  }
 0x4fd   :  { %15251 = vmatprep.subr.bf16.mxu0 %v21518_v21  ;;  %15743 = vmatprep.subr.bf16.mxu1 %v21521_v32  ;;  %v21569_v21 = vld [vmem:[#allocation6 + $0x2ddc] ss:$48 sps:$4 sm:$0xff]   ;;  %v21564_v32 = vld [vmem:[#allocation6 + $0x2dd0] ss:$48 sps:$4 sm:$0xff]  }
 0x500   :  { %15252 = vmatpush1.bf16.msra.mxu0 %v21516_v6  ;;  %15744 = vmatpush1.bf16.msra.mxu1 %v21519_v55  ;;  %v21567_v6 = vld [vmem:[#allocation6 + $0x2dd8] ss:$48 sps:$4 sm:$0xff]   ;;  %v21572_v55 = vld [vmem:[#allocation6 + $0x2e34] ss:$48 sps:$4 sm:$0xff]  }
 0x501   :  { %15253 = vmatprep.subr.bf16.mxu0 %v21524_v7  ;;  %15745 = vmatprep.subr.bf16.mxu1 %v21527_v8  ;;  %v21575_v7 = vld [vmem:[#allocation6 + $0x2e3c] ss:$48 sps:$4 sm:$0xff]   ;;  %v21570_v8 = vld [vmem:[#allocation6 + $0x2e30] ss:$48 sps:$4 sm:$0xff]  }
 0x504   :  { %15254 = vmatpush1.bf16.msra.mxu0 %v21522_v12  ;;  %15746 = vmatpush1.bf16.msra.mxu1 %v21525_v14  ;;  %v21573_v12 = vld [vmem:[#allocation6 + $0x2e38] ss:$48 sps:$4 sm:$0xff]   ;;  %v21578_v14 = vld [vmem:[#allocation6 + $0x2e94] ss:$48 sps:$4 sm:$0xff]  }
 0x505   :  { %15255 = vmatprep.subr.bf16.mxu0 %v21530_v17  ;;  %15747 = vmatprep.subr.bf16.mxu1 %v21533_v56  ;;  %v21581_v17 = vld [vmem:[#allocation6 + $0x2e9c] ss:$48 sps:$4 sm:$0xff]   ;;  %v21576_v56 = vld [vmem:[#allocation6 + $0x2e90] ss:$48 sps:$4 sm:$0xff]  }
 0x508   :  { %15256 = vmatpush1.bf16.msra.mxu0 %v21528_v19  ;;  %15748 = vmatpush1.bf16.msra.mxu1 %v21531_v22  ;;  %v21579_v19 = vld [vmem:[#allocation6 + $0x2e98] ss:$48 sps:$4 sm:$0xff]   ;;  %v21584_v22 = vld [vmem:[#allocation6 + $0x2ef4] ss:$48 sps:$4 sm:$0xff]  }
 0x509   :  { %15257 = vmatprep.subr.bf16.mxu0 %v21536_v23  ;;  %15749 = vmatprep.subr.bf16.mxu1 %v21539_v25  ;;  %v21587_v23 = vld [vmem:[#allocation6 + $0x2efc] ss:$48 sps:$4 sm:$0xff]   ;;  %v21582_v25 = vld [vmem:[#allocation6 + $0x2ef0] ss:$48 sps:$4 sm:$0xff]  }
 0x50c   :  { %15258 = vmatpush1.bf16.msra.mxu0 %v21534_v26  ;;  %15750 = vmatpush1.bf16.msra.mxu1 %v21537_v13  ;;  %v21585_v26 = vld [vmem:[#allocation6 + $0x2ef8] ss:$48 sps:$4 sm:$0xff]   ;;  %v21590_v13 = vld [vmem:[#allocation6 + $0x2f54] ss:$48 sps:$4 sm:$0xff]  }
 0x50d   :  { %15259 = vmatprep.subr.bf16.mxu0 %v21542_v27  ;;  %15751 = vmatprep.subr.bf16.mxu1 %v21545_v33  ;;  %v21593_v27 = vld [vmem:[#allocation6 + $0x2f5c] ss:$48 sps:$4 sm:$0xff]   ;;  %v21588_v33 = vld [vmem:[#allocation6 + $0x2f50] ss:$48 sps:$4 sm:$0xff]  }
 0x510   :  { %15260 = vmatpush1.bf16.msra.mxu0 %v21540_v34  ;;  %15752 = vmatpush1.bf16.msra.mxu1 %v21543_v60  ;;  %v21591_v34 = vld [vmem:[#allocation6 + $0x2f58] ss:$48 sps:$4 sm:$0xff]   ;;  %v21596_v60 = vld [vmem:[#allocation6 + $0x2fb4] ss:$48 sps:$4 sm:$0xff]  }
 0x511   :  { %15261 = vmatprep.subr.bf16.mxu0 %v21548_v38  ;;  %15753 = vmatprep.subr.bf16.mxu1 %v21551_v40  ;;  %v21599_v38 = vld [vmem:[#allocation6 + $0x2fbc] ss:$48 sps:$4 sm:$0xff]   ;;  %v21594_v40 = vld [vmem:[#allocation6 + $0x2fb0] ss:$48 sps:$4 sm:$0xff]  }
 0x514   :  { %15262 = vmatpush1.bf16.msra.mxu0 %v21546_v9  ;;  %15754 = vmatpush1.bf16.msra.mxu1 %v21549_v44  ;;  %v21597_v9 = vld [vmem:[#allocation6 + $0x2fb8] ss:$48 sps:$4 sm:$0xff]   ;;  %v21602_v44 = vld [vmem:[#allocation6 + $0x3014] ss:$48 sps:$4 sm:$0xff]  }
 0x515   :  { %15263 = vmatprep.subr.bf16.mxu0 %v21554_v45  ;;  %15755 = vmatprep.subr.bf16.mxu1 %v21557_v31  ;;  %v21605_v45 = vld [vmem:[#allocation6 + $0x301c] ss:$48 sps:$4 sm:$0xff]   ;;  %v21600_v31 = vld [vmem:[#allocation6 + $0x3010] ss:$48 sps:$4 sm:$0xff]  }
 0x518   :  { %15264 = vmatpush1.bf16.msra.mxu0 %v21552_v41  ;;  %15756 = vmatpush1.bf16.msra.mxu1 %v21555_v49  ;;  %v21603_v41 = vld [vmem:[#allocation6 + $0x3018] ss:$48 sps:$4 sm:$0xff]   ;;  %v21608_v49 = vld [vmem:[#allocation6 + $0x3074] ss:$48 sps:$4 sm:$0xff]  }
 0x519   :  { %15265 = vmatprep.subr.bf16.mxu0 %v21560_v50  ;;  %15757 = vmatprep.subr.bf16.mxu1 %v21563_v52  ;;  %v21611_v50 = vld [vmem:[#allocation6 + $0x307c] ss:$48 sps:$4 sm:$0xff]   ;;  %v21606_v52 = vld [vmem:[#allocation6 + $0x3070] ss:$48 sps:$4 sm:$0xff]  }
 0x51c   :  { %15266 = vmatpush1.bf16.msra.mxu0 %v21558_v53  ;;  %15758 = vmatpush1.bf16.msra.mxu1 %v21561_v54  ;;  %v21609_v53 = vld [vmem:[#allocation6 + $0x3078] ss:$48 sps:$4 sm:$0xff]   ;;  %v21614_v54 = vld [vmem:[#allocation6 + $0x30d4] ss:$48 sps:$4 sm:$0xff]  }
 0x51d   :  { %15267 = vmatprep.subr.bf16.mxu0 %v21566_v59  ;;  %15759 = vmatprep.subr.bf16.mxu1 %v21569_v21  ;;  %v21617_v59 = vld [vmem:[#allocation6 + $0x30dc] ss:$48 sps:$4 sm:$0xff]   ;;  %v21612_v21 = vld [vmem:[#allocation6 + $0x30d0] ss:$48 sps:$4 sm:$0xff]  }
 0x520   :  { %15268 = vmatpush1.bf16.msra.mxu0 %v21564_v32  ;;  %15760 = vmatpush1.bf16.msra.mxu1 %v21567_v6  ;;  %v21615_v32 = vld [vmem:[#allocation6 + $0x30d8] ss:$48 sps:$4 sm:$0xff]   ;;  %v21620_v6 = vld [vmem:[#allocation6 + $0x3134] ss:$48 sps:$4 sm:$0xff]  }
 0x521   :  { %15269 = vmatprep.subr.bf16.mxu0 %v21572_v55  ;;  %15761 = vmatprep.subr.bf16.mxu1 %v21575_v7  ;;  %v21623_v55 = vld [vmem:[#allocation6 + $0x313c] ss:$48 sps:$4 sm:$0xff]   ;;  %v21618_v7 = vld [vmem:[#allocation6 + $0x3130] ss:$48 sps:$4 sm:$0xff]  }
 0x524   :  { %15270 = vmatpush1.bf16.msra.mxu0 %v21570_v8  ;;  %15762 = vmatpush1.bf16.msra.mxu1 %v21573_v12  ;;  %v21621_v8 = vld [vmem:[#allocation6 + $0x3138] ss:$48 sps:$4 sm:$0xff]   ;;  %v21626_v12 = vld [vmem:[#allocation6 + $0x3194] ss:$48 sps:$4 sm:$0xff]  }
 0x525   :  { %15271 = vmatprep.subr.bf16.mxu0 %v21578_v14  ;;  %15763 = vmatprep.subr.bf16.mxu1 %v21581_v17  ;;  %v21629_v14 = vld [vmem:[#allocation6 + $0x319c] ss:$48 sps:$4 sm:$0xff]   ;;  %v21624_v17 = vld [vmem:[#allocation6 + $0x3190] ss:$48 sps:$4 sm:$0xff]  }
 0x528   :  { %15272 = vmatpush1.bf16.msra.mxu0 %v21576_v56  ;;  %15764 = vmatpush1.bf16.msra.mxu1 %v21579_v19  ;;  %v21627_v56 = vld [vmem:[#allocation6 + $0x3198] ss:$48 sps:$4 sm:$0xff]   ;;  %v21632_v19 = vld [vmem:[#allocation6 + $0x31f4] ss:$48 sps:$4 sm:$0xff]  }
 0x529   :  { %15273 = vmatprep.subr.bf16.mxu0 %v21584_v22  ;;  %15765 = vmatprep.subr.bf16.mxu1 %v21587_v23  ;;  %v21635_v22 = vld [vmem:[#allocation6 + $0x31fc] ss:$48 sps:$4 sm:$0xff]   ;;  %v21630_v23 = vld [vmem:[#allocation6 + $0x31f0] ss:$48 sps:$4 sm:$0xff]  }
 0x52c   :  { %15274 = vmatpush1.bf16.msra.mxu0 %v21582_v25  ;;  %15766 = vmatpush1.bf16.msra.mxu1 %v21585_v26  ;;  %v21633_v25 = vld [vmem:[#allocation6 + $0x31f8] ss:$48 sps:$4 sm:$0xff]   ;;  %v21638_v26 = vld [vmem:[#allocation6 + $0x3254] ss:$48 sps:$4 sm:$0xff]  }
 0x52d   :  { %15275 = vmatprep.subr.bf16.mxu0 %v21590_v13  ;;  %15767 = vmatprep.subr.bf16.mxu1 %v21593_v27  ;;  %v21641_v13 = vld [vmem:[#allocation6 + $0x325c] ss:$48 sps:$4 sm:$0xff]   ;;  %v21636_v27 = vld [vmem:[#allocation6 + $0x3250] ss:$48 sps:$4 sm:$0xff]  }
 0x530   :  { %15276 = vmatpush1.bf16.msra.mxu0 %v21588_v33  ;;  %15768 = vmatpush1.bf16.msra.mxu1 %v21591_v34  ;;  %v21639_v33 = vld [vmem:[#allocation6 + $0x3258] ss:$48 sps:$4 sm:$0xff]   ;;  %v21644_v34 = vld [vmem:[#allocation6 + $0x32b4] ss:$48 sps:$4 sm:$0xff]  }
 0x531   :  { %15277 = vmatprep.subr.bf16.mxu0 %v21596_v60  ;;  %15769 = vmatprep.subr.bf16.mxu1 %v21599_v38  ;;  %v21647_v60 = vld [vmem:[#allocation6 + $0x32bc] ss:$48 sps:$4 sm:$0xff]   ;;  %v21642_v38 = vld [vmem:[#allocation6 + $0x32b0] ss:$48 sps:$4 sm:$0xff]  }
 0x534   :  { %15278 = vmatpush1.bf16.msra.mxu0 %v21594_v40  ;;  %15770 = vmatpush1.bf16.msra.mxu1 %v21597_v9  ;;  %v21645_v40 = vld [vmem:[#allocation6 + $0x32b8] ss:$48 sps:$4 sm:$0xff]   ;;  %v21650_v9 = vld [vmem:[#allocation6 + $0x3314] ss:$48 sps:$4 sm:$0xff]  }
 0x535   :  { %15288 = vmatprep.subr.bf16.mxu0 %v21602_v44  ;;  %15780 = vmatprep.subr.bf16.mxu1 %v21605_v45  ;;  %v21653_v44 = vld [vmem:[#allocation6 + $0x331c] ss:$48 sps:$4 sm:$0xff]   ;;  %v21648_v45 = vld [vmem:[#allocation6 + $0x3310] ss:$48 sps:$4 sm:$0xff]  }
 0x537   :  { %15280 = vmatmul.mubr.bf16.vlgmr.msra.gmra.mrb[4].mxu0 %v23402_v36  ;;  %15772 = vmatmul.mubr.bf16.vlgmr.msra.gmra.mrb[4].mxu1 %v23402_v36 }
 0x538   :  { %15289 = vmatpush1.bf16.msra.mxu0 %v21600_v31  ;;  %15781 = vmatpush1.bf16.msra.mxu1 %v21603_v41  ;;  %v21651_v31 = vld [vmem:[#allocation6 + $0x3318] ss:$48 sps:$4 sm:$0xff]   ;;  %v21656_v41 = vld [vmem:[#allocation6 + $0x3374] ss:$48 sps:$4 sm:$0xff]  }
 0x539   :  { %15290 = vmatprep.subr.bf16.mxu0 %v21608_v49  ;;  %15782 = vmatprep.subr.bf16.mxu1 %v21611_v50  ;;  %v21659_v49 = vld [vmem:[#allocation6 + $0x337c] ss:$48 sps:$4 sm:$0xff]   ;;  %v21654_v50 = vld [vmem:[#allocation6 + $0x3370] ss:$48 sps:$4 sm:$0xff]  }
 0x53a   :  { %15320 = vmatprep.mubr.bf16.mxu0 %v23406_v43  ;;  %15812 = vmatprep.mubr.bf16.mxu1 %v23406_v43 }
 0x53c   :  { %15291 = vmatpush1.bf16.msra.mxu0 %v21606_v52  ;;  %15783 = vmatpush1.bf16.msra.mxu1 %v21609_v53  ;;  %v21657_v52 = vld [vmem:[#allocation6 + $0x3378] ss:$48 sps:$4 sm:$0xff]   ;;  %v21662_v53 = vld [vmem:[#allocation6 + $0x33d4] ss:$48 sps:$4 sm:$0xff]  }
 0x53d   :  { %15292 = vmatprep.subr.bf16.mxu0 %v21614_v54  ;;  %15784 = vmatprep.subr.bf16.mxu1 %v21617_v59  ;;  %v21665_v54 = vld [vmem:[#allocation6 + $0x33dc] ss:$48 sps:$4 sm:$0xff]   ;;  %v21660_v59 = vld [vmem:[#allocation6 + $0x33d0] ss:$48 sps:$4 sm:$0xff]  }
 0x540   :  { %15293 = vmatpush1.bf16.msra.mxu0 %v21612_v21  ;;  %15785 = vmatpush1.bf16.msra.mxu1 %v21615_v32  ;;  %v21663_v21 = vld [vmem:[#allocation6 + $0x33d8] ss:$48 sps:$4 sm:$0xff]   ;;  %v21668_v32 = vld [vmem:[#allocation6 + $0x3434] ss:$48 sps:$4 sm:$0xff]  }
 0x541   :  { %15294 = vmatprep.subr.bf16.mxu0 %v21620_v6  ;;  %15786 = vmatprep.subr.bf16.mxu1 %v21623_v55  ;;  %v21671_v6 = vld [vmem:[#allocation6 + $0x343c] ss:$48 sps:$4 sm:$0xff]   ;;  %v21666_v55 = vld [vmem:[#allocation6 + $0x3430] ss:$48 sps:$4 sm:$0xff]  }
 0x544   :  { %15295 = vmatpush1.bf16.msra.mxu0 %v21618_v7  ;;  %15787 = vmatpush1.bf16.msra.mxu1 %v21621_v8  ;;  %v21669_v7 = vld [vmem:[#allocation6 + $0x3438] ss:$48 sps:$4 sm:$0xff]   ;;  %v21674_v8 = vld [vmem:[#allocation6 + $0x3494] ss:$48 sps:$4 sm:$0xff]  }
 0x545   :  { %15296 = vmatprep.subr.bf16.mxu0 %v21626_v12  ;;  %15788 = vmatprep.subr.bf16.mxu1 %v21629_v14  ;;  %v21677_v12 = vld [vmem:[#allocation6 + $0x349c] ss:$48 sps:$4 sm:$0xff]   ;;  %v21672_v14 = vld [vmem:[#allocation6 + $0x3490] ss:$48 sps:$4 sm:$0xff]  }
 0x548   :  { %15297 = vmatpush1.bf16.msra.mxu0 %v21624_v17  ;;  %15789 = vmatpush1.bf16.msra.mxu1 %v21627_v56  ;;  %v21675_v17 = vld [vmem:[#allocation6 + $0x3498] ss:$48 sps:$4 sm:$0xff]   ;;  %v21680_v56 = vld [vmem:[#allocation6 + $0x34f4] ss:$48 sps:$4 sm:$0xff]  }
 0x549   :  { %15298 = vmatprep.subr.bf16.mxu0 %v21632_v19  ;;  %15790 = vmatprep.subr.bf16.mxu1 %v21635_v22  ;;  %v21683_v19 = vld [vmem:[#allocation6 + $0x34fc] ss:$48 sps:$4 sm:$0xff]   ;;  %v21678_v22 = vld [vmem:[#allocation6 + $0x34f0] ss:$48 sps:$4 sm:$0xff]  }
 0x54c   :  { %15299 = vmatpush1.bf16.msra.mxu0 %v21630_v23  ;;  %15791 = vmatpush1.bf16.msra.mxu1 %v21633_v25  ;;  %v21681_v23 = vld [vmem:[#allocation6 + $0x34f8] ss:$48 sps:$4 sm:$0xff]   ;;  %v21686_v25 = vld [vmem:[#allocation6 + $0x3554] ss:$48 sps:$4 sm:$0xff]  }
 0x54d   :  { %15300 = vmatprep.subr.bf16.mxu0 %v21638_v26  ;;  %15792 = vmatprep.subr.bf16.mxu1 %v21641_v13  ;;  %v21689_v26 = vld [vmem:[#allocation6 + $0x355c] ss:$48 sps:$4 sm:$0xff]   ;;  %v21684_v13 = vld [vmem:[#allocation6 + $0x3550] ss:$48 sps:$4 sm:$0xff]  }
 0x550   :  { %15301 = vmatpush1.bf16.msra.mxu0 %v21636_v27  ;;  %15793 = vmatpush1.bf16.msra.mxu1 %v21639_v33  ;;  %v21687_v27 = vld [vmem:[#allocation6 + $0x3558] ss:$48 sps:$4 sm:$0xff]   ;;  %v21692_v33 = vld [vmem:[#allocation6 + $0x35b4] ss:$48 sps:$4 sm:$0xff]  }
 0x551   :  { %15302 = vmatprep.subr.bf16.mxu0 %v21644_v34  ;;  %15794 = vmatprep.subr.bf16.mxu1 %v21647_v60  ;;  %v21695_v34 = vld [vmem:[#allocation6 + $0x35bc] ss:$48 sps:$4 sm:$0xff]   ;;  %v21690_v60 = vld [vmem:[#allocation6 + $0x35b0] ss:$48 sps:$4 sm:$0xff]  }
 0x554   :  { %15303 = vmatpush1.bf16.msra.mxu0 %v21642_v38  ;;  %15795 = vmatpush1.bf16.msra.mxu1 %v21645_v40  ;;  %v21693_v38 = vld [vmem:[#allocation6 + $0x35b8] ss:$48 sps:$4 sm:$0xff]   ;;  %v21698_v40 = vld [vmem:[#allocation6 + $0x3614] ss:$48 sps:$4 sm:$0xff]  }
 0x555   :  { %15304 = vmatprep.subr.bf16.mxu0 %v21650_v9  ;;  %15796 = vmatprep.subr.bf16.mxu1 %v21653_v44  ;;  %v21701_v9 = vld [vmem:[#allocation6 + $0x361c] ss:$48 sps:$4 sm:$0xff]   ;;  %v21696_v44 = vld [vmem:[#allocation6 + $0x3610] ss:$48 sps:$4 sm:$0xff]  }
 0x558   :  { %15305 = vmatpush1.bf16.msra.mxu0 %v21648_v45  ;;  %15797 = vmatpush1.bf16.msra.mxu1 %v21651_v31  ;;  %v21699_v45 = vld [vmem:[#allocation6 + $0x3618] ss:$48 sps:$4 sm:$0xff]   ;;  %v21704_v31 = vld [vmem:[#allocation6 + $0x3674] ss:$48 sps:$4 sm:$0xff]  }
 0x559   :  { %15306 = vmatprep.subr.bf16.mxu0 %v21656_v41  ;;  %15798 = vmatprep.subr.bf16.mxu1 %v21659_v49  ;;  %v21707_v41 = vld [vmem:[#allocation6 + $0x367c] ss:$48 sps:$4 sm:$0xff]   ;;  %v21702_v49 = vld [vmem:[#allocation6 + $0x3670] ss:$48 sps:$4 sm:$0xff]  }
 0x55c   :  { %15307 = vmatpush1.bf16.msra.mxu0 %v21654_v50  ;;  %15799 = vmatpush1.bf16.msra.mxu1 %v21657_v52  ;;  %v21705_v50 = vld [vmem:[#allocation6 + $0x3678] ss:$48 sps:$4 sm:$0xff]   ;;  %v21710_v52 = vld [vmem:[#allocation6 + $0x36d4] ss:$48 sps:$4 sm:$0xff]  }
 0x55d   :  { %15308 = vmatprep.subr.bf16.mxu0 %v21662_v53  ;;  %15800 = vmatprep.subr.bf16.mxu1 %v21665_v54  ;;  %v21713_v53 = vld [vmem:[#allocation6 + $0x36dc] ss:$48 sps:$4 sm:$0xff]   ;;  %v21708_v54 = vld [vmem:[#allocation6 + $0x36d0] ss:$48 sps:$4 sm:$0xff]  }
 0x560   :  { %15309 = vmatpush1.bf16.msra.mxu0 %v21660_v59  ;;  %15801 = vmatpush1.bf16.msra.mxu1 %v21663_v21  ;;  %v21711_v59 = vld [vmem:[#allocation6 + $0x36d8] ss:$48 sps:$4 sm:$0xff]   ;;  %v21716_v21 = vld [vmem:[#allocation6 + $0x3734] ss:$48 sps:$4 sm:$0xff]  }
 0x561   :  { %15310 = vmatprep.subr.bf16.mxu0 %v21668_v32  ;;  %15802 = vmatprep.subr.bf16.mxu1 %v21671_v6  ;;  %v21719_v32 = vld [vmem:[#allocation6 + $0x373c] ss:$48 sps:$4 sm:$0xff]   ;;  %v21714_v6 = vld [vmem:[#allocation6 + $0x3730] ss:$48 sps:$4 sm:$0xff]  }
 0x564   :  { %15311 = vmatpush1.bf16.msra.mxu0 %v21666_v55  ;;  %15803 = vmatpush1.bf16.msra.mxu1 %v21669_v7  ;;  %v21717_v55 = vld [vmem:[#allocation6 + $0x3738] ss:$48 sps:$4 sm:$0xff]   ;;  %v21722_v7 = vld [vmem:[#allocation6 + $0x3794] ss:$48 sps:$4 sm:$0xff]  }
 0x565   :  { %15312 = vmatprep.subr.bf16.mxu0 %v21674_v8  ;;  %15804 = vmatprep.subr.bf16.mxu1 %v21677_v12  ;;  %v21725_v8 = vld [vmem:[#allocation6 + $0x379c] ss:$48 sps:$4 sm:$0xff]   ;;  %v21720_v12 = vld [vmem:[#allocation6 + $0x3790] ss:$48 sps:$4 sm:$0xff]  }
 0x568   :  { %15313 = vmatpush1.bf16.msra.mxu0 %v21672_v14  ;;  %15805 = vmatpush1.bf16.msra.mxu1 %v21675_v17  ;;  %v21723_v14 = vld [vmem:[#allocation6 + $0x3798] ss:$48 sps:$4 sm:$0xff]   ;;  %v21728_v17 = vld [vmem:[#allocation6 + $0x37f4] ss:$48 sps:$4 sm:$0xff]  }
 0x569   :  { %15314 = vmatprep.subr.bf16.mxu0 %v21680_v56  ;;  %15806 = vmatprep.subr.bf16.mxu1 %v21683_v19  ;;  %v21731_v56 = vld [vmem:[#allocation6 + $0x37fc] ss:$48 sps:$4 sm:$0xff]   ;;  %v21726_v19 = vld [vmem:[#allocation6 + $0x37f0] ss:$48 sps:$4 sm:$0xff]  }
 0x56c   :  { %15315 = vmatpush1.bf16.msra.mxu0 %v21678_v22  ;;  %15807 = vmatpush1.bf16.msra.mxu1 %v21681_v23  ;;  %v21729_v22 = vld [vmem:[#allocation6 + $0x37f8] ss:$48 sps:$4 sm:$0xff]   ;;  %v21734_v23 = vld [vmem:[#allocation6 + $0x3854] ss:$48 sps:$4 sm:$0xff]  }
 0x56d   :  { %15316 = vmatprep.subr.bf16.mxu0 %v21686_v25  ;;  %15808 = vmatprep.subr.bf16.mxu1 %v21689_v26  ;;  %v21737_v25 = vld [vmem:[#allocation6 + $0x385c] ss:$48 sps:$4 sm:$0xff]   ;;  %v21732_v26 = vld [vmem:[#allocation6 + $0x3850] ss:$48 sps:$4 sm:$0xff]  }
 0x570   :  { %15317 = vmatpush1.bf16.msra.mxu0 %v21684_v13  ;;  %15809 = vmatpush1.bf16.msra.mxu1 %v21687_v27  ;;  %v21735_v13 = vld [vmem:[#allocation6 + $0x3858] ss:$48 sps:$4 sm:$0xff]   ;;  %v21740_v27 = vld [vmem:[#allocation6 + $0x38b4] ss:$48 sps:$4 sm:$0xff]  }
 0x571   :  { %15318 = vmatprep.subr.bf16.mxu0 %v21692_v33  ;;  %15810 = vmatprep.subr.bf16.mxu1 %v21695_v34  ;;  %v21743_v33 = vld [vmem:[#allocation6 + $0x38bc] ss:$48 sps:$4 sm:$0xff]   ;;  %v21738_v34 = vld [vmem:[#allocation6 + $0x38b0] ss:$48 sps:$4 sm:$0xff]  }
 0x574   :  { %15319 = vmatpush1.bf16.msra.mxu0 %v21690_v60  ;;  %15811 = vmatpush1.bf16.msra.mxu1 %v21693_v38  ;;  %v21741_v60 = vld [vmem:[#allocation6 + $0x38b8] ss:$48 sps:$4 sm:$0xff]   ;;  %v21746_v38 = vld [vmem:[#allocation6 + $0x3914] ss:$48 sps:$4 sm:$0xff]  }
 0x575   :  { %15329 = vmatprep.subr.bf16.mxu0 %v21698_v40  ;;  %15821 = vmatprep.subr.bf16.mxu1 %v21701_v9  ;;  %v21749_v40 = vld [vmem:[#allocation6 + $0x391c] ss:$48 sps:$4 sm:$0xff]   ;;  %v21744_v9 = vld [vmem:[#allocation6 + $0x3910] ss:$48 sps:$4 sm:$0xff]  }
 0x577   :  { %15321 = vmatmul.mubr.bf16.vlgmr.msra.gmra.mrb[4].mxu0 %v23416_v61  ;;  %15813 = vmatmul.mubr.bf16.vlgmr.msra.gmra.mrb[4].mxu1 %v23416_v61 }
 0x578   :  { %15330 = vmatpush1.bf16.msra.mxu0 %v21696_v44  ;;  %15822 = vmatpush1.bf16.msra.mxu1 %v21699_v45  ;;  %v21747_v44 = vld [vmem:[#allocation6 + $0x3918] ss:$48 sps:$4 sm:$0xff]   ;;  %v21752_v45 = vld [vmem:[#allocation6 + $0x3974] ss:$48 sps:$4 sm:$0xff]  }
 0x579   :  { %15331 = vmatprep.subr.bf16.mxu0 %v21704_v31  ;;  %15823 = vmatprep.subr.bf16.mxu1 %v21707_v41  ;;  %v21755_v31 = vld [vmem:[#allocation6 + $0x397c] ss:$48 sps:$4 sm:$0xff]   ;;  %v21750_v41 = vld [vmem:[#allocation6 + $0x3970] ss:$48 sps:$4 sm:$0xff]  }
 0x57a   :  { %15361 = vmatprep.mubr.bf16.mxu0 %v23420_v2  ;;  %15853 = vmatprep.mubr.bf16.mxu1 %v23420_v2 }
 0x57c   :  { %15332 = vmatpush1.bf16.msra.mxu0 %v21702_v49  ;;  %15824 = vmatpush1.bf16.msra.mxu1 %v21705_v50  ;;  %v21753_v49 = vld [vmem:[#allocation6 + $0x3978] ss:$48 sps:$4 sm:$0xff]   ;;  %v21758_v50 = vld [vmem:[#allocation6 + $0x39d4] ss:$48 sps:$4 sm:$0xff]  }
 0x57d   :  { %15333 = vmatprep.subr.bf16.mxu0 %v21710_v52  ;;  %15825 = vmatprep.subr.bf16.mxu1 %v21713_v53  ;;  %v21761_v52 = vld [vmem:[#allocation6 + $0x39dc] ss:$48 sps:$4 sm:$0xff]   ;;  %v21756_v53 = vld [vmem:[#allocation6 + $0x39d0] ss:$48 sps:$4 sm:$0xff]  }
 0x580   :  { %15334 = vmatpush1.bf16.msra.mxu0 %v21708_v54  ;;  %15826 = vmatpush1.bf16.msra.mxu1 %v21711_v59  ;;  %v21759_v54 = vld [vmem:[#allocation6 + $0x39d8] ss:$48 sps:$4 sm:$0xff]   ;;  %v21764_v59 = vld [vmem:[#allocation6 + $0x3a34] ss:$48 sps:$4 sm:$0xff]  }
 0x581   :  { %15335 = vmatprep.subr.bf16.mxu0 %v21716_v21  ;;  %15827 = vmatprep.subr.bf16.mxu1 %v21719_v32  ;;  %v21767_v21 = vld [vmem:[#allocation6 + $0x3a3c] ss:$48 sps:$4 sm:$0xff]   ;;  %v21762_v32 = vld [vmem:[#allocation6 + $0x3a30] ss:$48 sps:$4 sm:$0xff]  }
 0x584   :  { %15336 = vmatpush1.bf16.msra.mxu0 %v21714_v6  ;;  %15828 = vmatpush1.bf16.msra.mxu1 %v21717_v55  ;;  %v21765_v6 = vld [vmem:[#allocation6 + $0x3a38] ss:$48 sps:$4 sm:$0xff]   ;;  %v21770_v55 = vld [vmem:[#allocation6 + $0x3a94] ss:$48 sps:$4 sm:$0xff]  }
 0x585   :  { %15337 = vmatprep.subr.bf16.mxu0 %v21722_v7  ;;  %15829 = vmatprep.subr.bf16.mxu1 %v21725_v8  ;;  %v21773_v7 = vld [vmem:[#allocation6 + $0x3a9c] ss:$48 sps:$4 sm:$0xff]   ;;  %v21768_v8 = vld [vmem:[#allocation6 + $0x3a90] ss:$48 sps:$4 sm:$0xff]  }
 0x588   :  { %15338 = vmatpush1.bf16.msra.mxu0 %v21720_v12  ;;  %15830 = vmatpush1.bf16.msra.mxu1 %v21723_v14  ;;  %v21771_v12 = vld [vmem:[#allocation6 + $0x3a98] ss:$48 sps:$4 sm:$0xff]   ;;  %v21776_v14 = vld [vmem:[#allocation6 + $0x3af4] ss:$48 sps:$4 sm:$0xff]  }
 0x589   :  { %15339 = vmatprep.subr.bf16.mxu0 %v21728_v17  ;;  %15831 = vmatprep.subr.bf16.mxu1 %v21731_v56  ;;  %v21779_v17 = vld [vmem:[#allocation6 + $0x3afc] ss:$48 sps:$4 sm:$0xff]   ;;  %v21774_v56 = vld [vmem:[#allocation6 + $0x3af0] ss:$48 sps:$4 sm:$0xff]  }
 0x58c   :  { %15340 = vmatpush1.bf16.msra.mxu0 %v21726_v19  ;;  %15832 = vmatpush1.bf16.msra.mxu1 %v21729_v22  ;;  %v21777_v19 = vld [vmem:[#allocation6 + $0x3af8] ss:$48 sps:$4 sm:$0xff]   ;;  %v21782_v22 = vld [vmem:[#allocation6 + $0x3b54] ss:$48 sps:$4 sm:$0xff]  }
 0x58d   :  { %15341 = vmatprep.subr.bf16.mxu0 %v21734_v23  ;;  %15833 = vmatprep.subr.bf16.mxu1 %v21737_v25  ;;  %v21785_v23 = vld [vmem:[#allocation6 + $0x3b5c] ss:$48 sps:$4 sm:$0xff]   ;;  %v21780_v25 = vld [vmem:[#allocation6 + $0x3b50] ss:$48 sps:$4 sm:$0xff]  }
 0x590   :  { %15342 = vmatpush1.bf16.msra.mxu0 %v21732_v26  ;;  %15834 = vmatpush1.bf16.msra.mxu1 %v21735_v13  ;;  %v21783_v26 = vld [vmem:[#allocation6 + $0x3b58] ss:$48 sps:$4 sm:$0xff]   ;;  %v21788_v13 = vld [vmem:[#allocation6 + $0x3bb4] ss:$48 sps:$4 sm:$0xff]  }
 0x591   :  { %15343 = vmatprep.subr.bf16.mxu0 %v21740_v27  ;;  %15835 = vmatprep.subr.bf16.mxu1 %v21743_v33  ;;  %v21791_v27 = vld [vmem:[#allocation6 + $0x3bbc] ss:$48 sps:$4 sm:$0xff]   ;;  %v21786_v33 = vld [vmem:[#allocation6 + $0x3bb0] ss:$48 sps:$4 sm:$0xff]  }
 0x594   :  { %15344 = vmatpush1.bf16.msra.mxu0 %v21738_v34  ;;  %15836 = vmatpush1.bf16.msra.mxu1 %v21741_v60  ;;  %v21789_v34 = vld [vmem:[#allocation6 + $0x3bb8] ss:$48 sps:$4 sm:$0xff]   ;;  %v21794_v60 = vld [vmem:[#allocation6 + $0x3c14] ss:$48 sps:$4 sm:$0xff]  }
 0x595   :  { %15345 = vmatprep.subr.bf16.mxu0 %v21746_v38  ;;  %15837 = vmatprep.subr.bf16.mxu1 %v21749_v40  ;;  %v21797_v38 = vld [vmem:[#allocation6 + $0x3c1c] ss:$48 sps:$4 sm:$0xff]   ;;  %v21792_v40 = vld [vmem:[#allocation6 + $0x3c10] ss:$48 sps:$4 sm:$0xff]  }
 0x598   :  { %15346 = vmatpush1.bf16.msra.mxu0 %v21744_v9  ;;  %15838 = vmatpush1.bf16.msra.mxu1 %v21747_v44  ;;  %v21795_v9 = vld [vmem:[#allocation6 + $0x3c18] ss:$48 sps:$4 sm:$0xff]   ;;  %v21800_v44 = vld [vmem:[#allocation6 + $0x3c74] ss:$48 sps:$4 sm:$0xff]  }
 0x599   :  { %15347 = vmatprep.subr.bf16.mxu0 %v21752_v45  ;;  %15839 = vmatprep.subr.bf16.mxu1 %v21755_v31  ;;  %v21803_v45 = vld [vmem:[#allocation6 + $0x3c7c] ss:$48 sps:$4 sm:$0xff]   ;;  %v21798_v31 = vld [vmem:[#allocation6 + $0x3c70] ss:$48 sps:$4 sm:$0xff]  }
 0x59c   :  { %15348 = vmatpush1.bf16.msra.mxu0 %v21750_v41  ;;  %15840 = vmatpush1.bf16.msra.mxu1 %v21753_v49  ;;  %v21801_v41 = vld [vmem:[#allocation6 + $0x3c78] ss:$48 sps:$4 sm:$0xff]   ;;  %v21806_v49 = vld [vmem:[#allocation6 + $0x3cd4] ss:$48 sps:$4 sm:$0xff]  }
 0x59d   :  { %15349 = vmatprep.subr.bf16.mxu0 %v21758_v50  ;;  %15841 = vmatprep.subr.bf16.mxu1 %v21761_v52  ;;  %v21809_v50 = vld [vmem:[#allocation6 + $0x3cdc] ss:$48 sps:$4 sm:$0xff]   ;;  %v21804_v52 = vld [vmem:[#allocation6 + $0x3cd0] ss:$48 sps:$4 sm:$0xff]  }
 0x5a0   :  { %15350 = vmatpush1.bf16.msra.mxu0 %v21756_v53  ;;  %15842 = vmatpush1.bf16.msra.mxu1 %v21759_v54  ;;  %v21807_v53 = vld [vmem:[#allocation6 + $0x3cd8] ss:$48 sps:$4 sm:$0xff]   ;;  %v21812_v54 = vld [vmem:[#allocation6 + $0x3d34] ss:$48 sps:$4 sm:$0xff]  }
 0x5a1   :  { %15351 = vmatprep.subr.bf16.mxu0 %v21764_v59  ;;  %15843 = vmatprep.subr.bf16.mxu1 %v21767_v21  ;;  %v21815_v59 = vld [vmem:[#allocation6 + $0x3d3c] ss:$48 sps:$4 sm:$0xff]   ;;  %v21810_v21 = vld [vmem:[#allocation6 + $0x3d30] ss:$48 sps:$4 sm:$0xff]  }
 0x5a4   :  { %15352 = vmatpush1.bf16.msra.mxu0 %v21762_v32  ;;  %15844 = vmatpush1.bf16.msra.mxu1 %v21765_v6  ;;  %v21813_v32 = vld [vmem:[#allocation6 + $0x3d38] ss:$48 sps:$4 sm:$0xff]   ;;  %v21818_v6 = vld [vmem:[#allocation6 + $0x3d94] ss:$48 sps:$4 sm:$0xff]  }
 0x5a5   :  { %15353 = vmatprep.subr.bf16.mxu0 %v21770_v55  ;;  %15845 = vmatprep.subr.bf16.mxu1 %v21773_v7  ;;  %v21821_v55 = vld [vmem:[#allocation6 + $0x3d9c] ss:$48 sps:$4 sm:$0xff]   ;;  %v21816_v7 = vld [vmem:[#allocation6 + $0x3d90] ss:$48 sps:$4 sm:$0xff]  }
 0x5a8   :  { %15354 = vmatpush1.bf16.msra.mxu0 %v21768_v8  ;;  %15846 = vmatpush1.bf16.msra.mxu1 %v21771_v12  ;;  %v21819_v8 = vld [vmem:[#allocation6 + $0x3d98] ss:$48 sps:$4 sm:$0xff]   ;;  %v21824_v12 = vld [vmem:[#allocation6 + $0x3df4] ss:$48 sps:$4 sm:$0xff]  }
 0x5a9   :  { %15355 = vmatprep.subr.bf16.mxu0 %v21776_v14  ;;  %15847 = vmatprep.subr.bf16.mxu1 %v21779_v17  ;;  %v21827_v14 = vld [vmem:[#allocation6 + $0x3dfc] ss:$48 sps:$4 sm:$0xff]   ;;  %v21822_v17 = vld [vmem:[#allocation6 + $0x3df0] ss:$48 sps:$4 sm:$0xff]  }
 0x5ac   :  { %15356 = vmatpush1.bf16.msra.mxu0 %v21774_v56  ;;  %15848 = vmatpush1.bf16.msra.mxu1 %v21777_v19  ;;  %v21825_v56 = vld [vmem:[#allocation6 + $0x3df8] ss:$48 sps:$4 sm:$0xff]   ;;  %v21830_v19 = vld [vmem:[#allocation6 + $0x3e54] ss:$48 sps:$4 sm:$0xff]  }
 0x5ad   :  { %15357 = vmatprep.subr.bf16.mxu0 %v21782_v22  ;;  %15849 = vmatprep.subr.bf16.mxu1 %v21785_v23  ;;  %v21833_v22 = vld [vmem:[#allocation6 + $0x3e5c] ss:$48 sps:$4 sm:$0xff]   ;;  %v21828_v23 = vld [vmem:[#allocation6 + $0x3e50] ss:$48 sps:$4 sm:$0xff]  }
 0x5b0   :  { %15358 = vmatpush1.bf16.msra.mxu0 %v21780_v25  ;;  %15850 = vmatpush1.bf16.msra.mxu1 %v21783_v26  ;;  %v21831_v25 = vld [vmem:[#allocation6 + $0x3e58] ss:$48 sps:$4 sm:$0xff]   ;;  %v21836_v26 = vld [vmem:[#allocation6 + $0x3eb4] ss:$48 sps:$4 sm:$0xff]  }
 0x5b1   :  { %15359 = vmatprep.subr.bf16.mxu0 %v21788_v13  ;;  %15851 = vmatprep.subr.bf16.mxu1 %v21791_v27  ;;  %v21839_v13 = vld [vmem:[#allocation6 + $0x3ebc] ss:$48 sps:$4 sm:$0xff]   ;;  %v21834_v27 = vld [vmem:[#allocation6 + $0x3eb0] ss:$48 sps:$4 sm:$0xff]  }
 0x5b4   :  { %15360 = vmatpush1.bf16.msra.mxu0 %v21786_v33  ;;  %15852 = vmatpush1.bf16.msra.mxu1 %v21789_v34  ;;  %v21837_v33 = vld [vmem:[#allocation6 + $0x3eb8] ss:$48 sps:$4 sm:$0xff]   ;;  %v21842_v34 = vld [vmem:[#allocation6 + $0x3f14] ss:$48 sps:$4 sm:$0xff]  }
 0x5b5   :  { %15370 = vmatprep.subr.bf16.mxu0 %v21794_v60  ;;  %15862 = vmatprep.subr.bf16.mxu1 %v21797_v38  ;;  %v21845_v60 = vld [vmem:[#allocation6 + $0x3f1c] ss:$48 sps:$4 sm:$0xff]   ;;  %v21840_v38 = vld [vmem:[#allocation6 + $0x3f10] ss:$48 sps:$4 sm:$0xff]  }
 0x5b7   :  { %15362 = vmatmul.mubr.bf16.vlgmr.msra.gmra.mrb[4].mxu0 %v23428_v28  ;;  %15854 = vmatmul.mubr.bf16.vlgmr.msra.gmra.mrb[4].mxu1 %v23428_v28 }
 0x5b8   :  { %15371 = vmatpush1.bf16.msra.mxu0 %v21792_v40  ;;  %15863 = vmatpush1.bf16.msra.mxu1 %v21795_v9  ;;  %v21843_v40 = vld [vmem:[#allocation6 + $0x3f18] ss:$48 sps:$4 sm:$0xff]   ;;  %v21848_v9 = vld [vmem:[#allocation6 + $0x3f74] ss:$48 sps:$4 sm:$0xff]  }
 0x5b9   :  { %15372 = vmatprep.subr.bf16.mxu0 %v21800_v44  ;;  %15864 = vmatprep.subr.bf16.mxu1 %v21803_v45  ;;  %v21851_v44 = vld [vmem:[#allocation6 + $0x3f7c] ss:$48 sps:$4 sm:$0xff]   ;;  %v21846_v45 = vld [vmem:[#allocation6 + $0x3f70] ss:$48 sps:$4 sm:$0xff]  }
 0x5ba   :  { %15402 = vmatprep.mubr.bf16.mxu0 %v23434_v37  ;;  %15894 = vmatprep.mubr.bf16.mxu1 %v23434_v37 }
 0x5bc   :  { %15373 = vmatpush1.bf16.msra.mxu0 %v21798_v31  ;;  %15865 = vmatpush1.bf16.msra.mxu1 %v21801_v41  ;;  %v21849_v31 = vld [vmem:[#allocation6 + $0x3f78] ss:$48 sps:$4 sm:$0xff]   ;;  %v21854_v41 = vld [vmem:[#allocation6 + $0x3fd4] ss:$48 sps:$4 sm:$0xff]  }
 0x5bd   :  { %15374 = vmatprep.subr.bf16.mxu0 %v21806_v49  ;;  %15866 = vmatprep.subr.bf16.mxu1 %v21809_v50  ;;  %v21857_v49 = vld [vmem:[#allocation6 + $0x3fdc] ss:$48 sps:$4 sm:$0xff]   ;;  %v21852_v50 = vld [vmem:[#allocation6 + $0x3fd0] ss:$48 sps:$4 sm:$0xff]  }
 0x5c0   :  { %15375 = vmatpush1.bf16.msra.mxu0 %v21804_v52  ;;  %15867 = vmatpush1.bf16.msra.mxu1 %v21807_v53  ;;  %v21855_v52 = vld [vmem:[#allocation6 + $0x3fd8] ss:$48 sps:$4 sm:$0xff]   ;;  %v21860_v53 = vld [vmem:[#allocation6 + $0x4034] ss:$48 sps:$4 sm:$0xff]  }
 0x5c1   :  { %15376 = vmatprep.subr.bf16.mxu0 %v21812_v54  ;;  %15868 = vmatprep.subr.bf16.mxu1 %v21815_v59  ;;  %v21863_v54 = vld [vmem:[#allocation6 + $0x403c] ss:$48 sps:$4 sm:$0xff]   ;;  %v21858_v59 = vld [vmem:[#allocation6 + $0x4030] ss:$48 sps:$4 sm:$0xff]  }
 0x5c4   :  { %15377 = vmatpush1.bf16.msra.mxu0 %v21810_v21  ;;  %15869 = vmatpush1.bf16.msra.mxu1 %v21813_v32  ;;  %v21861_v21 = vld [vmem:[#allocation6 + $0x4038] ss:$48 sps:$4 sm:$0xff]   ;;  %v21866_v32 = vld [vmem:[#allocation6 + $0x4094] ss:$48 sps:$4 sm:$0xff]  }
 0x5c5   :  { %15378 = vmatprep.subr.bf16.mxu0 %v21818_v6  ;;  %15870 = vmatprep.subr.bf16.mxu1 %v21821_v55  ;;  %v21869_v6 = vld [vmem:[#allocation6 + $0x409c] ss:$48 sps:$4 sm:$0xff]   ;;  %v21864_v55 = vld [vmem:[#allocation6 + $0x4090] ss:$48 sps:$4 sm:$0xff]  }
 0x5c8   :  { %15379 = vmatpush1.bf16.msra.mxu0 %v21816_v7  ;;  %15871 = vmatpush1.bf16.msra.mxu1 %v21819_v8  ;;  %v21867_v7 = vld [vmem:[#allocation6 + $0x4098] ss:$48 sps:$4 sm:$0xff]   ;;  %v21872_v8 = vld [vmem:[#allocation6 + $0x40f4] ss:$48 sps:$4 sm:$0xff]  }
 0x5c9   :  { %15380 = vmatprep.subr.bf16.mxu0 %v21824_v12  ;;  %15872 = vmatprep.subr.bf16.mxu1 %v21827_v14  ;;  %v21875_v12 = vld [vmem:[#allocation6 + $0x40fc] ss:$48 sps:$4 sm:$0xff]   ;;  %v21870_v14 = vld [vmem:[#allocation6 + $0x40f0] ss:$48 sps:$4 sm:$0xff]  }
 0x5cc   :  { %15381 = vmatpush1.bf16.msra.mxu0 %v21822_v17  ;;  %15873 = vmatpush1.bf16.msra.mxu1 %v21825_v56  ;;  %v21873_v17 = vld [vmem:[#allocation6 + $0x40f8] ss:$48 sps:$4 sm:$0xff]   ;;  %v21878_v56 = vld [vmem:[#allocation6 + $0x4154] ss:$48 sps:$4 sm:$0xff]  }
 0x5cd   :  { %15382 = vmatprep.subr.bf16.mxu0 %v21830_v19  ;;  %15874 = vmatprep.subr.bf16.mxu1 %v21833_v22  ;;  %v21881_v19 = vld [vmem:[#allocation6 + $0x415c] ss:$48 sps:$4 sm:$0xff]   ;;  %v21876_v22 = vld [vmem:[#allocation6 + $0x4150] ss:$48 sps:$4 sm:$0xff]  }
 0x5d0   :  { %15383 = vmatpush1.bf16.msra.mxu0 %v21828_v23  ;;  %15875 = vmatpush1.bf16.msra.mxu1 %v21831_v25  ;;  %v21879_v23 = vld [vmem:[#allocation6 + $0x4158] ss:$48 sps:$4 sm:$0xff]   ;;  %v21884_v25 = vld [vmem:[#allocation6 + $0x41b4] ss:$48 sps:$4 sm:$0xff]  }
 0x5d1   :  { %15384 = vmatprep.subr.bf16.mxu0 %v21836_v26  ;;  %15876 = vmatprep.subr.bf16.mxu1 %v21839_v13  ;;  %v21887_v26 = vld [vmem:[#allocation6 + $0x41bc] ss:$48 sps:$4 sm:$0xff]   ;;  %v21882_v13 = vld [vmem:[#allocation6 + $0x41b0] ss:$48 sps:$4 sm:$0xff]  }
 0x5d4   :  { %15385 = vmatpush1.bf16.msra.mxu0 %v21834_v27  ;;  %15877 = vmatpush1.bf16.msra.mxu1 %v21837_v33  ;;  %v21885_v27 = vld [vmem:[#allocation6 + $0x41b8] ss:$48 sps:$4 sm:$0xff]   ;;  %v21890_v33 = vld [vmem:[#allocation6 + $0x4214] ss:$48 sps:$4 sm:$0xff]  }
 0x5d5   :  { %15386 = vmatprep.subr.bf16.mxu0 %v21842_v34  ;;  %15878 = vmatprep.subr.bf16.mxu1 %v21845_v60  ;;  %v21893_v34 = vld [vmem:[#allocation6 + $0x421c] ss:$48 sps:$4 sm:$0xff]   ;;  %v21888_v60 = vld [vmem:[#allocation6 + $0x4210] ss:$48 sps:$4 sm:$0xff]  }
 0x5d8   :  { %15387 = vmatpush1.bf16.msra.mxu0 %v21840_v38  ;;  %15879 = vmatpush1.bf16.msra.mxu1 %v21843_v40  ;;  %v21891_v38 = vld [vmem:[#allocation6 + $0x4218] ss:$48 sps:$4 sm:$0xff]   ;;  %v21896_v40 = vld [vmem:[#allocation6 + $0x4274] ss:$48 sps:$4 sm:$0xff]  }
 0x5d9   :  { %15388 = vmatprep.subr.bf16.mxu0 %v21848_v9  ;;  %15880 = vmatprep.subr.bf16.mxu1 %v21851_v44  ;;  %v21899_v9 = vld [vmem:[#allocation6 + $0x427c] ss:$48 sps:$4 sm:$0xff]   ;;  %v21894_v44 = vld [vmem:[#allocation6 + $0x4270] ss:$48 sps:$4 sm:$0xff]  }
 0x5dc   :  { %15389 = vmatpush1.bf16.msra.mxu0 %v21846_v45  ;;  %15881 = vmatpush1.bf16.msra.mxu1 %v21849_v31  ;;  %v21897_v45 = vld [vmem:[#allocation6 + $0x4278] ss:$48 sps:$4 sm:$0xff]   ;;  %v21902_v31 = vld [vmem:[#allocation6 + $0x42d4] ss:$48 sps:$4 sm:$0xff]  }
 0x5dd   :  { %15390 = vmatprep.subr.bf16.mxu0 %v21854_v41  ;;  %15882 = vmatprep.subr.bf16.mxu1 %v21857_v49  ;;  %v21905_v41 = vld [vmem:[#allocation6 + $0x42dc] ss:$48 sps:$4 sm:$0xff]   ;;  %v21900_v49 = vld [vmem:[#allocation6 + $0x42d0] ss:$48 sps:$4 sm:$0xff]  }
 0x5e0   :  { %15391 = vmatpush1.bf16.msra.mxu0 %v21852_v50  ;;  %15883 = vmatpush1.bf16.msra.mxu1 %v21855_v52  ;;  %v21903_v50 = vld [vmem:[#allocation6 + $0x42d8] ss:$48 sps:$4 sm:$0xff]   ;;  %v21908_v52 = vld [vmem:[#allocation6 + $0x4334] ss:$48 sps:$4 sm:$0xff]  }
 0x5e1   :  { %15392 = vmatprep.subr.bf16.mxu0 %v21860_v53  ;;  %15884 = vmatprep.subr.bf16.mxu1 %v21863_v54  ;;  %v21911_v53 = vld [vmem:[#allocation6 + $0x433c] ss:$48 sps:$4 sm:$0xff]   ;;  %v21906_v54 = vld [vmem:[#allocation6 + $0x4330] ss:$48 sps:$4 sm:$0xff]  }
 0x5e4   :  { %15393 = vmatpush1.bf16.msra.mxu0 %v21858_v59  ;;  %15885 = vmatpush1.bf16.msra.mxu1 %v21861_v21  ;;  %v21909_v59 = vld [vmem:[#allocation6 + $0x4338] ss:$48 sps:$4 sm:$0xff]   ;;  %v21914_v21 = vld [vmem:[#allocation6 + $0x4394] ss:$48 sps:$4 sm:$0xff]  }
 0x5e5   :  { %15394 = vmatprep.subr.bf16.mxu0 %v21866_v32  ;;  %15886 = vmatprep.subr.bf16.mxu1 %v21869_v6  ;;  %v21917_v32 = vld [vmem:[#allocation6 + $0x439c] ss:$48 sps:$4 sm:$0xff]   ;;  %v21912_v6 = vld [vmem:[#allocation6 + $0x4390] ss:$48 sps:$4 sm:$0xff]  }
 0x5e8   :  { %15395 = vmatpush1.bf16.msra.mxu0 %v21864_v55  ;;  %15887 = vmatpush1.bf16.msra.mxu1 %v21867_v7  ;;  %v21915_v55 = vld [vmem:[#allocation6 + $0x4398] ss:$48 sps:$4 sm:$0xff]   ;;  %v21920_v7 = vld [vmem:[#allocation6 + $0x43f4] ss:$48 sps:$4 sm:$0xff]  }
 0x5e9   :  { %15396 = vmatprep.subr.bf16.mxu0 %v21872_v8  ;;  %15888 = vmatprep.subr.bf16.mxu1 %v21875_v12  ;;  %v21923_v8 = vld [vmem:[#allocation6 + $0x43fc] ss:$48 sps:$4 sm:$0xff]   ;;  %v21918_v12 = vld [vmem:[#allocation6 + $0x43f0] ss:$48 sps:$4 sm:$0xff]  }
 0x5ec   :  { %15397 = vmatpush1.bf16.msra.mxu0 %v21870_v14  ;;  %15889 = vmatpush1.bf16.msra.mxu1 %v21873_v17  ;;  %v21921_v14 = vld [vmem:[#allocation6 + $0x43f8] ss:$48 sps:$4 sm:$0xff]   ;;  %v21926_v17 = vld [vmem:[#allocation6 + $0x4454] ss:$48 sps:$4 sm:$0xff]  }
 0x5ed   :  { %15398 = vmatprep.subr.bf16.mxu0 %v21878_v56  ;;  %15890 = vmatprep.subr.bf16.mxu1 %v21881_v19  ;;  %v21929_v56 = vld [vmem:[#allocation6 + $0x445c] ss:$48 sps:$4 sm:$0xff]   ;;  %v21924_v19 = vld [vmem:[#allocation6 + $0x4450] ss:$48 sps:$4 sm:$0xff]  }
 0x5f0   :  { %15399 = vmatpush1.bf16.msra.mxu0 %v21876_v22  ;;  %15891 = vmatpush1.bf16.msra.mxu1 %v21879_v23  ;;  %v21927_v22 = vld [vmem:[#allocation6 + $0x4458] ss:$48 sps:$4 sm:$0xff]   ;;  %v21932_v23 = vld [vmem:[#allocation6 + $0x44b4] ss:$48 sps:$4 sm:$0xff]  }
 0x5f1   :  { %15400 = vmatprep.subr.bf16.mxu0 %v21884_v25  ;;  %15892 = vmatprep.subr.bf16.mxu1 %v21887_v26  ;;  %v21935_v25 = vld [vmem:[#allocation6 + $0x44bc] ss:$48 sps:$4 sm:$0xff]   ;;  %v21930_v26 = vld [vmem:[#allocation6 + $0x44b0] ss:$48 sps:$4 sm:$0xff]  }
 0x5f4   :  { %15401 = vmatpush1.bf16.msra.mxu0 %v21882_v13  ;;  %15893 = vmatpush1.bf16.msra.mxu1 %v21885_v27  ;;  %v21933_v13 = vld [vmem:[#allocation6 + $0x44b8] ss:$48 sps:$4 sm:$0xff]   ;;  %v21938_v27 = vld [vmem:[#allocation6 + $0x4514] ss:$48 sps:$4 sm:$0xff]  }
 0x5f5   :  { %15411 = vmatprep.subr.bf16.mxu0 %v21890_v33  ;;  %15903 = vmatprep.subr.bf16.mxu1 %v21893_v34  ;;  %v21941_v33 = vld [vmem:[#allocation6 + $0x451c] ss:$48 sps:$4 sm:$0xff]   ;;  %v21936_v34 = vld [vmem:[#allocation6 + $0x4510] ss:$48 sps:$4 sm:$0xff]  }
 0x5f7   :  { %15403 = vmatmul.mubr.bf16.vlgmr.msra.gmra.mrb[4].mxu0 %v23444_v63  ;;  %15895 = vmatmul.mubr.bf16.vlgmr.msra.gmra.mrb[4].mxu1 %v23444_v63 }
 0x5f8   :  { %15412 = vmatpush1.bf16.msra.mxu0 %v21888_v60  ;;  %15904 = vmatpush1.bf16.msra.mxu1 %v21891_v38  ;;  %v21939_v60 = vld [vmem:[#allocation6 + $0x4518] ss:$48 sps:$4 sm:$0xff]   ;;  %v21944_v38 = vld [vmem:[#allocation6 + $0x4574] ss:$48 sps:$4 sm:$0xff]  }
 0x5f9   :  { %15413 = vmatprep.subr.bf16.mxu0 %v21896_v40  ;;  %15905 = vmatprep.subr.bf16.mxu1 %v21899_v9  ;;  %v21947_v40 = vld [vmem:[#allocation6 + $0x457c] ss:$48 sps:$4 sm:$0xff]   ;;  %v21942_v9 = vld [vmem:[#allocation6 + $0x4570] ss:$48 sps:$4 sm:$0xff]  }
 0x5fa   :  { %15443 = vmatprep.mubr.bf16.mxu0 %v23448_v4  ;;  %15935 = vmatprep.mubr.bf16.mxu1 %v23448_v4 }
 0x5fc   :  { %15414 = vmatpush1.bf16.msra.mxu0 %v21894_v44  ;;  %15906 = vmatpush1.bf16.msra.mxu1 %v21897_v45  ;;  %v21945_v44 = vld [vmem:[#allocation6 + $0x4578] ss:$48 sps:$4 sm:$0xff]   ;;  %v21950_v45 = vld [vmem:[#allocation6 + $0x45d4] ss:$48 sps:$4 sm:$0xff]  }
 0x5fd   :  { %15415 = vmatprep.subr.bf16.mxu0 %v21902_v31  ;;  %15907 = vmatprep.subr.bf16.mxu1 %v21905_v41  ;;  %v21953_v31 = vld [vmem:[#allocation6 + $0x45dc] ss:$48 sps:$4 sm:$0xff]   ;;  %v21948_v41 = vld [vmem:[#allocation6 + $0x45d0] ss:$48 sps:$4 sm:$0xff]  }
 0x600   :  { %15416 = vmatpush1.bf16.msra.mxu0 %v21900_v49  ;;  %15908 = vmatpush1.bf16.msra.mxu1 %v21903_v50  ;;  %v21951_v49 = vld [vmem:[#allocation6 + $0x45d8] ss:$48 sps:$4 sm:$0xff]   ;;  %v21956_v50 = vld [vmem:[#allocation6 + $0x4634] ss:$48 sps:$4 sm:$0xff]  }
 0x601   :  { %15417 = vmatprep.subr.bf16.mxu0 %v21908_v52  ;;  %15909 = vmatprep.subr.bf16.mxu1 %v21911_v53  ;;  %v21959_v52 = vld [vmem:[#allocation6 + $0x463c] ss:$48 sps:$4 sm:$0xff]   ;;  %v21954_v53 = vld [vmem:[#allocation6 + $0x4630] ss:$48 sps:$4 sm:$0xff]  }
 0x604   :  { %15418 = vmatpush1.bf16.msra.mxu0 %v21906_v54  ;;  %15910 = vmatpush1.bf16.msra.mxu1 %v21909_v59  ;;  %v21957_v54 = vld [vmem:[#allocation6 + $0x4638] ss:$48 sps:$4 sm:$0xff]   ;;  %v21962_v59 = vld [vmem:[#allocation6 + $0x4694] ss:$48 sps:$4 sm:$0xff]  }
 0x605   :  { %15419 = vmatprep.subr.bf16.mxu0 %v21914_v21  ;;  %15911 = vmatprep.subr.bf16.mxu1 %v21917_v32  ;;  %v21965_v21 = vld [vmem:[#allocation6 + $0x469c] ss:$48 sps:$4 sm:$0xff]   ;;  %v21960_v32 = vld [vmem:[#allocation6 + $0x4690] ss:$48 sps:$4 sm:$0xff]  }
 0x608   :  { %15420 = vmatpush1.bf16.msra.mxu0 %v21912_v6  ;;  %15912 = vmatpush1.bf16.msra.mxu1 %v21915_v55  ;;  %v21963_v6 = vld [vmem:[#allocation6 + $0x4698] ss:$48 sps:$4 sm:$0xff]   ;;  %v21968_v55 = vld [vmem:[#allocation6 + $0x46f4] ss:$48 sps:$4 sm:$0xff]  }
 0x609   :  { %15421 = vmatprep.subr.bf16.mxu0 %v21920_v7  ;;  %15913 = vmatprep.subr.bf16.mxu1 %v21923_v8  ;;  %v21971_v7 = vld [vmem:[#allocation6 + $0x46fc] ss:$48 sps:$4 sm:$0xff]   ;;  %v21966_v8 = vld [vmem:[#allocation6 + $0x46f0] ss:$48 sps:$4 sm:$0xff]  }
 0x60c   :  { %15422 = vmatpush1.bf16.msra.mxu0 %v21918_v12  ;;  %15914 = vmatpush1.bf16.msra.mxu1 %v21921_v14  ;;  %v21969_v12 = vld [vmem:[#allocation6 + $0x46f8] ss:$48 sps:$4 sm:$0xff]   ;;  %v21974_v14 = vld [vmem:[#allocation6 + $0x4754] ss:$48 sps:$4 sm:$0xff]  }
 0x60d   :  { %15423 = vmatprep.subr.bf16.mxu0 %v21926_v17  ;;  %15915 = vmatprep.subr.bf16.mxu1 %v21929_v56  ;;  %v21977_v17 = vld [vmem:[#allocation6 + $0x475c] ss:$48 sps:$4 sm:$0xff]   ;;  %v21972_v56 = vld [vmem:[#allocation6 + $0x4750] ss:$48 sps:$4 sm:$0xff]  }
 0x610   :  { %15424 = vmatpush1.bf16.msra.mxu0 %v21924_v19  ;;  %15916 = vmatpush1.bf16.msra.mxu1 %v21927_v22  ;;  %v21975_v19 = vld [vmem:[#allocation6 + $0x4758] ss:$48 sps:$4 sm:$0xff]   ;;  %v21980_v22 = vld [vmem:[#allocation6 + $0x47b4] ss:$48 sps:$4 sm:$0xff]  }
 0x611   :  { %15425 = vmatprep.subr.bf16.mxu0 %v21932_v23  ;;  %15917 = vmatprep.subr.bf16.mxu1 %v21935_v25  ;;  %v21983_v23 = vld [vmem:[#allocation6 + $0x47bc] ss:$48 sps:$4 sm:$0xff]   ;;  %v21978_v25 = vld [vmem:[#allocation6 + $0x47b0] ss:$48 sps:$4 sm:$0xff]  }
 0x614   :  { %15426 = vmatpush1.bf16.msra.mxu0 %v21930_v26  ;;  %15918 = vmatpush1.bf16.msra.mxu1 %v21933_v13  ;;  %v21981_v26 = vld [vmem:[#allocation6 + $0x47b8] ss:$48 sps:$4 sm:$0xff]   ;;  %v21986_v13 = vld [vmem:[#allocation6 + $0x24] ss:$48 sps:$4 sm:$0xff]  }
 0x615   :  { %15427 = vmatprep.subr.bf16.mxu0 %v21938_v27  ;;  %15919 = vmatprep.subr.bf16.mxu1 %v21941_v33  ;;  %v21989_v27 = vld [vmem:[#allocation6 + $0x2c] ss:$48 sps:$4 sm:$0xff]   ;;  %v21984_v33 = vld [vmem:[#allocation6 + $0x20] ss:$48 sps:$4 sm:$0xff]  }
 0x618   :  { %15428 = vmatpush1.bf16.msra.mxu0 %v21936_v34  ;;  %15920 = vmatpush1.bf16.msra.mxu1 %v21939_v60  ;;  %v21987_v34 = vld [vmem:[#allocation6 + $0x28] ss:$48 sps:$4 sm:$0xff]   ;;  %v21992_v60 = vld [vmem:[#allocation6 + $0x84] ss:$48 sps:$4 sm:$0xff]  }
 0x619   :  { %15429 = vmatprep.subr.bf16.mxu0 %v21944_v38  ;;  %15921 = vmatprep.subr.bf16.mxu1 %v21947_v40  ;;  %v21995_v38 = vld [vmem:[#allocation6 + $0x8c] ss:$48 sps:$4 sm:$0xff]   ;;  %v21990_v40 = vld [vmem:[#allocation6 + $0x80] ss:$48 sps:$4 sm:$0xff]  }
 0x61c   :  { %15430 = vmatpush1.bf16.msra.mxu0 %v21942_v9  ;;  %15922 = vmatpush1.bf16.msra.mxu1 %v21945_v44  ;;  %v21993_v9 = vld [vmem:[#allocation6 + $0x88] ss:$48 sps:$4 sm:$0xff]   ;;  %v21998_v44 = vld [vmem:[#allocation6 + $0xe4] ss:$48 sps:$4 sm:$0xff]  }
 0x61d   :  { %15431 = vmatprep.subr.bf16.mxu0 %v21950_v45  ;;  %15923 = vmatprep.subr.bf16.mxu1 %v21953_v31  ;;  %v22001_v45 = vld [vmem:[#allocation6 + $0xec] ss:$48 sps:$4 sm:$0xff]   ;;  %v21996_v31 = vld [vmem:[#allocation6 + $0xe0] ss:$48 sps:$4 sm:$0xff]  }
 0x620   :  { %15432 = vmatpush1.bf16.msra.mxu0 %v21948_v41  ;;  %15924 = vmatpush1.bf16.msra.mxu1 %v21951_v49  ;;  %v21999_v41 = vld [vmem:[#allocation6 + $0xe8] ss:$48 sps:$4 sm:$0xff]   ;;  %v22004_v49 = vld [vmem:[#allocation6 + $0x144] ss:$48 sps:$4 sm:$0xff]  }
 0x621   :  { %15433 = vmatprep.subr.bf16.mxu0 %v21956_v50  ;;  %15925 = vmatprep.subr.bf16.mxu1 %v21959_v52  ;;  %v22007_v50 = vld [vmem:[#allocation6 + $0x14c] ss:$48 sps:$4 sm:$0xff]   ;;  %v22002_v52 = vld [vmem:[#allocation6 + $0x140] ss:$48 sps:$4 sm:$0xff]  }
 0x624   :  { %15434 = vmatpush1.bf16.msra.mxu0 %v21954_v53  ;;  %15926 = vmatpush1.bf16.msra.mxu1 %v21957_v54  ;;  %v22005_v53 = vld [vmem:[#allocation6 + $0x148] ss:$48 sps:$4 sm:$0xff]   ;;  %v22010_v54 = vld [vmem:[#allocation6 + $0x1a4] ss:$48 sps:$4 sm:$0xff]  }
 0x625   :  { %15435 = vmatprep.subr.bf16.mxu0 %v21962_v59  ;;  %15927 = vmatprep.subr.bf16.mxu1 %v21965_v21  ;;  %v22013_v59 = vld [vmem:[#allocation6 + $0x1ac] ss:$48 sps:$4 sm:$0xff]   ;;  %v22008_v21 = vld [vmem:[#allocation6 + $0x1a0] ss:$48 sps:$4 sm:$0xff]  }
 0x628   :  { %15436 = vmatpush1.bf16.msra.mxu0 %v21960_v32  ;;  %15928 = vmatpush1.bf16.msra.mxu1 %v21963_v6  ;;  %v22016_v32 = vld [vmem:[#allocation6 + $0x204] ss:$48 sps:$4 sm:$0xff]   ;;  %v22019_v6 = vld [vmem:[#allocation6 + $0x20c] ss:$48 sps:$4 sm:$0xff]  }
 0x629   :  { %15437 = vmatprep.subr.bf16.mxu0 %v21968_v55  ;;  %15929 = vmatprep.subr.bf16.mxu1 %v21971_v7  ;;  %v22014_v55 = vld [vmem:[#allocation6 + $0x200] ss:$48 sps:$4 sm:$0xff]   ;;  %v22017_v7 = vld [vmem:[#allocation6 + $0x208] ss:$48 sps:$4 sm:$0xff]  }
 0x62c   :  { %15438 = vmatpush1.bf16.msra.mxu0 %v21966_v8  ;;  %15930 = vmatpush1.bf16.msra.mxu1 %v21969_v12  ;;  %v22022_v8 = vld [vmem:[#allocation6 + $0x264] ss:$48 sps:$4 sm:$0xff]   ;;  %v22025_v12 = vld [vmem:[#allocation6 + $0x26c] ss:$48 sps:$4 sm:$0xff]  }
 0x62d   :  { %15439 = vmatprep.subr.bf16.mxu0 %v21974_v14  ;;  %15931 = vmatprep.subr.bf16.mxu1 %v21977_v17  ;;  %v22020_v14 = vld [vmem:[#allocation6 + $0x260] ss:$48 sps:$4 sm:$0xff]   ;;  %v22023_v17 = vld [vmem:[#allocation6 + $0x268] ss:$48 sps:$4 sm:$0xff]  }
 0x630   :  { %15440 = vmatpush1.bf16.msra.mxu0 %v21972_v56  ;;  %15932 = vmatpush1.bf16.msra.mxu1 %v21975_v19  ;;  %v22028_v56 = vld [vmem:[#allocation6 + $0x2c4] ss:$48 sps:$4 sm:$0xff]   ;;  %v22031_v19 = vld [vmem:[#allocation6 + $0x2cc] ss:$48 sps:$4 sm:$0xff]  }
 0x631   :  { %15441 = vmatprep.subr.bf16.mxu0 %v21980_v22  ;;  %15933 = vmatprep.subr.bf16.mxu1 %v21983_v23  ;;  %v22026_v22 = vld [vmem:[#allocation6 + $0x2c0] ss:$48 sps:$4 sm:$0xff]   ;;  %v22029_v23 = vld [vmem:[#allocation6 + $0x2c8] ss:$48 sps:$4 sm:$0xff]  }
 0x634   :  { %15442 = vmatpush1.bf16.msra.mxu0 %v21978_v25  ;;  %15934 = vmatpush1.bf16.msra.mxu1 %v21981_v26  ;;  %v22034_v25 = vld [vmem:[#allocation6 + $0x324] ss:$48 sps:$4 sm:$0xff]   ;;  %v22037_v26 = vld [vmem:[#allocation6 + $0x32c] ss:$48 sps:$4 sm:$0xff]  }
 0x635   :  { %15944 = vmatprep.subr.bf16.mxu0 %v21986_v13  ;;  %16436 = vmatprep.subr.bf16.mxu1 %v21989_v27  ;;  %v22032_v13 = vld [vmem:[#allocation6 + $0x320] ss:$48 sps:$4 sm:$0xff]   ;;  %v22035_v27 = vld [vmem:[#allocation6 + $0x328] ss:$48 sps:$4 sm:$0xff]  }
 0x637   :  { %15444 = vmatmul.mubr.bf16.vlgmr.msra.gmra.mrb[4].mxu0 %v23456_v39  ;;  %15936 = vmatmul.mubr.bf16.vlgmr.msra.gmra.mrb[4].mxu1 %v23456_v39 }
 0x638   :  { %15945 = vmatpush1.bf16.msra.mxu0 %v21984_v33  ;;  %16437 = vmatpush1.bf16.msra.mxu1 %v21987_v34  ;;  %v22040_v33 = vld [vmem:[#allocation6 + $0x384] ss:$48 sps:$4 sm:$0xff]   ;;  %v22043_v34 = vld [vmem:[#allocation6 + $0x38c] ss:$48 sps:$4 sm:$0xff]  }
 0x639   :  { %15946 = vmatprep.subr.bf16.mxu0 %v21992_v60  ;;  %16438 = vmatprep.subr.bf16.mxu1 %v21995_v38  ;;  %v22038_v60 = vld [vmem:[#allocation6 + $0x380] ss:$48 sps:$4 sm:$0xff]   ;;  %v22041_v38 = vld [vmem:[#allocation6 + $0x388] ss:$48 sps:$4 sm:$0xff]  }
 0x63a   :  { %15976 = vmatprep.mubr.bf16.mxu0 %v23298_v48  ;;  %16468 = vmatprep.mubr.bf16.mxu1 %v23298_v48  ;;  %v22011_v48 = vld [vmem:[#allocation6 + $0x1a8] ss:$48 sps:$4 sm:$0xff]  }
 0x63c   :  { %15947 = vmatpush1.bf16.msra.mxu0 %v21990_v40  ;;  %16439 = vmatpush1.bf16.msra.mxu1 %v21993_v9  ;;  %v22046_v40 = vld [vmem:[#allocation6 + $0x3e4] ss:$48 sps:$4 sm:$0xff]   ;;  %v22049_v9 = vld [vmem:[#allocation6 + $0x3ec] ss:$48 sps:$4 sm:$0xff]  }
 0x63d   :  { %15948 = vmatprep.subr.bf16.mxu0 %v21998_v44  ;;  %16440 = vmatprep.subr.bf16.mxu1 %v22001_v45  ;;  %v22044_v44 = vld [vmem:[#allocation6 + $0x3e0] ss:$48 sps:$4 sm:$0xff]   ;;  %v22047_v45 = vld [vmem:[#allocation6 + $0x3e8] ss:$48 sps:$4 sm:$0xff]  }
 0x640   :  { %15949 = vmatpush1.bf16.msra.mxu0 %v21996_v31  ;;  %16441 = vmatpush1.bf16.msra.mxu1 %v21999_v41  ;;  %v22052_v31 = vld [vmem:[#allocation6 + $0x444] ss:$48 sps:$4 sm:$0xff]   ;;  %v22055_v41 = vld [vmem:[#allocation6 + $0x44c] ss:$48 sps:$4 sm:$0xff]  }
 0x641   :  { %15950 = vmatprep.subr.bf16.mxu0 %v22004_v49  ;;  %16442 = vmatprep.subr.bf16.mxu1 %v22007_v50  ;;  %v22050_v49 = vld [vmem:[#allocation6 + $0x440] ss:$48 sps:$4 sm:$0xff]   ;;  %v22053_v50 = vld [vmem:[#allocation6 + $0x448] ss:$48 sps:$4 sm:$0xff]  }
 0x644   :  { %15951 = vmatpush1.bf16.msra.mxu0 %v22002_v52  ;;  %16443 = vmatpush1.bf16.msra.mxu1 %v22005_v53  ;;  %v22058_v52 = vld [vmem:[#allocation6 + $0x4a4] ss:$48 sps:$4 sm:$0xff]   ;;  %v22061_v53 = vld [vmem:[#allocation6 + $0x4ac] ss:$48 sps:$4 sm:$0xff]  }
 0x645   :  { %15952 = vmatprep.subr.bf16.mxu0 %v22010_v54  ;;  %16444 = vmatprep.subr.bf16.mxu1 %v22013_v59  ;;  %v22056_v54 = vld [vmem:[#allocation6 + $0x4a0] ss:$48 sps:$4 sm:$0xff]   ;;  %v22059_v59 = vld [vmem:[#allocation6 + $0x4a8] ss:$48 sps:$4 sm:$0xff]  }
 0x648   :  { %15953 = vmatpush1.bf16.msra.mxu0 %v22008_v21  ;;  %16445 = vmatpush1.bf16.msra.mxu1 %v22011_v48  ;;  %v22064_v21 = vld [vmem:[#allocation6 + $0x504] ss:$48 sps:$4 sm:$0xff]   ;;  %v22067_v48 = vld [vmem:[#allocation6 + $0x50c] ss:$48 sps:$4 sm:$0xff]  }
 0x649   :  { %15954 = vmatprep.subr.bf16.mxu0 %v22016_v32  ;;  %16446 = vmatprep.subr.bf16.mxu1 %v22019_v6  ;;  %v22062_v32 = vld [vmem:[#allocation6 + $0x500] ss:$48 sps:$4 sm:$0xff]   ;;  %v22065_v6 = vld [vmem:[#allocation6 + $0x508] ss:$48 sps:$4 sm:$0xff]  }
 0x64c   :  { %15955 = vmatpush1.bf16.msra.mxu0 %v22014_v55  ;;  %16447 = vmatpush1.bf16.msra.mxu1 %v22017_v7  ;;  %v22070_v55 = vld [vmem:[#allocation6 + $0x564] ss:$48 sps:$4 sm:$0xff]   ;;  %v22073_v7 = vld [vmem:[#allocation6 + $0x56c] ss:$48 sps:$4 sm:$0xff]  }
 0x64d   :  { %15956 = vmatprep.subr.bf16.mxu0 %v22022_v8  ;;  %16448 = vmatprep.subr.bf16.mxu1 %v22025_v12  ;;  %v22068_v8 = vld [vmem:[#allocation6 + $0x560] ss:$48 sps:$4 sm:$0xff]   ;;  %v22071_v12 = vld [vmem:[#allocation6 + $0x568] ss:$48 sps:$4 sm:$0xff]  }
 0x650   :  { %15957 = vmatpush1.bf16.msra.mxu0 %v22020_v14  ;;  %16449 = vmatpush1.bf16.msra.mxu1 %v22023_v17  ;;  %v22076_v14 = vld [vmem:[#allocation6 + $0x5c4] ss:$48 sps:$4 sm:$0xff]   ;;  %v22079_v17 = vld [vmem:[#allocation6 + $0x5cc] ss:$48 sps:$4 sm:$0xff]  }
 0x651   :  { %15958 = vmatprep.subr.bf16.mxu0 %v22028_v56  ;;  %16450 = vmatprep.subr.bf16.mxu1 %v22031_v19  ;;  %v22074_v56 = vld [vmem:[#allocation6 + $0x5c0] ss:$48 sps:$4 sm:$0xff]   ;;  %v22077_v19 = vld [vmem:[#allocation6 + $0x5c8] ss:$48 sps:$4 sm:$0xff]  }
 0x654   :  { %15959 = vmatpush1.bf16.msra.mxu0 %v22026_v22  ;;  %16451 = vmatpush1.bf16.msra.mxu1 %v22029_v23  ;;  %v22082_v22 = vld [vmem:[#allocation6 + $0x624] ss:$48 sps:$4 sm:$0xff]   ;;  %v22085_v23 = vld [vmem:[#allocation6 + $0x62c] ss:$48 sps:$4 sm:$0xff]  }
 0x655   :  { %15960 = vmatprep.subr.bf16.mxu0 %v22034_v25  ;;  %16452 = vmatprep.subr.bf16.mxu1 %v22037_v26  ;;  %v22080_v25 = vld [vmem:[#allocation6 + $0x620] ss:$48 sps:$4 sm:$0xff]   ;;  %v22083_v26 = vld [vmem:[#allocation6 + $0x628] ss:$48 sps:$4 sm:$0xff]  }
 0x658   :  { %15961 = vmatpush1.bf16.msra.mxu0 %v22032_v13  ;;  %16453 = vmatpush1.bf16.msra.mxu1 %v22035_v27  ;;  %v22088_v13 = vld [vmem:[#allocation6 + $0x684] ss:$48 sps:$4 sm:$0xff]   ;;  %v22091_v27 = vld [vmem:[#allocation6 + $0x68c] ss:$48 sps:$4 sm:$0xff]  }
 0x659   :  { %15962 = vmatprep.subr.bf16.mxu0 %v22040_v33  ;;  %16454 = vmatprep.subr.bf16.mxu1 %v22043_v34  ;;  %v22086_v33 = vld [vmem:[#allocation6 + $0x680] ss:$48 sps:$4 sm:$0xff]   ;;  %v22089_v34 = vld [vmem:[#allocation6 + $0x688] ss:$48 sps:$4 sm:$0xff]  }
 0x65c   :  { %15963 = vmatpush1.bf16.msra.mxu0 %v22038_v60  ;;  %16455 = vmatpush1.bf16.msra.mxu1 %v22041_v38  ;;  %v22094_v60 = vld [vmem:[#allocation6 + $0x6e4] ss:$48 sps:$4 sm:$0xff]   ;;  %v22097_v38 = vld [vmem:[#allocation6 + $0x6ec] ss:$48 sps:$4 sm:$0xff]  }
 0x65d   :  { %15964 = vmatprep.subr.bf16.mxu0 %v22046_v40  ;;  %16456 = vmatprep.subr.bf16.mxu1 %v22049_v9  ;;  %v22092_v40 = vld [vmem:[#allocation6 + $0x6e0] ss:$48 sps:$4 sm:$0xff]   ;;  %v22095_v9 = vld [vmem:[#allocation6 + $0x6e8] ss:$48 sps:$4 sm:$0xff]  }
 0x660   :  { %15965 = vmatpush1.bf16.msra.mxu0 %v22044_v44  ;;  %16457 = vmatpush1.bf16.msra.mxu1 %v22047_v45  ;;  %v22100_v44 = vld [vmem:[#allocation6 + $0x744] ss:$48 sps:$4 sm:$0xff]   ;;  %v22098_v45 = vld [vmem:[#allocation6 + $0x740] ss:$48 sps:$4 sm:$0xff]  }
 0x661   :  { %15966 = vmatprep.subr.bf16.mxu0 %v22052_v31  ;;  %16458 = vmatprep.subr.bf16.mxu1 %v22055_v41  ;;  %v22101_v31 = vld [vmem:[#allocation6 + $0x748] ss:$48 sps:$4 sm:$0xff]   ;;  %v22106_v41 = vld [vmem:[#allocation6 + $0x7a4] ss:$48 sps:$4 sm:$0xff]  }
 0x664   :  { %15967 = vmatpush1.bf16.msra.mxu0 %v22050_v49  ;;  %16459 = vmatpush1.bf16.msra.mxu1 %v22053_v50  ;;  %v22109_v49 = vld [vmem:[#allocation6 + $0x7ac] ss:$48 sps:$4 sm:$0xff]   ;;  %v22104_v50 = vld [vmem:[#allocation6 + $0x7a0] ss:$48 sps:$4 sm:$0xff]  }
 0x665   :  { %15968 = vmatprep.subr.bf16.mxu0 %v22058_v52  ;;  %16460 = vmatprep.subr.bf16.mxu1 %v22061_v53  ;;  %v22112_v52 = vld [vmem:[#allocation6 + $0x804] ss:$48 sps:$4 sm:$0xff]   ;;  %v22115_v53 = vld [vmem:[#allocation6 + $0x80c] ss:$48 sps:$4 sm:$0xff]  }
 0x668   :  { %15969 = vmatpush1.bf16.msra.mxu0 %v22056_v54  ;;  %16461 = vmatpush1.bf16.msra.mxu1 %v22059_v59  ;;  %v22110_v54 = vld [vmem:[#allocation6 + $0x800] ss:$48 sps:$4 sm:$0xff]   ;;  %v22113_v59 = vld [vmem:[#allocation6 + $0x808] ss:$48 sps:$4 sm:$0xff]  }
 0x669   :  { %15970 = vmatprep.subr.bf16.mxu0 %v22064_v21  ;;  %16462 = vmatprep.subr.bf16.mxu1 %v22067_v48  ;;  %v22118_v21 = vld [vmem:[#allocation6 + $0x864] ss:$48 sps:$4 sm:$0xff]   ;;  %v22121_v48 = vld [vmem:[#allocation6 + $0x86c] ss:$48 sps:$4 sm:$0xff]  }
 0x66c   :  { %15971 = vmatpush1.bf16.msra.mxu0 %v22062_v32  ;;  %16463 = vmatpush1.bf16.msra.mxu1 %v22065_v6  ;;  %v22116_v32 = vld [vmem:[#allocation6 + $0x860] ss:$48 sps:$4 sm:$0xff]   ;;  %v22119_v6 = vld [vmem:[#allocation6 + $0x868] ss:$48 sps:$4 sm:$0xff]  }
 0x66d   :  { %15972 = vmatprep.subr.bf16.mxu0 %v22070_v55  ;;  %16464 = vmatprep.subr.bf16.mxu1 %v22073_v7  ;;  %v22124_v55 = vld [vmem:[#allocation6 + $0x8c4] ss:$48 sps:$4 sm:$0xff]   ;;  %v22127_v7 = vld [vmem:[#allocation6 + $0x8cc] ss:$48 sps:$4 sm:$0xff]  }
 0x670   :  { %15973 = vmatpush1.bf16.msra.mxu0 %v22068_v8  ;;  %16465 = vmatpush1.bf16.msra.mxu1 %v22071_v12  ;;  %v22122_v8 = vld [vmem:[#allocation6 + $0x8c0] ss:$48 sps:$4 sm:$0xff]   ;;  %v22125_v12 = vld [vmem:[#allocation6 + $0x8c8] ss:$48 sps:$4 sm:$0xff]  }
 0x671   :  { %15974 = vmatprep.subr.bf16.mxu0 %v22076_v14  ;;  %16466 = vmatprep.subr.bf16.mxu1 %v22079_v17  ;;  %v22130_v14 = vld [vmem:[#allocation6 + $0x924] ss:$48 sps:$4 sm:$0xff]   ;;  %v22133_v17 = vld [vmem:[#allocation6 + $0x92c] ss:$48 sps:$4 sm:$0xff]  }
 0x674   :  { %15975 = vmatpush1.bf16.msra.mxu0 %v22074_v56  ;;  %16467 = vmatpush1.bf16.msra.mxu1 %v22077_v19  ;;  %v22128_v56 = vld [vmem:[#allocation6 + $0x920] ss:$48 sps:$4 sm:$0xff]   ;;  %v22131_v19 = vld [vmem:[#allocation6 + $0x928] ss:$48 sps:$4 sm:$0xff]  }
 0x675   :  { %15985 = vmatprep.subr.bf16.mxu0 %v22082_v22  ;;  %16477 = vmatprep.subr.bf16.mxu1 %v22085_v23  ;;  %v22136_v22 = vld [vmem:[#allocation6 + $0x984] ss:$48 sps:$4 sm:$0xff]   ;;  %v22139_v23 = vld [vmem:[#allocation6 + $0x98c] ss:$48 sps:$4 sm:$0xff]  }
 0x677   :  { %15977 = vmatmul.mubr.bf16.vlgmr.msra.gmra.mrb[8].mxu0 %v23302_v5  ;;  %16469 = vmatmul.mubr.bf16.vlgmr.msra.gmra.mrb[8].mxu1 %v23302_v5  ;;  %v22103_v5 = vld [vmem:[#allocation6 + $0x74c] ss:$48 sps:$4 sm:$0xff]  }
 0x678   :  { %15986 = vmatpush1.bf16.msra.mxu0 %v22080_v25  ;;  %16478 = vmatpush1.bf16.msra.mxu1 %v22083_v26  ;;  %v22134_v25 = vld [vmem:[#allocation6 + $0x980] ss:$48 sps:$4 sm:$0xff]   ;;  %v22137_v26 = vld [vmem:[#allocation6 + $0x988] ss:$48 sps:$4 sm:$0xff]  }
 0x679   :  { %15987 = vmatprep.subr.bf16.mxu0 %v22088_v13  ;;  %16479 = vmatprep.subr.bf16.mxu1 %v22091_v27  ;;  %v22142_v13 = vld [vmem:[#allocation6 + $0x9e4] ss:$48 sps:$4 sm:$0xff]   ;;  %v22145_v27 = vld [vmem:[#allocation6 + $0x9ec] ss:$48 sps:$4 sm:$0xff]  }
 0x67a   :  { %16017 = vmatprep.mubr.bf16.mxu0 %v23310_v30  ;;  %16509 = vmatprep.mubr.bf16.mxu1 %v23310_v30  ;;  %v22107_v30 = vld [vmem:[#allocation6 + $0x7a8] ss:$48 sps:$4 sm:$0xff]  }
 0x67c   :  { %15988 = vmatpush1.bf16.msra.mxu0 %v22086_v33  ;;  %16480 = vmatpush1.bf16.msra.mxu1 %v22089_v34  ;;  %v22140_v33 = vld [vmem:[#allocation6 + $0x9e0] ss:$48 sps:$4 sm:$0xff]   ;;  %v22143_v34 = vld [vmem:[#allocation6 + $0x9e8] ss:$48 sps:$4 sm:$0xff]  }
 0x67d   :  { %15989 = vmatprep.subr.bf16.mxu0 %v22094_v60  ;;  %16481 = vmatprep.subr.bf16.mxu1 %v22097_v38  ;;  %v22148_v60 = vld [vmem:[#allocation6 + $0xa44] ss:$48 sps:$4 sm:$0xff]   ;;  %v22151_v38 = vld [vmem:[#allocation6 + $0xa4c] ss:$48 sps:$4 sm:$0xff]  }
 0x680   :  { %15990 = vmatpush1.bf16.msra.mxu0 %v22092_v40  ;;  %16482 = vmatpush1.bf16.msra.mxu1 %v22095_v9  ;;  %v22146_v40 = vld [vmem:[#allocation6 + $0xa40] ss:$48 sps:$4 sm:$0xff]   ;;  %v22149_v9 = vld [vmem:[#allocation6 + $0xa48] ss:$48 sps:$4 sm:$0xff]  }
 0x681   :  { %15991 = vmatprep.subr.bf16.mxu0 %v22100_v44  ;;  %16483 = vmatprep.subr.bf16.mxu1 %v22103_v5  ;;  %v22154_v44 = vld [vmem:[#allocation6 + $0xaa4] ss:$48 sps:$4 sm:$0xff]   ;;  %v22157_v5 = vld [vmem:[#allocation6 + $0xaac] ss:$48 sps:$4 sm:$0xff]  }
 0x684   :  { %15992 = vmatpush1.bf16.msra.mxu0 %v22098_v45  ;;  %16484 = vmatpush1.bf16.msra.mxu1 %v22101_v31  ;;  %v22152_v45 = vld [vmem:[#allocation6 + $0xaa0] ss:$48 sps:$4 sm:$0xff]   ;;  %v22155_v31 = vld [vmem:[#allocation6 + $0xaa8] ss:$48 sps:$4 sm:$0xff]  }
 0x685   :  { %15993 = vmatprep.subr.bf16.mxu0 %v22106_v41  ;;  %16485 = vmatprep.subr.bf16.mxu1 %v22109_v49  ;;  %v22160_v41 = vld [vmem:[#allocation6 + $0xb04] ss:$48 sps:$4 sm:$0xff]   ;;  %v22163_v49 = vld [vmem:[#allocation6 + $0xb0c] ss:$48 sps:$4 sm:$0xff]  }
 0x688   :  { %15994 = vmatpush1.bf16.msra.mxu0 %v22104_v50  ;;  %16486 = vmatpush1.bf16.msra.mxu1 %v22107_v30  ;;  %v22158_v50 = vld [vmem:[#allocation6 + $0xb00] ss:$48 sps:$4 sm:$0xff]   ;;  %v22161_v30 = vld [vmem:[#allocation6 + $0xb08] ss:$48 sps:$4 sm:$0xff]  }
 0x689   :  { %15995 = vmatprep.subr.bf16.mxu0 %v22112_v52  ;;  %16487 = vmatprep.subr.bf16.mxu1 %v22115_v53  ;;  %v22166_v52 = vld [vmem:[#allocation6 + $0xb64] ss:$48 sps:$4 sm:$0xff]   ;;  %v22169_v53 = vld [vmem:[#allocation6 + $0xb6c] ss:$48 sps:$4 sm:$0xff]  }
 0x68c   :  { %15996 = vmatpush1.bf16.msra.mxu0 %v22110_v54  ;;  %16488 = vmatpush1.bf16.msra.mxu1 %v22113_v59  ;;  %v22164_v54 = vld [vmem:[#allocation6 + $0xb60] ss:$48 sps:$4 sm:$0xff]   ;;  %v22167_v59 = vld [vmem:[#allocation6 + $0xb68] ss:$48 sps:$4 sm:$0xff]  }
 0x68d   :  { %15997 = vmatprep.subr.bf16.mxu0 %v22118_v21  ;;  %16489 = vmatprep.subr.bf16.mxu1 %v22121_v48  ;;  %v22172_v21 = vld [vmem:[#allocation6 + $0xbc4] ss:$48 sps:$4 sm:$0xff]   ;;  %v22175_v48 = vld [vmem:[#allocation6 + $0xbcc] ss:$48 sps:$4 sm:$0xff]  }
 0x690   :  { %15998 = vmatpush1.bf16.msra.mxu0 %v22116_v32  ;;  %16490 = vmatpush1.bf16.msra.mxu1 %v22119_v6  ;;  %v22170_v32 = vld [vmem:[#allocation6 + $0xbc0] ss:$48 sps:$4 sm:$0xff]   ;;  %v22173_v6 = vld [vmem:[#allocation6 + $0xbc8] ss:$48 sps:$4 sm:$0xff]  }
 0x691   :  { %15999 = vmatprep.subr.bf16.mxu0 %v22124_v55  ;;  %16491 = vmatprep.subr.bf16.mxu1 %v22127_v7  ;;  %v22178_v55 = vld [vmem:[#allocation6 + $0xc24] ss:$48 sps:$4 sm:$0xff]   ;;  %v22181_v7 = vld [vmem:[#allocation6 + $0xc2c] ss:$48 sps:$4 sm:$0xff]  }
 0x694   :  { %16000 = vmatpush1.bf16.msra.mxu0 %v22122_v8  ;;  %16492 = vmatpush1.bf16.msra.mxu1 %v22125_v12  ;;  %v22176_v8 = vld [vmem:[#allocation6 + $0xc20] ss:$48 sps:$4 sm:$0xff]   ;;  %v22179_v12 = vld [vmem:[#allocation6 + $0xc28] ss:$48 sps:$4 sm:$0xff]  }
 0x695   :  { %16001 = vmatprep.subr.bf16.mxu0 %v22130_v14  ;;  %16493 = vmatprep.subr.bf16.mxu1 %v22133_v17  ;;  %v22184_v14 = vld [vmem:[#allocation6 + $0xc84] ss:$48 sps:$4 sm:$0xff]   ;;  %v22187_v17 = vld [vmem:[#allocation6 + $0xc8c] ss:$48 sps:$4 sm:$0xff]  }
 0x698   :  { %16002 = vmatpush1.bf16.msra.mxu0 %v22128_v56  ;;  %16494 = vmatpush1.bf16.msra.mxu1 %v22131_v19  ;;  %v22182_v56 = vld [vmem:[#allocation6 + $0xc80] ss:$48 sps:$4 sm:$0xff]   ;;  %v22185_v19 = vld [vmem:[#allocation6 + $0xc88] ss:$48 sps:$4 sm:$0xff]  }
 0x699   :  { %16003 = vmatprep.subr.bf16.mxu0 %v22136_v22  ;;  %16495 = vmatprep.subr.bf16.mxu1 %v22139_v23  ;;  %v22190_v22 = vld [vmem:[#allocation6 + $0xce4] ss:$48 sps:$4 sm:$0xff]   ;;  %v22193_v23 = vld [vmem:[#allocation6 + $0xcec] ss:$48 sps:$4 sm:$0xff]  }
 0x69c   :  { %16004 = vmatpush1.bf16.msra.mxu0 %v22134_v25  ;;  %16496 = vmatpush1.bf16.msra.mxu1 %v22137_v26  ;;  %v22188_v25 = vld [vmem:[#allocation6 + $0xce0] ss:$48 sps:$4 sm:$0xff]   ;;  %v22191_v26 = vld [vmem:[#allocation6 + $0xce8] ss:$48 sps:$4 sm:$0xff]  }
 0x69d   :  { %16005 = vmatprep.subr.bf16.mxu0 %v22142_v13  ;;  %16497 = vmatprep.subr.bf16.mxu1 %v22145_v27  ;;  %v22196_v13 = vld [vmem:[#allocation6 + $0xd44] ss:$48 sps:$4 sm:$0xff]   ;;  %v22194_v27 = vld [vmem:[#allocation6 + $0xd40] ss:$48 sps:$4 sm:$0xff]  }
 0x6a0   :  { %16006 = vmatpush1.bf16.msra.mxu0 %v22140_v33  ;;  %16498 = vmatpush1.bf16.msra.mxu1 %v22143_v34  ;;  %v22197_v33 = vld [vmem:[#allocation6 + $0xd48] ss:$48 sps:$4 sm:$0xff]   ;;  %v22202_v34 = vld [vmem:[#allocation6 + $0xda4] ss:$48 sps:$4 sm:$0xff]  }
 0x6a1   :  { %16007 = vmatprep.subr.bf16.mxu0 %v22148_v60  ;;  %16499 = vmatprep.subr.bf16.mxu1 %v22151_v38  ;;  %v22205_v60 = vld [vmem:[#allocation6 + $0xdac] ss:$48 sps:$4 sm:$0xff]   ;;  %v22200_v38 = vld [vmem:[#allocation6 + $0xda0] ss:$48 sps:$4 sm:$0xff]  }
 0x6a4   :  { %16008 = vmatpush1.bf16.msra.mxu0 %v22146_v40  ;;  %16500 = vmatpush1.bf16.msra.mxu1 %v22149_v9  ;;  %v22208_v40 = vld [vmem:[#allocation6 + $0xe04] ss:$48 sps:$4 sm:$0xff]   ;;  %v22211_v9 = vld [vmem:[#allocation6 + $0xe0c] ss:$48 sps:$4 sm:$0xff]  }
 0x6a5   :  { %16009 = vmatprep.subr.bf16.mxu0 %v22154_v44  ;;  %16501 = vmatprep.subr.bf16.mxu1 %v22157_v5  ;;  %v22206_v44 = vld [vmem:[#allocation6 + $0xe00] ss:$48 sps:$4 sm:$0xff]   ;;  %v22209_v5 = vld [vmem:[#allocation6 + $0xe08] ss:$48 sps:$4 sm:$0xff]  }
 0x6a8   :  { %16010 = vmatpush1.bf16.msra.mxu0 %v22152_v45  ;;  %16502 = vmatpush1.bf16.msra.mxu1 %v22155_v31  ;;  %v22214_v45 = vld [vmem:[#allocation6 + $0xe64] ss:$48 sps:$4 sm:$0xff]   ;;  %v22217_v31 = vld [vmem:[#allocation6 + $0xe6c] ss:$48 sps:$4 sm:$0xff]  }
 0x6a9   :  { %16011 = vmatprep.subr.bf16.mxu0 %v22160_v41  ;;  %16503 = vmatprep.subr.bf16.mxu1 %v22163_v49  ;;  %v22212_v41 = vld [vmem:[#allocation6 + $0xe60] ss:$48 sps:$4 sm:$0xff]   ;;  %v22215_v49 = vld [vmem:[#allocation6 + $0xe68] ss:$48 sps:$4 sm:$0xff]  }
 0x6ac   :  { %16012 = vmatpush1.bf16.msra.mxu0 %v22158_v50  ;;  %16504 = vmatpush1.bf16.msra.mxu1 %v22161_v30  ;;  %v22220_v50 = vld [vmem:[#allocation6 + $0xec4] ss:$48 sps:$4 sm:$0xff]   ;;  %v22223_v30 = vld [vmem:[#allocation6 + $0xecc] ss:$48 sps:$4 sm:$0xff]  }
 0x6ad   :  { %16013 = vmatprep.subr.bf16.mxu0 %v22166_v52  ;;  %16505 = vmatprep.subr.bf16.mxu1 %v22169_v53  ;;  %v22218_v52 = vld [vmem:[#allocation6 + $0xec0] ss:$48 sps:$4 sm:$0xff]   ;;  %v22221_v53 = vld [vmem:[#allocation6 + $0xec8] ss:$48 sps:$4 sm:$0xff]  }
 0x6b0   :  { %16014 = vmatpush1.bf16.msra.mxu0 %v22164_v54  ;;  %16506 = vmatpush1.bf16.msra.mxu1 %v22167_v59  ;;  %v22226_v54 = vld [vmem:[#allocation6 + $0xf24] ss:$48 sps:$4 sm:$0xff]   ;;  %v22229_v59 = vld [vmem:[#allocation6 + $0xf2c] ss:$48 sps:$4 sm:$0xff]  }
 0x6b1   :  { %16015 = vmatprep.subr.bf16.mxu0 %v22172_v21  ;;  %16507 = vmatprep.subr.bf16.mxu1 %v22175_v48  ;;  %v22224_v21 = vld [vmem:[#allocation6 + $0xf20] ss:$48 sps:$4 sm:$0xff]   ;;  %v22227_v48 = vld [vmem:[#allocation6 + $0xf28] ss:$48 sps:$4 sm:$0xff]  }
 0x6b4   :  { %16016 = vmatpush1.bf16.msra.mxu0 %v22170_v32  ;;  %16508 = vmatpush1.bf16.msra.mxu1 %v22173_v6  ;;  %v22232_v32 = vld [vmem:[#allocation6 + $0xf84] ss:$48 sps:$4 sm:$0xff]   ;;  %v22235_v6 = vld [vmem:[#allocation6 + $0xf8c] ss:$48 sps:$4 sm:$0xff]  }
 0x6b5   :  { %16026 = vmatprep.subr.bf16.mxu0 %v22178_v55  ;;  %16518 = vmatprep.subr.bf16.mxu1 %v22181_v7  ;;  %v22230_v55 = vld [vmem:[#allocation6 + $0xf80] ss:$48 sps:$4 sm:$0xff]   ;;  %v22233_v7 = vld [vmem:[#allocation6 + $0xf88] ss:$48 sps:$4 sm:$0xff]  }
 0x6b7   :  { %16018 = vmatmul.mubr.bf16.vlgmr.msra.gmra.mrb[8].mxu0 %v23316_v10  ;;  %16510 = vmatmul.mubr.bf16.vlgmr.msra.gmra.mrb[8].mxu1 %v23316_v10  ;;  %v22199_v10 = vld [vmem:[#allocation6 + $0xd4c] ss:$48 sps:$4 sm:$0xff]  }
 0x6b8   :  { %16027 = vmatpush1.bf16.msra.mxu0 %v22176_v8  ;;  %16519 = vmatpush1.bf16.msra.mxu1 %v22179_v12  ;;  %v22238_v8 = vld [vmem:[#allocation6 + $0xfe4] ss:$48 sps:$4 sm:$0xff]   ;;  %v22241_v12 = vld [vmem:[#allocation6 + $0xfec] ss:$48 sps:$4 sm:$0xff]  }
 0x6b9   :  { %16028 = vmatprep.subr.bf16.mxu0 %v22184_v14  ;;  %16520 = vmatprep.subr.bf16.mxu1 %v22187_v17  ;;  %v22236_v14 = vld [vmem:[#allocation6 + $0xfe0] ss:$48 sps:$4 sm:$0xff]   ;;  %v22239_v17 = vld [vmem:[#allocation6 + $0xfe8] ss:$48 sps:$4 sm:$0xff]  }
 0x6ba   :  { %16058 = vmatprep.mubr.bf16.mxu0 %v23322_v15  ;;  %16550 = vmatprep.mubr.bf16.mxu1 %v23322_v15  ;;  %v22203_v15 = vld [vmem:[#allocation6 + $0xda8] ss:$48 sps:$4 sm:$0xff]  }
 0x6bc   :  { %16029 = vmatpush1.bf16.msra.mxu0 %v22182_v56  ;;  %16521 = vmatpush1.bf16.msra.mxu1 %v22185_v19  ;;  %v22244_v56 = vld [vmem:[#allocation6 + $0x1044] ss:$48 sps:$4 sm:$0xff]   ;;  %v22247_v19 = vld [vmem:[#allocation6 + $0x104c] ss:$48 sps:$4 sm:$0xff]  }
 0x6bd   :  { %16030 = vmatprep.subr.bf16.mxu0 %v22190_v22  ;;  %16522 = vmatprep.subr.bf16.mxu1 %v22193_v23  ;;  %v22242_v22 = vld [vmem:[#allocation6 + $0x1040] ss:$48 sps:$4 sm:$0xff]   ;;  %v22245_v23 = vld [vmem:[#allocation6 + $0x1048] ss:$48 sps:$4 sm:$0xff]  }
 0x6c0   :  { %16031 = vmatpush1.bf16.msra.mxu0 %v22188_v25  ;;  %16523 = vmatpush1.bf16.msra.mxu1 %v22191_v26  ;;  %v22250_v25 = vld [vmem:[#allocation6 + $0x10a4] ss:$48 sps:$4 sm:$0xff]   ;;  %v22253_v26 = vld [vmem:[#allocation6 + $0x10ac] ss:$48 sps:$4 sm:$0xff]  }
 0x6c1   :  { %16032 = vmatprep.subr.bf16.mxu0 %v22196_v13  ;;  %16524 = vmatprep.subr.bf16.mxu1 %v22199_v10  ;;  %v22248_v13 = vld [vmem:[#allocation6 + $0x10a0] ss:$48 sps:$4 sm:$0xff]   ;;  %v22251_v10 = vld [vmem:[#allocation6 + $0x10a8] ss:$48 sps:$4 sm:$0xff]  }
 0x6c4   :  { %16033 = vmatpush1.bf16.msra.mxu0 %v22194_v27  ;;  %16525 = vmatpush1.bf16.msra.mxu1 %v22197_v33  ;;  %v22256_v27 = vld [vmem:[#allocation6 + $0x1104] ss:$48 sps:$4 sm:$0xff]   ;;  %v22259_v33 = vld [vmem:[#allocation6 + $0x110c] ss:$48 sps:$4 sm:$0xff]  }
 0x6c5   :  { %16034 = vmatprep.subr.bf16.mxu0 %v22202_v34  ;;  %16526 = vmatprep.subr.bf16.mxu1 %v22205_v60  ;;  %v22254_v34 = vld [vmem:[#allocation6 + $0x1100] ss:$48 sps:$4 sm:$0xff]   ;;  %v22257_v60 = vld [vmem:[#allocation6 + $0x1108] ss:$48 sps:$4 sm:$0xff]  }
 0x6c8   :  { %16035 = vmatpush1.bf16.msra.mxu0 %v22200_v38  ;;  %16527 = vmatpush1.bf16.msra.mxu1 %v22203_v15  ;;  %v22262_v38 = vld [vmem:[#allocation6 + $0x1164] ss:$48 sps:$4 sm:$0xff]   ;;  %v22265_v15 = vld [vmem:[#allocation6 + $0x116c] ss:$48 sps:$4 sm:$0xff]  }
 0x6c9   :  { %16036 = vmatprep.subr.bf16.mxu0 %v22208_v40  ;;  %16528 = vmatprep.subr.bf16.mxu1 %v22211_v9  ;;  %v22260_v40 = vld [vmem:[#allocation6 + $0x1160] ss:$48 sps:$4 sm:$0xff]   ;;  %v22263_v9 = vld [vmem:[#allocation6 + $0x1168] ss:$48 sps:$4 sm:$0xff]  }
 0x6cc   :  { %16037 = vmatpush1.bf16.msra.mxu0 %v22206_v44  ;;  %16529 = vmatpush1.bf16.msra.mxu1 %v22209_v5  ;;  %v22268_v44 = vld [vmem:[#allocation6 + $0x11c4] ss:$48 sps:$4 sm:$0xff]   ;;  %v22271_v5 = vld [vmem:[#allocation6 + $0x11cc] ss:$48 sps:$4 sm:$0xff]  }
 0x6cd   :  { %16038 = vmatprep.subr.bf16.mxu0 %v22214_v45  ;;  %16530 = vmatprep.subr.bf16.mxu1 %v22217_v31  ;;  %v22266_v45 = vld [vmem:[#allocation6 + $0x11c0] ss:$48 sps:$4 sm:$0xff]   ;;  %v22269_v31 = vld [vmem:[#allocation6 + $0x11c8] ss:$48 sps:$4 sm:$0xff]  }
 0x6d0   :  { %16039 = vmatpush1.bf16.msra.mxu0 %v22212_v41  ;;  %16531 = vmatpush1.bf16.msra.mxu1 %v22215_v49  ;;  %v22274_v41 = vld [vmem:[#allocation6 + $0x1224] ss:$48 sps:$4 sm:$0xff]   ;;  %v22277_v49 = vld [vmem:[#allocation6 + $0x122c] ss:$48 sps:$4 sm:$0xff]  }
 0x6d1   :  { %16040 = vmatprep.subr.bf16.mxu0 %v22220_v50  ;;  %16532 = vmatprep.subr.bf16.mxu1 %v22223_v30  ;;  %v22272_v50 = vld [vmem:[#allocation6 + $0x1220] ss:$48 sps:$4 sm:$0xff]   ;;  %v22275_v30 = vld [vmem:[#allocation6 + $0x1228] ss:$48 sps:$4 sm:$0xff]  }
 0x6d4   :  { %16041 = vmatpush1.bf16.msra.mxu0 %v22218_v52  ;;  %16533 = vmatpush1.bf16.msra.mxu1 %v22221_v53  ;;  %v22280_v52 = vld [vmem:[#allocation6 + $0x1284] ss:$48 sps:$4 sm:$0xff]   ;;  %v22283_v53 = vld [vmem:[#allocation6 + $0x128c] ss:$48 sps:$4 sm:$0xff]  }
 0x6d5   :  { %16042 = vmatprep.subr.bf16.mxu0 %v22226_v54  ;;  %16534 = vmatprep.subr.bf16.mxu1 %v22229_v59  ;;  %v22278_v54 = vld [vmem:[#allocation6 + $0x1280] ss:$48 sps:$4 sm:$0xff]   ;;  %v22281_v59 = vld [vmem:[#allocation6 + $0x1288] ss:$48 sps:$4 sm:$0xff]  }
 0x6d8   :  { %16043 = vmatpush1.bf16.msra.mxu0 %v22224_v21  ;;  %16535 = vmatpush1.bf16.msra.mxu1 %v22227_v48  ;;  %v22286_v21 = vld [vmem:[#allocation6 + $0x12e4] ss:$48 sps:$4 sm:$0xff]   ;;  %v22289_v48 = vld [vmem:[#allocation6 + $0x12ec] ss:$48 sps:$4 sm:$0xff]  }
 0x6d9   :  { %16044 = vmatprep.subr.bf16.mxu0 %v22232_v32  ;;  %16536 = vmatprep.subr.bf16.mxu1 %v22235_v6  ;;  %v22284_v32 = vld [vmem:[#allocation6 + $0x12e0] ss:$48 sps:$4 sm:$0xff]   ;;  %v22287_v6 = vld [vmem:[#allocation6 + $0x12e8] ss:$48 sps:$4 sm:$0xff]  }
 0x6dc   :  { %16045 = vmatpush1.bf16.msra.mxu0 %v22230_v55  ;;  %16537 = vmatpush1.bf16.msra.mxu1 %v22233_v7  ;;  %v22292_v55 = vld [vmem:[#allocation6 + $0x1344] ss:$48 sps:$4 sm:$0xff]   ;;  %v22290_v7 = vld [vmem:[#allocation6 + $0x1340] ss:$48 sps:$4 sm:$0xff]  }
 0x6dd   :  { %16046 = vmatprep.subr.bf16.mxu0 %v22238_v8  ;;  %16538 = vmatprep.subr.bf16.mxu1 %v22241_v12  ;;  %v22293_v8 = vld [vmem:[#allocation6 + $0x1348] ss:$48 sps:$4 sm:$0xff]   ;;  %v22298_v12 = vld [vmem:[#allocation6 + $0x13a4] ss:$48 sps:$4 sm:$0xff]  }
 0x6e0   :  { %16047 = vmatpush1.bf16.msra.mxu0 %v22236_v14  ;;  %16539 = vmatpush1.bf16.msra.mxu1 %v22239_v17  ;;  %v22301_v14 = vld [vmem:[#allocation6 + $0x13ac] ss:$48 sps:$4 sm:$0xff]   ;;  %v22296_v17 = vld [vmem:[#allocation6 + $0x13a0] ss:$48 sps:$4 sm:$0xff]  }
 0x6e1   :  { %16048 = vmatprep.subr.bf16.mxu0 %v22244_v56  ;;  %16540 = vmatprep.subr.bf16.mxu1 %v22247_v19  ;;  %v16962_v56 = vsub.s32 4, %v23475_v51  ;;  %v22304_v19 = vld [vmem:[#allocation6 + $0x1404] ss:$48 sps:$4 sm:$0xff]  }
 0x6e4   :  { %16049 = vmatpush1.bf16.msra.mxu0 %v22242_v22  ;;  %16541 = vmatpush1.bf16.msra.mxu1 %v22245_v23  ;;  %v22307_v22 = vld [vmem:[#allocation6 + $0x140c] ss:$48 sps:$4 sm:$0xff]   ;;  %v16966_v23 = vsub.s32 5, %v23475_v51 }
 0x6e5   :  { %16050 = vmatprep.subr.bf16.mxu0 %v22250_v25  ;;  %16542 = vmatprep.subr.bf16.mxu1 %v22253_v26  ;;  %v22302_v25 = vld [vmem:[#allocation6 + $0x1400] ss:$48 sps:$4 sm:$0xff]   ;;  %v22305_v26 = vld [vmem:[#allocation6 + $0x1408] ss:$48 sps:$4 sm:$0xff]  }
 0x6e8   :  { %16051 = vmatpush1.bf16.msra.mxu0 %v22248_v13  ;;  %16543 = vmatpush1.bf16.msra.mxu1 %v22251_v10  ;;  %v23136_v13 = vld [vmem:[#allocation8] sm:$0xff] }
 0x6e9   :  { %16052 = vmatprep.subr.bf16.mxu0 %v22256_v27  ;;  %16544 = vmatprep.subr.bf16.mxu1 %v22259_v33  ;;  %v16963_v10 = vrot.slane %v23136_v13, %v16962_v56  ;;  %v16970_v27 = vsub.s32 6, %v23475_v51  ;;  %v22310_v33 = vld [vmem:[#allocation6 + $0x1464] ss:$48 sps:$4 sm:$0xff]  }
 0x6ec   :  { %16053 = vmatpush1.bf16.msra.mxu0 %v22254_v34  ;;  %16545 = vmatpush1.bf16.msra.mxu1 %v22257_v60  ;;  %v22313_v34 = vld [vmem:[#allocation6 + $0x146c] ss:$48 sps:$4 sm:$0xff]  }
 0x6ed   :  { %16054 = vmatprep.subr.bf16.mxu0 %v22262_v38  ;;  %16546 = vmatprep.subr.bf16.mxu1 %v22265_v15  ;;  %v16967_v15 = vrot.slane %v23136_v13, %v16966_v23  ;;  %v22323_v23 = vld [vmem:[#allocation6 + $0x1528] ss:$48 sps:$4 sm:$0xff]  }
 0x6f0   :  { %16055 = vmatpush1.bf16.msra.mxu0 %v22260_v40  ;;  %16547 = vmatpush1.bf16.msra.mxu1 %v22263_v9  ;;  %v22308_v40 = vld [vmem:[#allocation6 + $0x1460] ss:$48 sps:$4 sm:$0xff]  }
 0x6f1   :  { %16056 = vmatprep.subr.bf16.mxu0 %v22268_v44  ;;  %16548 = vmatprep.subr.bf16.mxu1 %v22271_v5 }
 0x6f4   :  { %16057 = vmatpush1.bf16.msra.mxu0 %v22266_v45  ;;  %16549 = vmatpush1.bf16.msra.mxu1 %v22269_v31  ;;  %v16974_v45 = vsub.s32 7, %v23475_v51  ;;  %v22311_v31 = vld [vmem:[#allocation6 + $0x1468] ss:$48 sps:$4 sm:$0xff]  }
 0x6f5   :  { %16067 = vmatprep.subr.bf16.mxu0 %v22274_v41  ;;  %16559 = vmatprep.subr.bf16.mxu1 %v22277_v49 }
 0x6f7   :  { %16059 = vmatmul.mubr.bf16.vlgmr.msra.gmra.mrb[8].mxu0 %v23330_v20  ;;  %16551 = vmatmul.mubr.bf16.vlgmr.msra.gmra.mrb[8].mxu1 %v23330_v20  ;;  %v22295_v20 = vld [vmem:[#allocation6 + $0x134c] ss:$48 sps:$4 sm:$0xff]  }
 0x6f8   :  { %16068 = vmatpush1.bf16.msra.mxu0 %v22272_v50  ;;  %16560 = vmatpush1.bf16.msra.mxu1 %v22275_v30  ;;  %v22316_v30 = vld [vmem:[#allocation6 + $0x14c4] ss:$48 sps:$4 sm:$0xff]  }
 0x6f9   :  { %16069 = vmatprep.subr.bf16.mxu0 %v22280_v52  ;;  %16561 = vmatprep.subr.bf16.mxu1 %v22283_v53 }
 0x6fa   :  { %16099 = vmatprep.mubr.bf16.mxu0 %v23336_v24  ;;  %16591 = vmatprep.mubr.bf16.mxu1 %v23336_v24  ;;  %v22299_v24 = vld [vmem:[#allocation6 + $0x13a8] ss:$48 sps:$4 sm:$0xff]  }
 0x6fc   :  { %16070 = vmatpush1.bf16.msra.mxu0 %v22278_v54  ;;  %16562 = vmatpush1.bf16.msra.mxu1 %v22281_v59  ;;  %v16971_v54 = vrot.slane %v23136_v13, %v16970_v27  ;;  %v22334_v27 = vld [vmem:[#allocation6 + $0x15e4] ss:$48 sps:$4 sm:$0xff]  }
 0x6fd   :  { %16071 = vmatprep.subr.bf16.mxu0 %v22286_v21  ;;  %16563 = vmatprep.subr.bf16.mxu1 %v22289_v48  ;;  %v22319_v48 = vld [vmem:[#allocation6 + $0x14cc] ss:$48 sps:$4 sm:$0xff]  }
 0x700   :  { %16072 = vmatpush1.bf16.msra.mxu0 %v22284_v32  ;;  %16564 = vmatpush1.bf16.msra.mxu1 %v22287_v6 }
 0x701   :  { %16073 = vmatprep.subr.bf16.mxu0 %v22292_v55  ;;  %16565 = vmatprep.subr.bf16.mxu1 %v22295_v20  ;;  %v16975_v20 = vrot.slane %v23136_v13, %v16974_v45  ;;  %v22326_v13 = vld [vmem:[#allocation6 + $0x1580] ss:$48 sps:$4 sm:$0xff]  }
 0x702   :  { %v22344_v45 = vld [vmem:[#allocation6 + $0x16a0] ss:$48 sps:$4 sm:$0xff]  }
 0x704   :  { %16074 = vmatpush1.bf16.msra.mxu0 %v22290_v7  ;;  %16566 = vmatpush1.bf16.msra.mxu1 %v22293_v8  ;;  %v22314_v7 = vld [vmem:[#allocation6 + $0x14c0] ss:$48 sps:$4 sm:$0xff]   ;;  %v22317_v8 = vld [vmem:[#allocation6 + $0x14c8] ss:$48 sps:$4 sm:$0xff]  }
 0x705   :  { %16075 = vmatprep.subr.bf16.mxu0 %v22298_v12  ;;  %16567 = vmatprep.subr.bf16.mxu1 %v22301_v14 }
 0x708   :  { %16076 = vmatpush1.bf16.msra.mxu0 %v22296_v17  ;;  %16568 = vmatpush1.bf16.msra.mxu1 %v22299_v24  ;;  %v22322_v17 = vld [vmem:[#allocation6 + $0x1524] ss:$48 sps:$4 sm:$0xff]   ;;  %v22325_v24 = vld [vmem:[#allocation6 + $0x152c] ss:$48 sps:$4 sm:$0xff]  }
 0x709   :  { %16077 = vmatprep.subr.bf16.mxu0 %v22304_v19  ;;  %16569 = vmatprep.subr.bf16.mxu1 %v22307_v22  ;;  %v22320_v22 = vld [vmem:[#allocation6 + $0x1520] ss:$48 sps:$4 sm:$0xff]  }
 0x70a   :  { %v15445_v60 = vpop.f32.mrb[4].mxu0  ;;  %v15937_v38 = vpop.f32.mrb[4].mxu1 }
 0x70b   :  { %v16932_v9 = vmax.f32 %v15445_v60, 0.0  ;;  %v15447_v44 = vpop.f32.mrb[5].mxu0  ;;  %v15939_v5 = vpop.f32.mrb[5].mxu1  ;;  %v16934_v53 = vmax.f32 %v15937_v38, 0.0  ;;  %v22335_v60 = vld [vmem:[#allocation6 + $0x15e8] ss:$48 sps:$4 sm:$0xff]  }
 0x70c   :  { %v16933_v41 = vmax.f32 %v15447_v44, 0.0  ;;  %v15449_v49 = vpop.f32.mrb[6].mxu0  ;;  %v15941_v50 = vpop.f32.mrb[6].mxu1  ;;  %16078 = vmatpush1.bf16.msra.mxu0 %v22302_v25  ;;  %16570 = vmatpush1.bf16.msra.mxu1 %v22305_v26  ;;  %v16935_v55 = vmax.f32 %v15939_v5, 0.0  ;;  %v22331_v26 = vld [vmem:[#allocation6 + $0x158c] ss:$48 sps:$4 sm:$0xff]  }
 0x70d   :  { %v17008_v52 = vmul.f32 %v16963_v10, %v16932_v9  ;;  %v15450_v59 = vpop.f32.mrb[7].mxu0  ;;  %v15942_v21 = vpop.f32.mrb[7].mxu1  ;;  %16079 = vmatprep.subr.bf16.mxu0 %v22310_v33  ;;  %16571 = vmatprep.subr.bf16.mxu1 %v22313_v34  ;;  %v17010_v12 = vmul.f32 %v16971_v54, %v16934_v53  ;;  %v22329_v10 = vld [vmem:[#allocation6 + $0x1588] ss:$48 sps:$4 sm:$0xff]   ;;  %v22337_v33 = vld [vmem:[#allocation6 + $0x15ec] ss:$48 sps:$4 sm:$0xff]  }
 0x70e   :  { %v17009_v32 = vmul.f32 %v16967_v15, %v16933_v41  ;;  %v17011_v56 = vmul.f32 %v16975_v20, %v16935_v55  ;;  %v22332_v34 = vld [vmem:[#allocation6 + $0x15e0] ss:$48 sps:$4 sm:$0xff]   ;;  %v22340_v38 = vld [vmem:[#allocation6 + $0x1644] ss:$48 sps:$4 sm:$0xff]   ;;  %v22343_v15 = vld [vmem:[#allocation6 + $0x164c] ss:$48 sps:$4 sm:$0xff]  }
 0x70f   :  { %v17019_v6 = vadd.f32 %v23489_v3, %v17008_v52  ;;  %v22328_v3 = vld [vmem:[#allocation6 + $0x1584] ss:$48 sps:$4 sm:$0xff]   ;;  %v22341_v9 = vld [vmem:[#allocation6 + $0x1648] ss:$48 sps:$4 sm:$0xff]   ;;  %v22349_v5 = vld [vmem:[#allocation6 + $0x16ac] ss:$48 sps:$4 sm:$0xff]  }
 0x710   :  { %16080 = vmatpush1.bf16.msra.mxu0 %v22308_v40  ;;  %16572 = vmatpush1.bf16.msra.mxu1 %v22311_v31  ;;  %v22338_v40 = vld [vmem:[#allocation6 + $0x1640] ss:$48 sps:$4 sm:$0xff]   ;;  %v22346_v44 = vld [vmem:[#allocation6 + $0x16a4] ss:$48 sps:$4 sm:$0xff]   ;;  %v22347_v31 = vld [vmem:[#allocation6 + $0x16a8] ss:$48 sps:$4 sm:$0xff]  }
 0x711   :  { %v17020_v14 = vadd.f32 %v17019_v6, %v17009_v32  ;;  %16081 = vmatprep.subr.bf16.mxu0 %v22316_v30  ;;  %16573 = vmatprep.subr.bf16.mxu1 %v22319_v48  ;;  %v22352_v41 = vld [vmem:[#allocation6 + $0x1704] ss:$48 sps:$4 sm:$0xff]   ;;  %v22355_v49 = vld [vmem:[#allocation6 + $0x170c] ss:$48 sps:$4 sm:$0xff]   ;;  %v22350_v50 = vld [vmem:[#allocation6 + $0x1700] ss:$48 sps:$4 sm:$0xff]  }
 0x712   :  { %v22353_v30 = vld [vmem:[#allocation6 + $0x1708] ss:$48 sps:$4 sm:$0xff]   ;;  %v22358_v52 = vld [vmem:[#allocation6 + $0x1764] ss:$48 sps:$4 sm:$0xff]   ;;  %v22361_v53 = vld [vmem:[#allocation6 + $0x176c] ss:$48 sps:$4 sm:$0xff]  }
 0x713   :  { %v17021_v19 = vadd.f32 %v17020_v14, %v17010_v12  ;;  %v22356_v54 = vld [vmem:[#allocation6 + $0x1760] ss:$48 sps:$4 sm:$0xff]   ;;  %v22359_v59 = vld [vmem:[#allocation6 + $0x1768] ss:$48 sps:$4 sm:$0xff]   ;;  %v22364_v21 = vld [vmem:[#allocation6 + $0x17c4] ss:$48 sps:$4 sm:$0xff]  }
 0x714   :  { %16082 = vmatpush1.bf16.msra.mxu0 %v22314_v7  ;;  %16574 = vmatpush1.bf16.msra.mxu1 %v22317_v8  ;;  %v22367_v48 = vld [vmem:[#allocation6 + $0x17cc] ss:$48 sps:$4 sm:$0xff]   ;;  %v22362_v32 = vld [vmem:[#allocation6 + $0x17c0] ss:$48 sps:$4 sm:$0xff]   ;;  %v22365_v6 = vld [vmem:[#allocation6 + $0x17c8] ss:$48 sps:$4 sm:$0xff]  }
 0x715   :  { %v23544_v25 = vadd.f32 %v17021_v19, %v17011_v56  ;;  %16083 = vmatprep.subr.bf16.mxu0 %v22322_v17  ;;  %16575 = vmatprep.subr.bf16.mxu1 %v22325_v24  ;;  %v22370_v55 = vld [vmem:[#allocation6 + $0x1824] ss:$48 sps:$4 sm:$0xff]   ;;  %v22373_v20 = vld [vmem:[#allocation6 + $0x182c] ss:$48 sps:$4 sm:$0xff]   ;;  %v22368_v7 = vld [vmem:[#allocation6 + $0x1820] ss:$48 sps:$4 sm:$0xff]  }
 0x716   :  { %v22371_v8 = vld [vmem:[#allocation6 + $0x1828] ss:$48 sps:$4 sm:$0xff]   ;;  %v22376_v12 = vld [vmem:[#allocation6 + $0x1884] ss:$48 sps:$4 sm:$0xff]   ;;  %v22379_v14 = vld [vmem:[#allocation6 + $0x188c] ss:$48 sps:$4 sm:$0xff]  }
 0x717   :  { %v22374_v17 = vld [vmem:[#allocation6 + $0x1880] ss:$48 sps:$4 sm:$0xff]   ;;  %v22377_v24 = vld [vmem:[#allocation6 + $0x1888] ss:$48 sps:$4 sm:$0xff]   ;;  %v22382_v56 = vld [vmem:[#allocation6 + $0x18e4] ss:$48 sps:$4 sm:$0xff]  }
 0x718   :  { %16084 = vmatpush1.bf16.msra.mxu0 %v22320_v22  ;;  %16576 = vmatpush1.bf16.msra.mxu1 %v22323_v23  ;;  %v22385_v19 = vld [vmem:[#allocation6 + $0x18ec] ss:$48 sps:$4 sm:$0xff]   ;;  %v22380_v22 = vld [vmem:[#allocation6 + $0x18e0] ss:$48 sps:$4 sm:$0xff]   ;;  %v22383_v23 = vld [vmem:[#allocation6 + $0x18e8] ss:$48 sps:$4 sm:$0xff]  }
 0x719   :  { %16085 = vmatprep.subr.bf16.mxu0 %v22328_v3  ;;  %16577 = vmatprep.subr.bf16.mxu1 %v22331_v26  ;;  %v22388_v3 = vld [vmem:[#allocation6 + $0x1944] ss:$48 sps:$4 sm:$0xff]   ;;  %v22386_v26 = vld [vmem:[#allocation6 + $0x1940] ss:$48 sps:$4 sm:$0xff]  }
 0x71c   :  { %16086 = vmatpush1.bf16.msra.mxu0 %v22326_v13  ;;  %16578 = vmatpush1.bf16.msra.mxu1 %v22329_v10  ;;  %v22389_v13 = vld [vmem:[#allocation6 + $0x1948] ss:$48 sps:$4 sm:$0xff]   ;;  %v22394_v10 = vld [vmem:[#allocation6 + $0x19a4] ss:$48 sps:$4 sm:$0xff]  }
 0x71d   :  { %16087 = vmatprep.subr.bf16.mxu0 %v22334_v27  ;;  %16579 = vmatprep.subr.bf16.mxu1 %v22337_v33  ;;  %v22397_v27 = vld [vmem:[#allocation6 + $0x19ac] ss:$48 sps:$4 sm:$0xff]   ;;  %v22392_v33 = vld [vmem:[#allocation6 + $0x19a0] ss:$48 sps:$4 sm:$0xff]  }
 0x720   :  { %16088 = vmatpush1.bf16.msra.mxu0 %v22332_v34  ;;  %16580 = vmatpush1.bf16.msra.mxu1 %v22335_v60  ;;  %v22400_v34 = vld [vmem:[#allocation6 + $0x1a04] ss:$48 sps:$4 sm:$0xff]   ;;  %v22403_v60 = vld [vmem:[#allocation6 + $0x1a0c] ss:$48 sps:$4 sm:$0xff]  }
 0x721   :  { %16089 = vmatprep.subr.bf16.mxu0 %v22340_v38  ;;  %16581 = vmatprep.subr.bf16.mxu1 %v22343_v15  ;;  %v22398_v38 = vld [vmem:[#allocation6 + $0x1a00] ss:$48 sps:$4 sm:$0xff]   ;;  %v22401_v15 = vld [vmem:[#allocation6 + $0x1a08] ss:$48 sps:$4 sm:$0xff]  }
 0x724   :  { %16090 = vmatpush1.bf16.msra.mxu0 %v22338_v40  ;;  %16582 = vmatpush1.bf16.msra.mxu1 %v22341_v9  ;;  %v22406_v40 = vld [vmem:[#allocation6 + $0x1a64] ss:$48 sps:$4 sm:$0xff]   ;;  %v22409_v9 = vld [vmem:[#allocation6 + $0x1a6c] ss:$48 sps:$4 sm:$0xff]  }
 0x725   :  { %16091 = vmatprep.subr.bf16.mxu0 %v22346_v44  ;;  %16583 = vmatprep.subr.bf16.mxu1 %v22349_v5  ;;  %v22404_v44 = vld [vmem:[#allocation6 + $0x1a60] ss:$48 sps:$4 sm:$0xff]   ;;  %v22407_v5 = vld [vmem:[#allocation6 + $0x1a68] ss:$48 sps:$4 sm:$0xff]  }
 0x728   :  { %16092 = vmatpush1.bf16.msra.mxu0 %v22344_v45  ;;  %16584 = vmatpush1.bf16.msra.mxu1 %v22347_v31  ;;  %v22412_v45 = vld [vmem:[#allocation6 + $0x1ac4] ss:$48 sps:$4 sm:$0xff]   ;;  %v22415_v31 = vld [vmem:[#allocation6 + $0x1acc] ss:$48 sps:$4 sm:$0xff]  }
 0x729   :  { %16093 = vmatprep.subr.bf16.mxu0 %v22352_v41  ;;  %16585 = vmatprep.subr.bf16.mxu1 %v22355_v49  ;;  %v22410_v41 = vld [vmem:[#allocation6 + $0x1ac0] ss:$48 sps:$4 sm:$0xff]   ;;  %v22413_v49 = vld [vmem:[#allocation6 + $0x1ac8] ss:$48 sps:$4 sm:$0xff]  }
 0x72c   :  { %16094 = vmatpush1.bf16.msra.mxu0 %v22350_v50  ;;  %16586 = vmatpush1.bf16.msra.mxu1 %v22353_v30  ;;  %v22418_v50 = vld [vmem:[#allocation6 + $0x1b24] ss:$48 sps:$4 sm:$0xff]   ;;  %v22421_v30 = vld [vmem:[#allocation6 + $0x1b2c] ss:$48 sps:$4 sm:$0xff]  }
 0x72d   :  { %16095 = vmatprep.subr.bf16.mxu0 %v22358_v52  ;;  %16587 = vmatprep.subr.bf16.mxu1 %v22361_v53  ;;  %v22416_v52 = vld [vmem:[#allocation6 + $0x1b20] ss:$48 sps:$4 sm:$0xff]   ;;  %v22419_v53 = vld [vmem:[#allocation6 + $0x1b28] ss:$48 sps:$4 sm:$0xff]  }
 0x730   :  { %16096 = vmatpush1.bf16.msra.mxu0 %v22356_v54  ;;  %16588 = vmatpush1.bf16.msra.mxu1 %v22359_v59  ;;  %v22424_v54 = vld [vmem:[#allocation6 + $0x1b84] ss:$48 sps:$4 sm:$0xff]   ;;  %v22427_v59 = vld [vmem:[#allocation6 + $0x1b8c] ss:$48 sps:$4 sm:$0xff]  }
 0x731   :  { %16097 = vmatprep.subr.bf16.mxu0 %v22364_v21  ;;  %16589 = vmatprep.subr.bf16.mxu1 %v22367_v48  ;;  %v22422_v21 = vld [vmem:[#allocation6 + $0x1b80] ss:$48 sps:$4 sm:$0xff]   ;;  %v22425_v48 = vld [vmem:[#allocation6 + $0x1b88] ss:$48 sps:$4 sm:$0xff]  }
 0x734   :  { %16098 = vmatpush1.bf16.msra.mxu0 %v22362_v32  ;;  %16590 = vmatpush1.bf16.msra.mxu1 %v22365_v6  ;;  %v22430_v32 = vld [vmem:[#allocation6 + $0x1be4] ss:$48 sps:$4 sm:$0xff]   ;;  %v22433_v6 = vld [vmem:[#allocation6 + $0x1bec] ss:$48 sps:$4 sm:$0xff]  }
 0x735   :  { %16108 = vmatprep.subr.bf16.mxu0 %v22370_v55  ;;  %16600 = vmatprep.subr.bf16.mxu1 %v22373_v20  ;;  %v22428_v55 = vld [vmem:[#allocation6 + $0x1be0] ss:$48 sps:$4 sm:$0xff]   ;;  %v22431_v20 = vld [vmem:[#allocation6 + $0x1be8] ss:$48 sps:$4 sm:$0xff]  }
 0x737   :  { %16100 = vmatmul.mubr.bf16.vlgmr.msra.gmra.mrb[8].mxu0 %v23344_v29  ;;  %16592 = vmatmul.mubr.bf16.vlgmr.msra.gmra.mrb[8].mxu1 %v23344_v29  ;;  %v22391_v29 = vld [vmem:[#allocation6 + $0x194c] ss:$48 sps:$4 sm:$0xff]  }
 0x738   :  { %16109 = vmatpush1.bf16.msra.mxu0 %v22368_v7  ;;  %16601 = vmatpush1.bf16.msra.mxu1 %v22371_v8  ;;  %v22436_v7 = vld [vmem:[#allocation6 + $0x1c44] ss:$48 sps:$4 sm:$0xff]   ;;  %v22439_v8 = vld [vmem:[#allocation6 + $0x1c4c] ss:$48 sps:$4 sm:$0xff]  }
 0x739   :  { %16110 = vmatprep.subr.bf16.mxu0 %v22376_v12  ;;  %16602 = vmatprep.subr.bf16.mxu1 %v22379_v14  ;;  %v22434_v12 = vld [vmem:[#allocation6 + $0x1c40] ss:$48 sps:$4 sm:$0xff]   ;;  %v22437_v14 = vld [vmem:[#allocation6 + $0x1c48] ss:$48 sps:$4 sm:$0xff]  }
 0x73a   :  { %16140 = vmatprep.mubr.bf16.mxu0 %v23350_v35  ;;  %16632 = vmatprep.mubr.bf16.mxu1 %v23350_v35  ;;  %v22395_v35 = vld [vmem:[#allocation6 + $0x19a8] ss:$48 sps:$4 sm:$0xff]  }
 0x73c   :  { %16111 = vmatpush1.bf16.msra.mxu0 %v22374_v17  ;;  %16603 = vmatpush1.bf16.msra.mxu1 %v22377_v24  ;;  %v22442_v17 = vld [vmem:[#allocation6 + $0x1ca4] ss:$48 sps:$4 sm:$0xff]   ;;  %v22445_v24 = vld [vmem:[#allocation6 + $0x1cac] ss:$48 sps:$4 sm:$0xff]  }
 0x73d   :  { %16112 = vmatprep.subr.bf16.mxu0 %v22382_v56  ;;  %16604 = vmatprep.subr.bf16.mxu1 %v22385_v19  ;;  %v22440_v56 = vld [vmem:[#allocation6 + $0x1ca0] ss:$48 sps:$4 sm:$0xff]   ;;  %v22443_v19 = vld [vmem:[#allocation6 + $0x1ca8] ss:$48 sps:$4 sm:$0xff]  }
 0x740   :  { %16113 = vmatpush1.bf16.msra.mxu0 %v22380_v22  ;;  %16605 = vmatpush1.bf16.msra.mxu1 %v22383_v23  ;;  %v22448_v22 = vld [vmem:[#allocation6 + $0x1d04] ss:$48 sps:$4 sm:$0xff]   ;;  %v22451_v23 = vld [vmem:[#allocation6 + $0x1d0c] ss:$48 sps:$4 sm:$0xff]  }
 0x741   :  { %16114 = vmatprep.subr.bf16.mxu0 %v22388_v3  ;;  %16606 = vmatprep.subr.bf16.mxu1 %v22391_v29  ;;  %v22446_v3 = vld [vmem:[#allocation6 + $0x1d00] ss:$48 sps:$4 sm:$0xff]   ;;  %v22449_v29 = vld [vmem:[#allocation6 + $0x1d08] ss:$48 sps:$4 sm:$0xff]  }
 0x744   :  { %16115 = vmatpush1.bf16.msra.mxu0 %v22386_v26  ;;  %16607 = vmatpush1.bf16.msra.mxu1 %v22389_v13  ;;  %v22454_v26 = vld [vmem:[#allocation6 + $0x1d64] ss:$48 sps:$4 sm:$0xff]   ;;  %v22457_v13 = vld [vmem:[#allocation6 + $0x1d6c] ss:$48 sps:$4 sm:$0xff]  }
 0x745   :  { %16116 = vmatprep.subr.bf16.mxu0 %v22394_v10  ;;  %16608 = vmatprep.subr.bf16.mxu1 %v22397_v27  ;;  %v22452_v10 = vld [vmem:[#allocation6 + $0x1d60] ss:$48 sps:$4 sm:$0xff]   ;;  %v22455_v27 = vld [vmem:[#allocation6 + $0x1d68] ss:$48 sps:$4 sm:$0xff]  }
 0x748   :  { %16117 = vmatpush1.bf16.msra.mxu0 %v22392_v33  ;;  %16609 = vmatpush1.bf16.msra.mxu1 %v22395_v35  ;;  %v22460_v33 = vld [vmem:[#allocation6 + $0x1dc4] ss:$48 sps:$4 sm:$0xff]   ;;  %v22463_v35 = vld [vmem:[#allocation6 + $0x1dcc] ss:$48 sps:$4 sm:$0xff]  }
 0x749   :  { %16118 = vmatprep.subr.bf16.mxu0 %v22400_v34  ;;  %16610 = vmatprep.subr.bf16.mxu1 %v22403_v60  ;;  %v22458_v34 = vld [vmem:[#allocation6 + $0x1dc0] ss:$48 sps:$4 sm:$0xff]   ;;  %v22461_v60 = vld [vmem:[#allocation6 + $0x1dc8] ss:$48 sps:$4 sm:$0xff]  }
 0x74c   :  { %16119 = vmatpush1.bf16.msra.mxu0 %v22398_v38  ;;  %16611 = vmatpush1.bf16.msra.mxu1 %v22401_v15  ;;  %v22466_v38 = vld [vmem:[#allocation6 + $0x1e24] ss:$48 sps:$4 sm:$0xff]   ;;  %v22469_v15 = vld [vmem:[#allocation6 + $0x1e2c] ss:$48 sps:$4 sm:$0xff]  }
 0x74d   :  { %16120 = vmatprep.subr.bf16.mxu0 %v22406_v40  ;;  %16612 = vmatprep.subr.bf16.mxu1 %v22409_v9  ;;  %v22464_v40 = vld [vmem:[#allocation6 + $0x1e20] ss:$48 sps:$4 sm:$0xff]   ;;  %v22467_v9 = vld [vmem:[#allocation6 + $0x1e28] ss:$48 sps:$4 sm:$0xff]  }
 0x750   :  { %16121 = vmatpush1.bf16.msra.mxu0 %v22404_v44  ;;  %16613 = vmatpush1.bf16.msra.mxu1 %v22407_v5  ;;  %v22472_v44 = vld [vmem:[#allocation6 + $0x1e84] ss:$48 sps:$4 sm:$0xff]   ;;  %v22475_v5 = vld [vmem:[#allocation6 + $0x1e8c] ss:$48 sps:$4 sm:$0xff]  }
 0x751   :  { %16122 = vmatprep.subr.bf16.mxu0 %v22412_v45  ;;  %16614 = vmatprep.subr.bf16.mxu1 %v22415_v31  ;;  %v22470_v45 = vld [vmem:[#allocation6 + $0x1e80] ss:$48 sps:$4 sm:$0xff]   ;;  %v22473_v31 = vld [vmem:[#allocation6 + $0x1e88] ss:$48 sps:$4 sm:$0xff]  }
 0x754   :  { %16123 = vmatpush1.bf16.msra.mxu0 %v22410_v41  ;;  %16615 = vmatpush1.bf16.msra.mxu1 %v22413_v49  ;;  %v22478_v41 = vld [vmem:[#allocation6 + $0x1ee4] ss:$48 sps:$4 sm:$0xff]   ;;  %v22481_v49 = vld [vmem:[#allocation6 + $0x1eec] ss:$48 sps:$4 sm:$0xff]  }
 0x755   :  { %16124 = vmatprep.subr.bf16.mxu0 %v22418_v50  ;;  %16616 = vmatprep.subr.bf16.mxu1 %v22421_v30  ;;  %v22476_v50 = vld [vmem:[#allocation6 + $0x1ee0] ss:$48 sps:$4 sm:$0xff]   ;;  %v22479_v30 = vld [vmem:[#allocation6 + $0x1ee8] ss:$48 sps:$4 sm:$0xff]  }
 0x758   :  { %16125 = vmatpush1.bf16.msra.mxu0 %v22416_v52  ;;  %16617 = vmatpush1.bf16.msra.mxu1 %v22419_v53  ;;  %v22484_v52 = vld [vmem:[#allocation6 + $0x1f44] ss:$48 sps:$4 sm:$0xff]   ;;  %v22482_v53 = vld [vmem:[#allocation6 + $0x1f40] ss:$48 sps:$4 sm:$0xff]  }
 0x759   :  { %16126 = vmatprep.subr.bf16.mxu0 %v22424_v54  ;;  %16618 = vmatprep.subr.bf16.mxu1 %v22427_v59  ;;  %v22485_v54 = vld [vmem:[#allocation6 + $0x1f48] ss:$48 sps:$4 sm:$0xff]   ;;  %v22490_v59 = vld [vmem:[#allocation6 + $0x1fa4] ss:$48 sps:$4 sm:$0xff]  }
 0x75c   :  { %16127 = vmatpush1.bf16.msra.mxu0 %v22422_v21  ;;  %16619 = vmatpush1.bf16.msra.mxu1 %v22425_v48  ;;  %v22493_v21 = vld [vmem:[#allocation6 + $0x1fac] ss:$48 sps:$4 sm:$0xff]   ;;  %v22488_v48 = vld [vmem:[#allocation6 + $0x1fa0] ss:$48 sps:$4 sm:$0xff]  }
 0x75d   :  { %16128 = vmatprep.subr.bf16.mxu0 %v22430_v32  ;;  %16620 = vmatprep.subr.bf16.mxu1 %v22433_v6  ;;  %v22496_v32 = vld [vmem:[#allocation6 + $0x2004] ss:$48 sps:$4 sm:$0xff]   ;;  %v22499_v6 = vld [vmem:[#allocation6 + $0x200c] ss:$48 sps:$4 sm:$0xff]  }
 0x760   :  { %16129 = vmatpush1.bf16.msra.mxu0 %v22428_v55  ;;  %16621 = vmatpush1.bf16.msra.mxu1 %v22431_v20  ;;  %v22494_v55 = vld [vmem:[#allocation6 + $0x2000] ss:$48 sps:$4 sm:$0xff]   ;;  %v22497_v20 = vld [vmem:[#allocation6 + $0x2008] ss:$48 sps:$4 sm:$0xff]  }
 0x761   :  { %16130 = vmatprep.subr.bf16.mxu0 %v22436_v7  ;;  %16622 = vmatprep.subr.bf16.mxu1 %v22439_v8  ;;  %v22502_v7 = vld [vmem:[#allocation6 + $0x2064] ss:$48 sps:$4 sm:$0xff]   ;;  %v22505_v8 = vld [vmem:[#allocation6 + $0x206c] ss:$48 sps:$4 sm:$0xff]  }
 0x764   :  { %16131 = vmatpush1.bf16.msra.mxu0 %v22434_v12  ;;  %16623 = vmatpush1.bf16.msra.mxu1 %v22437_v14  ;;  %v22500_v12 = vld [vmem:[#allocation6 + $0x2060] ss:$48 sps:$4 sm:$0xff]   ;;  %v22503_v14 = vld [vmem:[#allocation6 + $0x2068] ss:$48 sps:$4 sm:$0xff]  }
 0x765   :  { %16132 = vmatprep.subr.bf16.mxu0 %v22442_v17  ;;  %16624 = vmatprep.subr.bf16.mxu1 %v22445_v24  ;;  %v22508_v17 = vld [vmem:[#allocation6 + $0x20c4] ss:$48 sps:$4 sm:$0xff]   ;;  %v22511_v24 = vld [vmem:[#allocation6 + $0x20cc] ss:$48 sps:$4 sm:$0xff]  }
 0x768   :  { %16133 = vmatpush1.bf16.msra.mxu0 %v22440_v56  ;;  %16625 = vmatpush1.bf16.msra.mxu1 %v22443_v19  ;;  %v22506_v56 = vld [vmem:[#allocation6 + $0x20c0] ss:$48 sps:$4 sm:$0xff]   ;;  %v22509_v19 = vld [vmem:[#allocation6 + $0x20c8] ss:$48 sps:$4 sm:$0xff]  }
 0x769   :  { %16134 = vmatprep.subr.bf16.mxu0 %v22448_v22  ;;  %16626 = vmatprep.subr.bf16.mxu1 %v22451_v23  ;;  %v22514_v22 = vld [vmem:[#allocation6 + $0x2124] ss:$48 sps:$4 sm:$0xff]   ;;  %v22517_v23 = vld [vmem:[#allocation6 + $0x212c] ss:$48 sps:$4 sm:$0xff]  }
 0x76c   :  { %16135 = vmatpush1.bf16.msra.mxu0 %v22446_v3  ;;  %16627 = vmatpush1.bf16.msra.mxu1 %v22449_v29  ;;  %v22512_v3 = vld [vmem:[#allocation6 + $0x2120] ss:$48 sps:$4 sm:$0xff]   ;;  %v22515_v29 = vld [vmem:[#allocation6 + $0x2128] ss:$48 sps:$4 sm:$0xff]  }
 0x76d   :  { %16136 = vmatprep.subr.bf16.mxu0 %v22454_v26  ;;  %16628 = vmatprep.subr.bf16.mxu1 %v22457_v13  ;;  %v22520_v26 = vld [vmem:[#allocation6 + $0x2184] ss:$48 sps:$4 sm:$0xff]   ;;  %v22523_v13 = vld [vmem:[#allocation6 + $0x218c] ss:$48 sps:$4 sm:$0xff]  }
 0x770   :  { %16137 = vmatpush1.bf16.msra.mxu0 %v22452_v10  ;;  %16629 = vmatpush1.bf16.msra.mxu1 %v22455_v27  ;;  %v22518_v10 = vld [vmem:[#allocation6 + $0x2180] ss:$48 sps:$4 sm:$0xff]   ;;  %v22521_v27 = vld [vmem:[#allocation6 + $0x2188] ss:$48 sps:$4 sm:$0xff]  }
 0x771   :  { %16138 = vmatprep.subr.bf16.mxu0 %v22460_v33  ;;  %16630 = vmatprep.subr.bf16.mxu1 %v22463_v35  ;;  %v22526_v33 = vld [vmem:[#allocation6 + $0x21e4] ss:$48 sps:$4 sm:$0xff]   ;;  %v22529_v35 = vld [vmem:[#allocation6 + $0x21ec] ss:$48 sps:$4 sm:$0xff]  }
 0x774   :  { %16139 = vmatpush1.bf16.msra.mxu0 %v22458_v34  ;;  %16631 = vmatpush1.bf16.msra.mxu1 %v22461_v60  ;;  %v22524_v34 = vld [vmem:[#allocation6 + $0x21e0] ss:$48 sps:$4 sm:$0xff]   ;;  %v22527_v60 = vld [vmem:[#allocation6 + $0x21e8] ss:$48 sps:$4 sm:$0xff]  }
 0x775   :  { %16149 = vmatprep.subr.bf16.mxu0 %v22466_v38  ;;  %16641 = vmatprep.subr.bf16.mxu1 %v22469_v15  ;;  %v22532_v38 = vld [vmem:[#allocation6 + $0x2244] ss:$48 sps:$4 sm:$0xff]   ;;  %v22535_v15 = vld [vmem:[#allocation6 + $0x224c] ss:$48 sps:$4 sm:$0xff]  }
 0x777   :  { %16141 = vmatmul.mubr.bf16.vlgmr.msra.gmra.mrb[8].mxu0 %v23360_v42  ;;  %16633 = vmatmul.mubr.bf16.vlgmr.msra.gmra.mrb[8].mxu1 %v23360_v42  ;;  %v22487_v42 = vld [vmem:[#allocation6 + $0x1f4c] ss:$48 sps:$4 sm:$0xff]  }
 0x778   :  { %16150 = vmatpush1.bf16.msra.mxu0 %v22464_v40  ;;  %16642 = vmatpush1.bf16.msra.mxu1 %v22467_v9  ;;  %v22530_v40 = vld [vmem:[#allocation6 + $0x2240] ss:$48 sps:$4 sm:$0xff]   ;;  %v22533_v9 = vld [vmem:[#allocation6 + $0x2248] ss:$48 sps:$4 sm:$0xff]  }
 0x779   :  { %16151 = vmatprep.subr.bf16.mxu0 %v22472_v44  ;;  %16643 = vmatprep.subr.bf16.mxu1 %v22475_v5  ;;  %v22538_v44 = vld [vmem:[#allocation6 + $0x22a4] ss:$48 sps:$4 sm:$0xff]   ;;  %v22541_v5 = vld [vmem:[#allocation6 + $0x22ac] ss:$48 sps:$4 sm:$0xff]  }
 0x77a   :  { %16181 = vmatprep.mubr.bf16.mxu0 %v23364_v47  ;;  %16673 = vmatprep.mubr.bf16.mxu1 %v23364_v47  ;;  %v22491_v47 = vld [vmem:[#allocation6 + $0x1fa8] ss:$48 sps:$4 sm:$0xff]  }
 0x77c   :  { %16152 = vmatpush1.bf16.msra.mxu0 %v22470_v45  ;;  %16644 = vmatpush1.bf16.msra.mxu1 %v22473_v31  ;;  %v22536_v45 = vld [vmem:[#allocation6 + $0x22a0] ss:$48 sps:$4 sm:$0xff]   ;;  %v22539_v31 = vld [vmem:[#allocation6 + $0x22a8] ss:$48 sps:$4 sm:$0xff]  }
 0x77d   :  { %16153 = vmatprep.subr.bf16.mxu0 %v22478_v41  ;;  %16645 = vmatprep.subr.bf16.mxu1 %v22481_v49  ;;  %v22544_v41 = vld [vmem:[#allocation6 + $0x2304] ss:$48 sps:$4 sm:$0xff]   ;;  %v22547_v49 = vld [vmem:[#allocation6 + $0x230c] ss:$48 sps:$4 sm:$0xff]  }
 0x780   :  { %16154 = vmatpush1.bf16.msra.mxu0 %v22476_v50  ;;  %16646 = vmatpush1.bf16.msra.mxu1 %v22479_v30  ;;  %v22542_v50 = vld [vmem:[#allocation6 + $0x2300] ss:$48 sps:$4 sm:$0xff]   ;;  %v22545_v30 = vld [vmem:[#allocation6 + $0x2308] ss:$48 sps:$4 sm:$0xff]  }
 0x781   :  { %16155 = vmatprep.subr.bf16.mxu0 %v22484_v52  ;;  %16647 = vmatprep.subr.bf16.mxu1 %v22487_v42  ;;  %v22550_v52 = vld [vmem:[#allocation6 + $0x2364] ss:$48 sps:$4 sm:$0xff]   ;;  %v22553_v42 = vld [vmem:[#allocation6 + $0x236c] ss:$48 sps:$4 sm:$0xff]  }
 0x784   :  { %16156 = vmatpush1.bf16.msra.mxu0 %v22482_v53  ;;  %16648 = vmatpush1.bf16.msra.mxu1 %v22485_v54  ;;  %v22548_v53 = vld [vmem:[#allocation6 + $0x2360] ss:$48 sps:$4 sm:$0xff]   ;;  %v22551_v54 = vld [vmem:[#allocation6 + $0x2368] ss:$48 sps:$4 sm:$0xff]  }
 0x785   :  { %16157 = vmatprep.subr.bf16.mxu0 %v22490_v59  ;;  %16649 = vmatprep.subr.bf16.mxu1 %v22493_v21  ;;  %v22556_v59 = vld [vmem:[#allocation6 + $0x23c4] ss:$48 sps:$4 sm:$0xff]   ;;  %v22559_v21 = vld [vmem:[#allocation6 + $0x23cc] ss:$48 sps:$4 sm:$0xff]  }
 0x788   :  { %16158 = vmatpush1.bf16.msra.mxu0 %v22488_v48  ;;  %16650 = vmatpush1.bf16.msra.mxu1 %v22491_v47  ;;  %v22554_v48 = vld [vmem:[#allocation6 + $0x23c0] ss:$48 sps:$4 sm:$0xff]   ;;  %v22557_v47 = vld [vmem:[#allocation6 + $0x23c8] ss:$48 sps:$4 sm:$0xff]  }
 0x789   :  { %16159 = vmatprep.subr.bf16.mxu0 %v22496_v32  ;;  %16651 = vmatprep.subr.bf16.mxu1 %v22499_v6  ;;  %v22562_v32 = vld [vmem:[#allocation6 + $0x2424] ss:$48 sps:$4 sm:$0xff]   ;;  %v22565_v6 = vld [vmem:[#allocation6 + $0x242c] ss:$48 sps:$4 sm:$0xff]  }
 0x78c   :  { %16160 = vmatpush1.bf16.msra.mxu0 %v22494_v55  ;;  %16652 = vmatpush1.bf16.msra.mxu1 %v22497_v20  ;;  %v22560_v55 = vld [vmem:[#allocation6 + $0x2420] ss:$48 sps:$4 sm:$0xff]   ;;  %v22563_v20 = vld [vmem:[#allocation6 + $0x2428] ss:$48 sps:$4 sm:$0xff]  }
 0x78d   :  { %16161 = vmatprep.subr.bf16.mxu0 %v22502_v7  ;;  %16653 = vmatprep.subr.bf16.mxu1 %v22505_v8  ;;  %v22568_v7 = vld [vmem:[#allocation6 + $0x2484] ss:$48 sps:$4 sm:$0xff]   ;;  %v22571_v8 = vld [vmem:[#allocation6 + $0x248c] ss:$48 sps:$4 sm:$0xff]  }
 0x790   :  { %16162 = vmatpush1.bf16.msra.mxu0 %v22500_v12  ;;  %16654 = vmatpush1.bf16.msra.mxu1 %v22503_v14  ;;  %v22566_v12 = vld [vmem:[#allocation6 + $0x2480] ss:$48 sps:$4 sm:$0xff]   ;;  %v22569_v14 = vld [vmem:[#allocation6 + $0x2488] ss:$48 sps:$4 sm:$0xff]  }
 0x791   :  { %16163 = vmatprep.subr.bf16.mxu0 %v22508_v17  ;;  %16655 = vmatprep.subr.bf16.mxu1 %v22511_v24  ;;  %v22574_v17 = vld [vmem:[#allocation6 + $0x24e4] ss:$48 sps:$4 sm:$0xff]   ;;  %v22577_v24 = vld [vmem:[#allocation6 + $0x24ec] ss:$48 sps:$4 sm:$0xff]  }
 0x794   :  { %16164 = vmatpush1.bf16.msra.mxu0 %v22506_v56  ;;  %16656 = vmatpush1.bf16.msra.mxu1 %v22509_v19  ;;  %v22572_v56 = vld [vmem:[#allocation6 + $0x24e0] ss:$48 sps:$4 sm:$0xff]   ;;  %v22575_v19 = vld [vmem:[#allocation6 + $0x24e8] ss:$48 sps:$4 sm:$0xff]  }
 0x795   :  { %16165 = vmatprep.subr.bf16.mxu0 %v22514_v22  ;;  %16657 = vmatprep.subr.bf16.mxu1 %v22517_v23  ;;  %v22580_v22 = vld [vmem:[#allocation6 + $0x2544] ss:$48 sps:$4 sm:$0xff]   ;;  %v22578_v23 = vld [vmem:[#allocation6 + $0x2540] ss:$48 sps:$4 sm:$0xff]  }
 0x798   :  { %16166 = vmatpush1.bf16.msra.mxu0 %v22512_v3  ;;  %16658 = vmatpush1.bf16.msra.mxu1 %v22515_v29  ;;  %v22581_v3 = vld [vmem:[#allocation6 + $0x2548] ss:$48 sps:$4 sm:$0xff]   ;;  %v22586_v29 = vld [vmem:[#allocation6 + $0x25a4] ss:$48 sps:$4 sm:$0xff]  }
 0x799   :  { %16167 = vmatprep.subr.bf16.mxu0 %v22520_v26  ;;  %16659 = vmatprep.subr.bf16.mxu1 %v22523_v13  ;;  %v22589_v26 = vld [vmem:[#allocation6 + $0x25ac] ss:$48 sps:$4 sm:$0xff]   ;;  %v22584_v13 = vld [vmem:[#allocation6 + $0x25a0] ss:$48 sps:$4 sm:$0xff]  }
 0x79c   :  { %16168 = vmatpush1.bf16.msra.mxu0 %v22518_v10  ;;  %16660 = vmatpush1.bf16.msra.mxu1 %v22521_v27  ;;  %v22592_v10 = vld [vmem:[#allocation6 + $0x2604] ss:$48 sps:$4 sm:$0xff]   ;;  %v22595_v27 = vld [vmem:[#allocation6 + $0x260c] ss:$48 sps:$4 sm:$0xff]  }
 0x79d   :  { %16169 = vmatprep.subr.bf16.mxu0 %v22526_v33  ;;  %16661 = vmatprep.subr.bf16.mxu1 %v22529_v35  ;;  %v22590_v33 = vld [vmem:[#allocation6 + $0x2600] ss:$48 sps:$4 sm:$0xff]   ;;  %v22593_v35 = vld [vmem:[#allocation6 + $0x2608] ss:$48 sps:$4 sm:$0xff]  }
 0x7a0   :  { %16170 = vmatpush1.bf16.msra.mxu0 %v22524_v34  ;;  %16662 = vmatpush1.bf16.msra.mxu1 %v22527_v60  ;;  %v22598_v34 = vld [vmem:[#allocation6 + $0x2664] ss:$48 sps:$4 sm:$0xff]   ;;  %v22601_v60 = vld [vmem:[#allocation6 + $0x266c] ss:$48 sps:$4 sm:$0xff]  }
 0x7a1   :  { %16171 = vmatprep.subr.bf16.mxu0 %v22532_v38  ;;  %16663 = vmatprep.subr.bf16.mxu1 %v22535_v15  ;;  %v22596_v38 = vld [vmem:[#allocation6 + $0x2660] ss:$48 sps:$4 sm:$0xff]   ;;  %v22599_v15 = vld [vmem:[#allocation6 + $0x2668] ss:$48 sps:$4 sm:$0xff]  }
 0x7a4   :  { %16172 = vmatpush1.bf16.msra.mxu0 %v22530_v40  ;;  %16664 = vmatpush1.bf16.msra.mxu1 %v22533_v9  ;;  %v22604_v40 = vld [vmem:[#allocation6 + $0x26c4] ss:$48 sps:$4 sm:$0xff]   ;;  %v22607_v9 = vld [vmem:[#allocation6 + $0x26cc] ss:$48 sps:$4 sm:$0xff]  }
 0x7a5   :  { %16173 = vmatprep.subr.bf16.mxu0 %v22538_v44  ;;  %16665 = vmatprep.subr.bf16.mxu1 %v22541_v5  ;;  %v22602_v44 = vld [vmem:[#allocation6 + $0x26c0] ss:$48 sps:$4 sm:$0xff]   ;;  %v22605_v5 = vld [vmem:[#allocation6 + $0x26c8] ss:$48 sps:$4 sm:$0xff]  }
 0x7a8   :  { %16174 = vmatpush1.bf16.msra.mxu0 %v22536_v45  ;;  %16666 = vmatpush1.bf16.msra.mxu1 %v22539_v31  ;;  %v22610_v45 = vld [vmem:[#allocation6 + $0x2724] ss:$48 sps:$4 sm:$0xff]   ;;  %v22613_v31 = vld [vmem:[#allocation6 + $0x272c] ss:$48 sps:$4 sm:$0xff]  }
 0x7a9   :  { %16175 = vmatprep.subr.bf16.mxu0 %v22544_v41  ;;  %16667 = vmatprep.subr.bf16.mxu1 %v22547_v49  ;;  %v22608_v41 = vld [vmem:[#allocation6 + $0x2720] ss:$48 sps:$4 sm:$0xff]   ;;  %v22611_v49 = vld [vmem:[#allocation6 + $0x2728] ss:$48 sps:$4 sm:$0xff]  }
 0x7ac   :  { %16176 = vmatpush1.bf16.msra.mxu0 %v22542_v50  ;;  %16668 = vmatpush1.bf16.msra.mxu1 %v22545_v30  ;;  %v22616_v50 = vld [vmem:[#allocation6 + $0x2784] ss:$48 sps:$4 sm:$0xff]   ;;  %v22619_v30 = vld [vmem:[#allocation6 + $0x278c] ss:$48 sps:$4 sm:$0xff]  }
 0x7ad   :  { %16177 = vmatprep.subr.bf16.mxu0 %v22550_v52  ;;  %16669 = vmatprep.subr.bf16.mxu1 %v22553_v42  ;;  %v22614_v52 = vld [vmem:[#allocation6 + $0x2780] ss:$48 sps:$4 sm:$0xff]   ;;  %v22617_v42 = vld [vmem:[#allocation6 + $0x2788] ss:$48 sps:$4 sm:$0xff]  }
 0x7b0   :  { %16178 = vmatpush1.bf16.msra.mxu0 %v22548_v53  ;;  %16670 = vmatpush1.bf16.msra.mxu1 %v22551_v54  ;;  %v22622_v53 = vld [vmem:[#allocation6 + $0x27e4] ss:$48 sps:$4 sm:$0xff]   ;;  %v22625_v54 = vld [vmem:[#allocation6 + $0x27ec] ss:$48 sps:$4 sm:$0xff]  }
 0x7b1   :  { %16179 = vmatprep.subr.bf16.mxu0 %v22556_v59  ;;  %16671 = vmatprep.subr.bf16.mxu1 %v22559_v21  ;;  %v22620_v59 = vld [vmem:[#allocation6 + $0x27e0] ss:$48 sps:$4 sm:$0xff]   ;;  %v22623_v21 = vld [vmem:[#allocation6 + $0x27e8] ss:$48 sps:$4 sm:$0xff]  }
 0x7b4   :  { %16180 = vmatpush1.bf16.msra.mxu0 %v22554_v48  ;;  %16672 = vmatpush1.bf16.msra.mxu1 %v22557_v47  ;;  %v22628_v48 = vld [vmem:[#allocation6 + $0x2844] ss:$48 sps:$4 sm:$0xff]   ;;  %v22631_v47 = vld [vmem:[#allocation6 + $0x284c] ss:$48 sps:$4 sm:$0xff]  }
 0x7b5   :  { %16190 = vmatprep.subr.bf16.mxu0 %v22562_v32  ;;  %16682 = vmatprep.subr.bf16.mxu1 %v22565_v6  ;;  %v22626_v32 = vld [vmem:[#allocation6 + $0x2840] ss:$48 sps:$4 sm:$0xff]   ;;  %v22629_v6 = vld [vmem:[#allocation6 + $0x2848] ss:$48 sps:$4 sm:$0xff]  }
 0x7b7   :  { %16182 = vmatmul.mubr.bf16.vlgmr.msra.gmra.mrb[8].mxu0 %v23374_v57  ;;  %16674 = vmatmul.mubr.bf16.vlgmr.msra.gmra.mrb[8].mxu1 %v23374_v57  ;;  %v22583_v57 = vld [vmem:[#allocation6 + $0x254c] ss:$48 sps:$4 sm:$0xff]  }
 0x7b8   :  { %16191 = vmatpush1.bf16.msra.mxu0 %v22560_v55  ;;  %16683 = vmatpush1.bf16.msra.mxu1 %v22563_v20  ;;  %v22634_v55 = vld [vmem:[#allocation6 + $0x28a4] ss:$48 sps:$4 sm:$0xff]   ;;  %v22637_v20 = vld [vmem:[#allocation6 + $0x28ac] ss:$48 sps:$4 sm:$0xff]  }
 0x7b9   :  { %16192 = vmatprep.subr.bf16.mxu0 %v22568_v7  ;;  %16684 = vmatprep.subr.bf16.mxu1 %v22571_v8  ;;  %v22632_v7 = vld [vmem:[#allocation6 + $0x28a0] ss:$48 sps:$4 sm:$0xff]   ;;  %v22635_v8 = vld [vmem:[#allocation6 + $0x28a8] ss:$48 sps:$4 sm:$0xff]  }
 0x7ba   :  { %16222 = vmatprep.mubr.bf16.mxu0 %v23378_v62  ;;  %16714 = vmatprep.mubr.bf16.mxu1 %v23378_v62  ;;  %v22587_v62 = vld [vmem:[#allocation6 + $0x25a8] ss:$48 sps:$4 sm:$0xff]  }
 0x7bc   :  { %16193 = vmatpush1.bf16.msra.mxu0 %v22566_v12  ;;  %16685 = vmatpush1.bf16.msra.mxu1 %v22569_v14  ;;  %v22640_v12 = vld [vmem:[#allocation6 + $0x2904] ss:$48 sps:$4 sm:$0xff]   ;;  %v22643_v14 = vld [vmem:[#allocation6 + $0x290c] ss:$48 sps:$4 sm:$0xff]  }
 0x7bd   :  { %16194 = vmatprep.subr.bf16.mxu0 %v22574_v17  ;;  %16686 = vmatprep.subr.bf16.mxu1 %v22577_v24  ;;  %v22638_v17 = vld [vmem:[#allocation6 + $0x2900] ss:$48 sps:$4 sm:$0xff]   ;;  %v22641_v24 = vld [vmem:[#allocation6 + $0x2908] ss:$48 sps:$4 sm:$0xff]  }
 0x7c0   :  { %16195 = vmatpush1.bf16.msra.mxu0 %v22572_v56  ;;  %16687 = vmatpush1.bf16.msra.mxu1 %v22575_v19  ;;  %v22646_v56 = vld [vmem:[#allocation6 + $0x2964] ss:$48 sps:$4 sm:$0xff]   ;;  %v22649_v19 = vld [vmem:[#allocation6 + $0x296c] ss:$48 sps:$4 sm:$0xff]  }
 0x7c1   :  { %16196 = vmatprep.subr.bf16.mxu0 %v22580_v22  ;;  %16688 = vmatprep.subr.bf16.mxu1 %v22583_v57  ;;  %v22644_v22 = vld [vmem:[#allocation6 + $0x2960] ss:$48 sps:$4 sm:$0xff]   ;;  %v22647_v57 = vld [vmem:[#allocation6 + $0x2968] ss:$48 sps:$4 sm:$0xff]  }
 0x7c4   :  { %16197 = vmatpush1.bf16.msra.mxu0 %v22578_v23  ;;  %16689 = vmatpush1.bf16.msra.mxu1 %v22581_v3  ;;  %v22652_v23 = vld [vmem:[#allocation6 + $0x29c4] ss:$48 sps:$4 sm:$0xff]   ;;  %v22655_v3 = vld [vmem:[#allocation6 + $0x29cc] ss:$48 sps:$4 sm:$0xff]  }
 0x7c5   :  { %16198 = vmatprep.subr.bf16.mxu0 %v22586_v29  ;;  %16690 = vmatprep.subr.bf16.mxu1 %v22589_v26  ;;  %v22650_v29 = vld [vmem:[#allocation6 + $0x29c0] ss:$48 sps:$4 sm:$0xff]   ;;  %v22653_v26 = vld [vmem:[#allocation6 + $0x29c8] ss:$48 sps:$4 sm:$0xff]  }
 0x7c8   :  { %16199 = vmatpush1.bf16.msra.mxu0 %v22584_v13  ;;  %16691 = vmatpush1.bf16.msra.mxu1 %v22587_v62  ;;  %v22658_v13 = vld [vmem:[#allocation6 + $0x2a24] ss:$48 sps:$4 sm:$0xff]   ;;  %v22661_v62 = vld [vmem:[#allocation6 + $0x2a2c] ss:$48 sps:$4 sm:$0xff]  }
 0x7c9   :  { %16200 = vmatprep.subr.bf16.mxu0 %v22592_v10  ;;  %16692 = vmatprep.subr.bf16.mxu1 %v22595_v27  ;;  %v22656_v10 = vld [vmem:[#allocation6 + $0x2a20] ss:$48 sps:$4 sm:$0xff]   ;;  %v22659_v27 = vld [vmem:[#allocation6 + $0x2a28] ss:$48 sps:$4 sm:$0xff]  }
 0x7cc   :  { %16201 = vmatpush1.bf16.msra.mxu0 %v22590_v33  ;;  %16693 = vmatpush1.bf16.msra.mxu1 %v22593_v35  ;;  %v22664_v33 = vld [vmem:[#allocation6 + $0x2a84] ss:$48 sps:$4 sm:$0xff]   ;;  %v22667_v35 = vld [vmem:[#allocation6 + $0x2a8c] ss:$48 sps:$4 sm:$0xff]  }
 0x7cd   :  { %16202 = vmatprep.subr.bf16.mxu0 %v22598_v34  ;;  %16694 = vmatprep.subr.bf16.mxu1 %v22601_v60  ;;  %v22662_v34 = vld [vmem:[#allocation6 + $0x2a80] ss:$48 sps:$4 sm:$0xff]   ;;  %v22665_v60 = vld [vmem:[#allocation6 + $0x2a88] ss:$48 sps:$4 sm:$0xff]  }
 0x7d0   :  { %16203 = vmatpush1.bf16.msra.mxu0 %v22596_v38  ;;  %16695 = vmatpush1.bf16.msra.mxu1 %v22599_v15  ;;  %v22670_v38 = vld [vmem:[#allocation6 + $0x2ae4] ss:$48 sps:$4 sm:$0xff]   ;;  %v22673_v15 = vld [vmem:[#allocation6 + $0x2aec] ss:$48 sps:$4 sm:$0xff]  }
 0x7d1   :  { %16204 = vmatprep.subr.bf16.mxu0 %v22604_v40  ;;  %16696 = vmatprep.subr.bf16.mxu1 %v22607_v9  ;;  %v22668_v40 = vld [vmem:[#allocation6 + $0x2ae0] ss:$48 sps:$4 sm:$0xff]   ;;  %v22671_v9 = vld [vmem:[#allocation6 + $0x2ae8] ss:$48 sps:$4 sm:$0xff]  }
 0x7d4   :  { %16205 = vmatpush1.bf16.msra.mxu0 %v22602_v44  ;;  %16697 = vmatpush1.bf16.msra.mxu1 %v22605_v5  ;;  %v22676_v44 = vld [vmem:[#allocation6 + $0x2b44] ss:$48 sps:$4 sm:$0xff]   ;;  %v22674_v5 = vld [vmem:[#allocation6 + $0x2b40] ss:$48 sps:$4 sm:$0xff]  }
 0x7d5   :  { %16206 = vmatprep.subr.bf16.mxu0 %v22610_v45  ;;  %16698 = vmatprep.subr.bf16.mxu1 %v22613_v31  ;;  %v22677_v45 = vld [vmem:[#allocation6 + $0x2b48] ss:$48 sps:$4 sm:$0xff]   ;;  %v22682_v31 = vld [vmem:[#allocation6 + $0x2ba4] ss:$48 sps:$4 sm:$0xff]  }
 0x7d8   :  { %16207 = vmatpush1.bf16.msra.mxu0 %v22608_v41  ;;  %16699 = vmatpush1.bf16.msra.mxu1 %v22611_v49  ;;  %v22685_v41 = vld [vmem:[#allocation6 + $0x2bac] ss:$48 sps:$4 sm:$0xff]   ;;  %v22680_v49 = vld [vmem:[#allocation6 + $0x2ba0] ss:$48 sps:$4 sm:$0xff]  }
 0x7d9   :  { %16208 = vmatprep.subr.bf16.mxu0 %v22616_v50  ;;  %16700 = vmatprep.subr.bf16.mxu1 %v22619_v30  ;;  %v22688_v50 = vld [vmem:[#allocation6 + $0x2c04] ss:$48 sps:$4 sm:$0xff]   ;;  %v22691_v30 = vld [vmem:[#allocation6 + $0x2c0c] ss:$48 sps:$4 sm:$0xff]  }
 0x7dc   :  { %16209 = vmatpush1.bf16.msra.mxu0 %v22614_v52  ;;  %16701 = vmatpush1.bf16.msra.mxu1 %v22617_v42  ;;  %v22686_v52 = vld [vmem:[#allocation6 + $0x2c00] ss:$48 sps:$4 sm:$0xff]   ;;  %v22689_v42 = vld [vmem:[#allocation6 + $0x2c08] ss:$48 sps:$4 sm:$0xff]  }
 0x7dd   :  { %16210 = vmatprep.subr.bf16.mxu0 %v22622_v53  ;;  %16702 = vmatprep.subr.bf16.mxu1 %v22625_v54  ;;  %v22694_v53 = vld [vmem:[#allocation6 + $0x2c64] ss:$48 sps:$4 sm:$0xff]   ;;  %v22697_v54 = vld [vmem:[#allocation6 + $0x2c6c] ss:$48 sps:$4 sm:$0xff]  }
 0x7e0   :  { %16211 = vmatpush1.bf16.msra.mxu0 %v22620_v59  ;;  %16703 = vmatpush1.bf16.msra.mxu1 %v22623_v21  ;;  %v22692_v59 = vld [vmem:[#allocation6 + $0x2c60] ss:$48 sps:$4 sm:$0xff]   ;;  %v22695_v21 = vld [vmem:[#allocation6 + $0x2c68] ss:$48 sps:$4 sm:$0xff]  }
 0x7e1   :  { %16212 = vmatprep.subr.bf16.mxu0 %v22628_v48  ;;  %16704 = vmatprep.subr.bf16.mxu1 %v22631_v47  ;;  %v22700_v48 = vld [vmem:[#allocation6 + $0x2cc4] ss:$48 sps:$4 sm:$0xff]   ;;  %v22703_v47 = vld [vmem:[#allocation6 + $0x2ccc] ss:$48 sps:$4 sm:$0xff]  }
 0x7e4   :  { %16213 = vmatpush1.bf16.msra.mxu0 %v22626_v32  ;;  %16705 = vmatpush1.bf16.msra.mxu1 %v22629_v6  ;;  %v22698_v32 = vld [vmem:[#allocation6 + $0x2cc0] ss:$48 sps:$4 sm:$0xff]   ;;  %v22701_v6 = vld [vmem:[#allocation6 + $0x2cc8] ss:$48 sps:$4 sm:$0xff]  }
 0x7e5   :  { %16214 = vmatprep.subr.bf16.mxu0 %v22634_v55  ;;  %16706 = vmatprep.subr.bf16.mxu1 %v22637_v20  ;;  %v22706_v55 = vld [vmem:[#allocation6 + $0x2d24] ss:$48 sps:$4 sm:$0xff]   ;;  %v22709_v20 = vld [vmem:[#allocation6 + $0x2d2c] ss:$48 sps:$4 sm:$0xff]  }
 0x7e8   :  { %16215 = vmatpush1.bf16.msra.mxu0 %v22632_v7  ;;  %16707 = vmatpush1.bf16.msra.mxu1 %v22635_v8  ;;  %v22704_v7 = vld [vmem:[#allocation6 + $0x2d20] ss:$48 sps:$4 sm:$0xff]   ;;  %v22707_v8 = vld [vmem:[#allocation6 + $0x2d28] ss:$48 sps:$4 sm:$0xff]  }
 0x7e9   :  { %16216 = vmatprep.subr.bf16.mxu0 %v22640_v12  ;;  %16708 = vmatprep.subr.bf16.mxu1 %v22643_v14  ;;  %v22712_v12 = vld [vmem:[#allocation6 + $0x2d84] ss:$48 sps:$4 sm:$0xff]   ;;  %v22715_v14 = vld [vmem:[#allocation6 + $0x2d8c] ss:$48 sps:$4 sm:$0xff]  }
 0x7ec   :  { %16217 = vmatpush1.bf16.msra.mxu0 %v22638_v17  ;;  %16709 = vmatpush1.bf16.msra.mxu1 %v22641_v24  ;;  %v22710_v17 = vld [vmem:[#allocation6 + $0x2d80] ss:$48 sps:$4 sm:$0xff]   ;;  %v22713_v24 = vld [vmem:[#allocation6 + $0x2d88] ss:$48 sps:$4 sm:$0xff]  }
 0x7ed   :  { %16218 = vmatprep.subr.bf16.mxu0 %v22646_v56  ;;  %16710 = vmatprep.subr.bf16.mxu1 %v22649_v19  ;;  %v22718_v56 = vld [vmem:[#allocation6 + $0x2de4] ss:$48 sps:$4 sm:$0xff]   ;;  %v22721_v19 = vld [vmem:[#allocation6 + $0x2dec] ss:$48 sps:$4 sm:$0xff]  }
 0x7f0   :  { %16219 = vmatpush1.bf16.msra.mxu0 %v22644_v22  ;;  %16711 = vmatpush1.bf16.msra.mxu1 %v22647_v57  ;;  %v22716_v22 = vld [vmem:[#allocation6 + $0x2de0] ss:$48 sps:$4 sm:$0xff]   ;;  %v22719_v57 = vld [vmem:[#allocation6 + $0x2de8] ss:$48 sps:$4 sm:$0xff]  }
 0x7f1   :  { %16220 = vmatprep.subr.bf16.mxu0 %v22652_v23  ;;  %16712 = vmatprep.subr.bf16.mxu1 %v22655_v3  ;;  %v22724_v23 = vld [vmem:[#allocation6 + $0x2e44] ss:$48 sps:$4 sm:$0xff]   ;;  %v22727_v3 = vld [vmem:[#allocation6 + $0x2e4c] ss:$48 sps:$4 sm:$0xff]  }
 0x7f4   :  { %16221 = vmatpush1.bf16.msra.mxu0 %v22650_v29  ;;  %16713 = vmatpush1.bf16.msra.mxu1 %v22653_v26  ;;  %v22722_v29 = vld [vmem:[#allocation6 + $0x2e40] ss:$48 sps:$4 sm:$0xff]   ;;  %v22725_v26 = vld [vmem:[#allocation6 + $0x2e48] ss:$48 sps:$4 sm:$0xff]  }
 0x7f5   :  { %16231 = vmatprep.subr.bf16.mxu0 %v22658_v13  ;;  %16723 = vmatprep.subr.bf16.mxu1 %v22661_v62  ;;  %v22730_v13 = vld [vmem:[#allocation6 + $0x2ea4] ss:$48 sps:$4 sm:$0xff]   ;;  %v22733_v62 = vld [vmem:[#allocation6 + $0x2eac] ss:$48 sps:$4 sm:$0xff]  }
 0x7f7   :  { %16223 = vmatmul.mubr.bf16.vlgmr.msra.gmra.mrb[8].mxu0 %v23388_v11  ;;  %16715 = vmatmul.mubr.bf16.vlgmr.msra.gmra.mrb[8].mxu1 %v23388_v11  ;;  %v22679_v11 = vld [vmem:[#allocation6 + $0x2b4c] ss:$48 sps:$4 sm:$0xff]  }
 0x7f8   :  { %16232 = vmatpush1.bf16.msra.mxu0 %v22656_v10  ;;  %16724 = vmatpush1.bf16.msra.mxu1 %v22659_v27  ;;  %v22728_v10 = vld [vmem:[#allocation6 + $0x2ea0] ss:$48 sps:$4 sm:$0xff]   ;;  %v22731_v27 = vld [vmem:[#allocation6 + $0x2ea8] ss:$48 sps:$4 sm:$0xff]  }
 0x7f9   :  { %16233 = vmatprep.subr.bf16.mxu0 %v22664_v33  ;;  %16725 = vmatprep.subr.bf16.mxu1 %v22667_v35  ;;  %v22736_v33 = vld [vmem:[#allocation6 + $0x2f04] ss:$48 sps:$4 sm:$0xff]   ;;  %v22739_v35 = vld [vmem:[#allocation6 + $0x2f0c] ss:$48 sps:$4 sm:$0xff]  }
 0x7fa   :  { %16263 = vmatprep.mubr.bf16.mxu0 %v23392_v18  ;;  %16755 = vmatprep.mubr.bf16.mxu1 %v23392_v18  ;;  %v22683_v18 = vld [vmem:[#allocation6 + $0x2ba8] ss:$48 sps:$4 sm:$0xff]  }
 0x7fc   :  { %16234 = vmatpush1.bf16.msra.mxu0 %v22662_v34  ;;  %16726 = vmatpush1.bf16.msra.mxu1 %v22665_v60  ;;  %v22734_v34 = vld [vmem:[#allocation6 + $0x2f00] ss:$48 sps:$4 sm:$0xff]   ;;  %v22737_v60 = vld [vmem:[#allocation6 + $0x2f08] ss:$48 sps:$4 sm:$0xff]  }
 0x7fd   :  { %16235 = vmatprep.subr.bf16.mxu0 %v22670_v38  ;;  %16727 = vmatprep.subr.bf16.mxu1 %v22673_v15  ;;  %v22742_v38 = vld [vmem:[#allocation6 + $0x2f64] ss:$48 sps:$4 sm:$0xff]   ;;  %v22745_v15 = vld [vmem:[#allocation6 + $0x2f6c] ss:$48 sps:$4 sm:$0xff]  }
 0x800   :  { %16236 = vmatpush1.bf16.msra.mxu0 %v22668_v40  ;;  %16728 = vmatpush1.bf16.msra.mxu1 %v22671_v9  ;;  %v22740_v40 = vld [vmem:[#allocation6 + $0x2f60] ss:$48 sps:$4 sm:$0xff]   ;;  %v22743_v9 = vld [vmem:[#allocation6 + $0x2f68] ss:$48 sps:$4 sm:$0xff]  }
 0x801   :  { %16237 = vmatprep.subr.bf16.mxu0 %v22676_v44  ;;  %16729 = vmatprep.subr.bf16.mxu1 %v22679_v11  ;;  %v22748_v44 = vld [vmem:[#allocation6 + $0x2fc4] ss:$48 sps:$4 sm:$0xff]   ;;  %v22751_v11 = vld [vmem:[#allocation6 + $0x2fcc] ss:$48 sps:$4 sm:$0xff]  }
 0x804   :  { %16238 = vmatpush1.bf16.msra.mxu0 %v22674_v5  ;;  %16730 = vmatpush1.bf16.msra.mxu1 %v22677_v45  ;;  %v22746_v5 = vld [vmem:[#allocation6 + $0x2fc0] ss:$48 sps:$4 sm:$0xff]   ;;  %v22749_v45 = vld [vmem:[#allocation6 + $0x2fc8] ss:$48 sps:$4 sm:$0xff]  }
 0x805   :  { %16239 = vmatprep.subr.bf16.mxu0 %v22682_v31  ;;  %16731 = vmatprep.subr.bf16.mxu1 %v22685_v41  ;;  %v22754_v31 = vld [vmem:[#allocation6 + $0x3024] ss:$48 sps:$4 sm:$0xff]   ;;  %v22757_v41 = vld [vmem:[#allocation6 + $0x302c] ss:$48 sps:$4 sm:$0xff]  }
 0x808   :  { %16240 = vmatpush1.bf16.msra.mxu0 %v22680_v49  ;;  %16732 = vmatpush1.bf16.msra.mxu1 %v22683_v18  ;;  %v22752_v49 = vld [vmem:[#allocation6 + $0x3020] ss:$48 sps:$4 sm:$0xff]   ;;  %v22755_v18 = vld [vmem:[#allocation6 + $0x3028] ss:$48 sps:$4 sm:$0xff]  }
 0x809   :  { %16241 = vmatprep.subr.bf16.mxu0 %v22688_v50  ;;  %16733 = vmatprep.subr.bf16.mxu1 %v22691_v30  ;;  %v22760_v50 = vld [vmem:[#allocation6 + $0x3084] ss:$48 sps:$4 sm:$0xff]   ;;  %v22763_v30 = vld [vmem:[#allocation6 + $0x308c] ss:$48 sps:$4 sm:$0xff]  }
 0x80c   :  { %16242 = vmatpush1.bf16.msra.mxu0 %v22686_v52  ;;  %16734 = vmatpush1.bf16.msra.mxu1 %v22689_v42  ;;  %v22758_v52 = vld [vmem:[#allocation6 + $0x3080] ss:$48 sps:$4 sm:$0xff]   ;;  %v22761_v42 = vld [vmem:[#allocation6 + $0x3088] ss:$48 sps:$4 sm:$0xff]  }
 0x80d   :  { %16243 = vmatprep.subr.bf16.mxu0 %v22694_v53  ;;  %16735 = vmatprep.subr.bf16.mxu1 %v22697_v54  ;;  %v22766_v53 = vld [vmem:[#allocation6 + $0x30e4] ss:$48 sps:$4 sm:$0xff]   ;;  %v22769_v54 = vld [vmem:[#allocation6 + $0x30ec] ss:$48 sps:$4 sm:$0xff]  }
 0x810   :  { %16244 = vmatpush1.bf16.msra.mxu0 %v22692_v59  ;;  %16736 = vmatpush1.bf16.msra.mxu1 %v22695_v21  ;;  %v22764_v59 = vld [vmem:[#allocation6 + $0x30e0] ss:$48 sps:$4 sm:$0xff]   ;;  %v22767_v21 = vld [vmem:[#allocation6 + $0x30e8] ss:$48 sps:$4 sm:$0xff]  }
 0x811   :  { %16245 = vmatprep.subr.bf16.mxu0 %v22700_v48  ;;  %16737 = vmatprep.subr.bf16.mxu1 %v22703_v47  ;;  %v22772_v48 = vld [vmem:[#allocation6 + $0x3144] ss:$48 sps:$4 sm:$0xff]   ;;  %v22770_v47 = vld [vmem:[#allocation6 + $0x3140] ss:$48 sps:$4 sm:$0xff]  }
 0x814   :  { %16246 = vmatpush1.bf16.msra.mxu0 %v22698_v32  ;;  %16738 = vmatpush1.bf16.msra.mxu1 %v22701_v6  ;;  %v22773_v32 = vld [vmem:[#allocation6 + $0x3148] ss:$48 sps:$4 sm:$0xff]   ;;  %v22778_v6 = vld [vmem:[#allocation6 + $0x31a4] ss:$48 sps:$4 sm:$0xff]  }
 0x815   :  { %16247 = vmatprep.subr.bf16.mxu0 %v22706_v55  ;;  %16739 = vmatprep.subr.bf16.mxu1 %v22709_v20  ;;  %v22781_v55 = vld [vmem:[#allocation6 + $0x31ac] ss:$48 sps:$4 sm:$0xff]   ;;  %v22776_v20 = vld [vmem:[#allocation6 + $0x31a0] ss:$48 sps:$4 sm:$0xff]  }
 0x818   :  { %16248 = vmatpush1.bf16.msra.mxu0 %v22704_v7  ;;  %16740 = vmatpush1.bf16.msra.mxu1 %v22707_v8  ;;  %v22784_v7 = vld [vmem:[#allocation6 + $0x3204] ss:$48 sps:$4 sm:$0xff]   ;;  %v22787_v8 = vld [vmem:[#allocation6 + $0x320c] ss:$48 sps:$4 sm:$0xff]  }
 0x819   :  { %16249 = vmatprep.subr.bf16.mxu0 %v22712_v12  ;;  %16741 = vmatprep.subr.bf16.mxu1 %v22715_v14  ;;  %v22782_v12 = vld [vmem:[#allocation6 + $0x3200] ss:$48 sps:$4 sm:$0xff]   ;;  %v22785_v14 = vld [vmem:[#allocation6 + $0x3208] ss:$48 sps:$4 sm:$0xff]  }
 0x81c   :  { %16250 = vmatpush1.bf16.msra.mxu0 %v22710_v17  ;;  %16742 = vmatpush1.bf16.msra.mxu1 %v22713_v24  ;;  %v22790_v17 = vld [vmem:[#allocation6 + $0x3264] ss:$48 sps:$4 sm:$0xff]   ;;  %v22793_v24 = vld [vmem:[#allocation6 + $0x326c] ss:$48 sps:$4 sm:$0xff]  }
 0x81d   :  { %16251 = vmatprep.subr.bf16.mxu0 %v22718_v56  ;;  %16743 = vmatprep.subr.bf16.mxu1 %v22721_v19  ;;  %v22788_v56 = vld [vmem:[#allocation6 + $0x3260] ss:$48 sps:$4 sm:$0xff]   ;;  %v22791_v19 = vld [vmem:[#allocation6 + $0x3268] ss:$48 sps:$4 sm:$0xff]  }
 0x820   :  { %16252 = vmatpush1.bf16.msra.mxu0 %v22716_v22  ;;  %16744 = vmatpush1.bf16.msra.mxu1 %v22719_v57  ;;  %v22796_v22 = vld [vmem:[#allocation6 + $0x32c4] ss:$48 sps:$4 sm:$0xff]   ;;  %v22799_v57 = vld [vmem:[#allocation6 + $0x32cc] ss:$48 sps:$4 sm:$0xff]  }
 0x821   :  { %16253 = vmatprep.subr.bf16.mxu0 %v22724_v23  ;;  %16745 = vmatprep.subr.bf16.mxu1 %v22727_v3  ;;  %v22794_v23 = vld [vmem:[#allocation6 + $0x32c0] ss:$48 sps:$4 sm:$0xff]   ;;  %v22797_v3 = vld [vmem:[#allocation6 + $0x32c8] ss:$48 sps:$4 sm:$0xff]  }
 0x824   :  { %16254 = vmatpush1.bf16.msra.mxu0 %v22722_v29  ;;  %16746 = vmatpush1.bf16.msra.mxu1 %v22725_v26  ;;  %v22802_v29 = vld [vmem:[#allocation6 + $0x3324] ss:$48 sps:$4 sm:$0xff]   ;;  %v22805_v26 = vld [vmem:[#allocation6 + $0x332c] ss:$48 sps:$4 sm:$0xff]  }
 0x825   :  { %16255 = vmatprep.subr.bf16.mxu0 %v22730_v13  ;;  %16747 = vmatprep.subr.bf16.mxu1 %v22733_v62  ;;  %v22800_v13 = vld [vmem:[#allocation6 + $0x3320] ss:$48 sps:$4 sm:$0xff]   ;;  %v22803_v62 = vld [vmem:[#allocation6 + $0x3328] ss:$48 sps:$4 sm:$0xff]  }
 0x828   :  { %16256 = vmatpush1.bf16.msra.mxu0 %v22728_v10  ;;  %16748 = vmatpush1.bf16.msra.mxu1 %v22731_v27  ;;  %v22808_v10 = vld [vmem:[#allocation6 + $0x3384] ss:$48 sps:$4 sm:$0xff]   ;;  %v22811_v27 = vld [vmem:[#allocation6 + $0x338c] ss:$48 sps:$4 sm:$0xff]  }
 0x829   :  { %16257 = vmatprep.subr.bf16.mxu0 %v22736_v33  ;;  %16749 = vmatprep.subr.bf16.mxu1 %v22739_v35  ;;  %v22806_v33 = vld [vmem:[#allocation6 + $0x3380] ss:$48 sps:$4 sm:$0xff]   ;;  %v22809_v35 = vld [vmem:[#allocation6 + $0x3388] ss:$48 sps:$4 sm:$0xff]  }
 0x82c   :  { %16258 = vmatpush1.bf16.msra.mxu0 %v22734_v34  ;;  %16750 = vmatpush1.bf16.msra.mxu1 %v22737_v60  ;;  %v22814_v34 = vld [vmem:[#allocation6 + $0x33e4] ss:$48 sps:$4 sm:$0xff]   ;;  %v22817_v60 = vld [vmem:[#allocation6 + $0x33ec] ss:$48 sps:$4 sm:$0xff]  }
 0x82d   :  { %16259 = vmatprep.subr.bf16.mxu0 %v22742_v38  ;;  %16751 = vmatprep.subr.bf16.mxu1 %v22745_v15  ;;  %v22812_v38 = vld [vmem:[#allocation6 + $0x33e0] ss:$48 sps:$4 sm:$0xff]   ;;  %v22815_v15 = vld [vmem:[#allocation6 + $0x33e8] ss:$48 sps:$4 sm:$0xff]  }
 0x830   :  { %16260 = vmatpush1.bf16.msra.mxu0 %v22740_v40  ;;  %16752 = vmatpush1.bf16.msra.mxu1 %v22743_v9  ;;  %v22820_v40 = vld [vmem:[#allocation6 + $0x3444] ss:$48 sps:$4 sm:$0xff]   ;;  %v22823_v9 = vld [vmem:[#allocation6 + $0x344c] ss:$48 sps:$4 sm:$0xff]  }
 0x831   :  { %16261 = vmatprep.subr.bf16.mxu0 %v22748_v44  ;;  %16753 = vmatprep.subr.bf16.mxu1 %v22751_v11  ;;  %v22818_v44 = vld [vmem:[#allocation6 + $0x3440] ss:$48 sps:$4 sm:$0xff]   ;;  %v22821_v11 = vld [vmem:[#allocation6 + $0x3448] ss:$48 sps:$4 sm:$0xff]  }
 0x834   :  { %16262 = vmatpush1.bf16.msra.mxu0 %v22746_v5  ;;  %16754 = vmatpush1.bf16.msra.mxu1 %v22749_v45  ;;  %v22826_v5 = vld [vmem:[#allocation6 + $0x34a4] ss:$48 sps:$4 sm:$0xff]   ;;  %v22829_v45 = vld [vmem:[#allocation6 + $0x34ac] ss:$48 sps:$4 sm:$0xff]  }
 0x835   :  { %16272 = vmatprep.subr.bf16.mxu0 %v22754_v31  ;;  %16764 = vmatprep.subr.bf16.mxu1 %v22757_v41  ;;  %v22824_v31 = vld [vmem:[#allocation6 + $0x34a0] ss:$48 sps:$4 sm:$0xff]   ;;  %v22827_v41 = vld [vmem:[#allocation6 + $0x34a8] ss:$48 sps:$4 sm:$0xff]  }
 0x837   :  { %16264 = vmatmul.mubr.bf16.vlgmr.msra.gmra.mrb[8].mxu0 %v23402_v36  ;;  %16756 = vmatmul.mubr.bf16.vlgmr.msra.gmra.mrb[8].mxu1 %v23402_v36  ;;  %v22775_v36 = vld [vmem:[#allocation6 + $0x314c] ss:$48 sps:$4 sm:$0xff]  }
 0x838   :  { %16273 = vmatpush1.bf16.msra.mxu0 %v22752_v49  ;;  %16765 = vmatpush1.bf16.msra.mxu1 %v22755_v18  ;;  %v22832_v49 = vld [vmem:[#allocation6 + $0x3504] ss:$48 sps:$4 sm:$0xff]   ;;  %v22835_v18 = vld [vmem:[#allocation6 + $0x350c] ss:$48 sps:$4 sm:$0xff]  }
 0x839   :  { %16274 = vmatprep.subr.bf16.mxu0 %v22760_v50  ;;  %16766 = vmatprep.subr.bf16.mxu1 %v22763_v30  ;;  %v22830_v50 = vld [vmem:[#allocation6 + $0x3500] ss:$48 sps:$4 sm:$0xff]   ;;  %v22833_v30 = vld [vmem:[#allocation6 + $0x3508] ss:$48 sps:$4 sm:$0xff]  }
 0x83a   :  { %16304 = vmatprep.mubr.bf16.mxu0 %v23406_v43  ;;  %16796 = vmatprep.mubr.bf16.mxu1 %v23406_v43  ;;  %v22779_v43 = vld [vmem:[#allocation6 + $0x31a8] ss:$48 sps:$4 sm:$0xff]  }
 0x83c   :  { %16275 = vmatpush1.bf16.msra.mxu0 %v22758_v52  ;;  %16767 = vmatpush1.bf16.msra.mxu1 %v22761_v42  ;;  %v22838_v52 = vld [vmem:[#allocation6 + $0x3564] ss:$48 sps:$4 sm:$0xff]   ;;  %v22841_v42 = vld [vmem:[#allocation6 + $0x356c] ss:$48 sps:$4 sm:$0xff]  }
 0x83d   :  { %16276 = vmatprep.subr.bf16.mxu0 %v22766_v53  ;;  %16768 = vmatprep.subr.bf16.mxu1 %v22769_v54  ;;  %v22836_v53 = vld [vmem:[#allocation6 + $0x3560] ss:$48 sps:$4 sm:$0xff]   ;;  %v22839_v54 = vld [vmem:[#allocation6 + $0x3568] ss:$48 sps:$4 sm:$0xff]  }
 0x840   :  { %16277 = vmatpush1.bf16.msra.mxu0 %v22764_v59  ;;  %16769 = vmatpush1.bf16.msra.mxu1 %v22767_v21  ;;  %v22844_v59 = vld [vmem:[#allocation6 + $0x35c4] ss:$48 sps:$4 sm:$0xff]   ;;  %v22847_v21 = vld [vmem:[#allocation6 + $0x35cc] ss:$48 sps:$4 sm:$0xff]  }
 0x841   :  { %16278 = vmatprep.subr.bf16.mxu0 %v22772_v48  ;;  %16770 = vmatprep.subr.bf16.mxu1 %v22775_v36  ;;  %v22842_v48 = vld [vmem:[#allocation6 + $0x35c0] ss:$48 sps:$4 sm:$0xff]   ;;  %v22845_v36 = vld [vmem:[#allocation6 + $0x35c8] ss:$48 sps:$4 sm:$0xff]  }
 0x844   :  { %16279 = vmatpush1.bf16.msra.mxu0 %v22770_v47  ;;  %16771 = vmatpush1.bf16.msra.mxu1 %v22773_v32  ;;  %v22850_v47 = vld [vmem:[#allocation6 + $0x3624] ss:$48 sps:$4 sm:$0xff]   ;;  %v22853_v32 = vld [vmem:[#allocation6 + $0x362c] ss:$48 sps:$4 sm:$0xff]  }
 0x845   :  { %16280 = vmatprep.subr.bf16.mxu0 %v22778_v6  ;;  %16772 = vmatprep.subr.bf16.mxu1 %v22781_v55  ;;  %v22848_v6 = vld [vmem:[#allocation6 + $0x3620] ss:$48 sps:$4 sm:$0xff]   ;;  %v22851_v55 = vld [vmem:[#allocation6 + $0x3628] ss:$48 sps:$4 sm:$0xff]  }
 0x848   :  { %16281 = vmatpush1.bf16.msra.mxu0 %v22776_v20  ;;  %16773 = vmatpush1.bf16.msra.mxu1 %v22779_v43  ;;  %v22856_v20 = vld [vmem:[#allocation6 + $0x3684] ss:$48 sps:$4 sm:$0xff]   ;;  %v22859_v43 = vld [vmem:[#allocation6 + $0x368c] ss:$48 sps:$4 sm:$0xff]  }
 0x849   :  { %16282 = vmatprep.subr.bf16.mxu0 %v22784_v7  ;;  %16774 = vmatprep.subr.bf16.mxu1 %v22787_v8  ;;  %v22854_v7 = vld [vmem:[#allocation6 + $0x3680] ss:$48 sps:$4 sm:$0xff]   ;;  %v22857_v8 = vld [vmem:[#allocation6 + $0x3688] ss:$48 sps:$4 sm:$0xff]  }
 0x84c   :  { %16283 = vmatpush1.bf16.msra.mxu0 %v22782_v12  ;;  %16775 = vmatpush1.bf16.msra.mxu1 %v22785_v14  ;;  %v22862_v12 = vld [vmem:[#allocation6 + $0x36e4] ss:$48 sps:$4 sm:$0xff]   ;;  %v22865_v14 = vld [vmem:[#allocation6 + $0x36ec] ss:$48 sps:$4 sm:$0xff]  }
 0x84d   :  { %16284 = vmatprep.subr.bf16.mxu0 %v22790_v17  ;;  %16776 = vmatprep.subr.bf16.mxu1 %v22793_v24  ;;  %v22860_v17 = vld [vmem:[#allocation6 + $0x36e0] ss:$48 sps:$4 sm:$0xff]   ;;  %v22863_v24 = vld [vmem:[#allocation6 + $0x36e8] ss:$48 sps:$4 sm:$0xff]  }
 0x850   :  { %16285 = vmatpush1.bf16.msra.mxu0 %v22788_v56  ;;  %16777 = vmatpush1.bf16.msra.mxu1 %v22791_v19  ;;  %v22868_v56 = vld [vmem:[#allocation6 + $0x3744] ss:$48 sps:$4 sm:$0xff]   ;;  %v22866_v19 = vld [vmem:[#allocation6 + $0x3740] ss:$48 sps:$4 sm:$0xff]  }
 0x851   :  { %16286 = vmatprep.subr.bf16.mxu0 %v22796_v22  ;;  %16778 = vmatprep.subr.bf16.mxu1 %v22799_v57  ;;  %v22869_v22 = vld [vmem:[#allocation6 + $0x3748] ss:$48 sps:$4 sm:$0xff]   ;;  %v22874_v57 = vld [vmem:[#allocation6 + $0x37a4] ss:$48 sps:$4 sm:$0xff]  }
 0x854   :  { %16287 = vmatpush1.bf16.msra.mxu0 %v22794_v23  ;;  %16779 = vmatpush1.bf16.msra.mxu1 %v22797_v3  ;;  %v22877_v23 = vld [vmem:[#allocation6 + $0x37ac] ss:$48 sps:$4 sm:$0xff]   ;;  %v22872_v3 = vld [vmem:[#allocation6 + $0x37a0] ss:$48 sps:$4 sm:$0xff]  }
 0x855   :  { %16288 = vmatprep.subr.bf16.mxu0 %v22802_v29  ;;  %16780 = vmatprep.subr.bf16.mxu1 %v22805_v26  ;;  %v22880_v29 = vld [vmem:[#allocation6 + $0x3804] ss:$48 sps:$4 sm:$0xff]   ;;  %v22883_v26 = vld [vmem:[#allocation6 + $0x380c] ss:$48 sps:$4 sm:$0xff]  }
 0x858   :  { %16289 = vmatpush1.bf16.msra.mxu0 %v22800_v13  ;;  %16781 = vmatpush1.bf16.msra.mxu1 %v22803_v62  ;;  %v22878_v13 = vld [vmem:[#allocation6 + $0x3800] ss:$48 sps:$4 sm:$0xff]   ;;  %v22881_v62 = vld [vmem:[#allocation6 + $0x3808] ss:$48 sps:$4 sm:$0xff]  }
 0x859   :  { %16290 = vmatprep.subr.bf16.mxu0 %v22808_v10  ;;  %16782 = vmatprep.subr.bf16.mxu1 %v22811_v27  ;;  %v22886_v10 = vld [vmem:[#allocation6 + $0x3864] ss:$48 sps:$4 sm:$0xff]   ;;  %v22889_v27 = vld [vmem:[#allocation6 + $0x386c] ss:$48 sps:$4 sm:$0xff]  }
 0x85c   :  { %16291 = vmatpush1.bf16.msra.mxu0 %v22806_v33  ;;  %16783 = vmatpush1.bf16.msra.mxu1 %v22809_v35  ;;  %v22884_v33 = vld [vmem:[#allocation6 + $0x3860] ss:$48 sps:$4 sm:$0xff]   ;;  %v22887_v35 = vld [vmem:[#allocation6 + $0x3868] ss:$48 sps:$4 sm:$0xff]  }
 0x85d   :  { %16292 = vmatprep.subr.bf16.mxu0 %v22814_v34  ;;  %16784 = vmatprep.subr.bf16.mxu1 %v22817_v60  ;;  %v22892_v34 = vld [vmem:[#allocation6 + $0x38c4] ss:$48 sps:$4 sm:$0xff]   ;;  %v22895_v60 = vld [vmem:[#allocation6 + $0x38cc] ss:$48 sps:$4 sm:$0xff]  }
 0x860   :  { %16293 = vmatpush1.bf16.msra.mxu0 %v22812_v38  ;;  %16785 = vmatpush1.bf16.msra.mxu1 %v22815_v15  ;;  %v22890_v38 = vld [vmem:[#allocation6 + $0x38c0] ss:$48 sps:$4 sm:$0xff]   ;;  %v22893_v15 = vld [vmem:[#allocation6 + $0x38c8] ss:$48 sps:$4 sm:$0xff]  }
 0x861   :  { %16294 = vmatprep.subr.bf16.mxu0 %v22820_v40  ;;  %16786 = vmatprep.subr.bf16.mxu1 %v22823_v9  ;;  %v22898_v40 = vld [vmem:[#allocation6 + $0x3924] ss:$48 sps:$4 sm:$0xff]   ;;  %v22901_v9 = vld [vmem:[#allocation6 + $0x392c] ss:$48 sps:$4 sm:$0xff]  }
 0x864   :  { %16295 = vmatpush1.bf16.msra.mxu0 %v22818_v44  ;;  %16787 = vmatpush1.bf16.msra.mxu1 %v22821_v11  ;;  %v22896_v44 = vld [vmem:[#allocation6 + $0x3920] ss:$48 sps:$4 sm:$0xff]   ;;  %v22899_v11 = vld [vmem:[#allocation6 + $0x3928] ss:$48 sps:$4 sm:$0xff]  }
 0x865   :  { %16296 = vmatprep.subr.bf16.mxu0 %v22826_v5  ;;  %16788 = vmatprep.subr.bf16.mxu1 %v22829_v45  ;;  %v22904_v5 = vld [vmem:[#allocation6 + $0x3984] ss:$48 sps:$4 sm:$0xff]   ;;  %v22907_v45 = vld [vmem:[#allocation6 + $0x398c] ss:$48 sps:$4 sm:$0xff]  }
 0x868   :  { %16297 = vmatpush1.bf16.msra.mxu0 %v22824_v31  ;;  %16789 = vmatpush1.bf16.msra.mxu1 %v22827_v41  ;;  %v22902_v31 = vld [vmem:[#allocation6 + $0x3980] ss:$48 sps:$4 sm:$0xff]   ;;  %v22905_v41 = vld [vmem:[#allocation6 + $0x3988] ss:$48 sps:$4 sm:$0xff]  }
 0x869   :  { %16298 = vmatprep.subr.bf16.mxu0 %v22832_v49  ;;  %16790 = vmatprep.subr.bf16.mxu1 %v22835_v18  ;;  %v22910_v49 = vld [vmem:[#allocation6 + $0x39e4] ss:$48 sps:$4 sm:$0xff]   ;;  %v22913_v18 = vld [vmem:[#allocation6 + $0x39ec] ss:$48 sps:$4 sm:$0xff]  }
 0x86c   :  { %16299 = vmatpush1.bf16.msra.mxu0 %v22830_v50  ;;  %16791 = vmatpush1.bf16.msra.mxu1 %v22833_v30  ;;  %v22908_v50 = vld [vmem:[#allocation6 + $0x39e0] ss:$48 sps:$4 sm:$0xff]   ;;  %v22911_v30 = vld [vmem:[#allocation6 + $0x39e8] ss:$48 sps:$4 sm:$0xff]  }
 0x86d   :  { %16300 = vmatprep.subr.bf16.mxu0 %v22838_v52  ;;  %16792 = vmatprep.subr.bf16.mxu1 %v22841_v42  ;;  %v22916_v52 = vld [vmem:[#allocation6 + $0x3a44] ss:$48 sps:$4 sm:$0xff]   ;;  %v22919_v42 = vld [vmem:[#allocation6 + $0x3a4c] ss:$48 sps:$4 sm:$0xff]  }
 0x870   :  { %16301 = vmatpush1.bf16.msra.mxu0 %v22836_v53  ;;  %16793 = vmatpush1.bf16.msra.mxu1 %v22839_v54  ;;  %v22914_v53 = vld [vmem:[#allocation6 + $0x3a40] ss:$48 sps:$4 sm:$0xff]   ;;  %v22917_v54 = vld [vmem:[#allocation6 + $0x3a48] ss:$48 sps:$4 sm:$0xff]  }
 0x871   :  { %16302 = vmatprep.subr.bf16.mxu0 %v22844_v59  ;;  %16794 = vmatprep.subr.bf16.mxu1 %v22847_v21  ;;  %v22922_v59 = vld [vmem:[#allocation6 + $0x3aa4] ss:$48 sps:$4 sm:$0xff]   ;;  %v22925_v21 = vld [vmem:[#allocation6 + $0x3aac] ss:$48 sps:$4 sm:$0xff]  }
 0x874   :  { %16303 = vmatpush1.bf16.msra.mxu0 %v22842_v48  ;;  %16795 = vmatpush1.bf16.msra.mxu1 %v22845_v36  ;;  %v22920_v48 = vld [vmem:[#allocation6 + $0x3aa0] ss:$48 sps:$4 sm:$0xff]   ;;  %v22923_v36 = vld [vmem:[#allocation6 + $0x3aa8] ss:$48 sps:$4 sm:$0xff]  }
 0x875   :  { %16313 = vmatprep.subr.bf16.mxu0 %v22850_v47  ;;  %16805 = vmatprep.subr.bf16.mxu1 %v22853_v32  ;;  %v22928_v47 = vld [vmem:[#allocation6 + $0x3b04] ss:$48 sps:$4 sm:$0xff]   ;;  %v22931_v32 = vld [vmem:[#allocation6 + $0x3b0c] ss:$48 sps:$4 sm:$0xff]  }
 0x877   :  { %16305 = vmatmul.mubr.bf16.vlgmr.msra.gmra.mrb[8].mxu0 %v23416_v61  ;;  %16797 = vmatmul.mubr.bf16.vlgmr.msra.gmra.mrb[8].mxu1 %v23416_v61  ;;  %v22871_v61 = vld [vmem:[#allocation6 + $0x374c] ss:$48 sps:$4 sm:$0xff]  }
 0x878   :  { %16314 = vmatpush1.bf16.msra.mxu0 %v22848_v6  ;;  %16806 = vmatpush1.bf16.msra.mxu1 %v22851_v55  ;;  %v22926_v6 = vld [vmem:[#allocation6 + $0x3b00] ss:$48 sps:$4 sm:$0xff]   ;;  %v22929_v55 = vld [vmem:[#allocation6 + $0x3b08] ss:$48 sps:$4 sm:$0xff]  }
 0x879   :  { %16315 = vmatprep.subr.bf16.mxu0 %v22856_v20  ;;  %16807 = vmatprep.subr.bf16.mxu1 %v22859_v43  ;;  %v22934_v20 = vld [vmem:[#allocation6 + $0x3b64] ss:$48 sps:$4 sm:$0xff]   ;;  %v22937_v43 = vld [vmem:[#allocation6 + $0x3b6c] ss:$48 sps:$4 sm:$0xff]  }
 0x87a   :  { %16345 = vmatprep.mubr.bf16.mxu0 %v23420_v2  ;;  %16837 = vmatprep.mubr.bf16.mxu1 %v23420_v2  ;;  %v22875_v2 = vld [vmem:[#allocation6 + $0x37a8] ss:$48 sps:$4 sm:$0xff]  }
 0x87c   :  { %16316 = vmatpush1.bf16.msra.mxu0 %v22854_v7  ;;  %16808 = vmatpush1.bf16.msra.mxu1 %v22857_v8  ;;  %v22932_v7 = vld [vmem:[#allocation6 + $0x3b60] ss:$48 sps:$4 sm:$0xff]   ;;  %v22935_v8 = vld [vmem:[#allocation6 + $0x3b68] ss:$48 sps:$4 sm:$0xff]  }
 0x87d   :  { %16317 = vmatprep.subr.bf16.mxu0 %v22862_v12  ;;  %16809 = vmatprep.subr.bf16.mxu1 %v22865_v14  ;;  %v22940_v12 = vld [vmem:[#allocation6 + $0x3bc4] ss:$48 sps:$4 sm:$0xff]   ;;  %v22943_v14 = vld [vmem:[#allocation6 + $0x3bcc] ss:$48 sps:$4 sm:$0xff]  }
 0x880   :  { %16318 = vmatpush1.bf16.msra.mxu0 %v22860_v17  ;;  %16810 = vmatpush1.bf16.msra.mxu1 %v22863_v24  ;;  %v22938_v17 = vld [vmem:[#allocation6 + $0x3bc0] ss:$48 sps:$4 sm:$0xff]   ;;  %v22941_v24 = vld [vmem:[#allocation6 + $0x3bc8] ss:$48 sps:$4 sm:$0xff]  }
 0x881   :  { %16319 = vmatprep.subr.bf16.mxu0 %v22868_v56  ;;  %16811 = vmatprep.subr.bf16.mxu1 %v22871_v61  ;;  %v22946_v56 = vld [vmem:[#allocation6 + $0x3c24] ss:$48 sps:$4 sm:$0xff]   ;;  %v22949_v61 = vld [vmem:[#allocation6 + $0x3c2c] ss:$48 sps:$4 sm:$0xff]  }
 0x884   :  { %16320 = vmatpush1.bf16.msra.mxu0 %v22866_v19  ;;  %16812 = vmatpush1.bf16.msra.mxu1 %v22869_v22  ;;  %v22944_v19 = vld [vmem:[#allocation6 + $0x3c20] ss:$48 sps:$4 sm:$0xff]   ;;  %v22947_v22 = vld [vmem:[#allocation6 + $0x3c28] ss:$48 sps:$4 sm:$0xff]  }
 0x885   :  { %16321 = vmatprep.subr.bf16.mxu0 %v22874_v57  ;;  %16813 = vmatprep.subr.bf16.mxu1 %v22877_v23  ;;  %v22952_v57 = vld [vmem:[#allocation6 + $0x3c84] ss:$48 sps:$4 sm:$0xff]   ;;  %v22955_v23 = vld [vmem:[#allocation6 + $0x3c8c] ss:$48 sps:$4 sm:$0xff]  }
 0x888   :  { %16322 = vmatpush1.bf16.msra.mxu0 %v22872_v3  ;;  %16814 = vmatpush1.bf16.msra.mxu1 %v22875_v2  ;;  %v22950_v3 = vld [vmem:[#allocation6 + $0x3c80] ss:$48 sps:$4 sm:$0xff]   ;;  %v22953_v2 = vld [vmem:[#allocation6 + $0x3c88] ss:$48 sps:$4 sm:$0xff]  }
 0x889   :  { %16323 = vmatprep.subr.bf16.mxu0 %v22880_v29  ;;  %16815 = vmatprep.subr.bf16.mxu1 %v22883_v26  ;;  %v22958_v29 = vld [vmem:[#allocation6 + $0x3ce4] ss:$48 sps:$4 sm:$0xff]   ;;  %v22961_v26 = vld [vmem:[#allocation6 + $0x3cec] ss:$48 sps:$4 sm:$0xff]  }
 0x88c   :  { %16324 = vmatpush1.bf16.msra.mxu0 %v22878_v13  ;;  %16816 = vmatpush1.bf16.msra.mxu1 %v22881_v62  ;;  %v22956_v13 = vld [vmem:[#allocation6 + $0x3ce0] ss:$48 sps:$4 sm:$0xff]   ;;  %v22959_v62 = vld [vmem:[#allocation6 + $0x3ce8] ss:$48 sps:$4 sm:$0xff]  }
 0x88d   :  { %16325 = vmatprep.subr.bf16.mxu0 %v22886_v10  ;;  %16817 = vmatprep.subr.bf16.mxu1 %v22889_v27  ;;  %v22964_v10 = vld [vmem:[#allocation6 + $0x3d44] ss:$48 sps:$4 sm:$0xff]   ;;  %v22962_v27 = vld [vmem:[#allocation6 + $0x3d40] ss:$48 sps:$4 sm:$0xff]  }
 0x890   :  { %16326 = vmatpush1.bf16.msra.mxu0 %v22884_v33  ;;  %16818 = vmatpush1.bf16.msra.mxu1 %v22887_v35  ;;  %v22965_v33 = vld [vmem:[#allocation6 + $0x3d48] ss:$48 sps:$4 sm:$0xff]   ;;  %v22970_v35 = vld [vmem:[#allocation6 + $0x3da4] ss:$48 sps:$4 sm:$0xff]  }
 0x891   :  { %16327 = vmatprep.subr.bf16.mxu0 %v22892_v34  ;;  %16819 = vmatprep.subr.bf16.mxu1 %v22895_v60  ;;  %v22973_v34 = vld [vmem:[#allocation6 + $0x3dac] ss:$48 sps:$4 sm:$0xff]   ;;  %v22968_v60 = vld [vmem:[#allocation6 + $0x3da0] ss:$48 sps:$4 sm:$0xff]  }
 0x894   :  { %16328 = vmatpush1.bf16.msra.mxu0 %v22890_v38  ;;  %16820 = vmatpush1.bf16.msra.mxu1 %v22893_v15  ;;  %v22976_v38 = vld [vmem:[#allocation6 + $0x3e04] ss:$48 sps:$4 sm:$0xff]   ;;  %v22979_v15 = vld [vmem:[#allocation6 + $0x3e0c] ss:$48 sps:$4 sm:$0xff]  }
 0x895   :  { %16329 = vmatprep.subr.bf16.mxu0 %v22898_v40  ;;  %16821 = vmatprep.subr.bf16.mxu1 %v22901_v9  ;;  %v22974_v40 = vld [vmem:[#allocation6 + $0x3e00] ss:$48 sps:$4 sm:$0xff]   ;;  %v22977_v9 = vld [vmem:[#allocation6 + $0x3e08] ss:$48 sps:$4 sm:$0xff]  }
 0x898   :  { %16330 = vmatpush1.bf16.msra.mxu0 %v22896_v44  ;;  %16822 = vmatpush1.bf16.msra.mxu1 %v22899_v11  ;;  %v22982_v44 = vld [vmem:[#allocation6 + $0x3e64] ss:$48 sps:$4 sm:$0xff]   ;;  %v22985_v11 = vld [vmem:[#allocation6 + $0x3e6c] ss:$48 sps:$4 sm:$0xff]  }
 0x899   :  { %16331 = vmatprep.subr.bf16.mxu0 %v22904_v5  ;;  %16823 = vmatprep.subr.bf16.mxu1 %v22907_v45  ;;  %v22980_v5 = vld [vmem:[#allocation6 + $0x3e60] ss:$48 sps:$4 sm:$0xff]   ;;  %v22983_v45 = vld [vmem:[#allocation6 + $0x3e68] ss:$48 sps:$4 sm:$0xff]  }
 0x89c   :  { %16332 = vmatpush1.bf16.msra.mxu0 %v22902_v31  ;;  %16824 = vmatpush1.bf16.msra.mxu1 %v22905_v41  ;;  %v22988_v31 = vld [vmem:[#allocation6 + $0x3ec4] ss:$48 sps:$4 sm:$0xff]   ;;  %v22991_v41 = vld [vmem:[#allocation6 + $0x3ecc] ss:$48 sps:$4 sm:$0xff]  }
 0x89d   :  { %16333 = vmatprep.subr.bf16.mxu0 %v22910_v49  ;;  %16825 = vmatprep.subr.bf16.mxu1 %v22913_v18  ;;  %v22986_v49 = vld [vmem:[#allocation6 + $0x3ec0] ss:$48 sps:$4 sm:$0xff]   ;;  %v22989_v18 = vld [vmem:[#allocation6 + $0x3ec8] ss:$48 sps:$4 sm:$0xff]  }
 0x8a0   :  { %16334 = vmatpush1.bf16.msra.mxu0 %v22908_v50  ;;  %16826 = vmatpush1.bf16.msra.mxu1 %v22911_v30  ;;  %v22994_v50 = vld [vmem:[#allocation6 + $0x3f24] ss:$48 sps:$4 sm:$0xff]   ;;  %v22997_v30 = vld [vmem:[#allocation6 + $0x3f2c] ss:$48 sps:$4 sm:$0xff]  }
 0x8a1   :  { %16335 = vmatprep.subr.bf16.mxu0 %v22916_v52  ;;  %16827 = vmatprep.subr.bf16.mxu1 %v22919_v42  ;;  %v22992_v52 = vld [vmem:[#allocation6 + $0x3f20] ss:$48 sps:$4 sm:$0xff]   ;;  %v22995_v42 = vld [vmem:[#allocation6 + $0x3f28] ss:$48 sps:$4 sm:$0xff]  }
 0x8a4   :  { %16336 = vmatpush1.bf16.msra.mxu0 %v22914_v53  ;;  %16828 = vmatpush1.bf16.msra.mxu1 %v22917_v54  ;;  %v23000_v53 = vld [vmem:[#allocation6 + $0x3f84] ss:$48 sps:$4 sm:$0xff]   ;;  %v23003_v54 = vld [vmem:[#allocation6 + $0x3f8c] ss:$48 sps:$4 sm:$0xff]  }
 0x8a5   :  { %16337 = vmatprep.subr.bf16.mxu0 %v22922_v59  ;;  %16829 = vmatprep.subr.bf16.mxu1 %v22925_v21  ;;  %v22998_v59 = vld [vmem:[#allocation6 + $0x3f80] ss:$48 sps:$4 sm:$0xff]   ;;  %v23001_v21 = vld [vmem:[#allocation6 + $0x3f88] ss:$48 sps:$4 sm:$0xff]  }
 0x8a8   :  { %16338 = vmatpush1.bf16.msra.mxu0 %v22920_v48  ;;  %16830 = vmatpush1.bf16.msra.mxu1 %v22923_v36  ;;  %v23006_v48 = vld [vmem:[#allocation6 + $0x3fe4] ss:$48 sps:$4 sm:$0xff]   ;;  %v23009_v36 = vld [vmem:[#allocation6 + $0x3fec] ss:$48 sps:$4 sm:$0xff]  }
 0x8a9   :  { %16339 = vmatprep.subr.bf16.mxu0 %v22928_v47  ;;  %16831 = vmatprep.subr.bf16.mxu1 %v22931_v32  ;;  %v23004_v47 = vld [vmem:[#allocation6 + $0x3fe0] ss:$48 sps:$4 sm:$0xff]   ;;  %v23007_v32 = vld [vmem:[#allocation6 + $0x3fe8] ss:$48 sps:$4 sm:$0xff]  }
 0x8ac   :  { %16340 = vmatpush1.bf16.msra.mxu0 %v22926_v6  ;;  %16832 = vmatpush1.bf16.msra.mxu1 %v22929_v55  ;;  %v23012_v6 = vld [vmem:[#allocation6 + $0x4044] ss:$48 sps:$4 sm:$0xff]   ;;  %v23015_v55 = vld [vmem:[#allocation6 + $0x404c] ss:$48 sps:$4 sm:$0xff]  }
 0x8ad   :  { %16341 = vmatprep.subr.bf16.mxu0 %v22934_v20  ;;  %16833 = vmatprep.subr.bf16.mxu1 %v22937_v43  ;;  %v23010_v20 = vld [vmem:[#allocation6 + $0x4040] ss:$48 sps:$4 sm:$0xff]   ;;  %v23013_v43 = vld [vmem:[#allocation6 + $0x4048] ss:$48 sps:$4 sm:$0xff]  }
 0x8b0   :  { %16342 = vmatpush1.bf16.msra.mxu0 %v22932_v7  ;;  %16834 = vmatpush1.bf16.msra.mxu1 %v22935_v8  ;;  %v23018_v7 = vld [vmem:[#allocation6 + $0x40a4] ss:$48 sps:$4 sm:$0xff]   ;;  %v23021_v8 = vld [vmem:[#allocation6 + $0x40ac] ss:$48 sps:$4 sm:$0xff]  }
 0x8b1   :  { %16343 = vmatprep.subr.bf16.mxu0 %v22940_v12  ;;  %16835 = vmatprep.subr.bf16.mxu1 %v22943_v14  ;;  %v23016_v12 = vld [vmem:[#allocation6 + $0x40a0] ss:$48 sps:$4 sm:$0xff]   ;;  %v23019_v14 = vld [vmem:[#allocation6 + $0x40a8] ss:$48 sps:$4 sm:$0xff]  }
 0x8b4   :  { %16344 = vmatpush1.bf16.msra.mxu0 %v22938_v17  ;;  %16836 = vmatpush1.bf16.msra.mxu1 %v22941_v24  ;;  %v23024_v17 = vld [vmem:[#allocation6 + $0x4104] ss:$48 sps:$4 sm:$0xff]   ;;  %v23027_v24 = vld [vmem:[#allocation6 + $0x410c] ss:$48 sps:$4 sm:$0xff]  }
 0x8b5   :  { %16354 = vmatprep.subr.bf16.mxu0 %v22946_v56  ;;  %16846 = vmatprep.subr.bf16.mxu1 %v22949_v61  ;;  %v23022_v56 = vld [vmem:[#allocation6 + $0x4100] ss:$48 sps:$4 sm:$0xff]   ;;  %v23025_v61 = vld [vmem:[#allocation6 + $0x4108] ss:$48 sps:$4 sm:$0xff]  }
 0x8b7   :  { %16346 = vmatmul.mubr.bf16.vlgmr.msra.gmra.mrb[8].mxu0 %v23428_v28  ;;  %16838 = vmatmul.mubr.bf16.vlgmr.msra.gmra.mrb[8].mxu1 %v23428_v28  ;;  %v22967_v28 = vld [vmem:[#allocation6 + $0x3d4c] ss:$48 sps:$4 sm:$0xff]  }
 0x8b8   :  { %16355 = vmatpush1.bf16.msra.mxu0 %v22944_v19  ;;  %16847 = vmatpush1.bf16.msra.mxu1 %v22947_v22  ;;  %v23030_v19 = vld [vmem:[#allocation6 + $0x4164] ss:$48 sps:$4 sm:$0xff]   ;;  %v23033_v22 = vld [vmem:[#allocation6 + $0x416c] ss:$48 sps:$4 sm:$0xff]  }
 0x8b9   :  { %16356 = vmatprep.subr.bf16.mxu0 %v22952_v57  ;;  %16848 = vmatprep.subr.bf16.mxu1 %v22955_v23  ;;  %v23028_v57 = vld [vmem:[#allocation6 + $0x4160] ss:$48 sps:$4 sm:$0xff]   ;;  %v23031_v23 = vld [vmem:[#allocation6 + $0x4168] ss:$48 sps:$4 sm:$0xff]  }
 0x8ba   :  { %16386 = vmatprep.mubr.bf16.mxu0 %v23434_v37  ;;  %16878 = vmatprep.mubr.bf16.mxu1 %v23434_v37  ;;  %v22971_v37 = vld [vmem:[#allocation6 + $0x3da8] ss:$48 sps:$4 sm:$0xff]  }
 0x8bc   :  { %16357 = vmatpush1.bf16.msra.mxu0 %v22950_v3  ;;  %16849 = vmatpush1.bf16.msra.mxu1 %v22953_v2  ;;  %v23036_v3 = vld [vmem:[#allocation6 + $0x41c4] ss:$48 sps:$4 sm:$0xff]   ;;  %v23039_v2 = vld [vmem:[#allocation6 + $0x41cc] ss:$48 sps:$4 sm:$0xff]  }
 0x8bd   :  { %16358 = vmatprep.subr.bf16.mxu0 %v22958_v29  ;;  %16850 = vmatprep.subr.bf16.mxu1 %v22961_v26  ;;  %v23034_v29 = vld [vmem:[#allocation6 + $0x41c0] ss:$48 sps:$4 sm:$0xff]   ;;  %v23037_v26 = vld [vmem:[#allocation6 + $0x41c8] ss:$48 sps:$4 sm:$0xff]  }
 0x8c0   :  { %16359 = vmatpush1.bf16.msra.mxu0 %v22956_v13  ;;  %16851 = vmatpush1.bf16.msra.mxu1 %v22959_v62  ;;  %v23042_v13 = vld [vmem:[#allocation6 + $0x4224] ss:$48 sps:$4 sm:$0xff]   ;;  %v23045_v62 = vld [vmem:[#allocation6 + $0x422c] ss:$48 sps:$4 sm:$0xff]  }
 0x8c1   :  { %16360 = vmatprep.subr.bf16.mxu0 %v22964_v10  ;;  %16852 = vmatprep.subr.bf16.mxu1 %v22967_v28  ;;  %v23040_v10 = vld [vmem:[#allocation6 + $0x4220] ss:$48 sps:$4 sm:$0xff]   ;;  %v23043_v28 = vld [vmem:[#allocation6 + $0x4228] ss:$48 sps:$4 sm:$0xff]  }
 0x8c4   :  { %16361 = vmatpush1.bf16.msra.mxu0 %v22962_v27  ;;  %16853 = vmatpush1.bf16.msra.mxu1 %v22965_v33  ;;  %v23048_v27 = vld [vmem:[#allocation6 + $0x4284] ss:$48 sps:$4 sm:$0xff]   ;;  %v23051_v33 = vld [vmem:[#allocation6 + $0x428c] ss:$48 sps:$4 sm:$0xff]  }
 0x8c5   :  { %16362 = vmatprep.subr.bf16.mxu0 %v22970_v35  ;;  %16854 = vmatprep.subr.bf16.mxu1 %v22973_v34  ;;  %v23046_v35 = vld [vmem:[#allocation6 + $0x4280] ss:$48 sps:$4 sm:$0xff]   ;;  %v23049_v34 = vld [vmem:[#allocation6 + $0x4288] ss:$48 sps:$4 sm:$0xff]  }
 0x8c8   :  { %16363 = vmatpush1.bf16.msra.mxu0 %v22968_v60  ;;  %16855 = vmatpush1.bf16.msra.mxu1 %v22971_v37  ;;  %v23054_v60 = vld [vmem:[#allocation6 + $0x42e4] ss:$48 sps:$4 sm:$0xff]   ;;  %v23057_v37 = vld [vmem:[#allocation6 + $0x42ec] ss:$48 sps:$4 sm:$0xff]  }
 0x8c9   :  { %16364 = vmatprep.subr.bf16.mxu0 %v22976_v38  ;;  %16856 = vmatprep.subr.bf16.mxu1 %v22979_v15  ;;  %v23052_v38 = vld [vmem:[#allocation6 + $0x42e0] ss:$48 sps:$4 sm:$0xff]   ;;  %v23055_v15 = vld [vmem:[#allocation6 + $0x42e8] ss:$48 sps:$4 sm:$0xff]  }
 0x8cc   :  { %16365 = vmatpush1.bf16.msra.mxu0 %v22974_v40  ;;  %16857 = vmatpush1.bf16.msra.mxu1 %v22977_v9  ;;  %v23060_v40 = vld [vmem:[#allocation6 + $0x4344] ss:$48 sps:$4 sm:$0xff]   ;;  %v23058_v9 = vld [vmem:[#allocation6 + $0x4340] ss:$48 sps:$4 sm:$0xff]  }
 0x8cd   :  { %16366 = vmatprep.subr.bf16.mxu0 %v22982_v44  ;;  %16858 = vmatprep.subr.bf16.mxu1 %v22985_v11  ;;  %v23061_v44 = vld [vmem:[#allocation6 + $0x4348] ss:$48 sps:$4 sm:$0xff]   ;;  %v23066_v11 = vld [vmem:[#allocation6 + $0x43a4] ss:$48 sps:$4 sm:$0xff]  }
 0x8d0   :  { %16367 = vmatpush1.bf16.msra.mxu0 %v22980_v5  ;;  %16859 = vmatpush1.bf16.msra.mxu1 %v22983_v45  ;;  %v23069_v5 = vld [vmem:[#allocation6 + $0x43ac] ss:$48 sps:$4 sm:$0xff]   ;;  %v23064_v45 = vld [vmem:[#allocation6 + $0x43a0] ss:$48 sps:$4 sm:$0xff]  }
 0x8d1   :  { %16368 = vmatprep.subr.bf16.mxu0 %v22988_v31  ;;  %16860 = vmatprep.subr.bf16.mxu1 %v22991_v41  ;;  %v23072_v31 = vld [vmem:[#allocation6 + $0x4404] ss:$48 sps:$4 sm:$0xff]   ;;  %v23075_v41 = vld [vmem:[#allocation6 + $0x440c] ss:$48 sps:$4 sm:$0xff]  }
 0x8d4   :  { %16369 = vmatpush1.bf16.msra.mxu0 %v22986_v49  ;;  %16861 = vmatpush1.bf16.msra.mxu1 %v22989_v18  ;;  %v23070_v49 = vld [vmem:[#allocation6 + $0x4400] ss:$48 sps:$4 sm:$0xff]   ;;  %v23073_v18 = vld [vmem:[#allocation6 + $0x4408] ss:$48 sps:$4 sm:$0xff]  }
 0x8d5   :  { %16370 = vmatprep.subr.bf16.mxu0 %v22994_v50  ;;  %16862 = vmatprep.subr.bf16.mxu1 %v22997_v30  ;;  %v23078_v50 = vld [vmem:[#allocation6 + $0x4464] ss:$48 sps:$4 sm:$0xff]   ;;  %v23081_v30 = vld [vmem:[#allocation6 + $0x446c] ss:$48 sps:$4 sm:$0xff]  }
 0x8d8   :  { %16371 = vmatpush1.bf16.msra.mxu0 %v22992_v52  ;;  %16863 = vmatpush1.bf16.msra.mxu1 %v22995_v42  ;;  %v23076_v52 = vld [vmem:[#allocation6 + $0x4460] ss:$48 sps:$4 sm:$0xff]   ;;  %v23079_v42 = vld [vmem:[#allocation6 + $0x4468] ss:$48 sps:$4 sm:$0xff]  }
 0x8d9   :  { %16372 = vmatprep.subr.bf16.mxu0 %v23000_v53  ;;  %16864 = vmatprep.subr.bf16.mxu1 %v23003_v54  ;;  %v23084_v53 = vld [vmem:[#allocation6 + $0x44c4] ss:$48 sps:$4 sm:$0xff]   ;;  %v23087_v54 = vld [vmem:[#allocation6 + $0x44cc] ss:$48 sps:$4 sm:$0xff]  }
 0x8dc   :  { %16373 = vmatpush1.bf16.msra.mxu0 %v22998_v59  ;;  %16865 = vmatpush1.bf16.msra.mxu1 %v23001_v21  ;;  %v23082_v59 = vld [vmem:[#allocation6 + $0x44c0] ss:$48 sps:$4 sm:$0xff]   ;;  %v23085_v21 = vld [vmem:[#allocation6 + $0x44c8] ss:$48 sps:$4 sm:$0xff]  }
 0x8dd   :  { %16374 = vmatprep.subr.bf16.mxu0 %v23006_v48  ;;  %16866 = vmatprep.subr.bf16.mxu1 %v23009_v36  ;;  %v23090_v48 = vld [vmem:[#allocation6 + $0x4524] ss:$48 sps:$4 sm:$0xff]   ;;  %v23093_v36 = vld [vmem:[#allocation6 + $0x452c] ss:$48 sps:$4 sm:$0xff]  }
 0x8e0   :  { %16375 = vmatpush1.bf16.msra.mxu0 %v23004_v47  ;;  %16867 = vmatpush1.bf16.msra.mxu1 %v23007_v32  ;;  %v23088_v47 = vld [vmem:[#allocation6 + $0x4520] ss:$48 sps:$4 sm:$0xff]   ;;  %v23091_v32 = vld [vmem:[#allocation6 + $0x4528] ss:$48 sps:$4 sm:$0xff]  }
 0x8e1   :  { %16376 = vmatprep.subr.bf16.mxu0 %v23012_v6  ;;  %16868 = vmatprep.subr.bf16.mxu1 %v23015_v55  ;;  %v23096_v6 = vld [vmem:[#allocation6 + $0x4584] ss:$48 sps:$4 sm:$0xff]   ;;  %v23099_v55 = vld [vmem:[#allocation6 + $0x458c] ss:$48 sps:$4 sm:$0xff]  }
 0x8e4   :  { %16377 = vmatpush1.bf16.msra.mxu0 %v23010_v20  ;;  %16869 = vmatpush1.bf16.msra.mxu1 %v23013_v43  ;;  %v23094_v20 = vld [vmem:[#allocation6 + $0x4580] ss:$48 sps:$4 sm:$0xff]   ;;  %v23097_v43 = vld [vmem:[#allocation6 + $0x4588] ss:$48 sps:$4 sm:$0xff]  }
 0x8e5   :  { %16378 = vmatprep.subr.bf16.mxu0 %v23018_v7  ;;  %16870 = vmatprep.subr.bf16.mxu1 %v23021_v8  ;;  %v23102_v7 = vld [vmem:[#allocation6 + $0x45e4] ss:$48 sps:$4 sm:$0xff]   ;;  %v23105_v8 = vld [vmem:[#allocation6 + $0x45ec] ss:$48 sps:$4 sm:$0xff]  }
 0x8e8   :  { %16379 = vmatpush1.bf16.msra.mxu0 %v23016_v12  ;;  %16871 = vmatpush1.bf16.msra.mxu1 %v23019_v14  ;;  %v23100_v12 = vld [vmem:[#allocation6 + $0x45e0] ss:$48 sps:$4 sm:$0xff]   ;;  %v23103_v14 = vld [vmem:[#allocation6 + $0x45e8] ss:$48 sps:$4 sm:$0xff]  }
 0x8e9   :  { %16380 = vmatprep.subr.bf16.mxu0 %v23024_v17  ;;  %16872 = vmatprep.subr.bf16.mxu1 %v23027_v24  ;;  %v23108_v17 = vld [vmem:[#allocation6 + $0x4644] ss:$48 sps:$4 sm:$0xff]   ;;  %v23111_v24 = vld [vmem:[#allocation6 + $0x464c] ss:$48 sps:$4 sm:$0xff]  }
 0x8ec   :  { %16381 = vmatpush1.bf16.msra.mxu0 %v23022_v56  ;;  %16873 = vmatpush1.bf16.msra.mxu1 %v23025_v61  ;;  %v23106_v56 = vld [vmem:[#allocation6 + $0x4640] ss:$48 sps:$4 sm:$0xff]   ;;  %v23109_v61 = vld [vmem:[#allocation6 + $0x4648] ss:$48 sps:$4 sm:$0xff]  }
 0x8ed   :  { %16382 = vmatprep.subr.bf16.mxu0 %v23030_v19  ;;  %16874 = vmatprep.subr.bf16.mxu1 %v23033_v22  ;;  %v23114_v19 = vld [vmem:[#allocation6 + $0x46a4] ss:$48 sps:$4 sm:$0xff]   ;;  %v23117_v22 = vld [vmem:[#allocation6 + $0x46ac] ss:$48 sps:$4 sm:$0xff]  }
 0x8f0   :  { %16383 = vmatpush1.bf16.msra.mxu0 %v23028_v57  ;;  %16875 = vmatpush1.bf16.msra.mxu1 %v23031_v23  ;;  %v23112_v57 = vld [vmem:[#allocation6 + $0x46a0] ss:$48 sps:$4 sm:$0xff]   ;;  %v23115_v23 = vld [vmem:[#allocation6 + $0x46a8] ss:$48 sps:$4 sm:$0xff]  }
 0x8f1   :  { %16384 = vmatprep.subr.bf16.mxu0 %v23036_v3  ;;  %16876 = vmatprep.subr.bf16.mxu1 %v23039_v2  ;;  %v23120_v3 = vld [vmem:[#allocation6 + $0x4704] ss:$48 sps:$4 sm:$0xff]   ;;  %v23123_v2 = vld [vmem:[#allocation6 + $0x470c] ss:$48 sps:$4 sm:$0xff]  }
 0x8f4   :  { %16385 = vmatpush1.bf16.msra.mxu0 %v23034_v29  ;;  %16877 = vmatpush1.bf16.msra.mxu1 %v23037_v26  ;;  %v23118_v29 = vld [vmem:[#allocation6 + $0x4700] ss:$48 sps:$4 sm:$0xff]   ;;  %v23121_v26 = vld [vmem:[#allocation6 + $0x4708] ss:$48 sps:$4 sm:$0xff]  }
 0x8f5   :  { %16395 = vmatprep.subr.bf16.mxu0 %v23042_v13  ;;  %16887 = vmatprep.subr.bf16.mxu1 %v23045_v62  ;;  %v23126_v13 = vld [vmem:[#allocation6 + $0x4764] ss:$48 sps:$4 sm:$0xff]   ;;  %v23129_v62 = vld [vmem:[#allocation6 + $0x476c] ss:$48 sps:$4 sm:$0xff]  }
 0x8f7   :  { %16387 = vmatmul.mubr.bf16.vlgmr.msra.gmra.mrb[8].mxu0 %v23444_v63  ;;  %16879 = vmatmul.mubr.bf16.vlgmr.msra.gmra.mrb[8].mxu1 %v23444_v63  ;;  %v23063_v63 = vld [vmem:[#allocation6 + $0x434c] ss:$48 sps:$4 sm:$0xff]  }
 0x8f8   :  { %16396 = vmatpush1.bf16.msra.mxu0 %v23040_v10  ;;  %16888 = vmatpush1.bf16.msra.mxu1 %v23043_v28  ;;  %v23124_v10 = vld [vmem:[#allocation6 + $0x4760] ss:$48 sps:$4 sm:$0xff]   ;;  %v23127_v28 = vld [vmem:[#allocation6 + $0x4768] ss:$48 sps:$4 sm:$0xff]  }
 0x8f9   :  { %16397 = vmatprep.subr.bf16.mxu0 %v23048_v27  ;;  %16889 = vmatprep.subr.bf16.mxu1 %v23051_v33  ;;  %v23132_v27 = vld [vmem:[#allocation6 + $0x47c4] ss:$48 sps:$4 sm:$0xff]   ;;  %v23135_v33 = vld [vmem:[#allocation6 + $0x47cc] ss:$48 sps:$4 sm:$0xff]  }
 0x8fa   :  { %16427 = vmatprep.mubr.bf16.mxu0 %v23448_v4  ;;  %16919 = vmatprep.mubr.bf16.mxu1 %v23448_v4  ;;  %v23067_v4 = vld [vmem:[#allocation6 + $0x43a8] ss:$48 sps:$4 sm:$0xff]  }
 0x8fc   :  { %16398 = vmatpush1.bf16.msra.mxu0 %v23046_v35  ;;  %16890 = vmatpush1.bf16.msra.mxu1 %v23049_v34  ;;  %v23130_v35 = vld [vmem:[#allocation6 + $0x47c0] ss:$48 sps:$4 sm:$0xff]   ;;  %v23133_v34 = vld [vmem:[#allocation6 + $0x47c8] ss:$48 sps:$4 sm:$0xff]  }
 0x8fd   :  { %16399 = vmatprep.subr.bf16.mxu0 %v23054_v60  ;;  %16891 = vmatprep.subr.bf16.mxu1 %v23057_v37  ;;  %v16941_v60 = vld [vmem:[#allocation8 + $0x8] sm:$0xf] }
 0x8fe   :  { %v16979_v37 = vrot.slane %v16941_v60, %v16946_v58 }
 0x900   :  { %16400 = vmatpush1.bf16.msra.mxu0 %v23052_v38  ;;  %16892 = vmatpush1.bf16.msra.mxu1 %v23055_v15 }
 0x901   :  { %16401 = vmatprep.subr.bf16.mxu0 %v23060_v40  ;;  %16893 = vmatprep.subr.bf16.mxu1 %v23063_v63  ;;  %v16983_v40 = vrot.slane %v16941_v60, %v16950_v0  ;;  %v16991_v0 = vrot.slane %v16941_v60, %v16958_v16 }
 0x904   :  { %16402 = vmatpush1.bf16.msra.mxu0 %v23058_v9  ;;  %16894 = vmatpush1.bf16.msra.mxu1 %v23061_v44 }
 0x905   :  { %16403 = vmatprep.subr.bf16.mxu0 %v23066_v11  ;;  %16895 = vmatprep.subr.bf16.mxu1 %v23069_v5 }
 0x908   :  { %16404 = vmatpush1.bf16.msra.mxu0 %v23064_v45  ;;  %16896 = vmatpush1.bf16.msra.mxu1 %v23067_v4 }
 0x909   :  { %16405 = vmatprep.subr.bf16.mxu0 %v23072_v31  ;;  %16897 = vmatprep.subr.bf16.mxu1 %v23075_v41 }
 0x90c   :  { %16406 = vmatpush1.bf16.msra.mxu0 %v23070_v49  ;;  %16898 = vmatpush1.bf16.msra.mxu1 %v23073_v18 }
 0x90d   :  { %16407 = vmatprep.subr.bf16.mxu0 %v23078_v50  ;;  %16899 = vmatprep.subr.bf16.mxu1 %v23081_v30 }
 0x910   :  { %16408 = vmatpush1.bf16.msra.mxu0 %v23076_v52  ;;  %16900 = vmatpush1.bf16.msra.mxu1 %v23079_v42 }
 0x911   :  { %16409 = vmatprep.subr.bf16.mxu0 %v23084_v53  ;;  %16901 = vmatprep.subr.bf16.mxu1 %v23087_v54 }
 0x914   :  { %16410 = vmatpush1.bf16.msra.mxu0 %v23082_v59  ;;  %16902 = vmatpush1.bf16.msra.mxu1 %v23085_v21  ;;  %v17034_v59 = vand.u32 127, %v16944_v46 }
 0x915   :  { %16411 = vmatprep.subr.bf16.mxu0 %v23090_v48  ;;  %16903 = vmatprep.subr.bf16.mxu1 %v23093_v36 }
 0x916   :  { %v17037_v21 = vsub.s32 %v17034_v59, %v23475_v51 }
 0x918   :  { %16412 = vmatpush1.bf16.msra.mxu0 %v23088_v47  ;;  %16904 = vmatpush1.bf16.msra.mxu1 %v23091_v32 }
 0x919   :  { %16413 = vmatprep.subr.bf16.mxu0 %v23096_v6  ;;  %16905 = vmatprep.subr.bf16.mxu1 %v23099_v55 }
 0x91c   :  { %16414 = vmatpush1.bf16.msra.mxu0 %v23094_v20  ;;  %16906 = vmatpush1.bf16.msra.mxu1 %v23097_v43 }
 0x91d   :  { %16415 = vmatprep.subr.bf16.mxu0 %v23102_v7  ;;  %16907 = vmatprep.subr.bf16.mxu1 %v23105_v8 }
 0x920   :  { %16416 = vmatpush1.bf16.msra.mxu0 %v23100_v12  ;;  %16908 = vmatpush1.bf16.msra.mxu1 %v23103_v14 }
 0x921   :  { %16417 = vmatprep.subr.bf16.mxu0 %v23108_v17  ;;  %16909 = vmatprep.subr.bf16.mxu1 %v23111_v24 }
 0x924   :  { %16418 = vmatpush1.bf16.msra.mxu0 %v23106_v56  ;;  %16910 = vmatpush1.bf16.msra.mxu1 %v23109_v61 }
 0x925   :  { %16419 = vmatprep.subr.bf16.mxu0 %v23114_v19  ;;  %16911 = vmatprep.subr.bf16.mxu1 %v23117_v22 }
 0x928   :  { %16420 = vmatpush1.bf16.msra.mxu0 %v23112_v57  ;;  %16912 = vmatpush1.bf16.msra.mxu1 %v23115_v23 }
 0x929   :  { %16421 = vmatprep.subr.bf16.mxu0 %v23120_v3  ;;  %16913 = vmatprep.subr.bf16.mxu1 %v23123_v2 }
 0x92c   :  { %16422 = vmatpush1.bf16.msra.mxu0 %v23118_v29  ;;  %16914 = vmatpush1.bf16.msra.mxu1 %v23121_v26 }
 0x92d   :  { %16423 = vmatprep.subr.bf16.mxu0 %v23126_v13  ;;  %16915 = vmatprep.subr.bf16.mxu1 %v23129_v62 }
 0x930   :  { %16424 = vmatpush1.bf16.msra.mxu0 %v23124_v10  ;;  %16916 = vmatpush1.bf16.msra.mxu1 %v23127_v28 }
 0x931   :  { %16425 = vmatprep.subr.bf16.mxu0 %v23132_v27  ;;  %16917 = vmatprep.subr.bf16.mxu1 %v23135_v33 }
 0x934   :  { %16426 = vmatpush1.bf16.msra.mxu0 %v23130_v35  ;;  %16918 = vmatpush1.bf16.msra.mxu1 %v23133_v34 }
 0x937   :  { %16428 = vmatmul.mubr.bf16.vlgmr.msra.gmra.mrb[8].mxu0 %v23456_v39  ;;  %16920 = vmatmul.mubr.bf16.vlgmr.msra.gmra.mrb[8].mxu1 %v23456_v39  ;;  %v16987_v39 = vrot.slane %v16941_v60, %v16954_v1  ;;  %v17030_v1 = vstv %s23609_s3 }
 0xa0a   :  { %v16429_v38 = vpop.f32.mrb[8].mxu0  ;;  %v16921_v15 = vpop.f32.mrb[8].mxu1 }
 0xa0b   :  { %v16936_v63 = vmax.f32 %v16429_v38, 0.0  ;;  %v16431_v9 = vpop.f32.mrb[9].mxu0  ;;  %v16923_v44 = vpop.f32.mrb[9].mxu1  ;;  %v16938_v31 = vmax.f32 %v16921_v15, 0.0 }
 0xa0c   :  { %v16937_v11 = vmax.f32 %v16431_v9, 0.0  ;;  %v16433_v5 = vpop.f32.mrb[10].mxu0  ;;  %v16925_v45 = vpop.f32.mrb[10].mxu1  ;;  %v16939_v50 = vmax.f32 %v16923_v44, 0.0 }
 0xa0d   :  { %v17012_v4 = vmul.f32 %v16979_v37, %v16936_v63  ;;  %v16434_v41 = vpop.f32.mrb[11].mxu0  ;;  %v16926_v49 = vpop.f32.mrb[11].mxu1  ;;  %v17014_v30 = vmul.f32 %v16987_v39, %v16938_v31 }
 0xa0e   :  { %v17013_v18 = vmul.f32 %v16983_v40, %v16937_v11  ;;  %v17015_v42 = vmul.f32 %v16991_v0, %v16939_v50 }
 0xa0f   :  { %v17023_v58 = vadd.f32 %v23544_v25, %v17012_v4 }
 0xa11   :  { %v17024_v52 = vadd.f32 %v17023_v58, %v17013_v18 }
 0xa13   :  { %v17025_v53 = vadd.f32 %v17024_v52, %v17014_v30 }
 0xa15   :  { %v17026_v54 = vadd.f32 %v17025_v53, %v17015_v42 }
 0xa17   :  { %17027 = vadd.xlane.f32.xlu0 %v17026_v54 }
 0xaa4   :  { %v17028_v48 = vpop.xlane.xlu0 %17027 }
 0xaa5   :  { %v17031_v25 = vadd.f32 %v17030_v1, %v17028_v48 }
 0xaa7   :  { %v17038_v16 = vrot.slane %v17031_v25, %v17037_v21 }
 0xaa9   :  { %17041 = vst.msk [vmem:[#allocation9] sm:$0x1] %vm17040_vm0, %v17038_v16 }
 0xaaa   :  { %23214 = shalt.err (!%p23211_p0)
}
 0xaab   :  { %s23215_s5 = scalar_lea.hbm %s23610_s4, 16 }
 0xaac   :  { %p23216_p1 = scmp.ne.s32.totalorder %s23610_s4, %s23215_s5  ;;  %p23219_p2 = scmp.lt.u32.totalorder %s23215_s5, %s23610_s4 }
 0xaae   :  { %p23221_p3 = pnand %p23219_p2, %p23216_p1 }
 0xab0   :  { %23224 = shalt.err (!%p23221_p3)
}
 0xab1   :  { %17051 = dma.vmem_to_hbm [thread:$0]  %s17049_s27, 16, %s23610_s4, [#allocation5]  }
 0xab2   :  { %23229 = dma.done.wait [#allocation5], 16  }
 0xab3   :  { %23230 = vsyncadd [#allocation5], 4294967280 }
 0xab4   :  { %17055 = vsyncpa [#allocation4], 1 }
 0xab5   :  { %17056 = vsyncpa [#allocation7], 1 }
 0xab6   :  { %17057 = vsyncpa [#allocation5], 1 }

</bundles_post_ra>
